<compile_context>
chip_gen: v5e
topology: v5e:2x2
jax: 0.10.0
libtpu: 0.0.40
codegen_flags: <defaults>
</compile_context>

<pallas_src>
import functools

import jax
import jax.numpy as jnp
from jax.experimental import pallas as pl
from jax.experimental.pallas import tpu as pltpu

F32 = jnp.float32
BF16 = jnp.bfloat16
NEG_INF = jnp.float32(-1e9)

_LAYER_PARAM_ORDER = (
    "ln1_g", "ln1_b", "wqkv", "bqkv", "wo", "bo",
    "ln2_g", "ln2_b", "w1", "b1", "w2", "b2",
)


# ----------------------------------------------------------------------------
# shared in-kernel helpers
# ----------------------------------------------------------------------------
def _ln(x, g, b, eps=1e-5):
    mu = jnp.mean(x, axis=-1, keepdims=True)
    xc = x - mu
    var = jnp.mean(xc * xc, axis=-1, keepdims=True)
    return xc * jax.lax.rsqrt(var + eps) * g + b


# ----------------------------------------------------------------------------
# one-shot full-block helpers (tiny operands, grid=(1,))
# ----------------------------------------------------------------------------
def _full_spec(shape):
    n = len(shape)
    return pl.BlockSpec(shape, lambda i, _n=n: (0,) * _n)


def _call(kernel, out_shapes, *args):
    in_specs = [_full_spec(a.shape) for a in args]
    if isinstance(out_shapes, (list, tuple)):
        out_specs = [_full_spec(s.shape) for s in out_shapes]
        out_shapes = tuple(out_shapes)
    else:
        out_specs = _full_spec(out_shapes.shape)
    return pl.pallas_call(
        kernel, grid=(1,), in_specs=in_specs, out_specs=out_specs,
        out_shape=out_shapes,
    )(*args)


# ----------------------------------------------------------------------------
# kernels
# ----------------------------------------------------------------------------
def _matmul_kernel(x_ref, w_ref, o_ref):
    # bf16 MXU matmul, f32 accumulation (used once for the patch embedding).
    o_ref[...] = jnp.dot(x_ref[...].astype(BF16), w_ref[...],
                         preferred_element_type=F32)


def _encoder_stack_kernel(*refs, H, Dh, use_pre_ln):
    """One grid step == one transformer layer; activations stay resident."""
    refs = list(refs)
    x0_ref = refs.pop(0)
    bias_ref = refs.pop(0)
    if use_pre_ln:
        pre_g_ref = refs.pop(0)
        pre_b_ref = refs.pop(0)
    (ln1_g, ln1_b, wqkv, bqkv, wo, bo,
     ln2_g, ln2_b, w1, b1, w2, b2, x_ref) = refs

    D = H * Dh

    @pl.when(pl.program_id(0) == 0)
    def _init():
        x0 = x0_ref[...]
        if use_pre_ln:
            x0 = _ln(x0, pre_g_ref[...], pre_b_ref[...])
        x_ref[...] = x0

    x = x_ref[...]                                   # (N, D) f32, resident
    bias = bias_ref[...]                             # (N, N) additive mask

    # ---- attention block --------------------------------------------------
    h = _ln(x, ln1_g[0], ln1_b[0])
    # fused QKV: one wide MXU pass; attention scale already folded into Wq.
    qkv = jnp.dot(h.astype(BF16), wqkv[0],
                  preferred_element_type=F32) + bqkv[0]        # (N, 3D)

    wo_l = wo[0]                                     # (D, D) bf16, load once
    attn = None
    for hh in range(H):                              # heads via 128-aligned lanes
        q = qkv[:, hh * Dh:(hh + 1) * Dh]
        k = qkv[:, D + hh * Dh:D + (hh + 1) * Dh]
        v = qkv[:, 2 * D + hh * Dh:2 * D + (hh + 1) * Dh]
        s = jnp.einsum("qd,kd->qk", q.astype(BF16), k.astype(BF16),
                       preferred_element_type=F32) + bias      # (N, N)
        m = jnp.max(s, axis=-1, keepdims=True)
        p = jnp.exp(s - m)
        p = p * pl.reciprocal(jnp.sum(p, axis=-1, keepdims=True), approx=True)
        o_h = jnp.dot(p.astype(BF16), v.astype(BF16),
                      preferred_element_type=F32)              # (N, Dh)
        # head concat folded into per-head row-slices of Wo (128-aligned).
        proj_h = jnp.dot(o_h.astype(BF16), wo_l[hh * Dh:(hh + 1) * Dh, :],
                         preferred_element_type=F32)           # (N, D)
        attn = proj_h if attn is None else attn + proj_h

    x = x + attn + bo[0]

    # ---- MLP block ---------------------------------------------------------
    h = _ln(x, ln2_g[0], ln2_b[0])
    h1 = jnp.dot(h.astype(BF16), w1[0], preferred_element_type=F32) + b1[0]
    h1 = h1 * jax.nn.sigmoid(1.702 * h1)                 # quick_gelu (CLIP)
    h2 = jnp.dot(h1.astype(BF16), w2[0], preferred_element_type=F32) + b2[0]

    x_ref[...] = x + h2


def _head_kernel(pv_ref, pt_ref, vg_ref, vb_ref, tg_ref, tb_ref,
                 vproj_ref, tproj_ref, img_o, txt_o, sim_o):
    pv = _ln(pv_ref[...], vg_ref[...], vb_ref[...])
    pt = _ln(pt_ref[...], tg_ref[...], tb_ref[...])
    img = jnp.dot(pv.astype(BF16), vproj_ref[...], preferred_element_type=F32)
    txt = jnp.dot(pt.astype(BF16), tproj_ref[...], preferred_element_type=F32)
    img_n = img * jax.lax.rsqrt(jnp.sum(img * img, axis=-1, keepdims=True))
    txt_n = txt * jax.lax.rsqrt(jnp.sum(txt * txt, axis=-1, keepdims=True))
    img_o[...] = img_n
    txt_o[...] = txt_n
    # cosine similarity = normalized image @ normalized text.T (no logit_scale,
    # matching the reference compute_similarity).
    sim_o[...] = jnp.einsum("bd,cd->bc", img_n, txt_n,
                            preferred_element_type=F32)


# ----------------------------------------------------------------------------
# wrappers
# ----------------------------------------------------------------------------
def matmul_bf16(x, w):
    out = jax.ShapeDtypeStruct((x.shape[0], w.shape[1]), F32)
    return _call(_matmul_kernel, out, x, w)


def encoder_stack(x0, bias, layers, H, Dh, *, pre_ln=None):
    n_layers = layers["ln1_g"].shape[0]
    N, D = x0.shape
    use_pre_ln = pre_ln is not None

    in_arrays = [x0, bias]
    in_specs = [pl.BlockSpec((N, D), lambda l: (0, 0)),
                pl.BlockSpec((N, N), lambda l: (0, 0))]
    if use_pre_ln:
        in_arrays += [pre_ln[0], pre_ln[1]]
        in_specs += [pl.BlockSpec((1, D), lambda l: (0, 0))] * 2
    for name in _LAYER_PARAM_ORDER:
        a = layers[name]
        in_arrays.append(a)
        in_specs.append(
            pl.BlockSpec((1,) + a.shape[1:],
                         lambda l, _nd=a.ndim: (l,) + (0,) * (_nd - 1)))

    kernel = functools.partial(
        _encoder_stack_kernel, H=H, Dh=Dh, use_pre_ln=use_pre_ln)

    return pl.pallas_call(
        kernel,
        grid=(n_layers,),
        in_specs=in_specs,
        out_specs=pl.BlockSpec((N, D), lambda l: (0, 0)),
        out_shape=jax.ShapeDtypeStruct((N, D), F32),
        compiler_params=pltpu.CompilerParams(
            dimension_semantics=("arbitrary",)),
    )(*in_arrays)


def clip_head(pooled_v, pooled_t, vp, tp):
    B = pooled_v.shape[0]
    P = vp["proj"].shape[1]
    outs = (jax.ShapeDtypeStruct((B, P), F32),
            jax.ShapeDtypeStruct((B, P), F32),
            jax.ShapeDtypeStruct((B, B), F32))
    return _call(_head_kernel, outs,
                 pooled_v, pooled_t,
                 vp["post_ln_g"], vp["post_ln_b"],
                 tp["final_ln_g"], tp["final_ln_b"],
                 vp["proj"], tp["proj"])


# ----------------------------------------------------------------------------
# attention bias construction (tiny (B*L, B*L) arrays, built once per call)
# ----------------------------------------------------------------------------
def _block_diag_bias(B, L):
    batch = jnp.repeat(jnp.arange(B), L)
    same = batch[:, None] == batch[None, :]
    return jnp.where(same, jnp.float32(0.0), NEG_INF).astype(F32)


def _text_bias(attention_mask, B, L):
    N = B * L
    batch = jnp.repeat(jnp.arange(B), L)
    same = batch[:, None] == batch[None, :]
    pos = jnp.tile(jnp.arange(L), B)
    causal = pos[None, :] <= pos[:, None]
    key_ok = attention_mask.reshape(N)[None, :] > 0
    allowed = same & causal & key_ok
    return jnp.where(allowed, jnp.float32(0.0), NEG_INF).astype(F32)


# ----------------------------------------------------------------------------
# model glue (reshapes / embedding gathers in plain JAX)
# ----------------------------------------------------------------------------
def vision_encoder(images, p, cfg):
    B, C, Hh, Ww = images.shape
    P = cfg["patch"]
    Hp, Wp = Hh // P, Ww // P
    D = cfg["v_hidden"]
    # non-overlapping patch conv (stride == kernel) == patch matmul
    patches = (images.reshape(B, C, Hp, P, Wp, P)
               .transpose(0, 2, 4, 1, 3, 5)
               .reshape(B * Hp * Wp, C * P * P))
    patch_emb = matmul_bf16(patches, p["patch_w"]).reshape(B, Hp * Wp, D)
    cls = jnp.broadcast_to(p["class_emb"].reshape(1, 1, D), (B, 1, D))
    x = jnp.concatenate([cls, patch_emb], axis=1)
    L = Hp * Wp + 1
    x = (x + p["pos_emb"][None, :, :]).reshape(B * L, D)

    H = cfg["v_heads"]
    Dh = D // H
    bias = _block_diag_bias(B, L)
    x = encoder_stack(x, bias, p["layers"], H, Dh,
                      pre_ln=(p["pre_ln_g"], p["pre_ln_b"]))
    return x.reshape(B, L, D)[:, 0, :]          # CLS pooled (post-LN in head)


def text_encoder(input_ids, attention_mask, p, cfg):
    B, L = input_ids.shape
    D = cfg["t_hidden"]
    # TODO(synk): token-embedding row gather stays in XLA (data-dependent gather).
    tok = jnp.take(p["tok_emb"], input_ids, axis=0)
    x = (tok + p["pos_emb"][None, :L, :]).reshape(B * L, D)

    H = cfg["t_heads"]
    Dh = D // H
    bias = _text_bias(attention_mask, B, L)
    x = encoder_stack(x, bias, p["layers"], H, Dh, pre_ln=None)
    x = x.reshape(B, L, D)
    # TODO(synk): HF CLIP pools at the eos_token_id position; we pool at the
    # last attended token (where EOT sits after left-to-right padding).
    eot = attention_mask.sum(axis=-1).astype(jnp.int32) - 1
    pooled = jnp.take_along_axis(x, eot[:, None, None], axis=1)[:, 0, :]
    return pooled                                         # final-LN in head


def clip_forward(images, input_ids, attention_mask, params, cfg):
    pooled_v = vision_encoder(images, params["vision"], cfg)
    pooled_t = text_encoder(input_ids, attention_mask, params["text"], cfg)
    return clip_head(pooled_v, pooled_t, params["vision"], params["text"])


# ----------------------------------------------------------------------------
# deterministic synthetic parameters (stacked per-layer, bf16 matmul weights)
# ----------------------------------------------------------------------------
def init_params(key, cfg):
    keys = iter(jax.random.split(key, 64))

    def nrm(shape, std=0.02, dtype=F32):
        return (jax.random.normal(next(keys), shape, F32) * std).astype(dtype)

    def init_tower_layers(D, M, NL, n_heads):
        Dh = D // n_heads
        scale = Dh ** -0.5
        wq = nrm((NL, D, D)) * scale          # fold attention scale into Wq
        wk = nrm((NL, D, D))
        wv = nrm((NL, D, D))
        return dict(
            ln1_g=jnp.ones((NL, 1, D), F32), ln1_b=jnp.zeros((NL, 1, D), F32),
            wqkv=jnp.concatenate([wq, wk, wv], axis=-1).astype(BF16),
            bqkv=jnp.zeros((NL, 1, 3 * D), F32),
            wo=nrm((NL, D, D), dtype=BF16), bo=jnp.zeros((NL, 1, D), F32),
            ln2_g=jnp.ones((NL, 1, D), F32), ln2_b=jnp.zeros((NL, 1, D), F32),
            w1=nrm((NL, D, M), dtype=BF16), b1=jnp.zeros((NL, 1, M), F32),
            w2=nrm((NL, M, D), dtype=BF16), b2=jnp.zeros((NL, 1, D), F32),
        )

    Dv, Dt = cfg["v_hidden"], cfg["t_hidden"]
    P, C = cfg["patch"], 3
    n_pos_v = (cfg["image_size"] // P) ** 2 + 1
    vision = dict(
        patch_w=nrm((C * P * P, Dv), dtype=BF16),
        class_emb=nrm((Dv,)),
        pos_emb=nrm((n_pos_v, Dv)),
        pre_ln_g=jnp.ones((1, Dv), F32), pre_ln_b=jnp.zeros((1, Dv), F32),
        layers=init_tower_layers(Dv, cfg["v_mlp"], cfg["v_layers"], cfg["v_heads"]),
        post_ln_g=jnp.ones((1, Dv), F32), post_ln_b=jnp.zeros((1, Dv), F32),
        proj=nrm((Dv, cfg["proj"]), dtype=BF16),
    )
    text = dict(
        tok_emb=nrm((cfg["vocab"], Dt)),
        pos_emb=nrm((cfg["max_pos"], Dt)),
        layers=init_tower_layers(Dt, cfg["t_mlp"], cfg["t_layers"], cfg["t_heads"]),
        final_ln_g=jnp.ones((1, Dt), F32), final_ln_b=jnp.zeros((1, Dt), F32),
        proj=nrm((Dt, cfg["proj"]), dtype=BF16),
    )
    return dict(vision=vision, text=text)


# ----------------------------------------------------------------------------
if __name__ == "__main__":
    # lane-dense scaled-down CLIP: hidden / head-dim / MLP / proj are
    # multiples of 128 -> all in-kernel lane slices are 128-aligned.
    cfg = dict(
        image_size=16, patch=8,
        v_hidden=256, v_heads=2, v_layers=2, v_mlp=512,
        t_hidden=256, t_heads=2, t_layers=2, t_mlp=512,
        vocab=128, max_pos=8, proj=128,
    )
    B, L = 2, 8
    key = jax.random.PRNGKey(0)
    k_img, k_ids, k_par = jax.random.split(key, 3)

    images = jax.random.normal(
        k_img, (B, 3, cfg["image_size"], cfg["image_size"]), F32)
    input_ids = jax.random.randint(k_ids, (B, L), 0, cfg["vocab"], jnp.int32)
    attention_mask = jnp.array([[1] * L, [1] * (L - 2) + [0] * 2], jnp.int32)

    params = init_params(k_par, cfg)

    fwd = jax.jit(functools.partial(clip_forward, cfg=cfg))
    img_emb, txt_emb, sim = fwd(images, input_ids, attention_mask, params)
    jax.block_until_ready((img_emb, txt_emb, sim))

    assert img_emb.shape == (B, cfg["proj"])
    assert txt_emb.shape == (B, cfg["proj"])
    assert sim.shape == (B, B)
    assert bool(jnp.all(jnp.isfinite(img_emb)))
    assert bool(jnp.all(jnp.isfinite(txt_emb)))
    assert bool(jnp.all(jnp.isfinite(sim)))
    # embeddings are unit-norm
    assert bool(jnp.allclose(jnp.sum(img_emb * img_emb, -1), 1.0, atol=1e-3))
    assert bool(jnp.allclose(jnp.sum(txt_emb * txt_emb, -1), 1.0, atol=1e-3))

    print("KERNEL_OK")
</pallas_src>

<mosaic_0001>
module attributes {stable_mosaic.version = 11 : i64} {
  func.func @_matmul_kernel(%arg0: i32, %arg1: memref<8x192xf32, #tpu.memory_space<vmem>>, %arg2: memref<192x256xbf16, #tpu.memory_space<vmem>>, %arg3: memref<8x256xf32, #tpu.memory_space<vmem>>) attributes {dimension_semantics = [#tpu.dimension_semantics<arbitrary>], iteration_bounds = array<i64: 1>, scalar_prefetch = 0 : i64, scratch_operands = 0 : i64, tpu.core_type = #tpu.core_type<tc>, window_params = [{pipeline_mode = #tpu.pipeline_mode<synchronous>, transform_indices = @transform_0, window_bounds = array<i64: 8, 192>}, {pipeline_mode = #tpu.pipeline_mode<synchronous>, transform_indices = @transform_1, window_bounds = array<i64: 192, 256>}, {pipeline_mode = #tpu.pipeline_mode<synchronous>, transform_indices = @transform_2, window_bounds = array<i64: 8, 256>}]} {
    %c0 = arith.constant 0 : index
    %c0_0 = arith.constant 0 : index
    %0 = vector.load %arg1[%c0, %c0_0] : memref<8x192xf32, #tpu.memory_space<vmem>>, vector<8x192xf32>
    %1 = arith.truncf %0 : vector<8x192xf32> to vector<8x192xbf16>
    %c0_1 = arith.constant 0 : index
    %c0_2 = arith.constant 0 : index
    %2 = vector.load %arg2[%c0_1, %c0_2] : memref<192x256xbf16, #tpu.memory_space<vmem>>, vector<192x256xbf16>
    %cst = arith.constant dense<0.000000e+00> : vector<8x256xf32>
    %3 = tpu.matmul %1, %2, %cst {dimension_numbers = #tpu.dot_dimension_numbers<[1], [0], [0], [1], [0, 0, 1, 1], [], []>} : vector<8x192xbf16>, vector<192x256xbf16>, vector<8x256xf32> -> vector<8x256xf32>
    %c0_3 = arith.constant 0 : index
    %c0_4 = arith.constant 0 : index
    %4 = vector.load %arg3[%c0_3, %c0_4] : memref<8x256xf32, #tpu.memory_space<vmem>>, vector<8x256xf32>
    tpu.vector_store %arg3[%c0_3, %c0_4], %3 {strides = array<i32>} : memref<8x256xf32, #tpu.memory_space<vmem>>, vector<8x256xf32>,
    return
  }
  func.func @transform_0(%arg0: i32) -> (i32, i32) {
    %c0_i32 = arith.constant 0 : i32
    %c0_i32_0 = arith.constant 0 : i32
    %c0_i32_1 = arith.constant 0 : i32
    return %c0_i32, %c0_i32_0 : i32, i32
  }
  func.func @transform_1(%arg0: i32) -> (i32, i32) {
    %c0_i32 = arith.constant 0 : i32
    %c0_i32_0 = arith.constant 0 : i32
    %c0_i32_1 = arith.constant 0 : i32
    return %c0_i32, %c0_i32_0 : i32, i32
  }
  func.func @transform_2(%arg0: i32) -> (i32, i32) {
    %c0_i32 = arith.constant 0 : i32
    %c0_i32_0 = arith.constant 0 : i32
    %c0_i32_1 = arith.constant 0 : i32
    return %c0_i32, %c0_i32_0 : i32, i32
  }
}

module attributes {stable_mosaic.version = 11 : i64} {
  func.func @_encoder_stack_kernel(%arg0: i32, %arg1: memref<10x256xf32, #tpu.memory_space<vmem>>, %arg2: memref<10x10xf32, #tpu.memory_space<vmem>>, %arg3: memref<1x256xf32, #tpu.memory_space<vmem>>, %arg4: memref<1x256xf32, #tpu.memory_space<vmem>>, %arg5: memref<1x1x256xf32, #tpu.memory_space<vmem>>, %arg6: memref<1x1x256xf32, #tpu.memory_space<vmem>>, %arg7: memref<1x256x768xbf16, #tpu.memory_space<vmem>>, %arg8: memref<1x1x768xf32, #tpu.memory_space<vmem>>, %arg9: memref<1x256x256xbf16, #tpu.memory_space<vmem>>, %arg10: memref<1x1x256xf32, #tpu.memory_space<vmem>>, %arg11: memref<1x1x256xf32, #tpu.memory_space<vmem>>, %arg12: memref<1x1x256xf32, #tpu.memory_space<vmem>>, %arg13: memref<1x256x512xbf16, #tpu.memory_space<vmem>>, %arg14: memref<1x1x512xf32, #tpu.memory_space<vmem>>, %arg15: memref<1x512x256xbf16, #tpu.memory_space<vmem>>, %arg16: memref<1x1x256xf32, #tpu.memory_space<vmem>>, %arg17: memref<10x256xf32, #tpu.memory_space<vmem>>) attributes {dimension_semantics = [#tpu.dimension_semantics<arbitrary>], iteration_bounds = array<i64: 2>, scalar_prefetch = 0 : i64, scratch_operands = 0 : i64, tpu.core_type = #tpu.core_type<tc>, window_params = [{pipeline_mode = #tpu.pipeline_mode<synchronous>, transform_indices = @transform_0, window_bounds = array<i64: 10, 256>}, {pipeline_mode = #tpu.pipeline_mode<synchronous>, transform_indices = @transform_1, window_bounds = array<i64: 10, 10>}, {pipeline_mode = #tpu.pipeline_mode<synchronous>, transform_indices = @transform_2, window_bounds = array<i64: 1, 256>}, {pipeline_mode = #tpu.pipeline_mode<synchronous>, transform_indices = @transform_3, window_bounds = array<i64: 1, 256>}, {transform_indices = @transform_4, window_bounds = array<i64: 1, 1, 256>}, {transform_indices = @transform_5, window_bounds = array<i64: 1, 1, 256>}, {transform_indices = @transform_6, window_bounds = array<i64: 1, 256, 768>}, {transform_indices = @transform_7, window_bounds = array<i64: 1, 1, 768>}, {transform_indices = @transform_8, window_bounds = array<i64: 1, 256, 256>}, {transform_indices = @transform_9, window_bounds = array<i64: 1, 1, 256>}, {transform_indices = @transform_10, window_bounds = array<i64: 1, 1, 256>}, {transform_indices = @transform_11, window_bounds = array<i64: 1, 1, 256>}, {transform_indices = @transform_12, window_bounds = array<i64: 1, 256, 512>}, {transform_indices = @transform_13, window_bounds = array<i64: 1, 1, 512>}, {transform_indices = @transform_14, window_bounds = array<i64: 1, 512, 256>}, {transform_indices = @transform_15, window_bounds = array<i64: 1, 1, 256>}, {pipeline_mode = #tpu.pipeline_mode<synchronous>, transform_indices = @transform_16, window_bounds = array<i64: 10, 256>}]} {
    %c0_i32 = arith.constant 0 : i32
    %0 = arith.cmpi eq, %arg0, %c0_i32 : i32
    %1 = arith.extui %0 : i1 to i32
    %c0_i32_0 = arith.constant 0 : i32
    %2 = arith.cmpi ne, %1, %c0_i32_0 : i32
    scf.if %2 {
      %c0_66 = arith.constant 0 : index
      %c0_67 = arith.constant 0 : index
      %141 = vector.load %arg1[%c0_66, %c0_67] : memref<10x256xf32, #tpu.memory_space<vmem>>, vector<10x256xf32>
      %c0_68 = arith.constant 0 : index
      %c0_69 = arith.constant 0 : index
      %142 = vector.load %arg3[%c0_68, %c0_69] : memref<1x256xf32, #tpu.memory_space<vmem>>, vector<1x256xf32>
      %c0_70 = arith.constant 0 : index
      %c0_71 = arith.constant 0 : index
      %143 = vector.load %arg4[%c0_70, %c0_71] : memref<1x256xf32, #tpu.memory_space<vmem>>, vector<1x256xf32>
      %cst_72 = arith.constant dense<0.000000e+00> : vector<10xf32>
      %144 = vector.multi_reduction <add>, %141, %cst_72 [1] : vector<10x256xf32> to vector<10xf32>
      %145 = vector.shape_cast %144 : vector<10xf32> to vector<10x1xf32>
      %cst_73 = arith.constant 2.560000e+02 : f32
      %146 = vector.broadcast %cst_73 : f32 to vector<10x1xf32>
      %147 = arith.divf %145, %146 : vector<10x1xf32>
      %148 = vector.broadcast %147 : vector<10x1xf32> to vector<10x256xf32>
      %149 = arith.subf %141, %148 : vector<10x256xf32>
      %150 = arith.mulf %149, %149 : vector<10x256xf32>
      %cst_74 = arith.constant dense<0.000000e+00> : vector<10xf32>
      %151 = vector.multi_reduction <add>, %150, %cst_74 [1] : vector<10x256xf32> to vector<10xf32>
      %152 = vector.shape_cast %151 : vector<10xf32> to vector<10x1xf32>
      %cst_75 = arith.constant 2.560000e+02 : f32
      %153 = vector.broadcast %cst_75 : f32 to vector<10x1xf32>
      %154 = arith.divf %152, %153 : vector<10x1xf32>
      %cst_76 = arith.constant 9.99999974E-6 : f32
      %155 = vector.broadcast %cst_76 : f32 to vector<10x1xf32>
      %156 = arith.addf %154, %155 : vector<10x1xf32>
      %157 = math.rsqrt %156 : vector<10x1xf32>
      %158 = vector.broadcast %157 : vector<10x1xf32> to vector<10x256xf32>
      %159 = arith.mulf %149, %158 : vector<10x256xf32>
      %160 = vector.broadcast %142 : vector<1x256xf32> to vector<10x256xf32>
      %161 = arith.mulf %159, %160 : vector<10x256xf32>
      %162 = vector.broadcast %143 : vector<1x256xf32> to vector<10x256xf32>
      %163 = arith.addf %161, %162 : vector<10x256xf32>
      %c0_77 = arith.constant 0 : index
      %c0_78 = arith.constant 0 : index
      %164 = vector.load %arg17[%c0_77, %c0_78] : memref<10x256xf32, #tpu.memory_space<vmem>>, vector<10x256xf32>
      tpu.vector_store %arg17[%c0_77, %c0_78], %163 {strides = array<i32>} : memref<10x256xf32, #tpu.memory_space<vmem>>, vector<10x256xf32>,
    } else {
    }
    %c0 = arith.constant 0 : index
    %c0_1 = arith.constant 0 : index
    %3 = vector.load %arg17[%c0, %c0_1] : memref<10x256xf32, #tpu.memory_space<vmem>>, vector<10x256xf32>
    %c0_2 = arith.constant 0 : index
    %c0_3 = arith.constant 0 : index
    %4 = vector.load %arg2[%c0_2, %c0_3] : memref<10x10xf32, #tpu.memory_space<vmem>>, vector<10x10xf32>
    %c0_4 = arith.constant 0 : index
    %c0_5 = arith.constant 0 : index
    %c0_6 = arith.constant 0 : index
    %5 = vector.load %arg5[%c0_4, %c0_5, %c0_6] : memref<1x1x256xf32, #tpu.memory_space<vmem>>, vector<1x1x256xf32>
    %6 = vector.shape_cast %5 : vector<1x1x256xf32> to vector<1x256xf32>
    %c0_7 = arith.constant 0 : index
    %c0_8 = arith.constant 0 : index
    %c0_9 = arith.constant 0 : index
    %7 = vector.load %arg6[%c0_7, %c0_8, %c0_9] : memref<1x1x256xf32, #tpu.memory_space<vmem>>, vector<1x1x256xf32>
    %8 = vector.shape_cast %7 : vector<1x1x256xf32> to vector<1x256xf32>
    %cst = arith.constant dense<0.000000e+00> : vector<10xf32>
    %9 = vector.multi_reduction <add>, %3, %cst [1] : vector<10x256xf32> to vector<10xf32>
    %10 = vector.shape_cast %9 : vector<10xf32> to vector<10x1xf32>
    %cst_10 = arith.constant 2.560000e+02 : f32
    %11 = vector.broadcast %cst_10 : f32 to vector<10x1xf32>
    %12 = arith.divf %10, %11 : vector<10x1xf32>
    %13 = vector.broadcast %12 : vector<10x1xf32> to vector<10x256xf32>
    %14 = arith.subf %3, %13 : vector<10x256xf32>
    %15 = arith.mulf %14, %14 : vector<10x256xf32>
    %cst_11 = arith.constant dense<0.000000e+00> : vector<10xf32>
    %16 = vector.multi_reduction <add>, %15, %cst_11 [1] : vector<10x256xf32> to vector<10xf32>
    %17 = vector.shape_cast %16 : vector<10xf32> to vector<10x1xf32>
    %cst_12 = arith.constant 2.560000e+02 : f32
    %18 = vector.broadcast %cst_12 : f32 to vector<10x1xf32>
    %19 = arith.divf %17, %18 : vector<10x1xf32>
    %cst_13 = arith.constant 9.99999974E-6 : f32
    %20 = vector.broadcast %cst_13 : f32 to vector<10x1xf32>
    %21 = arith.addf %19, %20 : vector<10x1xf32>
    %22 = math.rsqrt %21 : vector<10x1xf32>
    %23 = vector.broadcast %22 : vector<10x1xf32> to vector<10x256xf32>
    %24 = arith.mulf %14, %23 : vector<10x256xf32>
    %25 = vector.broadcast %6 : vector<1x256xf32> to vector<10x256xf32>
    %26 = arith.mulf %24, %25 : vector<10x256xf32>
    %27 = vector.broadcast %8 : vector<1x256xf32> to vector<10x256xf32>
    %28 = arith.addf %26, %27 : vector<10x256xf32>
    %29 = arith.truncf %28 : vector<10x256xf32> to vector<10x256xbf16>
    %c0_14 = arith.constant 0 : index
    %c0_15 = arith.constant 0 : index
    %c0_16 = arith.constant 0 : index
    %30 = vector.load %arg7[%c0_14, %c0_15, %c0_16] : memref<1x256x768xbf16, #tpu.memory_space<vmem>>, vector<1x256x768xbf16>
    %31 = vector.shape_cast %30 : vector<1x256x768xbf16> to vector<256x768xbf16>
    %cst_17 = arith.constant dense<0.000000e+00> : vector<10x768xf32>
    %32 = tpu.matmul %29, %31, %cst_17 {dimension_numbers = #tpu.dot_dimension_numbers<[1], [0], [0], [1], [0, 0, 1, 1], [], []>} : vector<10x256xbf16>, vector<256x768xbf16>, vector<10x768xf32> -> vector<10x768xf32>
    %c0_18 = arith.constant 0 : index
    %c0_19 = arith.constant 0 : index
    %c0_20 = arith.constant 0 : index
    %33 = vector.load %arg8[%c0_18, %c0_19, %c0_20] : memref<1x1x768xf32, #tpu.memory_space<vmem>>, vector<1x1x768xf32>
    %34 = vector.shape_cast %33 : vector<1x1x768xf32> to vector<1x768xf32>
    %35 = vector.broadcast %34 : vector<1x768xf32> to vector<10x768xf32>
    %36 = arith.addf %32, %35 : vector<10x768xf32>
    %c0_21 = arith.constant 0 : index
    %c0_22 = arith.constant 0 : index
    %c0_23 = arith.constant 0 : index
    %37 = vector.load %arg9[%c0_21, %c0_22, %c0_23] : memref<1x256x256xbf16, #tpu.memory_space<vmem>>, vector<1x256x256xbf16>
    %38 = vector.shape_cast %37 : vector<1x256x256xbf16> to vector<256x256xbf16>
    %39 = vector.extract_strided_slice %36 {offsets = [0, 0], sizes = [10, 128], strides = [1, 1]} : vector<10x768xf32> to vector<10x128xf32>
    %40 = vector.extract_strided_slice %36 {offsets = [0, 256], sizes = [10, 128], strides = [1, 1]} : vector<10x768xf32> to vector<10x128xf32>
    %41 = vector.extract_strided_slice %36 {offsets = [0, 512], sizes = [10, 128], strides = [1, 1]} : vector<10x768xf32> to vector<10x128xf32>
    %42 = arith.truncf %39 : vector<10x128xf32> to vector<10x128xbf16>
    %43 = arith.truncf %40 : vector<10x128xf32> to vector<10x128xbf16>
    "tpu.trace_start"() <{level = 10 : i32, message = "qd,kd->qk"}> : () -> ()
    %cst_24 = arith.constant dense<0.000000e+00> : vector<10x10xf32>
    %44 = tpu.matmul %42, %43, %cst_24 {dimension_numbers = #tpu.dot_dimension_numbers<[1], [1], [0], [0], [0, 0, 1, 0], [], []>} : vector<10x128xbf16>, vector<10x128xbf16>, vector<10x10xf32> -> vector<10x10xf32>
    "tpu.trace_stop"() : () -> ()
    %45 = arith.addf %44, %4 : vector<10x10xf32>
    %cst_25 = arith.constant dense<0xFF800000> : vector<10xf32>
    %46 = vector.multi_reduction <maximumf>, %45, %cst_25 [1] : vector<10x10xf32> to vector<10xf32>
    %47 = vector.shape_cast %46 : vector<10xf32> to vector<10x1xf32>
    %48 = vector.broadcast %47 : vector<10x1xf32> to vector<10x10xf32>
    %49 = arith.subf %45, %48 : vector<10x10xf32>
    %50 = math.exp %49 : vector<10x10xf32>
    %cst_26 = arith.constant dense<0.000000e+00> : vector<10xf32>
    %51 = vector.multi_reduction <add>, %50, %cst_26 [1] : vector<10x10xf32> to vector<10xf32>
    %52 = vector.shape_cast %51 : vector<10xf32> to vector<10x1xf32>
    %53 = tpu.reciprocal %52 {approx = true} : vector<10x1xf32> -> vector<10x1xf32>
    %54 = vector.broadcast %53 : vector<10x1xf32> to vector<10x10xf32>
    %55 = arith.mulf %50, %54 : vector<10x10xf32>
    %56 = arith.truncf %55 : vector<10x10xf32> to vector<10x10xbf16>
    %57 = arith.truncf %41 : vector<10x128xf32> to vector<10x128xbf16>
    %cst_27 = arith.constant dense<0.000000e+00> : vector<10x128xf32>
    %58 = tpu.matmul %56, %57, %cst_27 {dimension_numbers = #tpu.dot_dimension_numbers<[1], [0], [0], [1], [0, 0, 1, 1], [], []>} : vector<10x10xbf16>, vector<10x128xbf16>, vector<10x128xf32> -> vector<10x128xf32>
    %59 = arith.truncf %58 : vector<10x128xf32> to vector<10x128xbf16>
    %60 = vector.extract_strided_slice %38 {offsets = [0, 0], sizes = [128, 256], strides = [1, 1]} : vector<256x256xbf16> to vector<128x256xbf16>
    %cst_28 = arith.constant dense<0.000000e+00> : vector<10x256xf32>
    %61 = tpu.matmul %59, %60, %cst_28 {dimension_numbers = #tpu.dot_dimension_numbers<[1], [0], [0], [1], [0, 0, 1, 1], [], []>} : vector<10x128xbf16>, vector<128x256xbf16>, vector<10x256xf32> -> vector<10x256xf32>
    %62 = vector.extract_strided_slice %36 {offsets = [0, 128], sizes = [10, 128], strides = [1, 1]} : vector<10x768xf32> to vector<10x128xf32>
    %63 = vector.extract_strided_slice %36 {offsets = [0, 384], sizes = [10, 128], strides = [1, 1]} : vector<10x768xf32> to vector<10x128xf32>
    %64 = vector.extract_strided_slice %36 {offsets = [0, 640], sizes = [10, 128], strides = [1, 1]} : vector<10x768xf32> to vector<10x128xf32>
    %65 = arith.truncf %62 : vector<10x128xf32> to vector<10x128xbf16>
    %66 = arith.truncf %63 : vector<10x128xf32> to vector<10x128xbf16>
    "tpu.trace_start"() <{level = 10 : i32, message = "qd,kd->qk"}> : () -> ()
    %cst_29 = arith.constant dense<0.000000e+00> : vector<10x10xf32>
    %67 = tpu.matmul %65, %66, %cst_29 {dimension_numbers = #tpu.dot_dimension_numbers<[1], [1], [0], [0], [0, 0, 1, 0], [], []>} : vector<10x128xbf16>, vector<10x128xbf16>, vector<10x10xf32> -> vector<10x10xf32>
    "tpu.trace_stop"() : () -> ()
    %68 = arith.addf %67, %4 : vector<10x10xf32>
    %cst_30 = arith.constant dense<0xFF800000> : vector<10xf32>
    %69 = vector.multi_reduction <maximumf>, %68, %cst_30 [1] : vector<10x10xf32> to vector<10xf32>
    %70 = vector.shape_cast %69 : vector<10xf32> to vector<10x1xf32>
    %71 = vector.broadcast %70 : vector<10x1xf32> to vector<10x10xf32>
    %72 = arith.subf %68, %71 : vector<10x10xf32>
    %73 = math.exp %72 : vector<10x10xf32>
    %cst_31 = arith.constant dense<0.000000e+00> : vector<10xf32>
    %74 = vector.multi_reduction <add>, %73, %cst_31 [1] : vector<10x10xf32> to vector<10xf32>
    %75 = vector.shape_cast %74 : vector<10xf32> to vector<10x1xf32>
    %76 = tpu.reciprocal %75 {approx = true} : vector<10x1xf32> -> vector<10x1xf32>
    %77 = vector.broadcast %76 : vector<10x1xf32> to vector<10x10xf32>
    %78 = arith.mulf %73, %77 : vector<10x10xf32>
    %79 = arith.truncf %78 : vector<10x10xf32> to vector<10x10xbf16>
    %80 = arith.truncf %64 : vector<10x128xf32> to vector<10x128xbf16>
    %cst_32 = arith.constant dense<0.000000e+00> : vector<10x128xf32>
    %81 = tpu.matmul %79, %80, %cst_32 {dimension_numbers = #tpu.dot_dimension_numbers<[1], [0], [0], [1], [0, 0, 1, 1], [], []>} : vector<10x10xbf16>, vector<10x128xbf16>, vector<10x128xf32> -> vector<10x128xf32>
    %82 = arith.truncf %81 : vector<10x128xf32> to vector<10x128xbf16>
    %83 = vector.extract_strided_slice %38 {offsets = [128, 0], sizes = [128, 256], strides = [1, 1]} : vector<256x256xbf16> to vector<128x256xbf16>
    %cst_33 = arith.constant dense<0.000000e+00> : vector<10x256xf32>
    %84 = tpu.matmul %82, %83, %cst_33 {dimension_numbers = #tpu.dot_dimension_numbers<[1], [0], [0], [1], [0, 0, 1, 1], [], []>} : vector<10x128xbf16>, vector<128x256xbf16>, vector<10x256xf32> -> vector<10x256xf32>
    %85 = arith.addf %61, %84 : vector<10x256xf32>
    %86 = arith.addf %3, %85 : vector<10x256xf32>
    %c0_34 = arith.constant 0 : index
    %c0_35 = arith.constant 0 : index
    %c0_36 = arith.constant 0 : index
    %87 = vector.load %arg10[%c0_34, %c0_35, %c0_36] : memref<1x1x256xf32, #tpu.memory_space<vmem>>, vector<1x1x256xf32>
    %88 = vector.shape_cast %87 : vector<1x1x256xf32> to vector<1x256xf32>
    %89 = vector.broadcast %88 : vector<1x256xf32> to vector<10x256xf32>
    %90 = arith.addf %86, %89 : vector<10x256xf32>
    %c0_37 = arith.constant 0 : index
    %c0_38 = arith.constant 0 : index
    %c0_39 = arith.constant 0 : index
    %91 = vector.load %arg11[%c0_37, %c0_38, %c0_39] : memref<1x1x256xf32, #tpu.memory_space<vmem>>, vector<1x1x256xf32>
    %92 = vector.shape_cast %91 : vector<1x1x256xf32> to vector<1x256xf32>
    %c0_40 = arith.constant 0 : index
    %c0_41 = arith.constant 0 : index
    %c0_42 = arith.constant 0 : index
    %93 = vector.load %arg12[%c0_40, %c0_41, %c0_42] : memref<1x1x256xf32, #tpu.memory_space<vmem>>, vector<1x1x256xf32>
    %94 = vector.shape_cast %93 : vector<1x1x256xf32> to vector<1x256xf32>
    %cst_43 = arith.constant dense<0.000000e+00> : vector<10xf32>
    %95 = vector.multi_reduction <add>, %90, %cst_43 [1] : vector<10x256xf32> to vector<10xf32>
    %96 = vector.shape_cast %95 : vector<10xf32> to vector<10x1xf32>
    %cst_44 = arith.constant 2.560000e+02 : f32
    %97 = vector.broadcast %cst_44 : f32 to vector<10x1xf32>
    %98 = arith.divf %96, %97 : vector<10x1xf32>
    %99 = vector.broadcast %98 : vector<10x1xf32> to vector<10x256xf32>
    %100 = arith.subf %90, %99 : vector<10x256xf32>
    %101 = arith.mulf %100, %100 : vector<10x256xf32>
    %cst_45 = arith.constant dense<0.000000e+00> : vector<10xf32>
    %102 = vector.multi_reduction <add>, %101, %cst_45 [1] : vector<10x256xf32> to vector<10xf32>
    %103 = vector.shape_cast %102 : vector<10xf32> to vector<10x1xf32>
    %cst_46 = arith.constant 2.560000e+02 : f32
    %104 = vector.broadcast %cst_46 : f32 to vector<10x1xf32>
    %105 = arith.divf %103, %104 : vector<10x1xf32>
    %cst_47 = arith.constant 9.99999974E-6 : f32
    %106 = vector.broadcast %cst_47 : f32 to vector<10x1xf32>
    %107 = arith.addf %105, %106 : vector<10x1xf32>
    %108 = math.rsqrt %107 : vector<10x1xf32>
    %109 = vector.broadcast %108 : vector<10x1xf32> to vector<10x256xf32>
    %110 = arith.mulf %100, %109 : vector<10x256xf32>
    %111 = vector.broadcast %92 : vector<1x256xf32> to vector<10x256xf32>
    %112 = arith.mulf %110, %111 : vector<10x256xf32>
    %113 = vector.broadcast %94 : vector<1x256xf32> to vector<10x256xf32>
    %114 = arith.addf %112, %113 : vector<10x256xf32>
    %115 = arith.truncf %114 : vector<10x256xf32> to vector<10x256xbf16>
    %c0_48 = arith.constant 0 : index
    %c0_49 = arith.constant 0 : index
    %c0_50 = arith.constant 0 : index
    %116 = vector.load %arg13[%c0_48, %c0_49, %c0_50] : memref<1x256x512xbf16, #tpu.memory_space<vmem>>, vector<1x256x512xbf16>
    %117 = vector.shape_cast %116 : vector<1x256x512xbf16> to vector<256x512xbf16>
    %cst_51 = arith.constant dense<0.000000e+00> : vector<10x512xf32>
    %118 = tpu.matmul %115, %117, %cst_51 {dimension_numbers = #tpu.dot_dimension_numbers<[1], [0], [0], [1], [0, 0, 1, 1], [], []>} : vector<10x256xbf16>, vector<256x512xbf16>, vector<10x512xf32> -> vector<10x512xf32>
    %c0_52 = arith.constant 0 : index
    %c0_53 = arith.constant 0 : index
    %c0_54 = arith.constant 0 : index
    %119 = vector.load %arg14[%c0_52, %c0_53, %c0_54] : memref<1x1x512xf32, #tpu.memory_space<vmem>>, vector<1x1x512xf32>
    %120 = vector.shape_cast %119 : vector<1x1x512xf32> to vector<1x512xf32>
    %121 = vector.broadcast %120 : vector<1x512xf32> to vector<10x512xf32>
    %122 = arith.addf %118, %121 : vector<10x512xf32>
    %cst_55 = arith.constant 1.702000e+00 : f32
    %123 = vector.broadcast %cst_55 : f32 to vector<10x512xf32>
    %124 = arith.mulf %123, %122 : vector<10x512xf32>
    %125 = arith.negf %124 : vector<10x512xf32>
    %126 = math.exp %125 : vector<10x512xf32>
    %cst_56 = arith.constant 1.000000e+00 : f32
    %127 = vector.broadcast %cst_56 : f32 to vector<10x512xf32>
    %128 = arith.addf %127, %126 : vector<10x512xf32>
    %129 = arith.divf %127, %128 : vector<10x512xf32>
    %130 = arith.mulf %122, %129 : vector<10x512xf32>
    %131 = arith.truncf %130 : vector<10x512xf32> to vector<10x512xbf16>
    %c0_57 = arith.constant 0 : index
    %c0_58 = arith.constant 0 : index
    %c0_59 = arith.constant 0 : index
    %132 = vector.load %arg15[%c0_57, %c0_58, %c0_59] : memref<1x512x256xbf16, #tpu.memory_space<vmem>>, vector<1x512x256xbf16>
    %133 = vector.shape_cast %132 : vector<1x512x256xbf16> to vector<512x256xbf16>
    %cst_60 = arith.constant dense<0.000000e+00> : vector<10x256xf32>
    %134 = tpu.matmul %131, %133, %cst_60 {dimension_numbers = #tpu.dot_dimension_numbers<[1], [0], [0], [1], [0, 0, 1, 1], [], []>} : vector<10x512xbf16>, vector<512x256xbf16>, vector<10x256xf32> -> vector<10x256xf32>
    %c0_61 = arith.constant 0 : index
    %c0_62 = arith.constant 0 : index
    %c0_63 = arith.constant 0 : index
    %135 = vector.load %arg16[%c0_61, %c0_62, %c0_63] : memref<1x1x256xf32, #tpu.memory_space<vmem>>, vector<1x1x256xf32>
    %136 = vector.shape_cast %135 : vector<1x1x256xf32> to vector<1x256xf32>
    %137 = vector.broadcast %136 : vector<1x256xf32> to vector<10x256xf32>
    %138 = arith.addf %134, %137 : vector<10x256xf32>
    %139 = arith.addf %90, %138 : vector<10x256xf32>
    %c0_64 = arith.constant 0 : index
    %c0_65 = arith.constant 0 : index
    %140 = vector.load %arg17[%c0_64, %c0_65] : memref<10x256xf32, #tpu.memory_space<vmem>>, vector<10x256xf32>
    tpu.vector_store %arg17[%c0_64, %c0_65], %139 {strides = array<i32>} : memref<10x256xf32, #tpu.memory_space<vmem>>, vector<10x256xf32>,
    return
  }
  func.func @transform_0(%arg0: i32) -> (i32, i32) {
    %c0_i32 = arith.constant 0 : i32
    %c0_i32_0 = arith.constant 0 : i32
    %c0_i32_1 = arith.constant 0 : i32
    return %c0_i32, %c0_i32_0 : i32, i32
  }
  func.func @transform_1(%arg0: i32) -> (i32, i32) {
    %c0_i32 = arith.constant 0 : i32
    %c0_i32_0 = arith.constant 0 : i32
    %c0_i32_1 = arith.constant 0 : i32
    return %c0_i32, %c0_i32_0 : i32, i32
  }
  func.func @transform_2(%arg0: i32) -> (i32, i32) {
    %c0_i32 = arith.constant 0 : i32
    %c0_i32_0 = arith.constant 0 : i32
    %c0_i32_1 = arith.constant 0 : i32
    return %c0_i32, %c0_i32_0 : i32, i32
  }
  func.func @transform_3(%arg0: i32) -> (i32, i32) {
    %c0_i32 = arith.constant 0 : i32
    %c0_i32_0 = arith.constant 0 : i32
    %c0_i32_1 = arith.constant 0 : i32
    return %c0_i32, %c0_i32_0 : i32, i32
  }
  func.func @transform_4(%arg0: i32) -> (i32, i32, i32) {
    %c0_i32 = arith.constant 0 : i32
    %c0_i32_0 = arith.constant 0 : i32
    %c0_i32_1 = arith.constant 0 : i32
    return %arg0, %c0_i32, %c0_i32_0 : i32, i32, i32
  }
  func.func @transform_5(%arg0: i32) -> (i32, i32, i32) {
    %c0_i32 = arith.constant 0 : i32
    %c0_i32_0 = arith.constant 0 : i32
    %c0_i32_1 = arith.constant 0 : i32
    return %arg0, %c0_i32, %c0_i32_0 : i32, i32, i32
  }
  func.func @transform_6(%arg0: i32) -> (i32, i32, i32) {
    %c0_i32 = arith.constant 0 : i32
    %c0_i32_0 = arith.constant 0 : i32
    %c0_i32_1 = arith.constant 0 : i32
    return %arg0, %c0_i32, %c0_i32_0 : i32, i32, i32
  }
  func.func @transform_7(%arg0: i32) -> (i32, i32, i32) {
    %c0_i32 = arith.constant 0 : i32
    %c0_i32_0 = arith.constant 0 : i32
    %c0_i32_1 = arith.constant 0 : i32
    return %arg0, %c0_i32, %c0_i32_0 : i32, i32, i32
  }
  func.func @transform_8(%arg0: i32) -> (i32, i32, i32) {
    %c0_i32 = arith.constant 0 : i32
    %c0_i32_0 = arith.constant 0 : i32
    %c0_i32_1 = arith.constant 0 : i32
    return %arg0, %c0_i32, %c0_i32_0 : i32, i32, i32
  }
  func.func @transform_9(%arg0: i32) -> (i32, i32, i32) {
    %c0_i32 = arith.constant 0 : i32
    %c0_i32_0 = arith.constant 0 : i32
    %c0_i32_1 = arith.constant 0 : i32
    return %arg0, %c0_i32, %c0_i32_0 : i32, i32, i32
  }
  func.func @transform_10(%arg0: i32) -> (i32, i32, i32) {
    %c0_i32 = arith.constant 0 : i32
    %c0_i32_0 = arith.constant 0 : i32
    %c0_i32_1 = arith.constant 0 : i32
    return %arg0, %c0_i32, %c0_i32_0 : i32, i32, i32
  }
  func.func @transform_11(%arg0: i32) -> (i32, i32, i32) {
    %c0_i32 = arith.constant 0 : i32
    %c0_i32_0 = arith.constant 0 : i32
    %c0_i32_1 = arith.constant 0 : i32
    return %arg0, %c0_i32, %c0_i32_0 : i32, i32, i32
  }
  func.func @transform_12(%arg0: i32) -> (i32, i32, i32) {
    %c0_i32 = arith.constant 0 : i32
    %c0_i32_0 = arith.constant 0 : i32
    %c0_i32_1 = arith.constant 0 : i32
    return %arg0, %c0_i32, %c0_i32_0 : i32, i32, i32
  }
  func.func @transform_13(%arg0: i32) -> (i32, i32, i32) {
    %c0_i32 = arith.constant 0 : i32
    %c0_i32_0 = arith.constant 0 : i32
    %c0_i32_1 = arith.constant 0 : i32
    return %arg0, %c0_i32, %c0_i32_0 : i32, i32, i32
  }
  func.func @transform_14(%arg0: i32) -> (i32, i32, i32) {
    %c0_i32 = arith.constant 0 : i32
    %c0_i32_0 = arith.constant 0 : i32
    %c0_i32_1 = arith.constant 0 : i32
    return %arg0, %c0_i32, %c0_i32_0 : i32, i32, i32
  }
  func.func @transform_15(%arg0: i32) -> (i32, i32, i32) {
    %c0_i32 = arith.constant 0 : i32
    %c0_i32_0 = arith.constant 0 : i32
    %c0_i32_1 = arith.constant 0 : i32
    return %arg0, %c0_i32, %c0_i32_0 : i32, i32, i32
  }
  func.func @transform_16(%arg0: i32) -> (i32, i32) {
    %c0_i32 = arith.constant 0 : i32
    %c0_i32_0 = arith.constant 0 : i32
    %c0_i32_1 = arith.constant 0 : i32
    return %c0_i32, %c0_i32_0 : i32, i32
  }
}

module attributes {stable_mosaic.version = 11 : i64} {
  func.func @_encoder_stack_kernel(%arg0: i32, %arg1: memref<16x256xf32, #tpu.memory_space<vmem>>, %arg2: memref<16x16xf32, #tpu.memory_space<vmem>>, %arg3: memref<1x1x256xf32, #tpu.memory_space<vmem>>, %arg4: memref<1x1x256xf32, #tpu.memory_space<vmem>>, %arg5: memref<1x256x768xbf16, #tpu.memory_space<vmem>>, %arg6: memref<1x1x768xf32, #tpu.memory_space<vmem>>, %arg7: memref<1x256x256xbf16, #tpu.memory_space<vmem>>, %arg8: memref<1x1x256xf32, #tpu.memory_space<vmem>>, %arg9: memref<1x1x256xf32, #tpu.memory_space<vmem>>, %arg10: memref<1x1x256xf32, #tpu.memory_space<vmem>>, %arg11: memref<1x256x512xbf16, #tpu.memory_space<vmem>>, %arg12: memref<1x1x512xf32, #tpu.memory_space<vmem>>, %arg13: memref<1x512x256xbf16, #tpu.memory_space<vmem>>, %arg14: memref<1x1x256xf32, #tpu.memory_space<vmem>>, %arg15: memref<16x256xf32, #tpu.memory_space<vmem>>) attributes {dimension_semantics = [#tpu.dimension_semantics<arbitrary>], iteration_bounds = array<i64: 2>, scalar_prefetch = 0 : i64, scratch_operands = 0 : i64, tpu.core_type = #tpu.core_type<tc>, window_params = [{pipeline_mode = #tpu.pipeline_mode<synchronous>, transform_indices = @transform_0, window_bounds = array<i64: 16, 256>}, {pipeline_mode = #tpu.pipeline_mode<synchronous>, transform_indices = @transform_1, window_bounds = array<i64: 16, 16>}, {transform_indices = @transform_2, window_bounds = array<i64: 1, 1, 256>}, {transform_indices = @transform_3, window_bounds = array<i64: 1, 1, 256>}, {transform_indices = @transform_4, window_bounds = array<i64: 1, 256, 768>}, {transform_indices = @transform_5, window_bounds = array<i64: 1, 1, 768>}, {transform_indices = @transform_6, window_bounds = array<i64: 1, 256, 256>}, {transform_indices = @transform_7, window_bounds = array<i64: 1, 1, 256>}, {transform_indices = @transform_8, window_bounds = array<i64: 1, 1, 256>}, {transform_indices = @transform_9, window_bounds = array<i64: 1, 1, 256>}, {transform_indices = @transform_10, window_bounds = array<i64: 1, 256, 512>}, {transform_indices = @transform_11, window_bounds = array<i64: 1, 1, 512>}, {transform_indices = @transform_12, window_bounds = array<i64: 1, 512, 256>}, {transform_indices = @transform_13, window_bounds = array<i64: 1, 1, 256>}, {pipeline_mode = #tpu.pipeline_mode<synchronous>, transform_indices = @transform_14, window_bounds = array<i64: 16, 256>}]} {
    %c0_i32 = arith.constant 0 : i32
    %0 = arith.cmpi eq, %arg0, %c0_i32 : i32
    %1 = arith.extui %0 : i1 to i32
    %c0_i32_0 = arith.constant 0 : i32
    %2 = arith.cmpi ne, %1, %c0_i32_0 : i32
    scf.if %2 {
      %c0_66 = arith.constant 0 : index
      %c0_67 = arith.constant 0 : index
      %141 = vector.load %arg1[%c0_66, %c0_67] : memref<16x256xf32, #tpu.memory_space<vmem>>, vector<16x256xf32>
      %c0_68 = arith.constant 0 : index
      %c0_69 = arith.constant 0 : index
      %142 = vector.load %arg15[%c0_68, %c0_69] : memref<16x256xf32, #tpu.memory_space<vmem>>, vector<16x256xf32>
      tpu.vector_store %arg15[%c0_68, %c0_69], %141 {strides = array<i32>} : memref<16x256xf32, #tpu.memory_space<vmem>>, vector<16x256xf32>,
    } else {
    }
    %c0 = arith.constant 0 : index
    %c0_1 = arith.constant 0 : index
    %3 = vector.load %arg15[%c0, %c0_1] : memref<16x256xf32, #tpu.memory_space<vmem>>, vector<16x256xf32>
    %c0_2 = arith.constant 0 : index
    %c0_3 = arith.constant 0 : index
    %4 = vector.load %arg2[%c0_2, %c0_3] : memref<16x16xf32, #tpu.memory_space<vmem>>, vector<16x16xf32>
    %c0_4 = arith.constant 0 : index
    %c0_5 = arith.constant 0 : index
    %c0_6 = arith.constant 0 : index
    %5 = vector.load %arg3[%c0_4, %c0_5, %c0_6] : memref<1x1x256xf32, #tpu.memory_space<vmem>>, vector<1x1x256xf32>
    %6 = vector.shape_cast %5 : vector<1x1x256xf32> to vector<1x256xf32>
    %c0_7 = arith.constant 0 : index
    %c0_8 = arith.constant 0 : index
    %c0_9 = arith.constant 0 : index
    %7 = vector.load %arg4[%c0_7, %c0_8, %c0_9] : memref<1x1x256xf32, #tpu.memory_space<vmem>>, vector<1x1x256xf32>
    %8 = vector.shape_cast %7 : vector<1x1x256xf32> to vector<1x256xf32>
    %cst = arith.constant dense<0.000000e+00> : vector<16xf32>
    %9 = vector.multi_reduction <add>, %3, %cst [1] : vector<16x256xf32> to vector<16xf32>
    %10 = vector.shape_cast %9 : vector<16xf32> to vector<16x1xf32>
    %cst_10 = arith.constant 2.560000e+02 : f32
    %11 = vector.broadcast %cst_10 : f32 to vector<16x1xf32>
    %12 = arith.divf %10, %11 : vector<16x1xf32>
    %13 = vector.broadcast %12 : vector<16x1xf32> to vector<16x256xf32>
    %14 = arith.subf %3, %13 : vector<16x256xf32>
    %15 = arith.mulf %14, %14 : vector<16x256xf32>
    %cst_11 = arith.constant dense<0.000000e+00> : vector<16xf32>
    %16 = vector.multi_reduction <add>, %15, %cst_11 [1] : vector<16x256xf32> to vector<16xf32>
    %17 = vector.shape_cast %16 : vector<16xf32> to vector<16x1xf32>
    %cst_12 = arith.constant 2.560000e+02 : f32
    %18 = vector.broadcast %cst_12 : f32 to vector<16x1xf32>
    %19 = arith.divf %17, %18 : vector<16x1xf32>
    %cst_13 = arith.constant 9.99999974E-6 : f32
    %20 = vector.broadcast %cst_13 : f32 to vector<16x1xf32>
    %21 = arith.addf %19, %20 : vector<16x1xf32>
    %22 = math.rsqrt %21 : vector<16x1xf32>
    %23 = vector.broadcast %22 : vector<16x1xf32> to vector<16x256xf32>
    %24 = arith.mulf %14, %23 : vector<16x256xf32>
    %25 = vector.broadcast %6 : vector<1x256xf32> to vector<16x256xf32>
    %26 = arith.mulf %24, %25 : vector<16x256xf32>
    %27 = vector.broadcast %8 : vector<1x256xf32> to vector<16x256xf32>
    %28 = arith.addf %26, %27 : vector<16x256xf32>
    %29 = arith.truncf %28 : vector<16x256xf32> to vector<16x256xbf16>
    %c0_14 = arith.constant 0 : index
    %c0_15 = arith.constant 0 : index
    %c0_16 = arith.constant 0 : index
    %30 = vector.load %arg5[%c0_14, %c0_15, %c0_16] : memref<1x256x768xbf16, #tpu.memory_space<vmem>>, vector<1x256x768xbf16>
    %31 = vector.shape_cast %30 : vector<1x256x768xbf16> to vector<256x768xbf16>
    %cst_17 = arith.constant dense<0.000000e+00> : vector<16x768xf32>
    %32 = tpu.matmul %29, %31, %cst_17 {dimension_numbers = #tpu.dot_dimension_numbers<[1], [0], [0], [1], [0, 0, 1, 1], [], []>} : vector<16x256xbf16>, vector<256x768xbf16>, vector<16x768xf32> -> vector<16x768xf32>
    %c0_18 = arith.constant 0 : index
    %c0_19 = arith.constant 0 : index
    %c0_20 = arith.constant 0 : index
    %33 = vector.load %arg6[%c0_18, %c0_19, %c0_20] : memref<1x1x768xf32, #tpu.memory_space<vmem>>, vector<1x1x768xf32>
    %34 = vector.shape_cast %33 : vector<1x1x768xf32> to vector<1x768xf32>
    %35 = vector.broadcast %34 : vector<1x768xf32> to vector<16x768xf32>
    %36 = arith.addf %32, %35 : vector<16x768xf32>
    %c0_21 = arith.constant 0 : index
    %c0_22 = arith.constant 0 : index
    %c0_23 = arith.constant 0 : index
    %37 = vector.load %arg7[%c0_21, %c0_22, %c0_23] : memref<1x256x256xbf16, #tpu.memory_space<vmem>>, vector<1x256x256xbf16>
    %38 = vector.shape_cast %37 : vector<1x256x256xbf16> to vector<256x256xbf16>
    %39 = vector.extract_strided_slice %36 {offsets = [0, 0], sizes = [16, 128], strides = [1, 1]} : vector<16x768xf32> to vector<16x128xf32>
    %40 = vector.extract_strided_slice %36 {offsets = [0, 256], sizes = [16, 128], strides = [1, 1]} : vector<16x768xf32> to vector<16x128xf32>
    %41 = vector.extract_strided_slice %36 {offsets = [0, 512], sizes = [16, 128], strides = [1, 1]} : vector<16x768xf32> to vector<16x128xf32>
    %42 = arith.truncf %39 : vector<16x128xf32> to vector<16x128xbf16>
    %43 = arith.truncf %40 : vector<16x128xf32> to vector<16x128xbf16>
    "tpu.trace_start"() <{level = 10 : i32, message = "qd,kd->qk"}> : () -> ()
    %cst_24 = arith.constant dense<0.000000e+00> : vector<16x16xf32>
    %44 = tpu.matmul %42, %43, %cst_24 {dimension_numbers = #tpu.dot_dimension_numbers<[1], [1], [0], [0], [0, 0, 1, 0], [], []>} : vector<16x128xbf16>, vector<16x128xbf16>, vector<16x16xf32> -> vector<16x16xf32>
    "tpu.trace_stop"() : () -> ()
    %45 = arith.addf %44, %4 : vector<16x16xf32>
    %cst_25 = arith.constant dense<0xFF800000> : vector<16xf32>
    %46 = vector.multi_reduction <maximumf>, %45, %cst_25 [1] : vector<16x16xf32> to vector<16xf32>
    %47 = vector.shape_cast %46 : vector<16xf32> to vector<16x1xf32>
    %48 = vector.broadcast %47 : vector<16x1xf32> to vector<16x16xf32>
    %49 = arith.subf %45, %48 : vector<16x16xf32>
    %50 = math.exp %49 : vector<16x16xf32>
    %cst_26 = arith.constant dense<0.000000e+00> : vector<16xf32>
    %51 = vector.multi_reduction <add>, %50, %cst_26 [1] : vector<16x16xf32> to vector<16xf32>
    %52 = vector.shape_cast %51 : vector<16xf32> to vector<16x1xf32>
    %53 = tpu.reciprocal %52 {approx = true} : vector<16x1xf32> -> vector<16x1xf32>
    %54 = vector.broadcast %53 : vector<16x1xf32> to vector<16x16xf32>
    %55 = arith.mulf %50, %54 : vector<16x16xf32>
    %56 = arith.truncf %55 : vector<16x16xf32> to vector<16x16xbf16>
    %57 = arith.truncf %41 : vector<16x128xf32> to vector<16x128xbf16>
    %cst_27 = arith.constant dense<0.000000e+00> : vector<16x128xf32>
    %58 = tpu.matmul %56, %57, %cst_27 {dimension_numbers = #tpu.dot_dimension_numbers<[1], [0], [0], [1], [0, 0, 1, 1], [], []>} : vector<16x16xbf16>, vector<16x128xbf16>, vector<16x128xf32> -> vector<16x128xf32>
    %59 = arith.truncf %58 : vector<16x128xf32> to vector<16x128xbf16>
    %60 = vector.extract_strided_slice %38 {offsets = [0, 0], sizes = [128, 256], strides = [1, 1]} : vector<256x256xbf16> to vector<128x256xbf16>
    %cst_28 = arith.constant dense<0.000000e+00> : vector<16x256xf32>
    %61 = tpu.matmul %59, %60, %cst_28 {dimension_numbers = #tpu.dot_dimension_numbers<[1], [0], [0], [1], [0, 0, 1, 1], [], []>} : vector<16x128xbf16>, vector<128x256xbf16>, vector<16x256xf32> -> vector<16x256xf32>
    %62 = vector.extract_strided_slice %36 {offsets = [0, 128], sizes = [16, 128], strides = [1, 1]} : vector<16x768xf32> to vector<16x128xf32>
    %63 = vector.extract_strided_slice %36 {offsets = [0, 384], sizes = [16, 128], strides = [1, 1]} : vector<16x768xf32> to vector<16x128xf32>
    %64 = vector.extract_strided_slice %36 {offsets = [0, 640], sizes = [16, 128], strides = [1, 1]} : vector<16x768xf32> to vector<16x128xf32>
    %65 = arith.truncf %62 : vector<16x128xf32> to vector<16x128xbf16>
    %66 = arith.truncf %63 : vector<16x128xf32> to vector<16x128xbf16>
    "tpu.trace_start"() <{level = 10 : i32, message = "qd,kd->qk"}> : () -> ()
    %cst_29 = arith.constant dense<0.000000e+00> : vector<16x16xf32>
    %67 = tpu.matmul %65, %66, %cst_29 {dimension_numbers = #tpu.dot_dimension_numbers<[1], [1], [0], [0], [0, 0, 1, 0], [], []>} : vector<16x128xbf16>, vector<16x128xbf16>, vector<16x16xf32> -> vector<16x16xf32>
    "tpu.trace_stop"() : () -> ()
    %68 = arith.addf %67, %4 : vector<16x16xf32>
    %cst_30 = arith.constant dense<0xFF800000> : vector<16xf32>
    %69 = vector.multi_reduction <maximumf>, %68, %cst_30 [1] : vector<16x16xf32> to vector<16xf32>
    %70 = vector.shape_cast %69 : vector<16xf32> to vector<16x1xf32>
    %71 = vector.broadcast %70 : vector<16x1xf32> to vector<16x16xf32>
    %72 = arith.subf %68, %71 : vector<16x16xf32>
    %73 = math.exp %72 : vector<16x16xf32>
    %cst_31 = arith.constant dense<0.000000e+00> : vector<16xf32>
    %74 = vector.multi_reduction <add>, %73, %cst_31 [1] : vector<16x16xf32> to vector<16xf32>
    %75 = vector.shape_cast %74 : vector<16xf32> to vector<16x1xf32>
    %76 = tpu.reciprocal %75 {approx = true} : vector<16x1xf32> -> vector<16x1xf32>
    %77 = vector.broadcast %76 : vector<16x1xf32> to vector<16x16xf32>
    %78 = arith.mulf %73, %77 : vector<16x16xf32>
    %79 = arith.truncf %78 : vector<16x16xf32> to vector<16x16xbf16>
    %80 = arith.truncf %64 : vector<16x128xf32> to vector<16x128xbf16>
    %cst_32 = arith.constant dense<0.000000e+00> : vector<16x128xf32>
    %81 = tpu.matmul %79, %80, %cst_32 {dimension_numbers = #tpu.dot_dimension_numbers<[1], [0], [0], [1], [0, 0, 1, 1], [], []>} : vector<16x16xbf16>, vector<16x128xbf16>, vector<16x128xf32> -> vector<16x128xf32>
    %82 = arith.truncf %81 : vector<16x128xf32> to vector<16x128xbf16>
    %83 = vector.extract_strided_slice %38 {offsets = [128, 0], sizes = [128, 256], strides = [1, 1]} : vector<256x256xbf16> to vector<128x256xbf16>
    %cst_33 = arith.constant dense<0.000000e+00> : vector<16x256xf32>
    %84 = tpu.matmul %82, %83, %cst_33 {dimension_numbers = #tpu.dot_dimension_numbers<[1], [0], [0], [1], [0, 0, 1, 1], [], []>} : vector<16x128xbf16>, vector<128x256xbf16>, vector<16x256xf32> -> vector<16x256xf32>
    %85 = arith.addf %61, %84 : vector<16x256xf32>
    %86 = arith.addf %3, %85 : vector<16x256xf32>
    %c0_34 = arith.constant 0 : index
    %c0_35 = arith.constant 0 : index
    %c0_36 = arith.constant 0 : index
    %87 = vector.load %arg8[%c0_34, %c0_35, %c0_36] : memref<1x1x256xf32, #tpu.memory_space<vmem>>, vector<1x1x256xf32>
    %88 = vector.shape_cast %87 : vector<1x1x256xf32> to vector<1x256xf32>
    %89 = vector.broadcast %88 : vector<1x256xf32> to vector<16x256xf32>
    %90 = arith.addf %86, %89 : vector<16x256xf32>
    %c0_37 = arith.constant 0 : index
    %c0_38 = arith.constant 0 : index
    %c0_39 = arith.constant 0 : index
    %91 = vector.load %arg9[%c0_37, %c0_38, %c0_39] : memref<1x1x256xf32, #tpu.memory_space<vmem>>, vector<1x1x256xf32>
    %92 = vector.shape_cast %91 : vector<1x1x256xf32> to vector<1x256xf32>
    %c0_40 = arith.constant 0 : index
    %c0_41 = arith.constant 0 : index
    %c0_42 = arith.constant 0 : index
    %93 = vector.load %arg10[%c0_40, %c0_41, %c0_42] : memref<1x1x256xf32, #tpu.memory_space<vmem>>, vector<1x1x256xf32>
    %94 = vector.shape_cast %93 : vector<1x1x256xf32> to vector<1x256xf32>
    %cst_43 = arith.constant dense<0.000000e+00> : vector<16xf32>
    %95 = vector.multi_reduction <add>, %90, %cst_43 [1] : vector<16x256xf32> to vector<16xf32>
    %96 = vector.shape_cast %95 : vector<16xf32> to vector<16x1xf32>
    %cst_44 = arith.constant 2.560000e+02 : f32
    %97 = vector.broadcast %cst_44 : f32 to vector<16x1xf32>
    %98 = arith.divf %96, %97 : vector<16x1xf32>
    %99 = vector.broadcast %98 : vector<16x1xf32> to vector<16x256xf32>
    %100 = arith.subf %90, %99 : vector<16x256xf32>
    %101 = arith.mulf %100, %100 : vector<16x256xf32>
    %cst_45 = arith.constant dense<0.000000e+00> : vector<16xf32>
    %102 = vector.multi_reduction <add>, %101, %cst_45 [1] : vector<16x256xf32> to vector<16xf32>
    %103 = vector.shape_cast %102 : vector<16xf32> to vector<16x1xf32>
    %cst_46 = arith.constant 2.560000e+02 : f32
    %104 = vector.broadcast %cst_46 : f32 to vector<16x1xf32>
    %105 = arith.divf %103, %104 : vector<16x1xf32>
    %cst_47 = arith.constant 9.99999974E-6 : f32
    %106 = vector.broadcast %cst_47 : f32 to vector<16x1xf32>
    %107 = arith.addf %105, %106 : vector<16x1xf32>
    %108 = math.rsqrt %107 : vector<16x1xf32>
    %109 = vector.broadcast %108 : vector<16x1xf32> to vector<16x256xf32>
    %110 = arith.mulf %100, %109 : vector<16x256xf32>
    %111 = vector.broadcast %92 : vector<1x256xf32> to vector<16x256xf32>
    %112 = arith.mulf %110, %111 : vector<16x256xf32>
    %113 = vector.broadcast %94 : vector<1x256xf32> to vector<16x256xf32>
    %114 = arith.addf %112, %113 : vector<16x256xf32>
    %115 = arith.truncf %114 : vector<16x256xf32> to vector<16x256xbf16>
    %c0_48 = arith.constant 0 : index
    %c0_49 = arith.constant 0 : index
    %c0_50 = arith.constant 0 : index
    %116 = vector.load %arg11[%c0_48, %c0_49, %c0_50] : memref<1x256x512xbf16, #tpu.memory_space<vmem>>, vector<1x256x512xbf16>
    %117 = vector.shape_cast %116 : vector<1x256x512xbf16> to vector<256x512xbf16>
    %cst_51 = arith.constant dense<0.000000e+00> : vector<16x512xf32>
    %118 = tpu.matmul %115, %117, %cst_51 {dimension_numbers = #tpu.dot_dimension_numbers<[1], [0], [0], [1], [0, 0, 1, 1], [], []>} : vector<16x256xbf16>, vector<256x512xbf16>, vector<16x512xf32> -> vector<16x512xf32>
    %c0_52 = arith.constant 0 : index
    %c0_53 = arith.constant 0 : index
    %c0_54 = arith.constant 0 : index
    %119 = vector.load %arg12[%c0_52, %c0_53, %c0_54] : memref<1x1x512xf32, #tpu.memory_space<vmem>>, vector<1x1x512xf32>
    %120 = vector.shape_cast %119 : vector<1x1x512xf32> to vector<1x512xf32>
    %121 = vector.broadcast %120 : vector<1x512xf32> to vector<16x512xf32>
    %122 = arith.addf %118, %121 : vector<16x512xf32>
    %cst_55 = arith.constant 1.702000e+00 : f32
    %123 = vector.broadcast %cst_55 : f32 to vector<16x512xf32>
    %124 = arith.mulf %123, %122 : vector<16x512xf32>
    %125 = arith.negf %124 : vector<16x512xf32>
    %126 = math.exp %125 : vector<16x512xf32>
    %cst_56 = arith.constant 1.000000e+00 : f32
    %127 = vector.broadcast %cst_56 : f32 to vector<16x512xf32>
    %128 = arith.addf %127, %126 : vector<16x512xf32>
    %129 = arith.divf %127, %128 : vector<16x512xf32>
    %130 = arith.mulf %122, %129 : vector<16x512xf32>
    %131 = arith.truncf %130 : vector<16x512xf32> to vector<16x512xbf16>
    %c0_57 = arith.constant 0 : index
    %c0_58 = arith.constant 0 : index
    %c0_59 = arith.constant 0 : index
    %132 = vector.load %arg13[%c0_57, %c0_58, %c0_59] : memref<1x512x256xbf16, #tpu.memory_space<vmem>>, vector<1x512x256xbf16>
    %133 = vector.shape_cast %132 : vector<1x512x256xbf16> to vector<512x256xbf16>
    %cst_60 = arith.constant dense<0.000000e+00> : vector<16x256xf32>
    %134 = tpu.matmul %131, %133, %cst_60 {dimension_numbers = #tpu.dot_dimension_numbers<[1], [0], [0], [1], [0, 0, 1, 1], [], []>} : vector<16x512xbf16>, vector<512x256xbf16>, vector<16x256xf32> -> vector<16x256xf32>
    %c0_61 = arith.constant 0 : index
    %c0_62 = arith.constant 0 : index
    %c0_63 = arith.constant 0 : index
    %135 = vector.load %arg14[%c0_61, %c0_62, %c0_63] : memref<1x1x256xf32, #tpu.memory_space<vmem>>, vector<1x1x256xf32>
    %136 = vector.shape_cast %135 : vector<1x1x256xf32> to vector<1x256xf32>
    %137 = vector.broadcast %136 : vector<1x256xf32> to vector<16x256xf32>
    %138 = arith.addf %134, %137 : vector<16x256xf32>
    %139 = arith.addf %90, %138 : vector<16x256xf32>
    %c0_64 = arith.constant 0 : index
    %c0_65 = arith.constant 0 : index
    %140 = vector.load %arg15[%c0_64, %c0_65] : memref<16x256xf32, #tpu.memory_space<vmem>>, vector<16x256xf32>
    tpu.vector_store %arg15[%c0_64, %c0_65], %139 {strides = array<i32>} : memref<16x256xf32, #tpu.memory_space<vmem>>, vector<16x256xf32>,
    return
  }
  func.func @transform_0(%arg0: i32) -> (i32, i32) {
    %c0_i32 = arith.constant 0 : i32
    %c0_i32_0 = arith.constant 0 : i32
    %c0_i32_1 = arith.constant 0 : i32
    return %c0_i32, %c0_i32_0 : i32, i32
  }
  func.func @transform_1(%arg0: i32) -> (i32, i32) {
    %c0_i32 = arith.constant 0 : i32
    %c0_i32_0 = arith.constant 0 : i32
    %c0_i32_1 = arith.constant 0 : i32
    return %c0_i32, %c0_i32_0 : i32, i32
  }
  func.func @transform_2(%arg0: i32) -> (i32, i32, i32) {
    %c0_i32 = arith.constant 0 : i32
    %c0_i32_0 = arith.constant 0 : i32
    %c0_i32_1 = arith.constant 0 : i32
    return %arg0, %c0_i32, %c0_i32_0 : i32, i32, i32
  }
  func.func @transform_3(%arg0: i32) -> (i32, i32, i32) {
    %c0_i32 = arith.constant 0 : i32
    %c0_i32_0 = arith.constant 0 : i32
    %c0_i32_1 = arith.constant 0 : i32
    return %arg0, %c0_i32, %c0_i32_0 : i32, i32, i32
  }
  func.func @transform_4(%arg0: i32) -> (i32, i32, i32) {
    %c0_i32 = arith.constant 0 : i32
    %c0_i32_0 = arith.constant 0 : i32
    %c0_i32_1 = arith.constant 0 : i32
    return %arg0, %c0_i32, %c0_i32_0 : i32, i32, i32
  }
  func.func @transform_5(%arg0: i32) -> (i32, i32, i32) {
    %c0_i32 = arith.constant 0 : i32
    %c0_i32_0 = arith.constant 0 : i32
    %c0_i32_1 = arith.constant 0 : i32
    return %arg0, %c0_i32, %c0_i32_0 : i32, i32, i32
  }
  func.func @transform_6(%arg0: i32) -> (i32, i32, i32) {
    %c0_i32 = arith.constant 0 : i32
    %c0_i32_0 = arith.constant 0 : i32
    %c0_i32_1 = arith.constant 0 : i32
    return %arg0, %c0_i32, %c0_i32_0 : i32, i32, i32
  }
  func.func @transform_7(%arg0: i32) -> (i32, i32, i32) {
    %c0_i32 = arith.constant 0 : i32
    %c0_i32_0 = arith.constant 0 : i32
    %c0_i32_1 = arith.constant 0 : i32
    return %arg0, %c0_i32, %c0_i32_0 : i32, i32, i32
  }
  func.func @transform_8(%arg0: i32) -> (i32, i32, i32) {
    %c0_i32 = arith.constant 0 : i32
    %c0_i32_0 = arith.constant 0 : i32
    %c0_i32_1 = arith.constant 0 : i32
    return %arg0, %c0_i32, %c0_i32_0 : i32, i32, i32
  }
  func.func @transform_9(%arg0: i32) -> (i32, i32, i32) {
    %c0_i32 = arith.constant 0 : i32
    %c0_i32_0 = arith.constant 0 : i32
    %c0_i32_1 = arith.constant 0 : i32
    return %arg0, %c0_i32, %c0_i32_0 : i32, i32, i32
  }
  func.func @transform_10(%arg0: i32) -> (i32, i32, i32) {
    %c0_i32 = arith.constant 0 : i32
    %c0_i32_0 = arith.constant 0 : i32
    %c0_i32_1 = arith.constant 0 : i32
    return %arg0, %c0_i32, %c0_i32_0 : i32, i32, i32
  }
  func.func @transform_11(%arg0: i32) -> (i32, i32, i32) {
    %c0_i32 = arith.constant 0 : i32
    %c0_i32_0 = arith.constant 0 : i32
    %c0_i32_1 = arith.constant 0 : i32
    return %arg0, %c0_i32, %c0_i32_0 : i32, i32, i32
  }
  func.func @transform_12(%arg0: i32) -> (i32, i32, i32) {
    %c0_i32 = arith.constant 0 : i32
    %c0_i32_0 = arith.constant 0 : i32
    %c0_i32_1 = arith.constant 0 : i32
    return %arg0, %c0_i32, %c0_i32_0 : i32, i32, i32
  }
  func.func @transform_13(%arg0: i32) -> (i32, i32, i32) {
    %c0_i32 = arith.constant 0 : i32
    %c0_i32_0 = arith.constant 0 : i32
    %c0_i32_1 = arith.constant 0 : i32
    return %arg0, %c0_i32, %c0_i32_0 : i32, i32, i32
  }
  func.func @transform_14(%arg0: i32) -> (i32, i32) {
    %c0_i32 = arith.constant 0 : i32
    %c0_i32_0 = arith.constant 0 : i32
    %c0_i32_1 = arith.constant 0 : i32
    return %c0_i32, %c0_i32_0 : i32, i32
  }
}

module attributes {stable_mosaic.version = 11 : i64} {
  func.func @_head_kernel(%arg0: i32, %arg1: memref<2x256xf32, #tpu.memory_space<vmem>>, %arg2: memref<2x256xf32, #tpu.memory_space<vmem>>, %arg3: memref<1x256xf32, #tpu.memory_space<vmem>>, %arg4: memref<1x256xf32, #tpu.memory_space<vmem>>, %arg5: memref<1x256xf32, #tpu.memory_space<vmem>>, %arg6: memref<1x256xf32, #tpu.memory_space<vmem>>, %arg7: memref<256x128xbf16, #tpu.memory_space<vmem>>, %arg8: memref<256x128xbf16, #tpu.memory_space<vmem>>, %arg9: memref<2x128xf32, #tpu.memory_space<vmem>>, %arg10: memref<2x128xf32, #tpu.memory_space<vmem>>, %arg11: memref<2x2xf32, #tpu.memory_space<vmem>>) attributes {dimension_semantics = [#tpu.dimension_semantics<arbitrary>], iteration_bounds = array<i64: 1>, scalar_prefetch = 0 : i64, scratch_operands = 0 : i64, tpu.core_type = #tpu.core_type<tc>, window_params = [{pipeline_mode = #tpu.pipeline_mode<synchronous>, transform_indices = @transform_0, window_bounds = array<i64: 2, 256>}, {pipeline_mode = #tpu.pipeline_mode<synchronous>, transform_indices = @transform_1, window_bounds = array<i64: 2, 256>}, {pipeline_mode = #tpu.pipeline_mode<synchronous>, transform_indices = @transform_2, window_bounds = array<i64: 1, 256>}, {pipeline_mode = #tpu.pipeline_mode<synchronous>, transform_indices = @transform_3, window_bounds = array<i64: 1, 256>}, {pipeline_mode = #tpu.pipeline_mode<synchronous>, transform_indices = @transform_4, window_bounds = array<i64: 1, 256>}, {pipeline_mode = #tpu.pipeline_mode<synchronous>, transform_indices = @transform_5, window_bounds = array<i64: 1, 256>}, {pipeline_mode = #tpu.pipeline_mode<synchronous>, transform_indices = @transform_6, window_bounds = array<i64: 256, 128>}, {pipeline_mode = #tpu.pipeline_mode<synchronous>, transform_indices = @transform_7, window_bounds = array<i64: 256, 128>}, {pipeline_mode = #tpu.pipeline_mode<synchronous>, transform_indices = @transform_8, window_bounds = array<i64: 2, 128>}, {pipeline_mode = #tpu.pipeline_mode<synchronous>, transform_indices = @transform_9, window_bounds = array<i64: 2, 128>}, {pipeline_mode = #tpu.pipeline_mode<synchronous>, transform_indices = @transform_10, window_bounds = array<i64: 2, 2>}]} {
    %c0 = arith.constant 0 : index
    %c0_0 = arith.constant 0 : index
    %0 = vector.load %arg1[%c0, %c0_0] : memref<2x256xf32, #tpu.memory_space<vmem>>, vector<2x256xf32>
    %c0_1 = arith.constant 0 : index
    %c0_2 = arith.constant 0 : index
    %1 = vector.load %arg3[%c0_1, %c0_2] : memref<1x256xf32, #tpu.memory_space<vmem>>, vector<1x256xf32>
    %c0_3 = arith.constant 0 : index
    %c0_4 = arith.constant 0 : index
    %2 = vector.load %arg4[%c0_3, %c0_4] : memref<1x256xf32, #tpu.memory_space<vmem>>, vector<1x256xf32>
    %cst = arith.constant dense<0.000000e+00> : vector<2xf32>
    %3 = vector.multi_reduction <add>, %0, %cst [1] : vector<2x256xf32> to vector<2xf32>
    %4 = vector.shape_cast %3 : vector<2xf32> to vector<2x1xf32>
    %cst_5 = arith.constant 2.560000e+02 : f32
    %5 = vector.broadcast %cst_5 : f32 to vector<2x1xf32>
    %6 = arith.divf %4, %5 : vector<2x1xf32>
    %7 = vector.broadcast %6 : vector<2x1xf32> to vector<2x256xf32>
    %8 = arith.subf %0, %7 : vector<2x256xf32>
    %9 = arith.mulf %8, %8 : vector<2x256xf32>
    %cst_6 = arith.constant dense<0.000000e+00> : vector<2xf32>
    %10 = vector.multi_reduction <add>, %9, %cst_6 [1] : vector<2x256xf32> to vector<2xf32>
    %11 = vector.shape_cast %10 : vector<2xf32> to vector<2x1xf32>
    %cst_7 = arith.constant 2.560000e+02 : f32
    %12 = vector.broadcast %cst_7 : f32 to vector<2x1xf32>
    %13 = arith.divf %11, %12 : vector<2x1xf32>
    %cst_8 = arith.constant 9.99999974E-6 : f32
    %14 = vector.broadcast %cst_8 : f32 to vector<2x1xf32>
    %15 = arith.addf %13, %14 : vector<2x1xf32>
    %16 = math.rsqrt %15 : vector<2x1xf32>
    %17 = vector.broadcast %16 : vector<2x1xf32> to vector<2x256xf32>
    %18 = arith.mulf %8, %17 : vector<2x256xf32>
    %19 = vector.broadcast %1 : vector<1x256xf32> to vector<2x256xf32>
    %20 = arith.mulf %18, %19 : vector<2x256xf32>
    %21 = vector.broadcast %2 : vector<1x256xf32> to vector<2x256xf32>
    %22 = arith.addf %20, %21 : vector<2x256xf32>
    %c0_9 = arith.constant 0 : index
    %c0_10 = arith.constant 0 : index
    %23 = vector.load %arg2[%c0_9, %c0_10] : memref<2x256xf32, #tpu.memory_space<vmem>>, vector<2x256xf32>
    %c0_11 = arith.constant 0 : index
    %c0_12 = arith.constant 0 : index
    %24 = vector.load %arg5[%c0_11, %c0_12] : memref<1x256xf32, #tpu.memory_space<vmem>>, vector<1x256xf32>
    %c0_13 = arith.constant 0 : index
    %c0_14 = arith.constant 0 : index
    %25 = vector.load %arg6[%c0_13, %c0_14] : memref<1x256xf32, #tpu.memory_space<vmem>>, vector<1x256xf32>
    %cst_15 = arith.constant dense<0.000000e+00> : vector<2xf32>
    %26 = vector.multi_reduction <add>, %23, %cst_15 [1] : vector<2x256xf32> to vector<2xf32>
    %27 = vector.shape_cast %26 : vector<2xf32> to vector<2x1xf32>
    %cst_16 = arith.constant 2.560000e+02 : f32
    %28 = vector.broadcast %cst_16 : f32 to vector<2x1xf32>
    %29 = arith.divf %27, %28 : vector<2x1xf32>
    %30 = vector.broadcast %29 : vector<2x1xf32> to vector<2x256xf32>
    %31 = arith.subf %23, %30 : vector<2x256xf32>
    %32 = arith.mulf %31, %31 : vector<2x256xf32>
    %cst_17 = arith.constant dense<0.000000e+00> : vector<2xf32>
    %33 = vector.multi_reduction <add>, %32, %cst_17 [1] : vector<2x256xf32> to vector<2xf32>
    %34 = vector.shape_cast %33 : vector<2xf32> to vector<2x1xf32>
    %cst_18 = arith.constant 2.560000e+02 : f32
    %35 = vector.broadcast %cst_18 : f32 to vector<2x1xf32>
    %36 = arith.divf %34, %35 : vector<2x1xf32>
    %cst_19 = arith.constant 9.99999974E-6 : f32
    %37 = vector.broadcast %cst_19 : f32 to vector<2x1xf32>
    %38 = arith.addf %36, %37 : vector<2x1xf32>
    %39 = math.rsqrt %38 : vector<2x1xf32>
    %40 = vector.broadcast %39 : vector<2x1xf32> to vector<2x256xf32>
    %41 = arith.mulf %31, %40 : vector<2x256xf32>
    %42 = vector.broadcast %24 : vector<1x256xf32> to vector<2x256xf32>
    %43 = arith.mulf %41, %42 : vector<2x256xf32>
    %44 = vector.broadcast %25 : vector<1x256xf32> to vector<2x256xf32>
    %45 = arith.addf %43, %44 : vector<2x256xf32>
    %46 = arith.truncf %22 : vector<2x256xf32> to vector<2x256xbf16>
    %c0_20 = arith.constant 0 : index
    %c0_21 = arith.constant 0 : index
    %47 = vector.load %arg7[%c0_20, %c0_21] : memref<256x128xbf16, #tpu.memory_space<vmem>>, vector<256x128xbf16>
    %cst_22 = arith.constant dense<0.000000e+00> : vector<2x128xf32>
    %48 = tpu.matmul %46, %47, %cst_22 {dimension_numbers = #tpu.dot_dimension_numbers<[1], [0], [0], [1], [0, 0, 1, 1], [], []>} : vector<2x256xbf16>, vector<256x128xbf16>, vector<2x128xf32> -> vector<2x128xf32>
    %49 = arith.truncf %45 : vector<2x256xf32> to vector<2x256xbf16>
    %c0_23 = arith.constant 0 : index
    %c0_24 = arith.constant 0 : index
    %50 = vector.load %arg8[%c0_23, %c0_24] : memref<256x128xbf16, #tpu.memory_space<vmem>>, vector<256x128xbf16>
    %cst_25 = arith.constant dense<0.000000e+00> : vector<2x128xf32>
    %51 = tpu.matmul %49, %50, %cst_25 {dimension_numbers = #tpu.dot_dimension_numbers<[1], [0], [0], [1], [0, 0, 1, 1], [], []>} : vector<2x256xbf16>, vector<256x128xbf16>, vector<2x128xf32> -> vector<2x128xf32>
    %52 = arith.mulf %48, %48 : vector<2x128xf32>
    %cst_26 = arith.constant dense<0.000000e+00> : vector<2xf32>
    %53 = vector.multi_reduction <add>, %52, %cst_26 [1] : vector<2x128xf32> to vector<2xf32>
    %54 = vector.shape_cast %53 : vector<2xf32> to vector<2x1xf32>
    %55 = math.rsqrt %54 : vector<2x1xf32>
    %56 = vector.broadcast %55 : vector<2x1xf32> to vector<2x128xf32>
    %57 = arith.mulf %48, %56 : vector<2x128xf32>
    %58 = arith.mulf %51, %51 : vector<2x128xf32>
    %cst_27 = arith.constant dense<0.000000e+00> : vector<2xf32>
    %59 = vector.multi_reduction <add>, %58, %cst_27 [1] : vector<2x128xf32> to vector<2xf32>
    %60 = vector.shape_cast %59 : vector<2xf32> to vector<2x1xf32>
    %61 = math.rsqrt %60 : vector<2x1xf32>
    %62 = vector.broadcast %61 : vector<2x1xf32> to vector<2x128xf32>
    %63 = arith.mulf %51, %62 : vector<2x128xf32>
    %c0_28 = arith.constant 0 : index
    %c0_29 = arith.constant 0 : index
    %64 = vector.load %arg9[%c0_28, %c0_29] : memref<2x128xf32, #tpu.memory_space<vmem>>, vector<2x128xf32>
    tpu.vector_store %arg9[%c0_28, %c0_29], %57 {strides = array<i32>} : memref<2x128xf32, #tpu.memory_space<vmem>>, vector<2x128xf32>,
    %c0_30 = arith.constant 0 : index
    %c0_31 = arith.constant 0 : index
    %65 = vector.load %arg10[%c0_30, %c0_31] : memref<2x128xf32, #tpu.memory_space<vmem>>, vector<2x128xf32>
    tpu.vector_store %arg10[%c0_30, %c0_31], %63 {strides = array<i32>} : memref<2x128xf32, #tpu.memory_space<vmem>>, vector<2x128xf32>,
    "tpu.trace_start"() <{level = 10 : i32, message = "bd,cd->bc"}> : () -> ()
    %cst_32 = arith.constant dense<0.000000e+00> : vector<2x2xf32>
    %66 = tpu.matmul %57, %63, %cst_32 {dimension_numbers = #tpu.dot_dimension_numbers<[1], [1], [0], [0], [0, 0, 1, 0], [], []>} : vector<2x128xf32>, vector<2x128xf32>, vector<2x2xf32> -> vector<2x2xf32>
    "tpu.trace_stop"() : () -> ()
    %c0_33 = arith.constant 0 : index
    %c0_34 = arith.constant 0 : index
    %67 = vector.load %arg11[%c0_33, %c0_34] : memref<2x2xf32, #tpu.memory_space<vmem>>, vector<2x2xf32>
    tpu.vector_store %arg11[%c0_33, %c0_34], %66 {strides = array<i32>} : memref<2x2xf32, #tpu.memory_space<vmem>>, vector<2x2xf32>,
    return
  }
  func.func @transform_0(%arg0: i32) -> (i32, i32) {
    %c0_i32 = arith.constant 0 : i32
    %c0_i32_0 = arith.constant 0 : i32
    %c0_i32_1 = arith.constant 0 : i32
    return %c0_i32, %c0_i32_0 : i32, i32
  }
  func.func @transform_1(%arg0: i32) -> (i32, i32) {
    %c0_i32 = arith.constant 0 : i32
    %c0_i32_0 = arith.constant 0 : i32
    %c0_i32_1 = arith.constant 0 : i32
    return %c0_i32, %c0_i32_0 : i32, i32
  }
  func.func @transform_2(%arg0: i32) -> (i32, i32) {
    %c0_i32 = arith.constant 0 : i32
    %c0_i32_0 = arith.constant 0 : i32
    %c0_i32_1 = arith.constant 0 : i32
    return %c0_i32, %c0_i32_0 : i32, i32
  }
  func.func @transform_3(%arg0: i32) -> (i32, i32) {
    %c0_i32 = arith.constant 0 : i32
    %c0_i32_0 = arith.constant 0 : i32
    %c0_i32_1 = arith.constant 0 : i32
    return %c0_i32, %c0_i32_0 : i32, i32
  }
  func.func @transform_4(%arg0: i32) -> (i32, i32) {
    %c0_i32 = arith.constant 0 : i32
    %c0_i32_0 = arith.constant 0 : i32
    %c0_i32_1 = arith.constant 0 : i32
    return %c0_i32, %c0_i32_0 : i32, i32
  }
  func.func @transform_5(%arg0: i32) -> (i32, i32) {
    %c0_i32 = arith.constant 0 : i32
    %c0_i32_0 = arith.constant 0 : i32
    %c0_i32_1 = arith.constant 0 : i32
    return %c0_i32, %c0_i32_0 : i32, i32
  }
  func.func @transform_6(%arg0: i32) -> (i32, i32) {
    %c0_i32 = arith.constant 0 : i32
    %c0_i32_0 = arith.constant 0 : i32
    %c0_i32_1 = arith.constant 0 : i32
    return %c0_i32, %c0_i32_0 : i32, i32
  }
  func.func @transform_7(%arg0: i32) -> (i32, i32) {
    %c0_i32 = arith.constant 0 : i32
    %c0_i32_0 = arith.constant 0 : i32
    %c0_i32_1 = arith.constant 0 : i32
    return %c0_i32, %c0_i32_0 : i32, i32
  }
  func.func @transform_8(%arg0: i32) -> (i32, i32) {
    %c0_i32 = arith.constant 0 : i32
    %c0_i32_0 = arith.constant 0 : i32
    %c0_i32_1 = arith.constant 0 : i32
    return %c0_i32, %c0_i32_0 : i32, i32
  }
  func.func @transform_9(%arg0: i32) -> (i32, i32) {
    %c0_i32 = arith.constant 0 : i32
    %c0_i32_0 = arith.constant 0 : i32
    %c0_i32_1 = arith.constant 0 : i32
    return %c0_i32, %c0_i32_0 : i32, i32
  }
  func.func @transform_10(%arg0: i32) -> (i32, i32) {
    %c0_i32 = arith.constant 0 : i32
    %c0_i32_0 = arith.constant 0 : i32
    %c0_i32_1 = arith.constant 0 : i32
    return %c0_i32, %c0_i32_0 : i32, i32
  }
}

</mosaic_0001>

<bundles_post_ra>
// kernel: eq.15
= control target key start
LH: loop header
LB: loop body
LE: loop exit
PB: predicated region body
PF: predicated region fallthrough
CT: control target
= control target key end

     0   :  { %vm7_vm0 = vcmask 39936   ;;  %vm13_vm1 = vcmask 80936   ;;  %s39_s0 = inlined_call_operand.vmem [shape: s32[2,5], index: 0, kind: input, shape index: {}]   ;;  %s40_s1 = inlined_call_operand.vmem [shape: s32[10], index: 1, kind: output, shape index: {}]  }
   0x1   :  { %v4_v0 = vld [vmem:[%s39_s0] sm:$0x3]  ;;  %s22_s0 = smov 5  }
   0x2   :  { %5 = vst [vmem:[#allocation1] sm:$0x3] %v4_v0 }
   0x9   :  { %v10_v1 = vld [vmem:[#allocation1 + $0x1] sm:$0x1]   ;;  %v6_v2 = vld [vmem:[#allocation1] sm:$0x1]  }
   0xa   :  { %11 = vrot.lane.b32.xlu0 %v10_v1, %s22_s0  ;;  %8 = vst.msk [vmem:[#allocation0] sm:$0x1] %vm7_vm0, %v6_v2  }
  0x7c   :  { %v12_v3 = vpop.permute.xlu0 %11  }
  0x7d   :  { %14 = vst.msk [vmem:[#allocation0] sm:$0x1] %vm13_vm1, %v12_v3  }
  0x84   :  { %v17_v4 = vld [vmem:[#allocation0] sm:$0x1] }
  0x85   :  { %20 = vst [vmem:[%s40_s1] sm:$0x1] %v17_v4 }

// kernel: clip_forward.4
= control target key start
LH: loop header
LB: loop body
LE: loop exit
PB: predicated region body
PF: predicated region fallthrough
CT: control target
= control target key end

     0   :  { %vm160_vm0 = vcmask 523264   ;;  %s517_s1 = inlined_call_operand.vmem [shape: bf16[192,256], index: 1, kind: input, shape index: {}]   ;;  %s518_s0 = inlined_call_operand.vmem [shape: f32[8,192], index: 0, kind: input, shape index: {}]   ;;  %s519_s2 = inlined_call_operand.vmem [shape: f32[8,256], index: 2, kind: output, shape index: {}]  }
   0x1   :  { %v280_v0 = vld [vmem:[%s517_s1 + $0x70] sm:$0xf]  ;;  %v335_v1 = vld [vmem:[%s517_s1 + $0x74] sm:$0xf0]  ;;  %v334_v2 = vld [vmem:[%s517_s1 + $0x74] sm:$0xf] }
   0x2   :  { %v281_v3 = vor.u32 %v335_v1, %v280_v0  ;;  %v282_v4 = vld [vmem:[%s517_s1 + $0x78] sm:$0xf0]  ;;  %v272_v5 = vld [vmem:[%s517_s1 + $0x60] sm:$0xf]  ;;  %v333_v6 = vld [vmem:[%s517_s1 + $0x64] sm:$0xf0] }
   0x3   :  { %v285_v7 = vor.u32 %v334_v2, %v282_v4  ;;  %v332_v8 = vld [vmem:[%s517_s1 + $0x64] sm:$0xf]  ;;  %v274_v9 = vld [vmem:[%s517_s1 + $0x68] sm:$0xf0]  ;;  %v273_v10 = vor.u32 %v333_v6, %v272_v5  ;;  %v264_v11 = vld [vmem:[%s517_s1 + $0x50] sm:$0xf] }
   0x4   :  { %164 = vmatpush.bf16.msra.mxu0 %v281_v3  ;;  %v277_v12 = vor.u32 %v332_v8, %v274_v9  ;;  %v331_v13 = vld [vmem:[%s517_s1 + $0x54] sm:$0xf0]  ;;  %v342_v14 = vld [vmem:[%s517_s1 + $0xb4] sm:$0xf]  ;;  %v314_v15 = vld [vmem:[%s517_s1 + $0xb8] sm:$0xf0] }
   0x5   :  { %190 = vmatpush.bf16.msra.mxu2 %v285_v7  ;;  %v330_v16 = vld [vmem:[%s517_s1 + $0x54] sm:$0xf]  ;;  %v266_v17 = vld [vmem:[%s517_s1 + $0x58] sm:$0xf0]  ;;  %v317_v18 = vor.u32 %v342_v14, %v314_v15  ;;  %v340_v19 = vld [vmem:[%s517_s1 + $0xa4] sm:$0xf]  ;;  %v265_v22 = vor.u32 %v331_v13, %v264_v11 }
   0x6   :  { %v306_v20 = vld [vmem:[%s517_s1 + $0xa8] sm:$0xf0]  ;;  %v312_v21 = vld [vmem:[%s517_s1 + $0xb0] sm:$0xf]  ;;  %v256_v23 = vld [vmem:[%s517_s1 + $0x40] sm:$0xf]  ;;  %v269_v27 = vor.u32 %v330_v16, %v266_v17 }
   0x7   :  { %207 = vmatpush.bf16.msra.mxu3 %v317_v18  ;;  %v329_v24 = vld [vmem:[%s517_s1 + $0x44] sm:$0xf0]  ;;  %v309_v25 = vor.u32 %v340_v19, %v306_v20  ;;  %v343_v26 = vld [vmem:[%s517_s1 + $0xb4] sm:$0xf0]  ;;  %v328_v28 = vld [vmem:[%s517_s1 + $0x44] sm:$0xf] }
   0x8   :  { %165 = vmatpush.bf16.msra.mxu0 %v273_v10  ;;  %v258_v29 = vld [vmem:[%s517_s1 + $0x48] sm:$0xf0]  ;;  %v313_v30 = vor.u32 %v343_v26, %v312_v21  ;;  %v338_v31 = vld [vmem:[%s517_s1 + $0x94] sm:$0xf]  ;;  %v298_v32 = vld [vmem:[%s517_s1 + $0x98] sm:$0xf0]  ;;  %v257_v36 = vor.u32 %v329_v24, %v256_v23 }
   0x9   :  { %191 = vmatpush.bf16.msra.mxu2 %v277_v12  ;;  %v304_v33 = vld [vmem:[%s517_s1 + $0xa0] sm:$0xf]  ;;  %v341_v34 = vld [vmem:[%s517_s1 + $0xa4] sm:$0xf0]  ;;  %v248_v37 = vld [vmem:[%s517_s1 + $0x30] sm:$0xf]  ;;  %v301_v39 = vor.u32 %v338_v31, %v298_v32  ;;  %v261_v41 = vor.u32 %v328_v28, %v258_v29 }
   0xa   :  { %181 = vmatpush.bf16.msra.mxu1 %v313_v30  ;;  %v305_v35 = vor.u32 %v341_v34, %v304_v33  ;;  %v327_v38 = vld [vmem:[%s517_s1 + $0x34] sm:$0xf0]  ;;  %v336_v40 = vld [vmem:[%s517_s1 + $0x84] sm:$0xf]  ;;  %v290_v42 = vld [vmem:[%s517_s1 + $0x88] sm:$0xf0] }
   0xb   :  { %208 = vmatpush.bf16.msra.mxu3 %v309_v25  ;;  %v296_v43 = vld [vmem:[%s517_s1 + $0x90] sm:$0xf]  ;;  %v339_v44 = vld [vmem:[%s517_s1 + $0x94] sm:$0xf0]  ;;  %v326_v45 = vld [vmem:[%s517_s1 + $0x34] sm:$0xf]  ;;  %v249_v48 = vor.u32 %v327_v38, %v248_v37  ;;  %v293_v49 = vor.u32 %v336_v40, %v290_v42 }
   0xc   :  { %166 = vmatpush.bf16.msra.mxu0 %v265_v22  ;;  %v250_v46 = vld [vmem:[%s517_s1 + $0x38] sm:$0xf0]  ;;  %v297_v47 = vor.u32 %v339_v44, %v296_v43  ;;  %v13_v50 = vld [vmem:[%s518_s0 + $0x8] sm:$0xff]  ;;  %v288_v51 = vld [vmem:[%s517_s1 + $0x80] sm:$0xf] }
   0xd   :  { %192 = vmatpush.bf16.msra.mxu2 %v269_v27  ;;  %v337_v52 = vld [vmem:[%s517_s1 + $0x84] sm:$0xf0]  ;;  %v253_v53 = vor.u32 %v326_v45, %v250_v46  ;;  %v240_v54 = vld [vmem:[%s517_s1 + $0x20] sm:$0xf]  ;;  %v324_v56 = vld [vmem:[%s517_s1 + $0x24] sm:$0xf]  ;;  %v15_v58 = vpack.c.bf16 %v13_v50, %v13_v50 }
   0xe   :  { %182 = vmatpush.bf16.msra.mxu1 %v305_v35  ;;  %v325_v55 = vld [vmem:[%s517_s1 + $0x24] sm:$0xf0]  ;;  %v242_v57 = vld [vmem:[%s517_s1 + $0x28] sm:$0xf0]  ;;  %v289_v59 = vor.u32 %v337_v52, %v288_v51  ;;  %v232_v62 = vld [vmem:[%s517_s1 + $0x10] sm:$0xf] }
   0xf   :  { %209 = vmatpush.bf16.msra.mxu3 %v301_v39  ;;  %v241_v60 = vor.u32 %v325_v55, %v240_v54  ;;  %v245_v61 = vor.u32 %v324_v56, %v242_v57  ;;  %v323_v63 = vld [vmem:[%s517_s1 + $0x14] sm:$0xf0]  ;;  %v322_v0 = vld [vmem:[%s517_s1 + $0x14] sm:$0xf]  ;;  %v234_v1 = vld [vmem:[%s517_s1 + $0x18] sm:$0xf0] }
  0x10   :  { %167 = vmatpush.bf16.msra.mxu0 %v257_v36  ;;  %v233_v2 = vor.u32 %v323_v63, %v232_v62  ;;  %v237_v3 = vor.u32 %v322_v0, %v234_v1  ;;  %v224_v4 = vld [vmem:[%s517_s1] sm:$0xf]  ;;  %v321_v5 = vld [vmem:[%s517_s1 + $0x4] sm:$0xf0]  ;;  %v320_v6 = vld [vmem:[%s517_s1 + $0x4] sm:$0xf] }
  0x11   :  { %193 = vmatpush.bf16.msra.mxu2 %v261_v41  ;;  %v226_v7 = vld [vmem:[%s517_s1 + $0x8] sm:$0xf0]  ;;  %v225_v8 = vor.u32 %v321_v5, %v224_v4  ;;  %v12_v9 = vld [vmem:[%s518_s0] sm:$0xff] }
  0x12   :  { %183 = vmatpush.bf16.msra.mxu1 %v297_v47  ;;  %v229_v10 = vor.u32 %v320_v6, %v226_v7  ;;  %v14_v11 = vpack.c.bf16 %v12_v9, %v12_v9 }
  0x13   :  { %210 = vmatpush.bf16.msra.mxu3 %v293_v49 }
  0x14   :  { %168 = vmatpush.bf16.msra.mxu0 %v249_v48 }
  0x15   :  { %194 = vmatpush.bf16.msra.mxu2 %v253_v53 }
  0x16   :  { %319 = vmatmul.msk.bf16.vlgmr.msra.gmra.mxu3 %vm160_vm0, %v15_v58  ;;  %184 = vmatpush.bf16.msra.mxu1 %v289_v59 }
  0x18   :  { %169 = vmatpush.bf16.msra.mxu0 %v241_v60 }
  0x19   :  { %195 = vmatpush.bf16.msra.mxu2 %v245_v61  ;;  %318 = vmatmul.msk.bf16.vlgmr.msra.gmra.mxu1 %vm160_vm0, %v15_v58 }
  0x1c   :  { %170 = vmatpush.bf16.msra.mxu0 %v233_v2 }
  0x1d   :  { %196 = vmatpush.bf16.msra.mxu2 %v237_v3 }
  0x20   :  { %171 = vmatpush.bf16.msra.mxu0 %v225_v8 }
  0x21   :  { %197 = vmatpush.bf16.msra.mxu2 %v229_v10 }
  0x23   :  { %172 = vmatmul.bf16.vlgmr.msra.gmra.mxu0 %v14_v11 }
  0x24   :  { %198 = vmatmul.bf16.vlgmr.msra.gmra.mxu2 %v14_v11 }
  0x96   :  { %v186_v12 = vpop.f32.mrf.mxu1 }
  0x99   :  { %v212_v13 = vpop.f32.mrf.mxu3 }
  0x9e   :  { %v188_v14 = vpop.f32.mrf.mxu1 }
  0xa0   :  { %v173_v15 = vpop.f32.mrf.mxu0 }
  0xa1   :  { %v187_v16 = vadd.f32 %v186_v12, %v173_v15  ;;  %v214_v17 = vpop.f32.mrf.mxu3 }
  0xa3   :  { %216 = vst [vmem:[%s519_s2] sm:$0xff] %v187_v16 }
  0xa7   :  { %v199_v18 = vpop.f32.mrf.mxu2 }
  0xa8   :  { %v213_v19 = vadd.f32 %v212_v13, %v199_v18  ;;  %v175_v20 = vpop.f32.mrf.mxu0 }
  0xaa   :  { %217 = vst [vmem:[%s519_s2 + $0x8] sm:$0xff] %v213_v19 }
  0xaf   :  { %v201_v21 = vpop.f32.mrf.mxu2 }

// kernel: clip_forward.7
= control target key start
LH: loop header
LB: loop body
LE: loop exit
PB: predicated region body
PF: predicated region fallthrough
CT: control target
= control target key end

     0   :  { %16 = vsyncpa [#allocation3], 0  ;;  %s1071_s0 = inlined_call_operand.vmem [shape: f32[2,256], index: 0, kind: input, shape index: {}]   ;;  %s1072_s1 = inlined_call_operand.vmem [shape: f32[2,256], index: 1, kind: input, shape index: {}]   ;;  %s1073_s2 = inlined_call_operand.vmem [shape: f32[1,256], index: 2, kind: input, shape index: {}]   ;;  %s1074_s3 = inlined_call_operand.vmem [shape: f32[1,256], index: 3, kind: input, shape index: {}]   ;;  %s1075_s4 = inlined_call_operand.vmem [shape: f32[1,256], index: 4, kind: input, shape index: {}]   ;;  %s1076_s5 = inlined_call_operand.vmem [shape: f32[1,256], index: 5, kind: input, shape index: {}]   ;;  %s1077_s6 = inlined_call_operand.vmem [shape: bf16[256,128], index: 6, kind: input, shape index: {}]   ;;  %s1078_s7 = inlined_call_operand.vmem [shape: bf16[256,128], index: 7, kind: input, shape index: {}]   ;;  %s1079_s8 = inlined_call_operand.hbm [shape: f32[2,128], index: 8, kind: output, shape index: {0}]   ;;  %s1080_s9 = inlined_call_operand.hbm [shape: f32[2,128], index: 9, kind: output, shape index: {1}]   ;;  %s1081_s10 = inlined_call_operand.hbm [shape: f32[2,2], index: 10, kind: output, shape index: {2}]  }
   0x1   :  { %v34_v0 = vld [vmem:[%s1071_s0] sm:$0xf] }
   0x2   :  { %38 = vst [vmem:[#allocation1] ss:$4 sm:$0xff] %v34_v0 }
   0x3   :  { %17 = vsyncpa [#allocation5], 0  ;;  %vm43_vm0 = vcmask 1041408   ;;  %v852_v6 = vmov 256.0   ;;  %v853_v12 = vmov 269488144  }
   0x4   :  { %766 = vrcp.f32 %v852_v6  ;;  %v59_v13 = vunpack.c.l.s4 %v853_v12  ;;  %v109_v21 = vld [vmem:[%s1072_s1] sm:$0xf]  ;;  %v736_v32 = vld [vmem:[%s1077_s6 + $0x38] sm:$0xff]  ;;  %v735_v34 = vld [vmem:[%s1077_s6 + $0x30] sm:$0xff]  ;;  %s572_s17 = sshll.u32 %s1080_s9, 4  ;;  %s561_s19 = sshll.u32 %s1079_s8, 4  ;;  %s573_s17 = int_to_ptr.hbm [resolvable:$true] %s572_s17  ;;  %s562_s19 = int_to_ptr.hbm [resolvable:$true] %s561_s19 }
   0x5   :  { %v744_v33 = vld [vmem:[%s1077_s6 + $0x78] sm:$0xff]  ;;  %312 = vmatpush.bf16.msra.mxu0 %v736_v32  ;;  %v743_v35 = vld [vmem:[%s1077_s6 + $0x70] sm:$0xff]  ;;  %v734_v36 = vld [vmem:[%s1077_s6 + $0x28] sm:$0xff]  ;;  %s855_s20 = smov [#allocation2]   ;;  %s856_s22 = smov [#allocation6]   ;;  %vm552_vm14 = vcmask 9216  }
   0x6   :  { %v919_v15 = vunpack.c.0.s8 %v59_v13  ;;  %325 = vmatpush.bf16.msra.mxu1 %v744_v33  ;;  %v742_v37 = vld [vmem:[%s1077_s6 + $0x68] sm:$0xff]  ;;  %v733_v38 = vld [vmem:[%s1077_s6 + $0x20] sm:$0xff]  ;;  %v732_v40 = vld [vmem:[%s1077_s6 + $0x18] sm:$0xff]  ;;  %s559_s21 = sshll.u32 %s855_s20, 4  ;;  %s581_s23 = sshll.u32 %s856_s22, 4  ;;  %s560_s21 = int_to_ptr.vmem [resolvable:$true] %s559_s21  ;;  %s582_s23 = int_to_ptr.vmem [resolvable:$true] %s581_s23 }
   0x7   :  { %v741_v39 = vld [vmem:[%s1077_s6 + $0x60] sm:$0xff]  ;;  %v740_v41 = vld [vmem:[%s1077_s6 + $0x58] sm:$0xff]  ;;  %v731_v42 = vld [vmem:[%s1077_s6 + $0x10] sm:$0xff]  ;;  %s583_s25 = sshll.u32 %s1081_s10, 4  ;;  %s584_s25 = int_to_ptr.hbm [resolvable:$true] %s583_s25 }
   0x8   :  { %v739_v43 = vld [vmem:[%s1077_s6 + $0x50] sm:$0xff]  ;;  %v730_v44 = vld [vmem:[%s1077_s6 + $0x8] sm:$0xff]  ;;  %v729_v48 = vld [vmem:[%s1077_s6] sm:$0xff] }
   0x9   :  { %v39_v1 = vld.sshfl [vmem:[#allocation1] sm:$0xff pattern:$0x73625140]  ;;  %v40_v2 = vld.sshfl [vmem:[#allocation1 + $0x8] sm:$0xff pattern:$0x73625140]  ;;  %313 = vmatpush.bf16.msra.mxu0 %v735_v34 }
   0xa   :  { %v44_v3 = vsel %vm43_vm0, %v39_v1, 0.0  ;;  %v45_v4 = vsel %vm43_vm0, %v40_v2, 0.0  ;;  %v767_v7 = vpop.eup %766  ;;  %326 = vmatpush.bf16.msra.mxu1 %v743_v35  ;;  %v738_v45 = vld [vmem:[%s1077_s6 + $0x48] sm:$0xff]  ;;  %v737_v49 = vld [vmem:[%s1077_s6 + $0x40] sm:$0xff]  ;;  %v748_v32 = vld [vmem:[%s1078_s7 + $0x18] sm:$0xff] }
   0xb   :  { %v46_v5 = vadd.f32 %v45_v4, %v44_v3  ;;  %v50_v8 = vmul.f32 256.0, %v767_v7  ;;  %vm54_vm1 = vweird.f32 %v767_v7  ;;  %v35_v56 = vld [vmem:[%s1073_s2] sm:$0x3]  ;;  %v756_v33 = vld [vmem:[%s1078_s7 + $0x58] sm:$0xff]  ;;  %v747_v34 = vld [vmem:[%s1078_s7 + $0x10] sm:$0xff] }
   0xc   :  { %v36_v59 = vld [vmem:[%s1074_s3] sm:$0x3]  ;;  %v97_v61 = vperm.slane %v35_v56, 1  ;;  %v96_v1 = vperm.slane %v35_v56, 0  ;;  %v755_v35 = vld [vmem:[%s1078_s7 + $0x50] sm:$0xff] }
   0xd   :  { %47 = vadd.xlane.f32.xlu0 %v46_v5  ;;  %v51_v9 = vsub.f32 1.0, %v50_v8  ;;  %314 = vmatpush.bf16.msra.mxu0 %v734_v36  ;;  %v104_v63 = vperm.slane %v36_v59, 1  ;;  %v103_v4 = vperm.slane %v36_v59, 0  ;;  %v746_v36 = vld [vmem:[%s1078_s7 + $0x8] sm:$0xff] }
   0xe   :  { %327 = vmatpush.bf16.msra.mxu1 %v742_v37  ;;  %v98_v2 = vrot.slane %v97_v61, 6  ;;  %v754_v37 = vld [vmem:[%s1078_s7 + $0x48] sm:$0xff] }
   0xf   :  { %v52_v10 = vmul.f32 %v767_v7, %v51_v9  ;;  %v105_v5 = vrot.slane %v104_v63, 6 }
  0x10   :  { %v99_v8 = vsel %vm43_vm0, %v96_v1, %v98_v2 }
  0x11   :  { %v53_v11 = vadd.f32 %v767_v7, %v52_v10  ;;  %315 = vmatpush.bf16.msra.mxu0 %v733_v38 }
  0x12   :  { %328 = vmatpush.bf16.msra.mxu1 %v741_v39 }
  0x13   :  { %v917_v14 = vsel %vm54_vm1, %v767_v7, %v53_v11 }
  0x15   :  { %316 = vmatpush.bf16.msra.mxu0 %v732_v40  ;;  %v745_v40 = vld [vmem:[%s1078_s7] sm:$0xff] }
  0x16   :  { %329 = vmatpush.bf16.msra.mxu1 %v740_v41  ;;  %v753_v41 = vld [vmem:[%s1078_s7 + $0x40] sm:$0xff] }
  0x19   :  { %317 = vmatpush.bf16.msra.mxu0 %v731_v42 }
  0x1a   :  { %330 = vmatpush.bf16.msra.mxu1 %v739_v43 }
  0x1d   :  { %318 = vmatpush.bf16.msra.mxu0 %v730_v44 }
  0x1e   :  { %331 = vmatpush.bf16.msra.mxu1 %v738_v45 }
  0x21   :  { %319 = vmatpush.bf16.msra.mxu0 %v729_v48 }
  0x22   :  { %332 = vmatpush.bf16.msra.mxu1 %v737_v49 }
  0x80   :  { %v48_v16 = vpop.xlane.xlu0 %47 }
  0x81   :  { %v56_v17 = vmul.f32 %v917_v14, %v48_v16  ;;  %v106_v16 = vsel %vm43_vm0, %v103_v4, %v105_v5 }
  0x83   :  { %v61_v18 = vperm.slane %v56_v17, %v919_v15 }
  0x85   :  { %v923_v19 = vsub.f32 %v34_v0, %v61_v18 }
  0x87   :  { %v64_v20 = vmul.f32 %v923_v19, %v923_v19 }
  0x89   :  { %66 = vst [vmem:[#allocation1] ss:$4 sm:$0xff] %v64_v20 }
  0x90   :  { %v67_v22 = vld.sshfl [vmem:[#allocation1] sm:$0xff pattern:$0x73625140]  ;;  %v68_v23 = vld.sshfl [vmem:[#allocation1 + $0x8] sm:$0xff pattern:$0x73625140] }
  0x91   :  { %v71_v24 = vsel %vm43_vm0, %v67_v22, 0.0  ;;  %v72_v25 = vsel %vm43_vm0, %v68_v23, 0.0  ;;  %113 = vst [vmem:[#allocation1] ss:$4 sm:$0xff] %v109_v21 }
  0x92   :  { %v73_v26 = vadd.f32 %v72_v25, %v71_v24  ;;  %v760_v25 = vld [vmem:[%s1078_s7 + $0x78] sm:$0xff] }
  0x93   :  { %487 = vmatpush.bf16.msra.mxu3 %v760_v25 }
  0x94   :  { %74 = vadd.xlane.f32.xlu1 %v73_v26  ;;  %v751_v26 = vld [vmem:[%s1078_s7 + $0x30] sm:$0xff] }
  0x98   :  { %v114_v27 = vld.sshfl [vmem:[#allocation1] sm:$0xff pattern:$0x73625140]  ;;  %v115_v28 = vld.sshfl [vmem:[#allocation1 + $0x8] sm:$0xff pattern:$0x73625140] }
  0x99   :  { %v118_v29 = vsel %vm43_vm0, %v114_v27, 0.0  ;;  %v119_v30 = vsel %vm43_vm0, %v115_v28, 0.0  ;;  %v759_v27 = vld [vmem:[%s1078_s7 + $0x70] sm:$0xff]  ;;  %v750_v28 = vld [vmem:[%s1078_s7 + $0x28] sm:$0xff] }
  0x9a   :  { %v120_v31 = vadd.f32 %v119_v30, %v118_v29  ;;  %488 = vmatpush.bf16.msra.mxu3 %v759_v27  ;;  %v758_v29 = vld [vmem:[%s1078_s7 + $0x68] sm:$0xff]  ;;  %v749_v30 = vld [vmem:[%s1078_s7 + $0x20] sm:$0xff] }
  0x9c   :  { %121 = vadd.xlane.f32.xlu0 %v120_v31  ;;  %v757_v31 = vld [vmem:[%s1078_s7 + $0x60] sm:$0xff] }
  0x9e   :  { %489 = vmatpush.bf16.msra.mxu3 %v758_v29 }
  0xa2   :  { %490 = vmatpush.bf16.msra.mxu3 %v757_v31 }
  0xa6   :  { %491 = vmatpush.bf16.msra.mxu3 %v756_v33 }
  0xaa   :  { %492 = vmatpush.bf16.msra.mxu3 %v755_v35 }
  0xae   :  { %493 = vmatpush.bf16.msra.mxu3 %v754_v37 }
  0xb2   :  { %494 = vmatpush.bf16.msra.mxu3 %v753_v41 }
 0x107   :  { %v75_v46 = vpop.xlane.xlu1 %74 }
 0x108   :  { %v76_v47 = vmul.f32 %v75_v46, %v917_v14  ;;  %v111_v46 = vld [vmem:[%s1076_s5] sm:$0x3] }
 0x109   :  { %v171_v49 = vperm.slane %v111_v46, 1 }
 0x10a   :  { %v77_v50 = vadd.f32 1e-05, %v76_v47 }
 0x10c   :  { %768 = vrsqrt.f32 %v77_v50  ;;  %vm84_vm3 = vweird.f32 %v77_v50 }
 0x10f   :  { %v122_v51 = vpop.xlane.xlu0 %121 }
 0x110   :  { %v123_v52 = vmul.f32 %v122_v51, %v917_v14 }
 0x112   :  { %v769_v53 = vpop.eup %768  ;;  %v128_v54 = vperm.slane %v123_v52, %v919_v15 }
 0x113   :  { %v79_v55 = vmul.f32 %v769_v53, %v77_v50  ;;  %vm85_vm2 = vweird.f32 %v769_v53 }
 0x114   :  { %v988_v57 = vsub.f32 %v109_v21, %v128_v54  ;;  %vm86_vm4 = vmor %vm84_vm3, %vm85_vm2  ;;  %v170_v54 = vperm.slane %v111_v46, 0 }
 0x115   :  { %v80_v58 = vmul.f32 %v769_v53, %v79_v55  ;;  %v172_v55 = vrot.slane %v171_v49, 6 }
 0x116   :  { %v131_v60 = vmul.f32 %v988_v57, %v988_v57 }
 0x117   :  { %v81_v62 = vmul.f32 0.5, %v80_v58 }
 0x118   :  { %133 = vst [vmem:[#allocation1] ss:$4 sm:$0xff] %v131_v60 }
 0x119   :  { %v82_v0 = vsub.f32 1.5, %v81_v62 }
 0x11b   :  { %v83_v3 = vmul.f32 %v769_v53, %v82_v0  ;;  %v173_v0 = vsel %vm43_vm0, %v170_v54, %v172_v55 }
 0x11d   :  { %v87_v6 = vsel %vm86_vm4, %v769_v53, %v83_v3 }
 0x11e   :  { %v92_v7 = vperm.slane %v87_v6, %v919_v15 }
 0x11f   :  { %v134_v9 = vld.sshfl [vmem:[#allocation1] sm:$0xff pattern:$0x73625140]  ;;  %v135_v10 = vld.sshfl [vmem:[#allocation1 + $0x8] sm:$0xff pattern:$0x73625140] }
 0x120   :  { %v94_v11 = vmul.f32 %v92_v7, %v923_v19  ;;  %v138_v12 = vsel %vm43_vm0, %v134_v9, 0.0  ;;  %v139_v13 = vsel %vm43_vm0, %v135_v10, 0.0  ;;  %v752_v19 = vld [vmem:[%s1078_s7 + $0x38] sm:$0xff] }
 0x121   :  { %v140_v17 = vadd.f32 %v139_v13, %v138_v12  ;;  %474 = vmatpush.bf16.msra.mxu2 %v752_v19 }
 0x122   :  { %v101_v18 = vmul.f32 %v99_v8, %v94_v11 }
 0x123   :  { %141 = vadd.xlane.f32.xlu1 %v140_v17 }
 0x124   :  { %v108_v20 = vadd.f32 %v106_v16, %v101_v18 }
 0x125   :  { %475 = vmatpush.bf16.msra.mxu2 %v751_v26 }
 0x126   :  { %177 = vst [vmem:[#allocation1] ss:$4 sm:$0xff] %v108_v20 }
 0x129   :  { %476 = vmatpush.bf16.msra.mxu2 %v750_v28 }
 0x12d   :  { %v178_v21 = vld.sshfl [vmem:[#allocation1] sm:$0xff pattern:$0x73625140]  ;;  %v179_v22 = vld.sshfl [vmem:[#allocation1 + $0x8] sm:$0xff pattern:$0x73625140]  ;;  %477 = vmatpush.bf16.msra.mxu2 %v749_v30 }
 0x12e   :  { %v182_v23 = vpack.c.bf16 %v178_v21, %v178_v21  ;;  %v183_v24 = vpack.c.bf16 %v179_v22, %v179_v22 }
 0x130   :  { %320 = vmatmul.bf16.vlgmr.msra.gmra.mxu0 %v182_v23  ;;  %333 = vmatmul.bf16.vlgmr.msra.gmra.mxu1 %v183_v24 }
 0x131   :  { %478 = vmatpush.bf16.msra.mxu2 %v748_v32 }
 0x135   :  { %479 = vmatpush.bf16.msra.mxu2 %v747_v34 }
 0x139   :  { %480 = vmatpush.bf16.msra.mxu2 %v746_v36 }
 0x13d   :  { %481 = vmatpush.bf16.msra.mxu2 %v745_v40 }
 0x196   :  { %v142_v38 = vpop.xlane.xlu1 %141 }
 0x197   :  { %v143_v39 = vmul.f32 %v142_v38, %v917_v14  ;;  %v110_v14 = vld [vmem:[%s1075_s4] sm:$0x3]  ;;  %s854_s4 = smov [#allocation4]  }
 0x198   :  { %v164_v47 = vperm.slane %v110_v14, 1  ;;  %v163_v51 = vperm.slane %v110_v14, 0  ;;  %s570_s5 = sshll.u32 %s854_s4, 4  ;;  %s571_s5 = int_to_ptr.vmem [resolvable:$true] %s570_s5 }
 0x199   :  { %v144_v42 = vadd.f32 1e-05, %v143_v39 }
 0x19a   :  { %v165_v52 = vrot.slane %v164_v47, 6 }
 0x19b   :  { %770 = vrsqrt.f32 %v144_v42  ;;  %vm151_vm6 = vweird.f32 %v144_v42 }
 0x19c   :  { %v166_v61 = vsel %vm43_vm0, %v163_v51, %v165_v52 }
 0x1a1   :  { %v771_v43 = vpop.eup %770 }
 0x1a2   :  { %v146_v44 = vmul.f32 %v771_v43, %v144_v42  ;;  %vm152_vm5 = vweird.f32 %v771_v43 }
 0x1a3   :  { %vm153_vm7 = vmor %vm151_vm6, %vm152_vm5 }
 0x1a4   :  { %v147_v45 = vmul.f32 %v771_v43, %v146_v44 }
 0x1a6   :  { %v148_v48 = vmul.f32 0.5, %v147_v45 }
 0x1a8   :  { %v149_v50 = vsub.f32 1.5, %v148_v48 }
 0x1aa   :  { %v150_v53 = vmul.f32 %v771_v43, %v149_v50 }
 0x1ac   :  { %v154_v56 = vsel %vm153_vm7, %v771_v43, %v150_v53 }
 0x1ad   :  { %v159_v58 = vperm.slane %v154_v56, %v919_v15  ;;  %v321_v59 = vpop.f32.mrf.mxu0  ;;  %v334_v60 = vpop.f32.mrf.mxu1 }
 0x1ae   :  { %v335_v62 = vadd.f32 %v334_v60, %v321_v59 }
 0x1af   :  { %v161_v63 = vmul.f32 %v159_v58, %v988_v57 }
 0x1b0   :  { %v500_v16 = vmul.f32 %v335_v62, %v335_v62 }
 0x1b1   :  { %v168_v1 = vmul.f32 %v166_v61, %v161_v63 }
 0x1b2   :  { %v501_v17 = vsel %vm43_vm0, %v500_v16, 0.0 }
 0x1b3   :  { %v175_v2 = vadd.f32 %v173_v0, %v168_v1 }
 0x1b5   :  { %339 = vst [vmem:[#allocation1] ss:$4 sm:$0xff] %v175_v2  ;;  %v323_v3 = vpop.f32.mrf.mxu0  ;;  %v336_v4 = vpop.f32.mrf.mxu1 }
 0x1bc   :  { %v340_v5 = vld.sshfl [vmem:[#allocation1] sm:$0xff pattern:$0x73625140]  ;;  %v341_v6 = vld.sshfl [vmem:[#allocation1 + $0x8] sm:$0xff pattern:$0x73625140] }
 0x1bd   :  { %v344_v7 = vpack.c.bf16 %v340_v5, %v340_v5  ;;  %v345_v8 = vpack.c.bf16 %v341_v6, %v341_v6 }
 0x1bf   :  { %482 = vmatmul.bf16.vlgmr.msra.gmra.mxu2 %v344_v7  ;;  %495 = vmatmul.bf16.vlgmr.msra.gmra.mxu3 %v345_v8 }
 0x242   :  { %v483_v15 = vpop.f32.mrf.mxu2  ;;  %v496_v9 = vpop.f32.mrf.mxu3 }
 0x243   :  { %v497_v10 = vadd.f32 %v496_v9, %v483_v15 }
 0x245   :  { %v515_v11 = vmul.f32 %v497_v10, %v497_v10 }
 0x247   :  { %v516_v12 = vsel %vm43_vm0, %v515_v11, 0.0 }
 0x248   :  { %517 = vadd.xlane.f32.xlu2 %v516_v12 }
 0x24a   :  { %v485_v57 = vpop.f32.mrf.mxu2  ;;  %v498_v13 = vpop.f32.mrf.mxu3 }
 0x250   :  { %502 = vadd.xlane.f32.xlu2 %v501_v17 }
 0x2bb   :  { %v518_v18 = vpop.xlane.xlu2 %517 }
 0x2bc   :  { %772 = vrsqrt.f32 %v518_v18  ;;  %vm525_vm9 = vweird.f32 %v518_v18 }
 0x2c2   :  { %v773_v20 = vpop.eup %772 }
 0x2c3   :  { %v520_v21 = vmul.f32 %v773_v20, %v518_v18  ;;  %v503_v22 = vpop.xlane.xlu2 %502  ;;  %vm526_vm8 = vweird.f32 %v773_v20 }
 0x2c4   :  { %774 = vrsqrt.f32 %v503_v22  ;;  %vm527_vm10 = vmor %vm525_vm9, %vm526_vm8  ;;  %vm510_vm12 = vweird.f32 %v503_v22 }
 0x2c5   :  { %v521_v23 = vmul.f32 %v773_v20, %v520_v21 }
 0x2c7   :  { %v522_v24 = vmul.f32 0.5, %v521_v23 }
 0x2c9   :  { %v523_v19 = vsub.f32 1.5, %v522_v24 }
 0x2ca   :  { %v775_v25 = vpop.eup %774 }
 0x2cb   :  { %v505_v26 = vmul.f32 %v775_v25, %v503_v22  ;;  %v524_v27 = vmul.f32 %v773_v20, %v523_v19  ;;  %vm511_vm11 = vweird.f32 %v775_v25 }
 0x2cc   :  { %vm512_vm13 = vmor %vm510_vm12, %vm511_vm11 }
 0x2cd   :  { %v506_v28 = vmul.f32 %v775_v25, %v505_v26  ;;  %v528_v29 = vsel %vm527_vm10, %v773_v20, %v524_v27 }
 0x2ce   :  { %v529_v30 = vmul.f32 %v528_v29, %v497_v10 }
 0x2cf   :  { %v507_v31 = vmul.f32 0.5, %v506_v28 }
 0x2d0   :  { %547 = vmatpush.xpose.msrb.mxu0 %v529_v30  ;;  %531 = vst [vmem:[#allocation4] sm:$0x3] %v529_v30 }
 0x2d1   :  { %v508_v32 = vsub.f32 1.5, %v507_v31  ;;  %575 = dma.vmem_to_hbm [thread:$0]  %s571_s5, 32, %s573_s17, [#allocation5]  }
 0x2d3   :  { %v509_v33 = vmul.f32 %v775_v25, %v508_v32 }
 0x2d5   :  { %v513_v34 = vsel %vm512_vm13, %v775_v25, %v509_v33 }
 0x2d6   :  { %v514_v35 = vmul.f32 %v513_v34, %v335_v62 }
 0x2d8   :  { %548 = vmatmul.f32.vlgmr.msrb.gmra.mxu0 %v514_v35  ;;  %530 = vst [vmem:[#allocation2] sm:$0x3] %v514_v35 }
 0x2d9   :  { %564 = dma.vmem_to_hbm [thread:$0]  %s560_s21, 32, %s562_s19, [#allocation3]  }
 0x355   :  { %v549_v36 = vpop.f32.mrf.mxu0 }
 0x356   :  { %553 = vst.msk [vmem:[#allocation6] sm:$0x3] %vm552_vm14, %v549_v36 }
 0x357   :  { %586 = dma.vmem_to_hbm [thread:$0]  %s582_s23, 32, %s584_s25, [#allocation5]  }
 0x358   :  { %848 = dma.done.wait [#allocation3], 32  }
 0x359   :  { %849 = vsyncadd [#allocation3], 4294967264 }
 0x35a   :  { %850 = dma.done.wait [#allocation5], 64  }
 0x35b   :  { %851 = vsyncadd [#allocation5], 4294967232 }
 0x35c   :  { %599 = vsyncpa [#allocation3], 1 }
 0x35d   :  { %600 = vsyncpa [#allocation5], 1 }

// kernel: clip_forward.5
= control target key start
LH: loop header
LB: loop body
LE: loop exit
PB: predicated region body
PF: predicated region fallthrough
CT: control target
= control target key end

     0   :  { %s6384_s0 = inlined_call_operand.vmem [shape: f32[10,256], index: 0, kind: input, shape index: {}]   ;;  %s6385_s1 = inlined_call_operand.vmem [shape: f32[10,10], index: 1, kind: input, shape index: {}]   ;;  %s6386_s2 = inlined_call_operand.vmem [shape: f32[1,256], index: 2, kind: input, shape index: {}]   ;;  %s6387_s3 = inlined_call_operand.vmem [shape: f32[1,256], index: 3, kind: input, shape index: {}]   ;;  %s6388_s4 = inlined_call_operand.vmem [shape: f32[2,1,256], index: 4, kind: input, shape index: {}]   ;;  %s6389_s5 = inlined_call_operand.vmem [shape: f32[2,1,256], index: 5, kind: input, shape index: {}]   ;;  %s6390_s6 = inlined_call_operand.hbm [shape: bf16[2,256,768], index: 6, kind: input, shape index: {}]   ;;  %s6391_s7 = inlined_call_operand.vmem [shape: f32[2,1,768], index: 7, kind: input, shape index: {}]   ;;  %s6392_s8 = inlined_call_operand.vmem [shape: bf16[2,256,256], index: 8, kind: input, shape index: {}]   ;;  %s6393_s9 = inlined_call_operand.vmem [shape: f32[2,1,256], index: 9, kind: input, shape index: {}]   ;;  %s6394_s10 = inlined_call_operand.vmem [shape: f32[2,1,256], index: 10, kind: input, shape index: {}]   ;;  %s6395_s11 = inlined_call_operand.vmem [shape: f32[2,1,256], index: 11, kind: input, shape index: {}]   ;;  %s6396_s12 = inlined_call_operand.hbm [shape: bf16[2,256,512], index: 12, kind: input, shape index: {}]   ;;  %s6397_s13 = inlined_call_operand.vmem [shape: f32[2,1,512], index: 13, kind: input, shape index: {}]   ;;  %s6398_s14 = inlined_call_operand.hbm [shape: bf16[2,512,256], index: 14, kind: input, shape index: {}]   ;;  %s6399_s15 = inlined_call_operand.vmem [shape: f32[2,1,256], index: 15, kind: input, shape index: {}]   ;;  %s6400_s16 = inlined_call_operand.vmem [shape: f32[10,256], index: 16, kind: output, shape index: {}]  }
   0x1   :  { %6410 = sst [smem:[#allocation13_spill]] %s6384_s0 }
   0x2   :  { %6411 = sst [smem:[#allocation14_spill]] %s6385_s1 }
   0x3   :  { %6412 = sst [smem:[#allocation15_spill]] %s6386_s2 }
   0x4   :  { %6413 = sst [smem:[#allocation16_spill]] %s6387_s3 }
   0x5   :  { %6414 = sst [smem:[#allocation17_spill]] %s6390_s6 }
   0x6   :  { %6415 = sst [smem:[#allocation18_spill]] %s6391_s7 }
   0x7   :  { %6416 = sst [smem:[#allocation19_spill]] %s6392_s8 }
   0x8   :  { %6417 = sst [smem:[#allocation20_spill]] %s6395_s11 }
   0x9   :  { %6418 = sst [smem:[#allocation21_spill]] %s6396_s12 }
   0xa   :  { %6419 = sst [smem:[#allocation22_spill]] %s6397_s13 }
   0xb   :  { %6420 = sst [smem:[#allocation23_spill]] %s6398_s14 }
   0xc   :  { %6421 = sst [smem:[#allocation24_spill]] %s6399_s15 }
   0xd   :  { %6422 = sst [smem:[#allocation25_spill]] %s6400_s16 }
   0xe   :  { %21 = vsyncpa [#allocation3], 0 }
   0xf   :  { %23 = vsyncpa [#allocation3 + $0x1], 0 }
  0x10   :  { %24 = vsyncpa [#allocation5], 0 }
  0x11   :  { %26 = vsyncpa [#allocation5 + $0x1], 0  ;;  %s5220_s21 = smov 0   ;;  %s5222_s22 = smov 0  }
  0x12   :  { %s5224_s23 = smov 0   ;;  %s5226_s24 = smov 0  }
  0x13 LB: > { %6423 = sst [smem:[#allocation9_spill]] %s5117_s22  ;;  %s5239_s25 = sadd.s32 4294967295, %s5125_s24   ;;  %s5125_s24 = sphi %s5226_s24, %s6459_s24   ;;  %s5121_s23 = sphi %s5224_s23, %s6462_s23   ;;  %s5117_s22 = sphi %s5222_s22, %s6461_s22   ;;  %s5113_s21 = sphi %s5220_s21, %s6460_s21  }
  0x14   : > { %6424 = sst [smem:[#allocation10_spill]] %s5121_s23  ;;  %s5242_s26 = sadd.s32 1, %s5125_s24  }
  0x15   : > { %6425 = sst [smem:[#allocation11_spill]] %s5242_s26  ;;  %s172_s27 = ssub.s32 %s5125_s24, %s5242_s26 }
  0x16   : > { %s175_s28 = sadd.s32 1, %s5121_s23  ;;  %p173_p0 = scmp.eq.s32.totalorder %s172_s27, 0 }
  0x17   : > { %p182_p1 = scmp.ne.s32.totalorder %s5121_s23, %s5117_s22  ;;  %p183_p2 = scmp.eq.s32.totalorder %s5125_s24, 0 }
  0x18   : > { %p188_p3 = scmp.ne.s32.totalorder %s5117_s22, %s5113_s21  ;;  %p189_p5 = scmp.eq.s32.totalorder %s5239_s25, 0 }
  0x19   : > { %s5252_s29 = scalar_select %p173_p0, %s5121_s23, %s175_s28  }
  0x1a   : > { %p184_p4 = por %p183_p2, %p182_p1  ;;  %p4888_p6 = scmp.lt.s32.totalorder %s5125_s24, 2 }
  0x1b   : > { %6426 = sst [smem:[#allocation12_spill]] %s5252_s29  ;;  %p5256_p7 = por %p189_p5, %p188_p3 }
  0x1c   : > { %s5261_s0 = sand.u32 1, %s5121_s23   ;;  %p5263_p8 = pnand %p4888_p6, %p184_p4 }
  0x1d   : > { %s551_s18 = sand.u32 1, %s5125_s24   ;;  %s6408_s19 = sshll.u32 %s5261_s0, 9 }
  0x1e   : > { %s4609_s20 = sshll.u32 %s5125_s24, 9  ;;  %s555_s21 = scalar_lea.vmem [#allocation4], %s6408_s19 }
  0x1f   : > { %s563_s27 = sshll.u32 %s555_s21, 4  ;;  %s6429_s12 = sld [smem:[#allocation21_spill]]  ;;  %s564_s27 = int_to_ptr.vmem [resolvable:$true] %s563_s27 }
  0x20   : > { %s5275_s1 = scalar_lea.sflag [#allocation5], %s551_s18  ;;  %p5001_p10 = pneg %p5263_p8 }
  0x25   : > { %s560_s26 = scalar_lea.hbm %s6429_s12, %s4609_s20  ;;  %s5004_s29 = scalar_lea.hbm %s6429_s12, 1024 }
  0x26   : > { %s561_s23 = sshll.u32 %s560_s26, 4  ;;  %s562_s23 = int_to_ptr.hbm [resolvable:$true] %s561_s23 }
  0x27   : > { %s4997_s16 = sshra.s32 %s562_s23, 4  ;;  %s4998_s16 = int_to_ptr.hbm [resolvable:$true] %s4997_s16 }
  0x28   : > { %s4999_s3 = scalar_lea.hbm %s4998_s16, 512  ;;  %p5005_p13 = scmp.lt.s32.totalorder %s4998_s16, %s6429_s12 }
  0x29   : > { %p5000_p9 = scmp.ne.s32.totalorder %s4998_s16, %s4999_s3  ;;  %p5006_p0 = scmp.lt.s32.totalorder %s5004_s29, %s4999_s3 }
  0x2b   : > { %p5002_p11 = pnand %p5001_p10, %p5000_p9  ;;  %p5007_p1 = por %p5006_p0, %p5005_p13 }
  0x2d   : > { %p5003_p12 = pneg %p5002_p11 }
  0x2f   : > { %p5008_p2 = pnand %p5007_p1, %p5003_p12 }
  0x31   : > { %5011 = shalt.err (!%p5008_p2)
}
  0x32   : > { %s5127_s26 = smov 256   ;;  %s5128_s18 = smov 16  }
  0x33   : > { %4884 = dma.hbm_to_vmem [thread:$0]  (!%p5263_p8), %s562_s23, 8192, %s564_s27, %s5275_s1, %s5127_s26, %s5127_s26, %s5128_s18  }
  0x34   : > { %s6430_s14 = sld [smem:[#allocation23_spill]]  ;;  %s6431_s3 = sshll.u32 %s5261_s0, 9 }
  0x35   : > { %s584_s29 = scalar_lea.vmem [#allocation6], %s6431_s3  ;;  %p3560_p3 = scmp.ge.s32.totalorder %s5125_s24, 1 }
  0x36   : > { %s592_s28 = sshll.u32 %s584_s29, 4  ;;  %p607_p4 = scmp.lt.s32.totalorder %s5125_s24, 3  ;;  %s5298_s28 = int_to_ptr.vmem [resolvable:$true] %s592_s28 }
  0x37   : > { %s4868_s12 = smul.u32 768, %s5261_s0  ;;  %s6433_s6 = sld [smem:[#allocation17_spill]] }
  0x38   : > { %p5303_p5 = pnand %p3560_p3, %p607_p4  ;;  %s4869_s23 = smul.u32 768, %s5125_s24 }
  0x39   : > { %s497_s18 = scalar_lea.vmem [#allocation2], %s4868_s12 }
  0x3a   : > { %s589_s2 = scalar_lea.hbm %s6430_s14, %s4609_s20  ;;  %s505_s19 = sshll.u32 %s497_s18, 4  ;;  %s506_s19 = int_to_ptr.vmem [resolvable:$true] %s505_s19 }
  0x3b   : > { %s590_s16 = sshll.u32 %s589_s2, 4  ;;  %s494_s2 = scalar_lea.sflag [#allocation3], %s5261_s0  ;;  %s5296_s16 = int_to_ptr.hbm [resolvable:$true] %s590_s16 }
  0x3d   : > { %s502_s26 = scalar_lea.hbm %s6433_s6, %s4869_s23  ;;  %s5034_s11 = scalar_lea.hbm %s6433_s6, 1536 }
  0x3e   : > { %s503_s21 = sshll.u32 %s502_s26, 4  ;;  %s504_s21 = int_to_ptr.hbm [resolvable:$true] %s503_s21 }
  0x3f   : > { %s5027_s3 = sshra.s32 %s504_s21, 4  ;;  %s5028_s3 = int_to_ptr.hbm [resolvable:$true] %s5027_s3 }
  0x40   : > { %s5029_s29 = scalar_lea.hbm %s5028_s3, 768  ;;  %p5035_p12 = scmp.lt.s32.totalorder %s5028_s3, %s6433_s6 }
  0x41   : > { %p5030_p6 = scmp.ne.s32.totalorder %s5028_s3, %s5029_s29  ;;  %p5036_p13 = scmp.lt.s32.totalorder %s5034_s11, %s5029_s29 }
  0x43   : > { %p5032_p9 = pnand %p5030_p6, %p5001_p10  ;;  %p5037_p0 = por %p5036_p13, %p5035_p12 }
  0x45   : > { %p5033_p11 = pneg %p5032_p9 }
  0x47   : > { %p5038_p1 = pnand %p5037_p0, %p5033_p11 }
  0x49   : > { %5041 = shalt.err (!%p5038_p1)
}
  0x4a   : > { %s5129_s12 = smov 384   ;;  %s5130_s0 = smov 24  }
  0x4b   : > { %4881 = dma.hbm_to_vmem [thread:$0]  (!%p5263_p8), %s504_s21, 12288, %s506_s19, %s494_s2, %s5129_s12, %s5129_s12, %s5130_s0  }
  0x4c   : > { %s5057_s20 = sshra.s32 %s5296_s16, 4  ;;  %s5064_s18 = scalar_lea.hbm %s6430_s14, 1024  ;;  %s5058_s20 = int_to_ptr.hbm [resolvable:$true] %s5057_s20 }
  0x4d   : > { %s5059_s26 = scalar_lea.hbm %s5058_s20, 512  ;;  %p5065_p6 = scmp.lt.s32.totalorder %s5058_s20, %s6430_s14 }
  0x4e   : > { %p5060_p2 = scmp.ne.s32.totalorder %s5058_s20, %s5059_s26  ;;  %p5066_p9 = scmp.lt.s32.totalorder %s5064_s18, %s5059_s26 }
  0x50   : > { %p5062_p3 = pnand %p5060_p2, %p5001_p10  ;;  %p5067_p11 = por %p5066_p9, %p5065_p6 }
  0x52   : > { %p5063_p4 = pneg %p5062_p3 }
  0x54   : > { %p5068_p12 = pnand %p5067_p11, %p5063_p4 }
  0x56   : > { %5071 = shalt.err (!%p5068_p12)
}
  0x57   : > { %s5131_s19 = smov 128   ;;  %s5132_s21 = smov 8  }
  0x58   : > { %4887 = dma.hbm_to_vmem [thread:$0]  (!%p5263_p8), %s5296_s16, 8192, %s5298_s28, %s5275_s1, %s5131_s19, %s5131_s19, %s5132_s21  }
  0x59   : > { %611 = sbr.rel (%p5303_p5) target bundleno = 2182 (0x886), region = 84  ;;  %s613_s2 = sand.u32 (!%p5303_p5), 1, %s5117_s22  }
  0x5a   : > { %s4870_s24 = smul.u32 (!%p5303_p5), 768, %s613_s2  ;;  %s614_s27 = scalar_lea.sflag (!%p5303_p5), [#allocation3], %s613_s2 }
  0x5c   : > { %s5341_s23 = scalar_lea.vmem (!%p5303_p5), [#allocation2], %s4870_s24 }
  0x5e   : > { %5104 = dma.done.wait (%p5256_p7), %s614_s27, 12288  }
  0x5f   : > { %5106 = vsyncadd (%p5256_p7), %s614_s27, 4294955008  ;;  %s623_s12 = sand.u32 1, %s5239_s25   ;;  %s3561_s17 = sshll.u32 %s613_s2, 9 }
  0x60   : > { %s624_s1 = scalar_lea.sflag [#allocation5], %s623_s12  ;;  %s5348_s16 = scalar_lea.vmem [#allocation4], %s3561_s17 }
  0x61   : > { %5108 = dma.done.wait (%p5256_p7), %s624_s1, 16384  }
  0x62   : > { %5110 = vsyncadd (%p5256_p7), %s624_s1, 4294950912  ;;  %p729_p8 = scmp.lt.s32.totalorder %s5239_s25, 1  ;;  %s6434_s7 = sld [smem:[#allocation18_spill]] }
  0x63   : > { %s6435_s8 = sld [smem:[#allocation19_spill]]  ;;  %s5397_s12 = scalar_lea.vmem [#allocation6], %s3561_s17 }
  0x64   : > { %s730_s13 = scalar_select %p729_p8, %s5239_s25, 1 }
  0x65   : > { %s6436_s6 = sld [smem:[#allocation20_spill]]  ;;  %p3572_p7 = scmp.ne.s32.totalorder %s5239_s25, 0 }
  0x66   : > { %s5356_s28 = sshll.u32 %s730_s13, 1  ;;  %s4871_s0 = smul.u32 6, %s730_s13 }
  0x67   : > { %s4611_s21 = sshll.u32 %s730_s13, 8  ;;  %s749_s20 = scalar_lea.vmem %s6393_s9, %s5356_s28 }
  0x68   : > { %s5369_s19 = scalar_lea.vmem %s6434_s7, %s4871_s0  ;;  %s753_s11 = scalar_lea.vmem %s6394_s10, %s5356_s28 }
  0x69   : > { %s5374_s27 = scalar_lea.vmem %s6435_s8, %s4611_s21  ;;  %s3570_s0 = sshll.u32 %s730_s13, 2 }
  0x6a   : > { %s6437_s14 = sld [smem:[#allocation24_spill]] }
  0x6b   : > { %s757_s3 = scalar_lea.vmem %s6436_s6, %s5356_s28  ;;  %s6438_s24 = sld [smem:[#allocation22_spill]] }
  0x6c   : > { %s6439_s26 = sld [smem:[#allocation13_spill]] (!%p3572_p7) }
  0x6d   : > { %770 = sbr.rel (%p3572_p7) target bundleno = 404 (0x194), region = 100  ;;  %s6441_s21 = sld [smem:[#allocation16_spill]] (!%p3572_p7) }
  0x6e   : > { %s6442_s1 = sld [smem:[#allocation25_spill]] (!%p3572_p7) }
  0x70   : > { %s765_s22 = scalar_lea.vmem %s6437_s14, %s5356_s28 }
  0x71   : > { %s5395_s8 = scalar_lea.vmem %s6438_s24, %s3570_s0  ;;  %s6440_s0 = sld [smem:[#allocation15_spill]] (!%p3572_p7) }
  0x72   : > { %v773_v0 = vld [vmem:[%s6439_s26 + $0x10] sm:$0x3]  ;;  %v774_v1 = vld [vmem:[%s6439_s26 + $0x18] sm:$0x3]  ;;  %vm780_vm0 = vcmask 1041408   ;;  %v771_v5 = vld [vmem:[%s6439_s26] sm:$0xff] }
  0x73   : > { %v781_v2 = vsel %vm780_vm0, %v773_v0, 0.0  ;;  %v782_v3 = vsel %vm780_vm0, %v774_v1, 0.0  ;;  %v772_v6 = vld [vmem:[%s6439_s26 + $0x8] sm:$0xff]  ;;  %v5133_v8 = vmov 256.0   ;;  %v776_v44 = vld [vmem:[%s6441_s21] sm:$0x3] }
  0x74   : > { %v783_v4 = vadd.f32 %v782_v3, %v781_v2  ;;  %v777_v7 = vadd.f32 %v772_v6, %v771_v5  ;;  %4929 = vrcp.f32 %v5133_v8  ;;  %v849_v51 = vperm.slane %v776_v44, 0 }
  0x75   : > { %v850_v52 = vperm.slane %v776_v44, 1 }
  0x76   : > { %784 = vadd.xlane.f32.xlu0 %v783_v4 }
  0x77   : > { %v775_v41 = vld [vmem:[%s6440_s0] sm:$0x3] }
  0x78   : > { %v840_v47 = vperm.slane %v775_v41, 0  ;;  %v841_v48 = vperm.slane %v775_v41, 1 }
  0x7a   : > { %v4930_v9 = vpop.eup %4929 }
  0x7b   : > { %v787_v10 = vmul.f32 256.0, %v4930_v9  ;;  %vm791_vm1 = vweird.f32 %v4930_v9 }
  0x7d   : > { %v788_v11 = vsub.f32 1.0, %v787_v10 }
  0x7e   : > { %778 = vadd.xlane.f32.xlu0 %v777_v7 }
  0x7f   : > { %v789_v12 = vmul.f32 %v4930_v9, %v788_v11 }
  0x81   : > { %v790_v14 = vadd.f32 %v4930_v9, %v789_v12 }
  0x83   : > { %v792_v15 = vsel %vm791_vm1, %v4930_v9, %v790_v14 }
  0xe9   : > { %v785_v13 = vpop.xlane.xlu0 %784 }
  0xea   : > { %v794_v16 = vmul.f32 %v792_v15, %v785_v13 }
  0xec   : > { %v797_v21 = vsub.f32 %v773_v0, %v794_v16  ;;  %v798_v22 = vsub.f32 %v774_v1, %v794_v16 }
  0xee   : > { %v801_v26 = vmul.f32 %v797_v21, %v797_v21  ;;  %v802_v27 = vmul.f32 %v798_v22, %v798_v22 }
  0xf0   : > { %v806_v28 = vsel %vm780_vm0, %v801_v26, 0.0  ;;  %v807_v29 = vsel %vm780_vm0, %v802_v27, 0.0 }
  0xf1   : > { %v779_v17 = vpop.xlane.xlu0 %778  ;;  %v808_v30 = vadd.f32 %v807_v29, %v806_v28 }
  0xf2   : > { %v793_v18 = vmul.f32 %v792_v15, %v779_v17 }
  0xf4   : > { %v795_v19 = vsub.f32 %v771_v5, %v793_v18  ;;  %v796_v20 = vsub.f32 %v772_v6, %v793_v18 }
  0xf6   : > { %v799_v23 = vmul.f32 %v795_v19, %v795_v19  ;;  %v800_v24 = vmul.f32 %v796_v20, %v796_v20 }
  0xf8   : > { %v803_v25 = vadd.f32 %v800_v24, %v799_v23 }
  0xfa   : > { %804 = vadd.xlane.f32.xlu1 %v803_v25 }
 0x102   : > { %809 = vadd.xlane.f32.xlu1 %v808_v30 }
 0x16d   : > { %v805_v31 = vpop.xlane.xlu1 %804 }
 0x16e   : > { %v811_v32 = vmul.f32 %v805_v31, %v792_v15 }
 0x170   : > { %v813_v33 = vadd.f32 1e-05, %v811_v32 }
 0x172   : > { %4931 = vrsqrt.f32 %v813_v33  ;;  %vm821_vm3 = vweird.f32 %v813_v33 }
 0x175   : > { %v810_v34 = vpop.xlane.xlu1 %809 }
 0x176   : > { %v812_v35 = vmul.f32 %v810_v34, %v792_v15 }
 0x178   : > { %v4932_v36 = vpop.eup %4931  ;;  %v814_v37 = vadd.f32 1e-05, %v812_v35 }
 0x179   : > { %v816_v38 = vmul.f32 %v4932_v36, %v813_v33  ;;  %vm822_vm2 = vweird.f32 %v4932_v36 }
 0x17a   : > { %4933 = vrsqrt.f32 %v814_v37  ;;  %vm823_vm4 = vmor %vm821_vm3, %vm822_vm2  ;;  %vm831_vm6 = vweird.f32 %v814_v37 }
 0x17b   : > { %v817_v39 = vmul.f32 %v4932_v36, %v816_v38 }
 0x17d   : > { %v818_v40 = vmul.f32 0.5, %v817_v39 }
 0x17f   : > { %v819_v42 = vsub.f32 1.5, %v818_v40 }
 0x180   : > { %v4934_v43 = vpop.eup %4933 }
 0x181   : > { %v820_v45 = vmul.f32 %v4932_v36, %v819_v42  ;;  %v826_v46 = vmul.f32 %v4934_v43, %v814_v37  ;;  %vm832_vm5 = vweird.f32 %v4934_v43 }
 0x182   : > { %vm833_vm7 = vmor %vm831_vm6, %vm832_vm5 }
 0x183   : > { %v824_v49 = vsel %vm823_vm4, %v4932_v36, %v820_v45  ;;  %v827_v50 = vmul.f32 %v4934_v43, %v826_v46 }
 0x184   : > { %v835_v53 = vmul.f32 %v824_v49, %v795_v19  ;;  %v836_v54 = vmul.f32 %v824_v49, %v796_v20 }
 0x185   : > { %v828_v55 = vmul.f32 0.5, %v827_v50 }
 0x186   : > { %v844_v56 = vmul.f32 %v840_v47, %v835_v53  ;;  %v845_v57 = vmul.f32 %v841_v48, %v836_v54 }
 0x187   : > { %v829_v58 = vsub.f32 1.5, %v828_v55 }
 0x188   : > { %v853_v59 = vadd.f32 %v849_v51, %v844_v56  ;;  %v854_v60 = vadd.f32 %v850_v52, %v845_v57 }
 0x189   : > { %v830_v61 = vmul.f32 %v4934_v43, %v829_v58 }
 0x18a   : > { %857 = vst [vmem:[%s6442_s1] sm:$0xff] %v853_v59 }
 0x18b   : > { %858 = vst [vmem:[%s6442_s1 + $0x8] sm:$0xff] %v854_v60  ;;  %v834_v62 = vsel %vm833_vm7, %v4934_v43, %v830_v61 }
 0x18c   : > { %v837_v63 = vmul.f32 %v834_v62, %v797_v21  ;;  %v838_v0 = vmul.f32 %v834_v62, %v798_v22 }
 0x18e   : > { %v846_v1 = vmul.f32 %v840_v47, %v837_v63  ;;  %v847_v2 = vmul.f32 %v841_v48, %v838_v0 }
 0x190   : > { %v855_v3 = vadd.f32 %v849_v51, %v846_v1  ;;  %v856_v4 = vadd.f32 %v850_v52, %v847_v2 }
 0x192   : > { %859 = vst [vmem:[%s6442_s1 + $0x10] sm:$0x3] %v855_v3 }
 0x193   : > { %860 = vst [vmem:[%s6442_s1 + $0x18] sm:$0x3] %v856_v4 }
 0x194 PF: > { %s6443_s0 = sld [smem:[#allocation25_spill]]  ;;  %vm872_vm8 = vcmask 1041408   ;;  %v5134_v13 = vmov 256.0   ;;  %v3743_v17 = vld [vmem:[%s5341_s23 + $0x150] sm:$0xf]  ;;  %s6444_s7 = scalar_lea.vmem %s6388_s4, %s5356_s28  ;;  %vm1786_vm0 = vcmask 1044480  }
 0x195   : > { %4935 = vrcp.f32 %v5134_v13  ;;  %v4657_v18 = vld [vmem:[%s5341_s23 + $0x164] sm:$0xf0]  ;;  %v3935_v19 = vld [vmem:[%s5341_s23 + $0x2d0] sm:$0xf]  ;;  %v4654_v22 = vld [vmem:[%s5341_s23 + $0x154] sm:$0xf]  ;;  %s6445_s17 = scalar_lea.vmem %s6389_s5, %s5356_s28 }
 0x196   : > { %v3744_v20 = vor.u32 %v4657_v18, %v3743_v17  ;;  %v4705_v21 = vld [vmem:[%s5341_s23 + $0x2e4] sm:$0xf0]  ;;  %v3745_v23 = vld [vmem:[%s5341_s23 + $0x168] sm:$0xf0]  ;;  %v4702_v26 = vld [vmem:[%s5341_s23 + $0x2d4] sm:$0xf] }
 0x197   : > { %v3936_v24 = vor.u32 %v4705_v21, %v3935_v19  ;;  %v3748_v25 = vor.u32 %v4654_v22, %v3745_v23  ;;  %v3937_v27 = vld [vmem:[%s5341_s23 + $0x2e8] sm:$0xf0]  ;;  %v3719_v28 = vld [vmem:[%s5341_s23 + $0x120] sm:$0xf]  ;;  %v4651_v30 = vld [vmem:[%s5341_s23 + $0x134] sm:$0xf0] }
 0x198   : > { %1541 = vmatpush.bf16.msra.mxu0 %v3744_v20  ;;  %v3940_v29 = vor.u32 %v4702_v26, %v3937_v27  ;;  %v3911_v31 = vld [vmem:[%s5341_s23 + $0x2a0] sm:$0xf]  ;;  %v4699_v32 = vld [vmem:[%s5341_s23 + $0x2b4] sm:$0xf0]  ;;  %v3720_v34 = vor.u32 %v4651_v30, %v3719_v28  ;;  %v4648_v36 = vld [vmem:[%s5341_s23 + $0x124] sm:$0xf] }
 0x199   : > { %1555 = vmatpush.bf16.msra.mxu1 %v3936_v24  ;;  %1569 = vmatpush.bf16.msra.mxu2 %v3748_v25  ;;  %v3912_v35 = vor.u32 %v4699_v32, %v3911_v31  ;;  %v3721_v37 = vld [vmem:[%s5341_s23 + $0x138] sm:$0xf0]  ;;  %v4696_v38 = vld [vmem:[%s5341_s23 + $0x2a4] sm:$0xf]  ;;  %v3695_v41 = vld [vmem:[%s5341_s23 + $0xf0] sm:$0xf] }
 0x19a   : > { %v5437_v5 = vld [vmem:[%s6443_s0 + $0x10] sm:$0x3]  ;;  %v5442_v6 = vld [vmem:[%s6443_s0 + $0x18] sm:$0x3]  ;;  %v5451_v10 = vld [vmem:[%s6443_s0] sm:$0xff]  ;;  %1583 = vmatpush.bf16.msra.mxu3 %v3940_v29  ;;  %v3724_v39 = vor.u32 %v4648_v36, %v3721_v37  ;;  %s6446_s18 = sld [smem:[#allocation14_spill]] }
 0x19b   : > { %v873_v7 = vsel %vm872_vm8, %v5437_v5, 0.0  ;;  %v874_v8 = vsel %vm872_vm8, %v5442_v6, 0.0  ;;  %v5456_v11 = vld [vmem:[%s6443_s0 + $0x8] sm:$0xff]  ;;  %v4936_v14 = vpop.eup %4935  ;;  %v3913_v40 = vld [vmem:[%s5341_s23 + $0x2b8] sm:$0xf0]  ;;  %vm1757_vm1 = vcmask 80896  }
 0x19c   : > { %v875_v9 = vadd.f32 %v874_v8, %v873_v7  ;;  %v869_v12 = vadd.f32 %v5456_v11, %v5451_v10  ;;  %v879_v15 = vmul.f32 256.0, %v4936_v14  ;;  %v4645_v42 = vld [vmem:[%s5341_s23 + $0x104] sm:$0xf0]  ;;  %v3916_v43 = vor.u32 %v4696_v38, %v3913_v40  ;;  %v3887_v44 = vld [vmem:[%s5341_s23 + $0x270] sm:$0xf]  ;;  %1542 = vmatpush.bf16.msra.mxu0 %v3720_v34 }
 0x19d   : > { %v4693_v45 = vld [vmem:[%s5341_s23 + $0x284] sm:$0xf0]  ;;  %v4642_v46 = vld [vmem:[%s5341_s23 + $0xf4] sm:$0xf]  ;;  %v3696_v48 = vor.u32 %v4645_v42, %v3695_v41  ;;  %v3697_v49 = vld [vmem:[%s5341_s23 + $0x108] sm:$0xf0]  ;;  %1556 = vmatpush.bf16.msra.mxu1 %v3912_v35  ;;  %1570 = vmatpush.bf16.msra.mxu2 %v3724_v39  ;;  %vm883_vm9 = vweird.f32 %v4936_v14 }
 0x19e   : > { %876 = vadd.xlane.f32.xlu0 %v875_v9  ;;  %v880_v16 = vsub.f32 1.0, %v879_v15  ;;  %v4690_v50 = vld [vmem:[%s5341_s23 + $0x274] sm:$0xf]  ;;  %v3889_v51 = vld [vmem:[%s5341_s23 + $0x288] sm:$0xf0]  ;;  %v3888_v53 = vor.u32 %v4693_v45, %v3887_v44  ;;  %v3700_v54 = vor.u32 %v4642_v46, %v3697_v49  ;;  %1584 = vmatpush.bf16.msra.mxu3 %v3916_v43  ;;  %vm1761_vm2 = vcmask 74752  }
 0x19f   : > { %v3671_v55 = vld [vmem:[%s5341_s23 + $0xc0] sm:$0xf]  ;;  %v4639_v56 = vld [vmem:[%s5341_s23 + $0xd4] sm:$0xf0]  ;;  %v3892_v58 = vor.u32 %v4690_v50, %v3889_v51  ;;  %v4636_v60 = vld [vmem:[%s5341_s23 + $0xc4] sm:$0xf] }
 0x1a0   : > { %v881_v33 = vmul.f32 %v4936_v14, %v880_v16  ;;  %v3863_v57 = vld [vmem:[%s5341_s23 + $0x240] sm:$0xf]  ;;  %v4687_v59 = vld [vmem:[%s5341_s23 + $0x254] sm:$0xf0]  ;;  %v3673_v61 = vld [vmem:[%s5341_s23 + $0xd8] sm:$0xf0]  ;;  %1543 = vmatpush.bf16.msra.mxu0 %v3696_v48  ;;  %v3672_v0 = vor.u32 %v4639_v56, %v3671_v55 }
 0x1a1   : > { %v4684_v62 = vld [vmem:[%s5341_s23 + $0x244] sm:$0xf]  ;;  %v3865_v63 = vld [vmem:[%s5341_s23 + $0x258] sm:$0xf0]  ;;  %1557 = vmatpush.bf16.msra.mxu1 %v3888_v53  ;;  %1571 = vmatpush.bf16.msra.mxu2 %v3700_v54  ;;  %v3864_v2 = vor.u32 %v4687_v59, %v3863_v57  ;;  %v3676_v3 = vor.u32 %v4636_v60, %v3673_v61  ;;  %v3647_v4 = vld [vmem:[%s5341_s23 + $0x90] sm:$0xf] }
 0x1a2   : > { %v882_v52 = vadd.f32 %v4936_v14, %v881_v33  ;;  %v4633_v7 = vld [vmem:[%s5341_s23 + $0xa4] sm:$0xf0]  ;;  %v3839_v8 = vld [vmem:[%s5341_s23 + $0x210] sm:$0xf]  ;;  %1585 = vmatpush.bf16.msra.mxu3 %v3892_v58  ;;  %v3868_v9 = vor.u32 %v4684_v62, %v3865_v63  ;;  %v4630_v13 = vld [vmem:[%s5341_s23 + $0x94] sm:$0xf] }
 0x1a3   : > { %v3649_v15 = vld [vmem:[%s5341_s23 + $0xa8] sm:$0xf0]  ;;  %v4678_v16 = vld [vmem:[%s5341_s23 + $0x214] sm:$0xf]  ;;  %v3623_v32 = vld [vmem:[%s5341_s23 + $0x60] sm:$0xf] }
 0x1a4   : > { %v5492_v1 = vsel %vm883_vm9, %v4936_v14, %v882_v52  ;;  %v3841_v17 = vld [vmem:[%s5341_s23 + $0x228] sm:$0xf0]  ;;  %1544 = vmatpush.bf16.msra.mxu0 %v3672_v0  ;;  %v3648_v14 = vor.u32 %v4633_v7, %v3647_v4  ;;  %v3652_v22 = vor.u32 %v4630_v13, %v3649_v15  ;;  %v4627_v33 = vld [vmem:[%s5341_s23 + $0x74] sm:$0xf0]  ;;  %v3815_v34 = vld [vmem:[%s5341_s23 + $0x1e0] sm:$0xf] }
 0x1a5   : > { %1558 = vmatpush.bf16.msra.mxu1 %v3864_v2  ;;  %1572 = vmatpush.bf16.msra.mxu2 %v3676_v3  ;;  %v3844_v23 = vor.u32 %v4678_v16, %v3841_v17  ;;  %v3624_v35 = vor.u32 %v4627_v33, %v3623_v32  ;;  %v4675_v36 = vld [vmem:[%s5341_s23 + $0x1f4] sm:$0xf0]  ;;  %v4624_v37 = vld [vmem:[%s5341_s23 + $0x64] sm:$0xf]  ;;  %v3625_v38 = vld [vmem:[%s5341_s23 + $0x78] sm:$0xf0] }
 0x1a6   : > { %870 = vadd.xlane.f32.xlu0 %v869_v12  ;;  %v4681_v12 = vld [vmem:[%s5341_s23 + $0x224] sm:$0xf0]  ;;  %1586 = vmatpush.bf16.msra.mxu3 %v3868_v9  ;;  %v3816_v39 = vor.u32 %v4675_v36, %v3815_v34  ;;  %v3628_v40 = vor.u32 %v4624_v37, %v3625_v38  ;;  %v4672_v41 = vld [vmem:[%s5341_s23 + $0x1e4] sm:$0xf]  ;;  %v3817_v42 = vld [vmem:[%s5341_s23 + $0x1f8] sm:$0xf0] }
 0x1a7   : > { %v3840_v21 = vor.u32 %v4681_v12, %v3839_v8  ;;  %v3820_v43 = vor.u32 %v4672_v41, %v3817_v42  ;;  %v3599_v44 = vld [vmem:[%s5341_s23 + $0x30] sm:$0xf]  ;;  %v4621_v45 = vld [vmem:[%s5341_s23 + $0x44] sm:$0xf0]  ;;  %v4618_v49 = vld [vmem:[%s5341_s23 + $0x34] sm:$0xf] }
 0x1a8   : > { %1545 = vmatpush.bf16.msra.mxu0 %v3648_v14  ;;  %v3791_v46 = vld [vmem:[%s5341_s23 + $0x1b0] sm:$0xf]  ;;  %v4669_v48 = vld [vmem:[%s5341_s23 + $0x1c4] sm:$0xf0]  ;;  %v3601_v50 = vld [vmem:[%s5341_s23 + $0x48] sm:$0xf0] }
 0x1a9   : > { %1559 = vmatpush.bf16.msra.mxu1 %v3840_v21  ;;  %1573 = vmatpush.bf16.msra.mxu2 %v3652_v22  ;;  %v3792_v51 = vor.u32 %v4669_v48, %v3791_v46  ;;  %v3604_v52 = vor.u32 %v4618_v49, %v3601_v50  ;;  %v4666_v53 = vld [vmem:[%s5341_s23 + $0x1b4] sm:$0xf]  ;;  %v3793_v54 = vld [vmem:[%s5341_s23 + $0x1c8] sm:$0xf0]  ;;  %v3575_v56 = vld [vmem:[%s5341_s23] sm:$0xf] }
 0x1aa   : > { %1587 = vmatpush.bf16.msra.mxu3 %v3844_v23  ;;  %v3796_v55 = vor.u32 %v4666_v53, %v3793_v54  ;;  %v4615_v57 = vld [vmem:[%s5341_s23 + $0x14] sm:$0xf0]  ;;  %v3767_v58 = vld [vmem:[%s5341_s23 + $0x180] sm:$0xf]  ;;  %v4612_v61 = vld [vmem:[%s5341_s23 + $0x4] sm:$0xf] }
 0x1ab   : > { %v3576_v59 = vor.u32 %v4615_v57, %v3575_v56  ;;  %v4663_v60 = vld [vmem:[%s5341_s23 + $0x194] sm:$0xf0]  ;;  %v3577_v62 = vld [vmem:[%s5341_s23 + $0x18] sm:$0xf0]  ;;  %v4660_v2 = vld [vmem:[%s5341_s23 + $0x184] sm:$0xf] }
 0x1ac   : > { %1546 = vmatpush.bf16.msra.mxu0 %v3624_v35  ;;  %v3768_v63 = vor.u32 %v4663_v60, %v3767_v58  ;;  %v3580_v0 = vor.u32 %v4612_v61, %v3577_v62  ;;  %v3769_v3 = vld [vmem:[%s5341_s23 + $0x198] sm:$0xf0]  ;;  %v3751_v4 = vld [vmem:[%s5341_s23 + $0x158] sm:$0xf]  ;;  %v4658_v8 = vld [vmem:[%s5341_s23 + $0x16c] sm:$0xf0] }
 0x1ad   : > { %1560 = vmatpush.bf16.msra.mxu1 %v3816_v39  ;;  %1574 = vmatpush.bf16.msra.mxu2 %v3628_v40  ;;  %v3772_v7 = vor.u32 %v4660_v2, %v3769_v3  ;;  %v3943_v9 = vld [vmem:[%s5341_s23 + $0x2d8] sm:$0xf]  ;;  %v4706_v12 = vld [vmem:[%s5341_s23 + $0x2ec] sm:$0xf0]  ;;  %v3752_v13 = vor.u32 %v4658_v8, %v3751_v4  ;;  %v4655_v16 = vld [vmem:[%s5341_s23 + $0x15c] sm:$0xf] }
 0x1ae   : > { %1588 = vmatpush.bf16.msra.mxu3 %v3820_v43  ;;  %v3944_v15 = vor.u32 %v4706_v12, %v3943_v9  ;;  %v3753_v17 = vld [vmem:[%s5341_s23 + $0x170] sm:$0xf0]  ;;  %v4652_v21 = vld [vmem:[%s5341_s23 + $0x13c] sm:$0xf0]  ;;  %v3703_v33 = vld [vmem:[%s5341_s23 + $0xf8] sm:$0xf] }
 0x1af   : > { %v3945_v14 = vld [vmem:[%s5341_s23 + $0x2f0] sm:$0xf0]  ;;  %v4646_v34 = vld [vmem:[%s5341_s23 + $0x10c] sm:$0xf0]  ;;  %v3895_v35 = vld [vmem:[%s5341_s23 + $0x278] sm:$0xf] }
 0x1b0   : > { %v3704_v36 = vor.u32 %v4646_v34, %v3703_v33  ;;  %v4694_v37 = vld [vmem:[%s5341_s23 + $0x28c] sm:$0xf0]  ;;  %v4643_v38 = vld [vmem:[%s5341_s23 + $0xfc] sm:$0xf]  ;;  %v3705_v39 = vld [vmem:[%s5341_s23 + $0x110] sm:$0xf0] }
 0x1b1   : > { %1561 = vmatpush.bf16.msra.mxu1 %v3792_v51  ;;  %1575 = vmatpush.bf16.msra.mxu2 %v3604_v52  ;;  %v3896_v40 = vor.u32 %v4694_v37, %v3895_v35  ;;  %v3708_v41 = vor.u32 %v4643_v38, %v3705_v39  ;;  %v4691_v42 = vld [vmem:[%s5341_s23 + $0x27c] sm:$0xf]  ;;  %v3897_v43 = vld [vmem:[%s5341_s23 + $0x290] sm:$0xf0]  ;;  %v4640_v46 = vld [vmem:[%s5341_s23 + $0xdc] sm:$0xf0] }
 0x1b2   : > { %1589 = vmatpush.bf16.msra.mxu3 %v3796_v55  ;;  %v4688_v49 = vld [vmem:[%s5341_s23 + $0x25c] sm:$0xf0]  ;;  %v4637_v50 = vld [vmem:[%s5341_s23 + $0xcc] sm:$0xf]  ;;  %v3681_v51 = vld [vmem:[%s5341_s23 + $0xe0] sm:$0xf0] }
 0x1b3   : > { %v3684_v53 = vor.u32 %v4637_v50, %v3681_v51  ;;  %v4685_v54 = vld [vmem:[%s5341_s23 + $0x24c] sm:$0xf]  ;;  %v3873_v55 = vld [vmem:[%s5341_s23 + $0x260] sm:$0xf0]  ;;  %v3655_v57 = vld [vmem:[%s5341_s23 + $0x98] sm:$0xf] }
 0x1b4   : > { %v3876_v56 = vor.u32 %v4685_v54, %v3873_v55  ;;  %v4634_v58 = vld [vmem:[%s5341_s23 + $0xac] sm:$0xf0]  ;;  %v4631_v62 = vld [vmem:[%s5341_s23 + $0x9c] sm:$0xf]  ;;  %v3849_v4 = vld [vmem:[%s5341_s23 + $0x230] sm:$0xf0] }
 0x1b5   : > { %1562 = vmatpush.bf16.msra.mxu1 %v3768_v63  ;;  %1576 = vmatpush.bf16.msra.mxu2 %v3580_v0  ;;  %v3656_v60 = vor.u32 %v4634_v58, %v3655_v57  ;;  %v4682_v61 = vld [vmem:[%s5341_s23 + $0x22c] sm:$0xf0]  ;;  %v3657_v63 = vld [vmem:[%s5341_s23 + $0xb0] sm:$0xf0]  ;;  %v4679_v3 = vld [vmem:[%s5341_s23 + $0x21c] sm:$0xf] }
 0x1b6   : > { %1590 = vmatpush.bf16.msra.mxu3 %v3772_v7  ;;  %v3660_v2 = vor.u32 %v4631_v62, %v3657_v63  ;;  %v3852_v7 = vor.u32 %v4679_v3, %v3849_v4  ;;  %v3631_v8 = vld [vmem:[%s5341_s23 + $0x68] sm:$0xf]  ;;  %v4628_v9 = vld [vmem:[%s5341_s23 + $0x7c] sm:$0xf0]  ;;  %v4667_v33 = vld [vmem:[%s5341_s23 + $0x1bc] sm:$0xf] }
 0x1b7   : > { %v3823_v12 = vld [vmem:[%s5341_s23 + $0x1e8] sm:$0xf]  ;;  %v3801_v34 = vld [vmem:[%s5341_s23 + $0x1d0] sm:$0xf0]  ;;  %v4616_v38 = vld [vmem:[%s5341_s23 + $0x1c] sm:$0xf0] }
 0x1b8   : > { %v3583_v37 = vld [vmem:[%s5341_s23 + $0x8] sm:$0xf] }
 0x1b9   : > { %1611 = vmatpush.bf16.msrb.mxu1 %v3944_v15  ;;  %v4676_v15 = vld [vmem:[%s5341_s23 + $0x1fc] sm:$0xf0]  ;;  %v3775_v39 = vld [vmem:[%s5341_s23 + $0x188] sm:$0xf] }
 0x211   : > { %v877_v47 = vpop.xlane.xlu0 %876 }
 0x212   : > { %v886_v18 = vmul.f32 %v5492_v1, %v877_v47  ;;  %v3600_v47 = vor.u32 %v4621_v45, %v3599_v44  ;;  %v3900_v44 = vor.u32 %v4691_v42, %v3897_v43  ;;  %v3679_v45 = vld [vmem:[%s5341_s23 + $0xc8] sm:$0xf]  ;;  %v4613_v42 = vld [vmem:[%s5341_s23 + $0xc] sm:$0xf]  ;;  %v3585_v43 = vld [vmem:[%s5341_s23 + $0x20] sm:$0xf0] }
 0x213   : > { %v3680_v48 = vor.u32 %v4640_v46, %v3679_v45  ;;  %v3588_v45 = vor.u32 %v4613_v42, %v3585_v43  ;;  %v4661_v46 = vld [vmem:[%s5341_s23 + $0x18c] sm:$0xf] }
 0x214   : > { %v5511_v26 = vsub.f32 %v5437_v5, %v886_v18  ;;  %v5514_v27 = vsub.f32 %v5442_v6, %v886_v18  ;;  %1547 = vmatpush.bf16.msra.mxu0 %v3600_v47  ;;  %v4703_v18 = vld [vmem:[%s5341_s23 + $0x2dc] sm:$0xf]  ;;  %v3871_v47 = vld [vmem:[%s5341_s23 + $0x248] sm:$0xf]  ;;  %v3929_v42 = vld [vmem:[%s5341_s23 + $0x2c8] sm:$0xf0] }
 0x215   : > { %v3948_v22 = vor.u32 %v4703_v18, %v3945_v14  ;;  %v3872_v52 = vor.u32 %v4688_v49, %v3871_v47  ;;  %v3824_v18 = vor.u32 %v4676_v15, %v3823_v12  ;;  %v4673_v14 = vld [vmem:[%s5341_s23 + $0x1ec] sm:$0xf]  ;;  %v3777_v47 = vld [vmem:[%s5341_s23 + $0x1a0] sm:$0xf0] }
 0x216   : > { %v893_v6 = vmul.f32 %v5511_v26, %v5511_v26  ;;  %v3780_v49 = vor.u32 %v4661_v46, %v3777_v47  ;;  %v4647_v46 = vld [vmem:[%s5341_s23 + $0x114] sm:$0xf0] }
 0x217   : > { %1639 = vmatpush.bf16.msrb.mxu3 %v3948_v22 }
 0x218   : > { %v898_v29 = vsel %vm872_vm8, %v893_v6, 0.0  ;;  %1548 = vmatpush.bf16.msra.mxu0 %v3576_v59  ;;  %v3847_v59 = vld [vmem:[%s5341_s23 + $0x218] sm:$0xf] }
 0x219   : > { %v871_v19 = vpop.xlane.xlu0 %870  ;;  %v3848_v0 = vor.u32 %v4682_v61, %v3847_v59  ;;  %v867_v61 = vld [vmem:[%s6444_s7] sm:$0x3] }
 0x21a   : > { %v885_v20 = vmul.f32 %v5492_v1, %v871_v19  ;;  %v3756_v19 = vor.u32 %v4655_v16, %v3753_v17  ;;  %v4625_v16 = vld [vmem:[%s5341_s23 + $0x6c] sm:$0xf]  ;;  %v3633_v17 = vld [vmem:[%s5341_s23 + $0x80] sm:$0xf0]  ;;  %v932_v3 = vperm.slane %v867_v61, 0  ;;  %v933_v4 = vperm.slane %v867_v61, 1 }
 0x21b   : > { %v3879_v61 = vld [vmem:[%s5341_s23 + $0x250] sm:$0xf] }
 0x21c   : > { %v5505_v24 = vsub.f32 %v5451_v10, %v885_v20  ;;  %v5508_v25 = vsub.f32 %v5456_v11, %v885_v20  ;;  %v894_v11 = vmul.f32 %v5514_v27, %v5514_v27  ;;  %v3727_v20 = vld [vmem:[%s5341_s23 + $0x128] sm:$0xf]  ;;  %1597 = vmatpush.bf16.msrb.mxu0 %v3752_v13  ;;  %1625 = vmatpush.bf16.msrb.mxu2 %v3756_v19 }
 0x21d   : > { %v3728_v23 = vor.u32 %v4652_v21, %v3727_v20  ;;  %v3632_v13 = vor.u32 %v4628_v9, %v3631_v8  ;;  %v3636_v19 = vor.u32 %v4625_v16, %v3633_v17  ;;  %v3825_v20 = vld [vmem:[%s5341_s23 + $0x200] sm:$0xf0] }
 0x21e   : > { %v891_v28 = vmul.f32 %v5505_v24, %v5505_v24  ;;  %v892_v10 = vmul.f32 %v5508_v25, %v5508_v25  ;;  %v899_v30 = vsel %vm872_vm8, %v894_v11, 0.0  ;;  %v3729_v11 = vld [vmem:[%s5341_s23 + $0x140] sm:$0xf0]  ;;  %v3828_v21 = vor.u32 %v4673_v14, %v3825_v20  ;;  %v4659_v20 = vld [vmem:[%s5341_s23 + $0x174] sm:$0xf0] }
 0x21f   : > { %v900_v31 = vadd.f32 %v899_v30, %v898_v29  ;;  %v4697_v29 = vld [vmem:[%s5341_s23 + $0x2ac] sm:$0xf]  ;;  %v3921_v30 = vld [vmem:[%s5341_s23 + $0x2c0] sm:$0xf0] }
 0x220   : > { %v895_v5 = vadd.f32 %v892_v10, %v891_v28  ;;  %v3919_v28 = vld [vmem:[%s5341_s23 + $0x2a8] sm:$0xf]  ;;  %v4700_v10 = vld [vmem:[%s5341_s23 + $0x2bc] sm:$0xf0]  ;;  %v3924_v32 = vor.u32 %v4697_v29, %v3921_v30  ;;  %1598 = vmatpush.bf16.msrb.mxu0 %v3728_v23  ;;  %v3607_v23 = vld [vmem:[%s5341_s23 + $0x38] sm:$0xf] }
 0x221   : > { %v3920_v6 = vor.u32 %v4700_v10, %v3919_v28  ;;  %v4622_v28 = vld [vmem:[%s5341_s23 + $0x4c] sm:$0xf0]  ;;  %v3799_v10 = vld [vmem:[%s5341_s23 + $0x1b8] sm:$0xf]  ;;  %v4619_v29 = vld [vmem:[%s5341_s23 + $0x3c] sm:$0xf] }
 0x222   : > { %896 = vadd.xlane.f32.xlu1 %v895_v5  ;;  %v4649_v5 = vld [vmem:[%s5341_s23 + $0x12c] sm:$0xf]  ;;  %1640 = vmatpush.bf16.msrb.mxu3 %v3924_v32  ;;  %v3609_v30 = vld [vmem:[%s5341_s23 + $0x50] sm:$0xf0] }
 0x223   : > { %1612 = vmatpush.bf16.msrb.mxu1 %v3920_v6  ;;  %v3608_v6 = vor.u32 %v4622_v28, %v3607_v23  ;;  %v3612_v32 = vor.u32 %v4619_v29, %v3609_v30  ;;  %v4656_v23 = vld [vmem:[%s5341_s23 + $0x164] sm:$0xf] }
 0x224   : > { %1599 = vmatpush.bf16.msrb.mxu0 %v3704_v36  ;;  %v3804_v36 = vor.u32 %v4667_v33, %v3801_v34  ;;  %v3735_v33 = vld [vmem:[%s5341_s23 + $0x130] sm:$0xf]  ;;  %v4653_v34 = vld [vmem:[%s5341_s23 + $0x144] sm:$0xf0] }
 0x225   : > { %v3736_v43 = vor.u32 %v4653_v34, %v3735_v33  ;;  %v4623_v33 = vld [vmem:[%s5341_s23 + $0x54] sm:$0xf0] }
 0x226   : > { %1641 = vmatpush.bf16.msrb.mxu3 %v3900_v44 }
 0x227   : > { %1613 = vmatpush.bf16.msrb.mxu1 %v3896_v40  ;;  %v3584_v40 = vor.u32 %v4616_v38, %v3583_v37  ;;  %v3927_v37 = vld [vmem:[%s5341_s23 + $0x2b0] sm:$0xf]  ;;  %v4701_v38 = vld [vmem:[%s5341_s23 + $0x2c4] sm:$0xf0] }
 0x228   : > { %1600 = vmatpush.bf16.msrb.mxu0 %v3680_v48 }
 0x22a   : > { %901 = vadd.xlane.f32.xlu1 %v900_v31  ;;  %v3732_v31 = vor.u32 %v4649_v5, %v3729_v11  ;;  %1642 = vmatpush.bf16.msrb.mxu3 %v3876_v56  ;;  %v4670_v11 = vld [vmem:[%s5341_s23 + $0x1cc] sm:$0xf0] }
 0x22b   : > { %1614 = vmatpush.bf16.msrb.mxu1 %v3872_v52 }
 0x22c   : > { %1626 = vmatpush.bf16.msrb.mxu2 %v3732_v31  ;;  %1601 = vmatpush.bf16.msrb.mxu0 %v3656_v60  ;;  %v3800_v31 = vor.u32 %v4670_v11, %v3799_v10  ;;  %v3761_v11 = vld [vmem:[%s5341_s23 + $0x178] sm:$0xf0] }
 0x22e   : > { %1643 = vmatpush.bf16.msrb.mxu3 %v3852_v7 }
 0x22f   : > { %1615 = vmatpush.bf16.msrb.mxu1 %v3848_v0 }
 0x230   : > { %1627 = vmatpush.bf16.msrb.mxu2 %v3708_v41  ;;  %1602 = vmatpush.bf16.msrb.mxu0 %v3632_v13  ;;  %v4664_v41 = vld [vmem:[%s5341_s23 + $0x19c] sm:$0xf0] }
 0x231   : > { %v3776_v44 = vor.u32 %v4664_v41, %v3775_v39  ;;  %v4650_v39 = vld [vmem:[%s5341_s23 + $0x134] sm:$0xf] }
 0x232   : > { %1644 = vmatpush.bf16.msrb.mxu3 %v3828_v21  ;;  %v3951_v21 = vld [vmem:[%s5341_s23 + $0x2e0] sm:$0xf]  ;;  %v4698_v41 = vld [vmem:[%s5341_s23 + $0x2b4] sm:$0xf] }
 0x233   : > { %1616 = vmatpush.bf16.msrb.mxu1 %v3824_v18 }
 0x234   : > { %1628 = vmatpush.bf16.msrb.mxu2 %v3684_v53  ;;  %1603 = vmatpush.bf16.msrb.mxu0 %v3608_v6 }
 0x236   : > { %1645 = vmatpush.bf16.msrb.mxu3 %v3804_v36 }
 0x237   : > { %1617 = vmatpush.bf16.msrb.mxu1 %v3800_v31 }
 0x238   : > { %1629 = vmatpush.bf16.msrb.mxu2 %v3660_v2  ;;  %1604 = vmatpush.bf16.msrb.mxu0 %v3584_v40  ;;  %v868_v2 = vld [vmem:[%s6445_s17] sm:$0x3]  ;;  %v3737_v40 = vld [vmem:[%s5341_s23 + $0x148] sm:$0xf0] }
 0x239   : > { %v941_v12 = vperm.slane %v868_v2, 0  ;;  %v942_v13 = vperm.slane %v868_v2, 1  ;;  %v3740_v47 = vor.u32 %v4650_v39, %v3737_v40  ;;  %v4686_v2 = vld [vmem:[%s5341_s23 + $0x254] sm:$0xf]  ;;  %v3617_v39 = vld [vmem:[%s5341_s23 + $0x58] sm:$0xf0] }
 0x23a   : > { %1646 = vmatpush.bf16.msrb.mxu3 %v3780_v49  ;;  %v3903_v49 = vld [vmem:[%s5341_s23 + $0x280] sm:$0xf]  ;;  %v4668_v40 = vld [vmem:[%s5341_s23 + $0x1c4] sm:$0xf] }
 0x23b   : > { %1618 = vmatpush.bf16.msrb.mxu1 %v3776_v44  ;;  %v3928_v44 = vor.u32 %v4701_v38, %v3927_v37  ;;  %v4671_v37 = vld [vmem:[%s5341_s23 + $0x1d4] sm:$0xf0]  ;;  %v4620_v38 = vld [vmem:[%s5341_s23 + $0x44] sm:$0xf] }
 0x23c   : > { %1630 = vmatpush.bf16.msrb.mxu2 %v3636_v19 }
 0x240   : > { %1631 = vmatpush.bf16.msrb.mxu2 %v3612_v32 }
 0x244   : > { %1632 = vmatpush.bf16.msrb.mxu2 %v3588_v45  ;;  %v3711_v45 = vld [vmem:[%s5341_s23 + $0x100] sm:$0xf] }
 0x295   : > { %v897_v22 = vpop.xlane.xlu1 %896 }
 0x296   : > { %v903_v5 = vmul.f32 %v897_v22, %v5492_v1  ;;  %v4707_v22 = vld [vmem:[%s5341_s23 + $0x2f4] sm:$0xf0] }
 0x297   : > { %v3952_v32 = vor.u32 %v4707_v22, %v3951_v21  ;;  %v4629_v21 = vld [vmem:[%s5341_s23 + $0x84] sm:$0xf0] }
 0x298   : > { %v905_v35 = vadd.f32 1e-05, %v903_v5 }
 0x29a   : > { %4937 = vrsqrt.f32 %v905_v35  ;;  %vm913_vm11 = vweird.f32 %v905_v35 }
 0x29d   : > { %v902_v48 = vpop.xlane.xlu1 %901 }
 0x29e   : > { %v904_v50 = vmul.f32 %v902_v48, %v5492_v1  ;;  %v3932_v48 = vor.u32 %v4698_v41, %v3929_v42  ;;  %v3809_v41 = vld [vmem:[%s5341_s23 + $0x1d8] sm:$0xf0] }
 0x2a0   : > { %v4938_v51 = vpop.eup %4937  ;;  %v906_v52 = vadd.f32 1e-05, %v904_v50  ;;  %v4695_v50 = vld [vmem:[%s5341_s23 + $0x294] sm:$0xf0] }
 0x2a1   : > { %v908_v53 = vmul.f32 %v4938_v51, %v905_v35  ;;  %vm914_vm10 = vweird.f32 %v4938_v51  ;;  %v3764_v35 = vor.u32 %v4656_v23, %v3761_v11  ;;  %v4674_v11 = vld [vmem:[%s5341_s23 + $0x1f4] sm:$0xf] }
 0x2a2   : > { %4939 = vrsqrt.f32 %v906_v52  ;;  %vm915_vm12 = vmor %vm913_vm11, %vm914_vm10  ;;  %vm923_vm14 = vweird.f32 %v906_v52 }
 0x2a3   : > { %v909_v54 = vmul.f32 %v4938_v51, %v908_v53  ;;  %v4692_v53 = vld [vmem:[%s5341_s23 + $0x284] sm:$0xf] }
 0x2a5   : > { %v910_v55 = vmul.f32 0.5, %v909_v54  ;;  %v3905_v54 = vld [vmem:[%s5341_s23 + $0x298] sm:$0xf0] }
 0x2a7   : > { %v911_v56 = vsub.f32 1.5, %v910_v55  ;;  %v3712_v55 = vor.u32 %v4647_v46, %v3711_v45  ;;  %v4617_v45 = vld [vmem:[%s5341_s23 + $0x24] sm:$0xf0]  ;;  %v3620_v46 = vor.u32 %v4620_v38, %v3617_v39 }
 0x2a8   : > { %v4940_v57 = vpop.eup %4939 }
 0x2a9   : > { %v912_v58 = vmul.f32 %v4938_v51, %v911_v56  ;;  %v918_v59 = vmul.f32 %v4940_v57, %v906_v52  ;;  %vm924_vm13 = vweird.f32 %v4940_v57  ;;  %v3713_v52 = vld [vmem:[%s5341_s23 + $0x118] sm:$0xf0]  ;;  %v3904_v56 = vor.u32 %v4695_v50, %v3903_v49  ;;  %v4665_v49 = vld [vmem:[%s5341_s23 + $0x1a4] sm:$0xf0]  ;;  %v4614_v50 = vld [vmem:[%s5341_s23 + $0x14] sm:$0xf] }
 0x2aa   : > { %vm925_vm15 = vmor %vm923_vm14, %vm924_vm13 }
 0x2ab   : > { %v919_v60 = vmul.f32 %v4940_v57, %v918_v59  ;;  %v916_v62 = vsel %vm915_vm12, %v4938_v51, %v912_v58  ;;  %v4644_v51 = vld [vmem:[%s5341_s23 + $0x104] sm:$0xf]  ;;  %v4641_v58 = vld [vmem:[%s5341_s23 + $0xe4] sm:$0xf0] }
 0x2ac   : > { %v927_v7 = vmul.f32 %v916_v62, %v5505_v24  ;;  %v928_v8 = vmul.f32 %v916_v62, %v5508_v25  ;;  %v3759_v25 = vld [vmem:[%s5341_s23 + $0x160] sm:$0xf]  ;;  %v3716_v59 = vor.u32 %v4644_v51, %v3713_v52  ;;  %v4689_v62 = vld [vmem:[%s5341_s23 + $0x264] sm:$0xf0]  ;;  %v3593_v51 = vld [vmem:[%s5341_s23 + $0x28] sm:$0xf0] }
 0x2ad   : > { %v920_v63 = vmul.f32 0.5, %v919_v60  ;;  %v3760_v31 = vor.u32 %v4659_v20, %v3759_v25  ;;  %v3908_v60 = vor.u32 %v4692_v53, %v3905_v54  ;;  %v3639_v20 = vld [vmem:[%s5341_s23 + $0x70] sm:$0xf]  ;;  %v4662_v52 = vld [vmem:[%s5341_s23 + $0x194] sm:$0xf] }
 0x2ae   : > { %v936_v16 = vmul.f32 %v932_v3, %v927_v7  ;;  %v937_v17 = vmul.f32 %v933_v4, %v928_v8  ;;  %v3880_v7 = vor.u32 %v4689_v62, %v3879_v61  ;;  %v3663_v8 = vld [vmem:[%s5341_s23 + $0xa0] sm:$0xf]  ;;  %v3785_v53 = vld [vmem:[%s5341_s23 + $0x1a8] sm:$0xf0] }
 0x2af   : > { %v921_v0 = vsub.f32 1.5, %v920_v63  ;;  %v4638_v63 = vld [vmem:[%s5341_s23 + $0xd4] sm:$0xf] }
 0x2b0   : > { %v945_v28 = vadd.f32 %v941_v12, %v936_v16  ;;  %v946_v10 = vadd.f32 %v942_v13, %v937_v17  ;;  %v4683_v16 = vld [vmem:[%s5341_s23 + $0x234] sm:$0xf0]  ;;  %v4632_v17 = vld [vmem:[%s5341_s23 + $0xa4] sm:$0xf] }
 0x2b1   : > { %v922_v9 = vmul.f32 %v4940_v57, %v921_v0  ;;  %v3689_v0 = vld [vmem:[%s5341_s23 + $0xe8] sm:$0xf0] }
 0x2b3   : > { %v926_v15 = vsel %vm925_vm15, %v4940_v57, %v922_v9  ;;  %v3687_v57 = vld [vmem:[%s5341_s23 + $0xd0] sm:$0xf]  ;;  %v4635_v9 = vld [vmem:[%s5341_s23 + $0xb4] sm:$0xf0] }
 0x2b4   : > { %v929_v18 = vmul.f32 %v926_v15, %v5511_v26  ;;  %v930_v24 = vmul.f32 %v926_v15, %v5514_v27  ;;  %v4704_v26 = vld [vmem:[%s5341_s23 + $0x2e4] sm:$0xf]  ;;  %v3953_v27 = vld [vmem:[%s5341_s23 + $0x2f8] sm:$0xf0]  ;;  %v3855_v15 = vld [vmem:[%s5341_s23 + $0x220] sm:$0xf] }
 0x2b5   : > { %v3956_v36 = vor.u32 %v4704_v26, %v3953_v27  ;;  %v3856_v25 = vor.u32 %v4683_v16, %v3855_v15  ;;  %v3833_v26 = vld [vmem:[%s5341_s23 + $0x208] sm:$0xf0]  ;;  %v3640_v27 = vor.u32 %v4629_v21, %v3639_v20 }
 0x2b6   : > { %v938_v19 = vmul.f32 %v932_v3, %v929_v18  ;;  %v939_v14 = vmul.f32 %v933_v4, %v930_v24  ;;  %v3881_v3 = vld [vmem:[%s5341_s23 + $0x268] sm:$0xf0]  ;;  %v3688_v4 = vor.u32 %v4641_v58, %v3687_v57  ;;  %v3665_v18 = vld [vmem:[%s5341_s23 + $0xb8] sm:$0xf0]  ;;  %v4680_v24 = vld [vmem:[%s5341_s23 + $0x224] sm:$0xf]  ;;  %v3788_v57 = vor.u32 %v4662_v52, %v3785_v53 }
 0x2b7   : > { %v3668_v22 = vor.u32 %v4632_v17, %v3665_v18 }
 0x2b8   : > { %v947_v5 = vadd.f32 %v941_v12, %v938_v19  ;;  %v948_v6 = vadd.f32 %v942_v13, %v939_v14  ;;  %v3692_v12 = vor.u32 %v4638_v63, %v3689_v0  ;;  %v3884_v13 = vor.u32 %v4686_v2, %v3881_v3  ;;  %v3857_v19 = vld [vmem:[%s5341_s23 + $0x238] sm:$0xf0] }
 0x2b9   : > { %v3664_v14 = vor.u32 %v4635_v9, %v3663_v8  ;;  %v3860_v23 = vor.u32 %v4680_v24, %v3857_v19 }
 0x2ba   : > { %v5638_v29 = vpack.c.bf16 %v947_v5, %v945_v28  ;;  %v5640_v30 = vpack.c.bf16 %v948_v6, %v946_v10  ;;  %v3831_v28 = vld [vmem:[%s5341_s23 + $0x1f0] sm:$0xf]  ;;  %v4677_v10 = vld [vmem:[%s5341_s23 + $0x204] sm:$0xf0]  ;;  %v4626_v5 = vld [vmem:[%s5341_s23 + $0x74] sm:$0xf] }
 0x2bb   : > { %v3641_v6 = vld [vmem:[%s5341_s23 + $0x88] sm:$0xf0] }
 0x2bc   : > { %1549 = vmatmul.bf16.vlgmr.msra.gmra.mxu0 %v5638_v29  ;;  %1563 = vmatmul.bf16.vlgmr.msra.gmra.mxu1 %v5640_v30  ;;  %v3644_v34 = vor.u32 %v4626_v5, %v3641_v6 }
 0x2bd   : > { %1577 = vmatmul.bf16.vlgmr.msra.gmra.mxu2 %v5638_v29  ;;  %1591 = vmatmul.bf16.vlgmr.msra.gmra.mxu3 %v5640_v30 }
 0x2be   : > { %1653 = vmatpush.bf16.msra.mxu0 %v3760_v31  ;;  %1667 = vmatpush.bf16.msra.mxu1 %v3952_v32  ;;  %v3832_v31 = vor.u32 %v4677_v10, %v3831_v28  ;;  %v3615_v32 = vld [vmem:[%s5341_s23 + $0x40] sm:$0xf] }
 0x2bf   : > { %1681 = vmatpush.bf16.msra.mxu2 %v3764_v35  ;;  %1695 = vmatpush.bf16.msra.mxu3 %v3956_v36  ;;  %v3836_v35 = vor.u32 %v4674_v11, %v3833_v26  ;;  %v3807_v36 = vld [vmem:[%s5341_s23 + $0x1c0] sm:$0xf]  ;;  %v3616_v42 = vor.u32 %v4623_v33, %v3615_v32 }
 0x2c2   : > { %1654 = vmatpush.bf16.msra.mxu0 %v3736_v43  ;;  %1668 = vmatpush.bf16.msra.mxu1 %v3928_v44  ;;  %v3808_v43 = vor.u32 %v4671_v37, %v3807_v36  ;;  %v3591_v44 = vld [vmem:[%s5341_s23 + $0x10] sm:$0xf] }
 0x2c3   : > { %1682 = vmatpush.bf16.msra.mxu2 %v3740_v47  ;;  %1696 = vmatpush.bf16.msra.mxu3 %v3932_v48  ;;  %v3812_v47 = vor.u32 %v4668_v40, %v3809_v41  ;;  %v3783_v48 = vld [vmem:[%s5341_s23 + $0x190] sm:$0xf]  ;;  %v3592_v54 = vor.u32 %v4617_v45, %v3591_v44 }
 0x2c6   : > { %1655 = vmatpush.bf16.msra.mxu0 %v3712_v55  ;;  %1669 = vmatpush.bf16.msra.mxu1 %v3904_v56  ;;  %v3784_v55 = vor.u32 %v4665_v49, %v3783_v48  ;;  %v3596_v56 = vor.u32 %v4614_v50, %v3593_v51 }
 0x2c7   : > { %1683 = vmatpush.bf16.msra.mxu2 %v3716_v59  ;;  %1697 = vmatpush.bf16.msra.mxu3 %v3908_v60 }
 0x2ca   : > { %1656 = vmatpush.bf16.msra.mxu0 %v3688_v4  ;;  %1670 = vmatpush.bf16.msra.mxu1 %v3880_v7  ;;  %v1047_v7 = vld [vmem:[%s5369_s19] sm:$0x3f] }
 0x2cb   : > { %1684 = vmatpush.bf16.msra.mxu2 %v3692_v12  ;;  %1698 = vmatpush.bf16.msra.mxu3 %v3884_v13  ;;  %v1051_v8 = vperm.slane %v1047_v7, 2  ;;  %v1049_v17 = vperm.slane %v1047_v7, 0  ;;  %v1050_v10 = vperm.slane %v1047_v7, 1  ;;  %v1054_v44 = vperm.slane %v1047_v7, 5 }
 0x2cc   : > { %1605 = vmatmul.bf16.vlgmr.msrb.gmra.mxu0 %v5638_v29  ;;  %1619 = vmatmul.bf16.vlgmr.msrb.gmra.mxu1 %v5640_v30 }
 0x2cd   : > { %1633 = vmatmul.bf16.vlgmr.msrb.gmra.mxu2 %v5638_v29  ;;  %1647 = vmatmul.bf16.vlgmr.msrb.gmra.mxu3 %v5640_v30 }
 0x2ce   : > { %1657 = vmatpush.bf16.msra.mxu0 %v3664_v14  ;;  %1671 = vmatpush.bf16.msra.mxu1 %v3856_v25 }
 0x2cf   : > { %1685 = vmatpush.bf16.msra.mxu2 %v3668_v22  ;;  %1699 = vmatpush.bf16.msra.mxu3 %v3860_v23 }
 0x2d2   : > { %1658 = vmatpush.bf16.msra.mxu0 %v3640_v27  ;;  %1672 = vmatpush.bf16.msra.mxu1 %v3832_v31 }
 0x2d3   : > { %1686 = vmatpush.bf16.msra.mxu2 %v3644_v34  ;;  %1700 = vmatpush.bf16.msra.mxu3 %v3836_v35  ;;  %v1053_v34 = vperm.slane %v1047_v7, 4 }
 0x2d6   : > { %1659 = vmatpush.bf16.msra.mxu0 %v3616_v42  ;;  %1673 = vmatpush.bf16.msra.mxu1 %v3808_v43 }
 0x2d7   : > { %1687 = vmatpush.bf16.msra.mxu2 %v3620_v46  ;;  %1701 = vmatpush.bf16.msra.mxu3 %v3812_v47 }
 0x2da   : > { %1660 = vmatpush.bf16.msra.mxu0 %v3592_v54  ;;  %1674 = vmatpush.bf16.msra.mxu1 %v3784_v55 }
 0x2db   : > { %1688 = vmatpush.bf16.msra.mxu2 %v3596_v56  ;;  %1702 = vmatpush.bf16.msra.mxu3 %v3788_v57 }
 0x2dd   : > { %1661 = vmatmul.bf16.vlgmr.msra.gmra.mxu0 %v5638_v29  ;;  %1675 = vmatmul.bf16.vlgmr.msra.gmra.mxu1 %v5640_v30 }
 0x2de   : > { %1689 = vmatmul.bf16.vlgmr.msra.gmra.mxu2 %v5638_v29  ;;  %1703 = vmatmul.bf16.vlgmr.msra.gmra.mxu3 %v5640_v30  ;;  %v1052_v30 = vperm.slane %v1047_v7, 3 }
 0x339   : > { %v1550_v58 = vpop.f32.mrf.mxu0  ;;  %v1564_v59 = vpop.f32.mrf.mxu1 }
 0x33a   : > { %v1551_v25 = vadd.f32 %v1550_v58, %v1049_v17  ;;  %v865_v58 = vld [vmem:[%s6446_s18] sm:$0xff] }
 0x33c   : > { %v1565_v11 = vadd.f32 %v1564_v59, %v1551_v25 }
 0x340   : > { %v1578_v60 = vpop.f32.mrf.mxu2  ;;  %v1592_v61 = vpop.f32.mrf.mxu3 }
 0x341   : > { %v1552_v62 = vpop.f32.mrf.mxu0  ;;  %v1566_v63 = vpop.f32.mrf.mxu1  ;;  %v1579_v35 = vadd.f32 %v1578_v60, %v1050_v10 }
 0x342   : > { %v1553_v19 = vadd.f32 %v1552_v62, %v1049_v17  ;;  %v866_v62 = vld [vmem:[%s6446_s18 + $0x8] sm:$0x3] }
 0x343   : > { %v1593_v40 = vadd.f32 %v1592_v61, %v1579_v35  ;;  %v4721_v35 = vld [vmem:[%s5374_s27 + $0x64] sm:$0xf0] }
 0x344   : > { %v1567_v23 = vadd.f32 %v1566_v63, %v1553_v19 }
 0x346   : > { %v1741_v32 = vpack.c.bf16 %v1567_v23, %v1565_v11 }
 0x348   : > { %v1580_v0 = vpop.f32.mrf.mxu2  ;;  %v1594_v2 = vpop.f32.mrf.mxu3 }
 0x349   : > { %v1606_v3 = vpop.f32.mrf.mxu0  ;;  %v1620_v4 = vpop.f32.mrf.mxu1  ;;  %v1581_v31 = vadd.f32 %v1580_v0, %v1050_v10 }
 0x34a   : > { %v1607_v9 = vadd.f32 %v1606_v3, %v1051_v8 }
 0x34b   : > { %v1595_v36 = vadd.f32 %v1594_v2, %v1581_v31  ;;  %v4722_v31 = vld [vmem:[%s5374_s27 + $0x74] sm:$0xf] }
 0x34c   : > { %v1621_v18 = vadd.f32 %v1620_v4, %v1607_v9 }
 0x34d   : > { %v1805_v43 = vpack.c.bf16 %v1595_v36, %v1593_v40 }
 0x350   : > { %v1634_v12 = vpop.f32.mrf.mxu2  ;;  %v1648_v13 = vpop.f32.mrf.mxu3 }
 0x351   : > { %v1608_v15 = vpop.f32.mrf.mxu0  ;;  %v1622_v16 = vpop.f32.mrf.mxu1  ;;  %v1635_v20 = vadd.f32 %v1634_v12, %v1052_v30 }
 0x352   : > { %v1609_v29 = vadd.f32 %v1608_v15, %v1051_v8 }
 0x353   : > { %v1649_v26 = vadd.f32 %v1648_v13, %v1635_v20 }
 0x354   : > { %v1623_v24 = vadd.f32 %v1622_v16, %v1609_v29 }
 0x356   : > { %v1742_v14 = vpack.c.bf16 %v1623_v24, %v1621_v18 }
 0x358   : > { %v1636_v21 = vpop.f32.mrf.mxu2  ;;  %v1650_v22 = vpop.f32.mrf.mxu3  ;;  %1750 = vmatpush.bf16.xpose.msrb.mxu0 %v1742_v14 }
 0x359   : > { %v1637_v28 = vadd.f32 %v1636_v21, %v1052_v30 }
 0x35a   : > { %v1662_v5 = vpop.f32.mrf.mxu0  ;;  %v1676_v6 = vpop.f32.mrf.mxu1 }
 0x35b   : > { %v1651_v27 = vadd.f32 %v1650_v22, %v1637_v28  ;;  %v1663_v37 = vadd.f32 %v1662_v5, %v1053_v34 }
 0x35d   : > { %v1806_v33 = vpack.c.bf16 %v1651_v27, %v1649_v26  ;;  %v1677_v46 = vadd.f32 %v1676_v6, %v1663_v37  ;;  %v4081_v26 = vld [vmem:[%s5374_s27 + $0x70] sm:$0xf]  ;;  %v4723_v27 = vld [vmem:[%s5374_s27 + $0x74] sm:$0xf0]  ;;  %v4720_v37 = vld [vmem:[%s5374_s27 + $0x64] sm:$0xf] }
 0x35f   : > { %1814 = vmatpush.bf16.xpose.msrb.mxu2 %v1806_v33  ;;  %1751 = vmatmul.bf16.vlgmr.msrb.gmra.mxu0 %v1741_v32  ;;  %v4082_v32 = vor.u32 %v4723_v27, %v4081_v26  ;;  %v4083_v33 = vld [vmem:[%s5374_s27 + $0x78] sm:$0xf0]  ;;  %v4711_v26 = vld [vmem:[%s5374_s27 + $0x14] sm:$0xf0]  ;;  %v4710_v27 = vld [vmem:[%s5374_s27 + $0x14] sm:$0xf] }
 0x360   : > { %v4086_v36 = vor.u32 %v4722_v31, %v4083_v33  ;;  %v4035_v31 = vld [vmem:[%s5374_s27 + $0x18] sm:$0xf0] }
 0x361   : > { %v1690_v38 = vpop.f32.mrf.mxu2  ;;  %v1704_v39 = vpop.f32.mrf.mxu3  ;;  %v4038_v33 = vor.u32 %v4710_v27, %v4035_v31  ;;  %v4994_v27 = vld [vmem:[%s6443_s0 + $0x8] sm:$0xff] }
 0x362   : > { %v1664_v41 = vpop.f32.mrf.mxu0  ;;  %v1678_v45 = vpop.f32.mrf.mxu1  ;;  %v1691_v49 = vadd.f32 %v1690_v38, %v1054_v44  ;;  %v4075_v38 = vld [vmem:[%s5374_s27 + $0x68] sm:$0xf0] }
 0x363   : > { %v1665_v42 = vadd.f32 %v1664_v41, %v1053_v34  ;;  %v4073_v34 = vld [vmem:[%s5374_s27 + $0x60] sm:$0xf]  ;;  %v4078_v41 = vor.u32 %v4720_v37, %v4075_v38  ;;  %v4003_v38 = vld [vmem:[%s5374_s27 + $0xd8] sm:$0xf0] }
 0x364   : > { %v1705_v54 = vadd.f32 %v1704_v39, %v1691_v49  ;;  %v4074_v40 = vor.u32 %v4721_v35, %v4073_v34  ;;  %v4739_v49 = vld [vmem:[%s5374_s27 + $0xf4] sm:$0xf0]  ;;  %v4001_v34 = vld [vmem:[%s5374_s27 + $0xd0] sm:$0xf] }
 0x365   : > { %v1679_v47 = vadd.f32 %v1678_v45, %v1665_v42  ;;  %v4065_v42 = vld [vmem:[%s5374_s27 + $0x50] sm:$0xf]  ;;  %v4067_v45 = vld [vmem:[%s5374_s27 + $0x58] sm:$0xf0]  ;;  %v4735_v35 = vld [vmem:[%s5374_s27 + $0xd4] sm:$0xf0] }
 0x366   : > { %1815 = vmatmul.bf16.vlgmr.msrb.gmra.mxu2 %v1805_v43  ;;  %v4719_v43 = vld [vmem:[%s5374_s27 + $0x54] sm:$0xf0]  ;;  %v4002_v37 = vor.u32 %v4735_v35, %v4001_v34 }
 0x367   : > { %v1782_v48 = vpack.c.bf16 %v1679_v47, %v1677_v46  ;;  %2054 = vmatpush.bf16.msra.mxu2 %v4082_v32  ;;  %v4017_v46 = vld [vmem:[%s5374_s27 + $0xf0] sm:$0xf] }
 0x369   : > { %v1692_v50 = vpop.f32.mrf.mxu2  ;;  %v1788_v51 = vsel %vm1786_vm0, %v1782_v48, 0  ;;  %v1706_v53 = vpop.f32.mrf.mxu3  ;;  %v4066_v48 = vor.u32 %v4719_v43, %v4065_v42  ;;  %v4708_v42 = vld [vmem:[%s5374_s27 + $0x4] sm:$0xf] }
 0x36a   : > { %v1693_v52 = vadd.f32 %v1692_v50, %v1054_v44  ;;  %1797 = vmatpush.bf16.msrb.mxu1 %v1788_v51  ;;  %v4718_v44 = vld [vmem:[%s5374_s27 + $0x54] sm:$0xf]  ;;  %v4019_v51 = vld [vmem:[%s5374_s27 + $0xf8] sm:$0xf0] }
 0x36b   : > { %2055 = vmatpush.bf16.msra.mxu2 %v4074_v40  ;;  %v4738_v50 = vld [vmem:[%s5374_s27 + $0xf4] sm:$0xf]  ;;  %v4025_v40 = vld [vmem:[%s5374_s27] sm:$0xf] }
 0x36c   : > { %v1707_v55 = vadd.f32 %v1706_v53, %v1693_v52  ;;  %v4070_v52 = vor.u32 %v4718_v44, %v4067_v45  ;;  %v4057_v53 = vld [vmem:[%s5374_s27 + $0x40] sm:$0xf]  ;;  %v4027_v44 = vld [vmem:[%s5374_s27 + $0x8] sm:$0xf0] }
 0x36d   : > { %v4030_v45 = vor.u32 %v4708_v42, %v4027_v44 }
 0x36e   : > { %v1844_v56 = vpack.c.bf16 %v1707_v55, %v1705_v54  ;;  %v4717_v54 = vld [vmem:[%s5374_s27 + $0x44] sm:$0xf0]  ;;  %v4018_v55 = vor.u32 %v4739_v49, %v4017_v46  ;;  %v3993_v46 = vld [vmem:[%s5374_s27 + $0xc0] sm:$0xf] }
 0x36f   : > { %2056 = vmatpush.bf16.msra.mxu2 %v4066_v48  ;;  %v4732_v48 = vld [vmem:[%s5374_s27 + $0xc4] sm:$0xf] }
 0x370   : > { %v1849_v57 = vsel %vm1786_vm0, %v1844_v56, 0  ;;  %v4022_v56 = vor.u32 %v4738_v50, %v4019_v51  ;;  %1946 = vmatpush.bf16.msra.mxu0 %v4018_v55  ;;  %v3995_v50 = vld [vmem:[%s5374_s27 + $0xc8] sm:$0xf0] }
 0x371   : > { %1858 = vmatpush.bf16.msrb.mxu3 %v1849_v57  ;;  %v4716_v57 = vld [vmem:[%s5374_s27 + $0x44] sm:$0xf]  ;;  %v3998_v51 = vor.u32 %v4732_v48, %v3995_v50  ;;  %v4201_v50 = vld [vmem:[%s5348_s16 + $0xe0] sm:$0xf] }
 0x372   : > { %1960 = vmatpush.bf16.msra.mxu1 %v4022_v56  ;;  %v3987_v56 = vld [vmem:[%s5374_s27 + $0xb8] sm:$0xf0] }
 0x375   : > { %2068 = vmatpush.bf16.msra.mxu3 %v4086_v36  ;;  %v4734_v36 = vld [vmem:[%s5374_s27 + $0xd4] sm:$0xf] }
 0x379   : > { %2069 = vmatpush.bf16.msra.mxu3 %v4078_v41  ;;  %v4709_v41 = vld [vmem:[%s5374_s27 + $0x4] sm:$0xf0] }
 0x37a   : > { %v4026_v43 = vor.u32 %v4709_v41, %v4025_v40  ;;  %v4995_v41 = vld [vmem:[%s6443_s0 + $0x10] sm:$0x3] }
 0x37d   : > { %2070 = vmatpush.bf16.msra.mxu3 %v4070_v52  ;;  %v3985_v52 = vld [vmem:[%s5374_s27 + $0xb0] sm:$0xf] }
 0x3dc   : > { %v1752_v59 = vpop.f32.mrf.mxu0 }
 0x3dd   : > { %v1753_v60 = vadd.f32 %v1752_v59, %v865_v58  ;;  %v4058_v59 = vor.u32 %v4717_v54, %v4057_v53  ;;  %v4731_v53 = vld [vmem:[%s5374_s27 + $0xb4] sm:$0xf0]  ;;  %v4730_v54 = vld [vmem:[%s5374_s27 + $0xb4] sm:$0xf] }
 0x3de   : > { %v3986_v55 = vor.u32 %v4731_v53, %v3985_v52  ;;  %v4329_v52 = vld [vmem:[%s5348_s16 + $0x1e0] sm:$0xf] }
 0x3df   : > { %v1758_v61 = vsel %vm1757_vm1, %v1753_v60, -inf  ;;  %2057 = vmatpush.bf16.msra.mxu2 %v4058_v59  ;;  %v4729_v59 = vld [vmem:[%s5374_s27 + $0xa4] sm:$0xf0] }
 0x3e0   : > { %1759 = vmax.xlane.f32.xlu2 %v1758_v61 }
 0x3e4   : > { %v1754_v63 = vpop.f32.mrf.mxu0 }
 0x3e5   : > { %v1755_v0 = vadd.f32 %v1754_v63, %v866_v62  ;;  %v4715_v63 = vld [vmem:[%s5374_s27 + $0x34] sm:$0xf0] }
 0x3e7   : > { %v1762_v2 = vsel %vm1761_vm2, %v1755_v0, -inf }
 0x3e8   : > { %1763 = vmax.xlane.f32.xlu2 %v1762_v2  ;;  %v4051_v2 = vld [vmem:[%s5374_s27 + $0x38] sm:$0xf0] }
 0x3e9   : > { %v1816_v3 = vpop.f32.mrf.mxu2 }
 0x3ea   : > { %v1817_v4 = vadd.f32 %v1816_v3, %v865_v58  ;;  %v4059_v58 = vld [vmem:[%s5374_s27 + $0x48] sm:$0xf0] }
 0x3eb   : > { %v4062_v61 = vor.u32 %v4716_v57, %v4059_v58  ;;  %v3990_v57 = vor.u32 %v4730_v54, %v3987_v56  ;;  %v3977_v58 = vld [vmem:[%s5374_s27 + $0xa0] sm:$0xf]  ;;  %v4802_v54 = vld [vmem:[%s5348_s16 + $0x1ec] sm:$0xf0]  ;;  %v4203_v56 = vld [vmem:[%s5348_s16 + $0xf0] sm:$0xf0] }
 0x3ec   : > { %v1821_v7 = vsel %vm1757_vm1, %v1817_v4, -inf }
 0x3ed   : > { %1822 = vmax.xlane.f32.xlu0 %v1821_v7  ;;  %2071 = vmatpush.bf16.msra.mxu3 %v4062_v61  ;;  %v3978_v61 = vor.u32 %v4729_v59, %v3977_v58  ;;  %v4800_v59 = vld [vmem:[%s5348_s16 + $0x1e4] sm:$0xf] }
 0x3f1   : > { %v1818_v8 = vpop.f32.mrf.mxu2 }
 0x3f2   : > { %v1819_v9 = vadd.f32 %v1818_v8, %v866_v62  ;;  %v4049_v62 = vld [vmem:[%s5374_s27 + $0x30] sm:$0xf] }
 0x3f3   : > { %v4050_v8 = vor.u32 %v4715_v63, %v4049_v62  ;;  %v3979_v62 = vld [vmem:[%s5374_s27 + $0xa8] sm:$0xf0] }
 0x3f4   : > { %v1824_v12 = vsel %vm1761_vm2, %v1819_v9, -inf }
 0x3f5   : > { %1825 = vmax.xlane.f32.xlu1 %v1824_v12  ;;  %2058 = vmatpush.bf16.msra.mxu2 %v4050_v8 }
 0x453   : > { %v1760_v13 = vpop.xlane.xlu2 %1759 }
 0x454   : > { %v1765_v15 = vsub.f32 %v1753_v60, %v1760_v13 }
 0x456   : > { %v1767_v16 = vmul.f32 1.442695, %v1765_v15 }
 0x458   : > { %4941 = vpow2.f32 %v1767_v16 }
 0x45b   : > { %v1764_v29 = vpop.xlane.xlu2 %1763 }
 0x45c   : > { %v1766_v17 = vsub.f32 %v1755_v0, %v1764_v29  ;;  %v4714_v0 = vld [vmem:[%s5374_s27 + $0x34] sm:$0xf] }
 0x45d   : > { %v4054_v12 = vor.u32 %v4714_v0, %v4051_v2  ;;  %v3969_v0 = vld [vmem:[%s5374_s27 + $0x90] sm:$0xf]  ;;  %v4727_v2 = vld [vmem:[%s5374_s27 + $0x94] sm:$0xf0] }
 0x45e   : > { %v5721_v30 = vpop.eup %4941  ;;  %v1769_v18 = vmul.f32 1.442695, %v1766_v17 }
 0x45f   : > { %v1771_v24 = vsel %vm1757_vm1, %v5721_v30, 0.0  ;;  %2072 = vmatpush.bf16.msra.mxu3 %v4054_v12  ;;  %v4725_v12 = vld [vmem:[%s5374_s27 + $0x84] sm:$0xf0] }
 0x460   : > { %4943 = vpow2.f32 %v1769_v18  ;;  %v1823_v19 = vpop.xlane.xlu0 %1822  ;;  %1772 = vadd.xlane.f32.xlu2 %v1771_v24  ;;  %v4041_v24 = vld [vmem:[%s5374_s27 + $0x20] sm:$0xf] }
 0x461   : > { %v1827_v14 = vsub.f32 %v1817_v4, %v1823_v19  ;;  %v4713_v19 = vld [vmem:[%s5374_s27 + $0x24] sm:$0xf0] }
 0x463   : > { %v1829_v25 = vmul.f32 1.442695, %v1827_v14  ;;  %v4712_v14 = vld [vmem:[%s5374_s27 + $0x24] sm:$0xf] }
 0x465   : > { %4945 = vpow2.f32 %v1829_v25  ;;  %v4042_v25 = vor.u32 %v4713_v19, %v4041_v24 }
 0x466   : > { %v4944_v20 = vpop.eup %4943 }
 0x467   : > { %v1774_v21 = vsel %vm1761_vm2, %v4944_v20, 0.0  ;;  %2059 = vmatpush.bf16.msra.mxu2 %v4042_v25 }
 0x468   : > { %v1826_v22 = vpop.xlane.xlu1 %1825  ;;  %1775 = vadd.xlane.f32.xlu0 %v1774_v21  ;;  %v4009_v21 = vld [vmem:[%s5374_s27 + $0xe0] sm:$0xf] }
 0x469   : > { %v1828_v23 = vsub.f32 %v1819_v9, %v1826_v22  ;;  %v4737_v22 = vld [vmem:[%s5374_s27 + $0xe4] sm:$0xf0] }
 0x46b   : > { %v5726_v28 = vpop.eup %4945  ;;  %v1831_v10 = vmul.f32 1.442695, %v1828_v23 }
 0x46c   : > { %v1833_v5 = vsel %vm1757_vm1, %v5726_v28, 0.0 }
 0x46d   : > { %4947 = vpow2.f32 %v1831_v10  ;;  %1834 = vadd.xlane.f32.xlu1 %v1833_v5  ;;  %v4736_v10 = vld [vmem:[%s5374_s27 + $0xe4] sm:$0xf]  ;;  %v4011_v5 = vld [vmem:[%s5374_s27 + $0xe8] sm:$0xf0] }
 0x473   : > { %v5730_v6 = vpop.eup %4947 }
 0x474   : > { %v1836_v11 = vsel %vm1761_vm2, %v5730_v6, 0.0 }
 0x475   : > { %1837 = vadd.xlane.f32.xlu2 %v1836_v11  ;;  %v4014_v11 = vor.u32 %v4736_v10, %v4011_v5 }
 0x477   : > { %1961 = vmatpush.bf16.msra.mxu1 %v4014_v11  ;;  %v4993_v11 = vld [vmem:[%s6443_s0] sm:$0xff] }
 0x4d3   : > { %v1773_v39 = vpop.xlane.xlu2 %1772 }
 0x4d4   : > { %4949 = vrcp.f32 %v1773_v39  ;;  %v4006_v39 = vor.u32 %v4734_v36, %v4003_v38 }
 0x4d6   : > { %1962 = vmatpush.bf16.msra.mxu1 %v4006_v39 }
 0x4da   : > { %v4950_v60 = vpop.eup %4949  ;;  %1963 = vmatpush.bf16.msra.mxu1 %v3998_v51  ;;  %v4770_v51 = vld [vmem:[%s5348_s16 + $0xec] sm:$0xf0] }
 0x4db   : > { %v1776_v47 = vpop.xlane.xlu0 %1775  ;;  %v1779_v4 = vmul.f32 %v4950_v60, %v5721_v30  ;;  %v4728_v60 = vld [vmem:[%s5374_s27 + $0xa4] sm:$0xf]  ;;  %v4202_v53 = vor.u32 %v4770_v51, %v4201_v50 }
 0x4dc   : > { %4951 = vrcp.f32 %v1776_v47  ;;  %v4733_v47 = vld [vmem:[%s5374_s27 + $0xc4] sm:$0xf0]  ;;  %v3982_v63 = vor.u32 %v4728_v60, %v3979_v62  ;;  %v4331_v60 = vld [vmem:[%s5348_s16 + $0x1f0] sm:$0xf0] }
 0x4dd   : > { %v3994_v49 = vor.u32 %v4733_v47, %v3993_v46 }
 0x4de   : > { %1964 = vmatpush.bf16.msra.mxu1 %v3990_v57  ;;  %v4330_v57 = vor.u32 %v4802_v54, %v4329_v52  ;;  %v4788_v52 = vld [vmem:[%s5348_s16 + $0x184] sm:$0xf] }
 0x4e0   : > { %v1835_v9 = vpop.xlane.xlu1 %1834 }
 0x4e1   : > { %4953 = vrcp.f32 %v1835_v9  ;;  %v3961_v9 = vld [vmem:[%s5374_s27 + $0x80] sm:$0xf] }
 0x4e2   : > { %v4952_v3 = vpop.eup %4951  ;;  %1965 = vmatpush.bf16.msra.mxu1 %v3982_v63 }
 0x4e3   : > { %v1780_v7 = vmul.f32 %v4952_v3, %v4944_v20  ;;  %v4043_v20 = vld [vmem:[%s5374_s27 + $0x28] sm:$0xf0]  ;;  %v4726_v3 = vld [vmem:[%s5374_s27 + $0x94] sm:$0xf] }
 0x4e4   : > { %v4046_v23 = vor.u32 %v4712_v14, %v4043_v20 }
 0x4e5   : > { %v1781_v13 = vpack.c.bf16 %v1780_v7, %v1779_v4  ;;  %v3970_v4 = vor.u32 %v4727_v2, %v3969_v0  ;;  %v3971_v7 = vld [vmem:[%s5374_s27 + $0x98] sm:$0xf0] }
 0x4e6   : > { %2073 = vmatpush.bf16.msra.mxu3 %v4046_v23  ;;  %v3974_v8 = vor.u32 %v4726_v3, %v3971_v7 }
 0x4e7   : > { %3957 = vmatmul.msk.bf16.vlgmr.msrb.gmra.mxu1 %vm1757_vm1, %v1781_v13  ;;  %v4954_v16 = vpop.eup %4953  ;;  %v4724_v13 = vld [vmem:[%s5374_s27 + $0x84] sm:$0xf] }
 0x4e8   : > { %v1838_v15 = vpop.xlane.xlu2 %1837  ;;  %v1841_v17 = vmul.f32 %v4954_v16, %v5726_v28  ;;  %v4010_v28 = vor.u32 %v4737_v22, %v4009_v21  ;;  %1966 = vmatpush.bf16.msra.mxu1 %v3974_v8  ;;  %v3963_v16 = vld [vmem:[%s5374_s27 + $0x88] sm:$0xf0]  ;;  %v2086_v21 = vld [vmem:[%s749_s20] sm:$0x3] }
 0x4e9   : > { %4955 = vrcp.f32 %v1838_v15  ;;  %v3962_v15 = vor.u32 %v4725_v12, %v3961_v9  ;;  %v2088_v10 = vperm.slane %v2086_v21, 0 }
 0x4ea   : > { %1947 = vmatpush.bf16.msra.mxu0 %v4010_v28  ;;  %2074 = vmatpush.bf16.msra.mxu3 %v4038_v33 }
 0x4ee   : > { %1948 = vmatpush.bf16.msra.mxu0 %v4002_v37  ;;  %2075 = vmatpush.bf16.msra.mxu3 %v4030_v45 }
 0x4ef   : > { %v4956_v29 = vpop.eup %4955 }
 0x4f0   : > { %v1842_v30 = vmul.f32 %v4956_v29, %v5730_v6  ;;  %v4033_v6 = vld [vmem:[%s5374_s27 + $0x10] sm:$0xf]  ;;  %v3966_v29 = vor.u32 %v4724_v13, %v3963_v16 }
 0x4f1   : > { %v4034_v32 = vor.u32 %v4711_v26, %v4033_v6  ;;  %v2089_v6 = vperm.slane %v2086_v21, 1  ;;  %v4187_v21 = vld [vmem:[%s5348_s16 + $0xd0] sm:$0xf0] }
 0x4f2   : > { %v1843_v18 = vpack.c.bf16 %v1842_v30, %v1841_v17  ;;  %1949 = vmatpush.bf16.msra.mxu0 %v3994_v49  ;;  %1967 = vmatpush.bf16.msra.mxu1 %v3966_v29 }
 0x4f3   : > { %2060 = vmatpush.bf16.msra.mxu2 %v4034_v32 }
 0x4f4   : > { %3958 = vmatmul.msk.bf16.vlgmr.msrb.gmra.mxu3 %vm1757_vm1, %v1843_v18 }
 0x4f6   : > { %1950 = vmatpush.bf16.msra.mxu0 %v3986_v55  ;;  %v4768_v55 = vld [vmem:[%s5348_s16 + $0xe4] sm:$0xf]  ;;  %2580 = vmatpush.bf16.msrb.mxu1 %v4330_v57  ;;  %v4265_v57 = vld [vmem:[%s5348_s16 + $0x160] sm:$0xf] }
 0x4f7   : > { %2061 = vmatpush.bf16.msra.mxu2 %v4026_v43  ;;  %v4996_v43 = vld [vmem:[%s6443_s0 + $0x18] sm:$0x3]  ;;  %v4206_v58 = vor.u32 %v4768_v55, %v4203_v56  ;;  %v4137_v55 = vld [vmem:[%s5348_s16 + $0x60] sm:$0xf]  ;;  %v4754_v56 = vld [vmem:[%s5348_s16 + $0x6c] sm:$0xf0] }
 0x4fa   : > { %1951 = vmatpush.bf16.msra.mxu0 %v3978_v61  ;;  %v4334_v61 = vor.u32 %v4800_v59, %v4331_v60  ;;  %v4786_v59 = vld [vmem:[%s5348_s16 + $0x16c] sm:$0xf0]  ;;  %v4752_v60 = vld [vmem:[%s5348_s16 + $0x64] sm:$0xf] }
 0x4fb   : > { %2594 = vmatpush.bf16.msrb.mxu2 %v4206_v58  ;;  %v4138_v58 = vor.u32 %v4754_v56, %v4137_v55  ;;  %v4211_v55 = vld [vmem:[%s5348_s16 + $0xf8] sm:$0xf0]  ;;  %v4801_v56 = vld [vmem:[%s5348_s16 + $0x1ec] sm:$0xf] }
 0x4fc   : > { %2608 = vmatpush.bf16.msrb.mxu3 %v4334_v61  ;;  %v4139_v61 = vld [vmem:[%s5348_s16 + $0x70] sm:$0xf0] }
 0x4fe   : > { %1952 = vmatpush.bf16.msra.mxu0 %v3970_v4 }
 0x502   : > { %1953 = vmatpush.bf16.msra.mxu0 %v3962_v15 }
 0x506   : > { %2566 = vmatpush.bf16.msrb.mxu0 %v4202_v53  ;;  %v4283_v53 = vld [vmem:[%s5348_s16 + $0x190] sm:$0xf0] }
 0x507   : > { %v4286_v54 = vor.u32 %v4788_v52, %v4283_v53 }
 0x564   : > { %v1799_v17 = vpop.f32.mrf.mxu1 }
 0x56c   : > { %v1801_v30 = vpop.f32.mrf.mxu1 }
 0x56d   : > { %v1804_v18 = vpack.c.bf16 %v1801_v30, %v1799_v17 }
 0x56f   : > { %2062 = vmatmul.bf16.vlgmr.msra.gmra.mxu2 %v1804_v18  ;;  %2076 = vmatmul.bf16.vlgmr.msra.gmra.mxu3 %v1804_v18  ;;  %v4185_v18 = vld [vmem:[%s5348_s16 + $0xc0] sm:$0xf] }
 0x577   : > { %v1860_v24 = vpop.f32.mrf.mxu3 }
 0x57f   : > { %v1862_v19 = vpop.f32.mrf.mxu3 }
 0x580   : > { %v1865_v14 = vpack.c.bf16 %v1862_v19, %v1860_v24  ;;  %v4766_v24 = vld [vmem:[%s5348_s16 + $0xcc] sm:$0xf0]  ;;  %v4313_v19 = vld [vmem:[%s5348_s16 + $0x1c0] sm:$0xf] }
 0x582   : > { %1954 = vmatmul.bf16.vlgmr.msra.gmra.mxu0 %v1865_v14  ;;  %1968 = vmatmul.bf16.vlgmr.msra.gmra.mxu1 %v1865_v14  ;;  %v4186_v14 = vor.u32 %v4766_v24, %v4185_v18 }
 0x584   : > { %2567 = vmatpush.bf16.msrb.mxu0 %v4186_v14  ;;  %v4251_v14 = vld [vmem:[%s5348_s16 + $0x150] sm:$0xf0] }
 0x5f2   : > { %v2063_v25 = vpop.f32.mrf.mxu2  ;;  %v2077_v20 = vpop.f32.mrf.mxu3 }
 0x5fa   : > { %v2065_v34 = vpop.f32.mrf.mxu2  ;;  %v2079_v35 = vpop.f32.mrf.mxu3 }
 0x5ff   : > { %v1955_v22 = vpop.f32.mrf.mxu0  ;;  %v1969_v23 = vpop.f32.mrf.mxu1 }
 0x600   : > { %v2064_v28 = vadd.f32 %v2063_v25, %v1955_v22  ;;  %v2078_v5 = vadd.f32 %v2077_v20, %v1969_v23  ;;  %v4798_v25 = vld [vmem:[%s5348_s16 + $0x1cc] sm:$0xf0]  ;;  %v4764_v20 = vld [vmem:[%s5348_s16 + $0xc4] sm:$0xf] }
 0x601   : > { %v4314_v22 = vor.u32 %v4798_v25, %v4313_v19  ;;  %v4190_v23 = vor.u32 %v4764_v20, %v4187_v21  ;;  %v4780_v19 = vld [vmem:[%s5348_s16 + $0x144] sm:$0xf]  ;;  %v4105_v20 = vld [vmem:[%s5348_s16 + $0x20] sm:$0xf]  ;;  %v4746_v21 = vld [vmem:[%s5348_s16 + $0x2c] sm:$0xf0] }
 0x602   : > { %v2082_v26 = vadd.f32 %v4993_v11, %v2064_v28  ;;  %v2083_v31 = vadd.f32 %v4994_v27, %v2078_v5  ;;  %v4796_v28 = vld [vmem:[%s5348_s16 + $0x1c4] sm:$0xf]  ;;  %v4762_v11 = vld [vmem:[%s5348_s16 + $0xac] sm:$0xf0]  ;;  %v4254_v25 = vor.u32 %v4780_v19, %v4251_v14 }
 0x603   : > { %2581 = vmatpush.bf16.msrb.mxu1 %v4314_v22  ;;  %2595 = vmatpush.bf16.msrb.mxu2 %v4190_v23  ;;  %v4233_v22 = vld [vmem:[%s5348_s16 + $0x120] sm:$0xf]  ;;  %v4106_v23 = vor.u32 %v4746_v21, %v4105_v20  ;;  %v4761_v20 = vld [vmem:[%s5348_s16 + $0xac] sm:$0xf]  ;;  %v4179_v21 = vld [vmem:[%s5348_s16 + $0xb8] sm:$0xf0] }
 0x604   : > { %v5814_v32 = vadd.f32 %v2088_v10, %v2082_v26  ;;  %v5816_v33 = vadd.f32 %v2089_v6, %v2083_v31  ;;  %v4297_v26 = vld [vmem:[%s5348_s16 + $0x1a0] sm:$0xf]  ;;  %v4794_v31 = vld [vmem:[%s5348_s16 + $0x1ac] sm:$0xf0] }
 0x606   : > { %v2098_v36 = vadd.f32 %v5816_v33, %v5814_v32 }
 0x607   : > { %v1957_v37 = vpop.f32.mrf.mxu0  ;;  %v1971_v38 = vpop.f32.mrf.mxu1 }
 0x608   : > { %v2066_v39 = vadd.f32 %v2065_v34, %v1957_v37  ;;  %v2080_v40 = vadd.f32 %v2079_v35, %v1971_v38  ;;  %2099 = vadd.xlane.f32.xlu1 %v2098_v36  ;;  %v4760_v34 = vld [vmem:[%s5348_s16 + $0xa4] sm:$0xf]  ;;  %v4171_v35 = vld [vmem:[%s5348_s16 + $0xb0] sm:$0xf0]  ;;  %v4298_v36 = vor.u32 %v4794_v31, %v4297_v26 }
 0x609   : > { %v4174_v37 = vor.u32 %v4760_v34, %v4171_v35  ;;  %v4792_v38 = vld [vmem:[%s5348_s16 + $0x1a4] sm:$0xf]  ;;  %v4089_v34 = vld [vmem:[%s5348_s16] sm:$0xf]  ;;  %v4742_v35 = vld [vmem:[%s5348_s16 + $0xc] sm:$0xf0] }
 0x60a   : > { %v2084_v42 = vadd.f32 %v4995_v41, %v2066_v39  ;;  %v2085_v44 = vadd.f32 %v4996_v43, %v2080_v40  ;;  %v4299_v39 = vld [vmem:[%s5348_s16 + $0x1b0] sm:$0xf0]  ;;  %2582 = vmatpush.bf16.msrb.mxu1 %v4298_v36  ;;  %v4153_v41 = vld [vmem:[%s5348_s16 + $0x80] sm:$0xf]  ;;  %v4776_v26 = vld [vmem:[%s5348_s16 + $0x124] sm:$0xf] }
 0x60b   : > { %v4302_v40 = vor.u32 %v4792_v38, %v4299_v39  ;;  %2596 = vmatpush.bf16.msrb.mxu2 %v4174_v37  ;;  %v4281_v43 = vld [vmem:[%s5348_s16 + $0x180] sm:$0xf]  ;;  %v4090_v37 = vor.u32 %v4742_v35, %v4089_v34  ;;  %v4774_v38 = vld [vmem:[%s5348_s16 + $0x10c] sm:$0xf0]  ;;  %v4740_v39 = vld [vmem:[%s5348_s16 + $0x4] sm:$0xf] }
 0x60c   : > { %v5826_v45 = vadd.f32 %v2088_v10, %v2084_v42  ;;  %v5828_v46 = vadd.f32 %v2089_v6, %v2085_v44  ;;  %v4315_v10 = vld [vmem:[%s5348_s16 + $0x1d0] sm:$0xf0]  ;;  %v4169_v6 = vld [vmem:[%s5348_s16 + $0xa0] sm:$0xf]  ;;  %v4758_v42 = vld [vmem:[%s5348_s16 + $0x8c] sm:$0xf0] }
 0x60d   : > { %v4318_v5 = vor.u32 %v4796_v28, %v4315_v10  ;;  %v4170_v27 = vor.u32 %v4762_v11, %v4169_v6  ;;  %v4154_v44 = vor.u32 %v4758_v42, %v4153_v41  ;;  %v4778_v28 = vld [vmem:[%s5348_s16 + $0x12c] sm:$0xf0]  ;;  %v4744_v10 = vld [vmem:[%s5348_s16 + $0x24] sm:$0xf]  ;;  %v4217_v36 = vld [vmem:[%s5348_s16 + $0x100] sm:$0xf] }
 0x60e   : > { %v2101_v47 = vsel %vm872_vm8, %v5826_v45, 0.0  ;;  %v2102_v48 = vsel %vm872_vm8, %v5828_v46, 0.0  ;;  %v4234_v6 = vor.u32 %v4778_v28, %v4233_v22  ;;  %v4218_v41 = vor.u32 %v4774_v38, %v4217_v36  ;;  %v4793_v28 = vld [vmem:[%s5348_s16 + $0x1ac] sm:$0xf]  ;;  %v4163_v35 = vld [vmem:[%s5348_s16 + $0x98] sm:$0xf0] }
 0x60f   : > { %v2103_v49 = vadd.f32 %v2102_v48, %v2101_v47  ;;  %2609 = vmatpush.bf16.msrb.mxu3 %v4318_v5  ;;  %2568 = vmatpush.bf16.msrb.mxu0 %v4170_v27  ;;  %v4790_v47 = vld [vmem:[%s5348_s16 + $0x18c] sm:$0xf0]  ;;  %v4756_v48 = vld [vmem:[%s5348_s16 + $0x84] sm:$0xf]  ;;  %v4107_v5 = vld [vmem:[%s5348_s16 + $0x30] sm:$0xf0] }
 0x610   : > { %v4282_v50 = vor.u32 %v4790_v47, %v4281_v43  ;;  %v4110_v11 = vor.u32 %v4744_v10, %v4107_v5  ;;  %v4235_v27 = vld [vmem:[%s5348_s16 + $0x130] sm:$0xf0]  ;;  %v4772_v43 = vld [vmem:[%s5348_s16 + $0x104] sm:$0xf]  ;;  %v4209_v47 = vld [vmem:[%s5348_s16 + $0xe8] sm:$0xf] }
 0x611   : > { %2104 = vadd.xlane.f32.xlu0 %v2103_v49  ;;  %v4155_v49 = vld [vmem:[%s5348_s16 + $0x90] sm:$0xf0]  ;;  %v4238_v31 = vor.u32 %v4776_v26, %v4235_v27  ;;  %v4307_v10 = vld [vmem:[%s5348_s16 + $0x1b8] sm:$0xf0]  ;;  %v4161_v5 = vld [vmem:[%s5348_s16 + $0x88] sm:$0xf] }
 0x612   : > { %v4158_v51 = vor.u32 %v4756_v48, %v4155_v49  ;;  %2583 = vmatpush.bf16.msrb.mxu1 %v4282_v50  ;;  %v4771_v49 = vld [vmem:[%s5348_s16 + $0xf4] sm:$0xf0]  ;;  %v4337_v50 = vld [vmem:[%s5348_s16 + $0x1e8] sm:$0xf]  ;;  %v4757_v34 = vld [vmem:[%s5348_s16 + $0x8c] sm:$0xf] }
 0x613   : > { %2610 = vmatpush.bf16.msrb.mxu3 %v4302_v40  ;;  %2569 = vmatpush.bf16.msrb.mxu0 %v4154_v44  ;;  %v4091_v40 = vld [vmem:[%s5348_s16 + $0x10] sm:$0xf0]  ;;  %v4210_v52 = vor.u32 %v4771_v49, %v4209_v47  ;;  %v4759_v26 = vld [vmem:[%s5348_s16 + $0x94] sm:$0xf0]  ;;  %v4289_v27 = vld [vmem:[%s5348_s16 + $0x188] sm:$0xf] }
 0x614   : > { %2597 = vmatpush.bf16.msrb.mxu2 %v4158_v51  ;;  %v4094_v42 = vor.u32 %v4740_v39, %v4091_v40  ;;  %v4219_v44 = vld [vmem:[%s5348_s16 + $0x110] sm:$0xf0]  ;;  %v4803_v51 = vld [vmem:[%s5348_s16 + $0x1f4] sm:$0xf0]  ;;  %v4162_v36 = vor.u32 %v4759_v26, %v4161_v5  ;;  %v4789_v38 = vld [vmem:[%s5348_s16 + $0x18c] sm:$0xf]  ;;  %v4166_v40 = vor.u32 %v4757_v34, %v4163_v35 }
 0x615   : > { %v4222_v48 = vor.u32 %v4772_v43, %v4219_v44  ;;  %v4338_v53 = vor.u32 %v4803_v51, %v4337_v50  ;;  %v4291_v39 = vld [vmem:[%s5348_s16 + $0x198] sm:$0xf0]  ;;  %v4755_v43 = vld [vmem:[%s5348_s16 + $0x74] sm:$0xf0]  ;;  %v4273_v44 = vld [vmem:[%s5348_s16 + $0x168] sm:$0xf] }
 0x616   : > { %v4753_v49 = vld [vmem:[%s5348_s16 + $0x6c] sm:$0xf]  ;;  %v4147_v50 = vld [vmem:[%s5348_s16 + $0x78] sm:$0xf0]  ;;  %v4743_v5 = vld [vmem:[%s5348_s16 + $0x14] sm:$0xf0] }
 0x617   : > { %2611 = vmatpush.bf16.msrb.mxu3 %v4286_v54  ;;  %2570 = vmatpush.bf16.msrb.mxu0 %v4138_v58  ;;  %v4769_v54 = vld [vmem:[%s5348_s16 + $0xec] sm:$0xf]  ;;  %v4339_v58 = vld [vmem:[%s5348_s16 + $0x1f8] sm:$0xf0] }
 0x618   : > { %v4741_v35 = vld [vmem:[%s5348_s16 + $0xc] sm:$0xf] }
 0x67b   : > { %v2100_v62 = vpop.xlane.xlu1 %2099 }
 0x67c   : > { %v2106_v63 = vmul.f32 %v2100_v62, %v5492_v1  ;;  %v4266_v62 = vor.u32 %v4786_v59, %v4265_v57  ;;  %v4214_v57 = vor.u32 %v4769_v54, %v4211_v55  ;;  %v4193_v59 = vld [vmem:[%s5348_s16 + $0xc8] sm:$0xf]  ;;  %v4785_v54 = vld [vmem:[%s5348_s16 + $0x16c] sm:$0xf]  ;;  %v4275_v55 = vld [vmem:[%s5348_s16 + $0x178] sm:$0xf0] }
 0x67e   : > { %v5844_v0 = vsub.f32 %v5814_v32, %v2106_v63  ;;  %v5847_v2 = vsub.f32 %v5816_v33, %v2106_v63  ;;  %v4142_v63 = vor.u32 %v4752_v60, %v4139_v61  ;;  %2584 = vmatpush.bf16.msrb.mxu1 %v4266_v62  ;;  %v4767_v60 = vld [vmem:[%s5348_s16 + $0xd4] sm:$0xf0]  ;;  %v4342_v61 = vor.u32 %v4801_v56, %v4339_v58  ;;  %v4129_v56 = vld [vmem:[%s5348_s16 + $0x48] sm:$0xf] }
 0x67f   : > { %v4194_v62 = vor.u32 %v4767_v60, %v4193_v59  ;;  %v4278_v59 = vor.u32 %v4785_v54, %v4275_v55  ;;  %v4751_v60 = vld [vmem:[%s5348_s16 + $0x54] sm:$0xf0]  ;;  %v2097_v54 = vld [vmem:[%s757_s3] sm:$0x3] }
 0x680   : > { %v2112_v3 = vmul.f32 %v5844_v0, %v5844_v0  ;;  %v2113_v4 = vmul.f32 %v5847_v2, %v5847_v2  ;;  %2598 = vmatpush.bf16.msrb.mxu2 %v4142_v63  ;;  %v4321_v63 = vld [vmem:[%s5348_s16 + $0x1c8] sm:$0xf] }
 0x682   : > { %v2116_v7 = vadd.f32 %v2113_v4, %v2112_v3  ;;  %v4784_v3 = vld [vmem:[%s5348_s16 + $0x164] sm:$0xf]  ;;  %v4267_v4 = vld [vmem:[%s5348_s16 + $0x170] sm:$0xf0] }
 0x684   : > { %2117 = vadd.xlane.f32.xlu2 %v2116_v7  ;;  %v2105_v8 = vpop.xlane.xlu0 %2104  ;;  %v4270_v7 = vor.u32 %v4784_v3, %v4267_v4  ;;  %v4799_v3 = vld [vmem:[%s5348_s16 + $0x1d4] sm:$0xf0]  ;;  %v4765_v4 = vld [vmem:[%s5348_s16 + $0xcc] sm:$0xf] }
 0x685   : > { %v2107_v9 = vmul.f32 %v2105_v8, %v5492_v1  ;;  %v4121_v8 = vld [vmem:[%s5348_s16 + $0x40] sm:$0xf] }
 0x686   : > { %2612 = vmatpush.bf16.msrb.mxu3 %v4270_v7  ;;  %v4322_v7 = vor.u32 %v4799_v3, %v4321_v63  ;;  %v4749_v3 = vld [vmem:[%s5348_s16 + $0x4c] sm:$0xf] }
 0x687   : > { %v5855_v12 = vsub.f32 %v5826_v45, %v2107_v9  ;;  %v5858_v13 = vsub.f32 %v5828_v46, %v2107_v9  ;;  %v4750_v9 = vld [vmem:[%s5348_s16 + $0x4c] sm:$0xf0] }
 0x689   : > { %v2114_v15 = vmul.f32 %v5855_v12, %v5855_v12  ;;  %v2115_v16 = vmul.f32 %v5858_v13, %v5858_v13 }
 0x68a   : > { %2613 = vmatpush.bf16.msrb.mxu3 %v4254_v25  ;;  %v4795_v25 = vld [vmem:[%s5348_s16 + $0x1b4] sm:$0xf0] }
 0x68b   : > { %v2119_v29 = vsel %vm872_vm8, %v2114_v15, 0.0  ;;  %v2120_v17 = vsel %vm872_vm8, %v2115_v16, 0.0  ;;  %v4249_v15 = vld [vmem:[%s5348_s16 + $0x140] sm:$0xf]  ;;  %v4122_v16 = vor.u32 %v4750_v9, %v4121_v8  ;;  %v4195_v8 = vld [vmem:[%s5348_s16 + $0xd8] sm:$0xf0] }
 0x68c   : > { %v2121_v30 = vadd.f32 %v2120_v17, %v2119_v29  ;;  %v4782_v29 = vld [vmem:[%s5348_s16 + $0x14c] sm:$0xf0]  ;;  %v4748_v17 = vld [vmem:[%s5348_s16 + $0x44] sm:$0xf]  ;;  %v4797_v9 = vld [vmem:[%s5348_s16 + $0x1cc] sm:$0xf] }
 0x68d   : > { %v4250_v18 = vor.u32 %v4782_v29, %v4249_v15  ;;  %2571 = vmatpush.bf16.msrb.mxu0 %v4122_v16  ;;  %v4323_v15 = vld [vmem:[%s5348_s16 + $0x1d8] sm:$0xf0]  ;;  %v4198_v16 = vor.u32 %v4765_v4, %v4195_v8 }
 0x68e   : > { %2122 = vadd.xlane.f32.xlu0 %v2121_v30  ;;  %v4123_v30 = vld [vmem:[%s5348_s16 + $0x50] sm:$0xf0]  ;;  %2614 = vmatpush.bf16.msrb.mxu3 %v4238_v31  ;;  %v4326_v29 = vor.u32 %v4797_v9, %v4323_v15  ;;  %v4791_v31 = vld [vmem:[%s5348_s16 + $0x194] sm:$0xf0]  ;;  %v4131_v4 = vld [vmem:[%s5348_s16 + $0x58] sm:$0xf0] }
 0x68f   : > { %v4126_v24 = vor.u32 %v4748_v17, %v4123_v30  ;;  %2585 = vmatpush.bf16.msrb.mxu1 %v4250_v18  ;;  %v4177_v30 = vld [vmem:[%s5348_s16 + $0xa8] sm:$0xf]  ;;  %v4763_v18 = vld [vmem:[%s5348_s16 + $0xb4] sm:$0xf0]  ;;  %v4259_v15 = vld [vmem:[%s5348_s16 + $0x158] sm:$0xf0] }
 0x690   : > { %v4178_v14 = vor.u32 %v4763_v18, %v4177_v30  ;;  %v4747_v30 = vld [vmem:[%s5348_s16 + $0x34] sm:$0xf0]  ;;  %v4241_v18 = vld [vmem:[%s5348_s16 + $0x128] sm:$0xf] }
 0x691   : > { %2599 = vmatpush.bf16.msrb.mxu2 %v4126_v24  ;;  %2572 = vmatpush.bf16.msrb.mxu0 %v4106_v23  ;;  %v4305_v24 = vld [vmem:[%s5348_s16 + $0x1a8] sm:$0xf]  ;;  %v4182_v23 = vor.u32 %v4761_v20, %v4179_v21  ;;  %v4777_v21 = vld [vmem:[%s5348_s16 + $0x12c] sm:$0xf] }
 0x692   : > { %2615 = vmatpush.bf16.msrb.mxu3 %v4222_v48  ;;  %v4306_v22 = vor.u32 %v4795_v25, %v4305_v24  ;;  %v4787_v48 = vld [vmem:[%s5348_s16 + $0x174] sm:$0xf0]  ;;  %v4115_v25 = vld [vmem:[%s5348_s16 + $0x38] sm:$0xf0] }
 0x693   : > { %2586 = vmatpush.bf16.msrb.mxu1 %v4234_v6  ;;  %v4779_v24 = vld [vmem:[%s5348_s16 + $0x134] sm:$0xf0] }
 0x695   : > { %2600 = vmatpush.bf16.msrb.mxu2 %v4110_v11  ;;  %2573 = vmatpush.bf16.msrb.mxu0 %v4090_v37  ;;  %v4310_v11 = vor.u32 %v4793_v28, %v4307_v10  ;;  %v4290_v37 = vor.u32 %v4791_v31, %v4289_v27  ;;  %v4242_v28 = vor.u32 %v4779_v24, %v4241_v18  ;;  %v4097_v10 = vld [vmem:[%s5348_s16 + $0x8] sm:$0xf]  ;;  %v4775_v31 = vld [vmem:[%s5348_s16 + $0x114] sm:$0xf0]  ;;  %v4473_v18 = vld [vmem:[%s5397_s12 + $0xf0] sm:$0xf] }
 0x696   : > { %2664 = vmatpush.bf16.msra.mxu3 %v4342_v61  ;;  %v4257_v61 = vld [vmem:[%s5348_s16 + $0x148] sm:$0xf]  ;;  %v4835_v24 = vld [vmem:[%s5397_s12 + $0xf4] sm:$0xf0] }
 0x697   : > { %2587 = vmatpush.bf16.msrb.mxu1 %v4218_v41  ;;  %v4294_v41 = vor.u32 %v4789_v38, %v4291_v39  ;;  %v4225_v27 = vld [vmem:[%s5348_s16 + $0x108] sm:$0xf]  ;;  %v4227_v38 = vld [vmem:[%s5348_s16 + $0x118] sm:$0xf0] }
 0x699   : > { %2601 = vmatpush.bf16.msrb.mxu2 %v4094_v42  ;;  %2622 = vmatpush.bf16.msra.mxu0 %v4210_v52  ;;  %v4145_v42 = vld [vmem:[%s5348_s16 + $0x68] sm:$0xf]  ;;  %v4274_v52 = vor.u32 %v4787_v48, %v4273_v44 }
 0x69a   : > { %2665 = vmatpush.bf16.msra.mxu3 %v4326_v29  ;;  %v4146_v47 = vor.u32 %v4755_v43, %v4145_v42 }
 0x69b   : > { %2636 = vmatpush.bf16.msra.mxu1 %v4338_v53  ;;  %v4150_v53 = vor.u32 %v4753_v49, %v4147_v50 }
 0x69d   : > { %2650 = vmatpush.bf16.msra.mxu2 %v4214_v57  ;;  %2623 = vmatpush.bf16.msra.mxu0 %v4194_v62  ;;  %v4783_v62 = vld [vmem:[%s5348_s16 + $0x154] sm:$0xf0] }
 0x69e   : > { %2666 = vmatpush.bf16.msra.mxu3 %v4310_v11  ;;  %v4258_v9 = vor.u32 %v4783_v62, %v4257_v61 }
 0x69f   : > { %2637 = vmatpush.bf16.msra.mxu1 %v4322_v7  ;;  %v4781_v7 = vld [vmem:[%s5348_s16 + $0x14c] sm:$0xf] }
 0x6a1   : > { %2651 = vmatpush.bf16.msra.mxu2 %v4198_v16  ;;  %2624 = vmatpush.bf16.msra.mxu0 %v4178_v14  ;;  %v4113_v16 = vld [vmem:[%s5348_s16 + $0x28] sm:$0xf]  ;;  %v4745_v14 = vld [vmem:[%s5348_s16 + $0x2c] sm:$0xf] }
 0x6a2   : > { %2667 = vmatpush.bf16.msra.mxu3 %v4294_v41  ;;  %v4118_v26 = vor.u32 %v4745_v14, %v4115_v25  ;;  %v4226_v41 = vor.u32 %v4775_v31, %v4225_v27  ;;  %v4393_v14 = vld [vmem:[%s5397_s12 + $0x50] sm:$0xf]  ;;  %v4815_v25 = vld [vmem:[%s5397_s12 + $0x54] sm:$0xf0] }
 0x6a3   : > { %2638 = vmatpush.bf16.msra.mxu1 %v4306_v22  ;;  %v4243_v22 = vld [vmem:[%s5348_s16 + $0x138] sm:$0xf0]  ;;  %v4377_v31 = vld [vmem:[%s5397_s12 + $0x30] sm:$0xf] }
 0x6a4   : > { %v4246_v34 = vor.u32 %v4777_v21, %v4243_v22  ;;  %v4465_v21 = vld [vmem:[%s5397_s12 + $0xe0] sm:$0xf]  ;;  %v4833_v22 = vld [vmem:[%s5397_s12 + $0xe4] sm:$0xf0] }
 0x6a5   : > { %2652 = vmatpush.bf16.msra.mxu2 %v4182_v23  ;;  %2625 = vmatpush.bf16.msra.mxu0 %v4162_v36  ;;  %v4114_v23 = vor.u32 %v4747_v30, %v4113_v16  ;;  %v4099_v36 = vld [vmem:[%s5348_s16 + $0x18] sm:$0xf0] }
 0x6a6   : > { %2668 = vmatpush.bf16.msra.mxu3 %v4278_v59  ;;  %v4102_v44 = vor.u32 %v4741_v35, %v4099_v36  ;;  %v2162_v59 = vperm.slane %v2097_v54, 0  ;;  %v4537_v35 = vld [vmem:[%s5397_s12 + $0x170] sm:$0xf] }
 0x6a7   : > { %2639 = vmatpush.bf16.msra.mxu1 %v4290_v37  ;;  %v4773_v37 = vld [vmem:[%s5348_s16 + $0x10c] sm:$0xf] }
 0x6a9   : > { %2653 = vmatpush.bf16.msra.mxu2 %v4166_v40  ;;  %2626 = vmatpush.bf16.msra.mxu0 %v4146_v47  ;;  %v4098_v40 = vor.u32 %v4743_v5, %v4097_v10  ;;  %v4230_v47 = vor.u32 %v4773_v37, %v4227_v38  ;;  %v4813_v10 = vld [vmem:[%s5397_s12 + $0x44] sm:$0xf0]  ;;  %v4851_v37 = vld [vmem:[%s5397_s12 + $0x174] sm:$0xf0] }
 0x6aa   : > { %v4538_v38 = vor.u32 %v4851_v37, %v4537_v35  ;;  %v4843_v37 = vld [vmem:[%s5397_s12 + $0x134] sm:$0xf0] }
 0x6ab   : > { %2640 = vmatpush.bf16.msra.mxu1 %v4274_v52 }
 0x6ad   : > { %2654 = vmatpush.bf16.msra.mxu2 %v4150_v53 }
 0x6af   : > { %2641 = vmatpush.bf16.msra.mxu1 %v4258_v9 }
 0x6b3   : > { %2642 = vmatpush.bf16.msra.mxu1 %v4242_v28  ;;  %v4385_v28 = vld [vmem:[%s5397_s12 + $0x40] sm:$0xf] }
 0x6b4   : > { %v4386_v5 = vor.u32 %v4813_v10, %v4385_v28 }
 0x6b7   : > { %2643 = vmatpush.bf16.msra.mxu1 %v4226_v41  ;;  %v6040_v41 = vld [vmem:[%s5395_s8] sm:$0xf] }
 0x6f7   : > { %v2118_v17 = vpop.xlane.xlu2 %2117 }
 0x6f8   : > { %v2124_v19 = vmul.f32 %v2118_v17, %v5492_v1  ;;  %v4134_v17 = vor.u32 %v4749_v3, %v4131_v4 }
 0x6fa   : > { %v5948_v6 = vadd.f32 1e-05, %v2124_v19  ;;  %v4262_v19 = vor.u32 %v4781_v7, %v4259_v15  ;;  %2655 = vmatpush.bf16.msra.mxu2 %v4134_v17  ;;  %v4817_v17 = vld [vmem:[%s5397_s12 + $0x64] sm:$0xf0] }
 0x6fc   : > { %4957 = vrsqrt.f32 %v5948_v6  ;;  %2669 = vmatpush.bf16.msra.mxu3 %v4262_v19  ;;  %vm2134_vm4 = vweird.f32 %v5948_v6  ;;  %v4474_v19 = vor.u32 %v4835_v24, %v4473_v18  ;;  %v4845_v18 = vld [vmem:[%s5397_s12 + $0x144] sm:$0xf0]  ;;  %v4818_v24 = vld [vmem:[%s5397_s12 + $0x74] sm:$0xf] }
 0x6fe   : > { %2656 = vmatpush.bf16.msra.mxu2 %v4118_v26  ;;  %v4831_v26 = vld [vmem:[%s5397_s12 + $0xd4] sm:$0xf0] }
 0x700   : > { %2670 = vmatpush.bf16.msra.mxu3 %v4246_v34  ;;  %v4811_v34 = vld [vmem:[%s5397_s12 + $0x34] sm:$0xf0] }
 0x701   : > { %v2123_v51 = vpop.xlane.xlu0 %2122  ;;  %v4378_v36 = vor.u32 %v4811_v34, %v4377_v31 }
 0x702   : > { %v5967_v57 = vpop.eup %4957  ;;  %v2125_v58 = vmul.f32 %v2123_v51, %v5492_v1  ;;  %v4130_v1 = vor.u32 %v4751_v60, %v4129_v56  ;;  %v2096_v51 = vld [vmem:[%s753_s11] sm:$0x3]  ;;  %2657 = vmatpush.bf16.msra.mxu2 %v4102_v44  ;;  %v2163_v60 = vperm.slane %v2097_v54, 1  ;;  %v4809_v44 = vld [vmem:[%s5397_s12 + $0x24] sm:$0xf0] }
 0x703   : > { %v2129_v63 = vmul.f32 %v5967_v57, %v5948_v6  ;;  %vm2135_vm3 = vweird.f32 %v5967_v57  ;;  %v2153_v55 = vperm.slane %v2096_v51, 0  ;;  %v2154_v56 = vperm.slane %v2096_v51, 1 }
 0x704   : > { %v5978_v8 = vadd.f32 1e-05, %v2125_v58  ;;  %2627 = vmatpush.bf16.msra.mxu0 %v4130_v1  ;;  %vm2136_vm5 = vmor %vm2134_vm4, %vm2135_vm3  ;;  %2671 = vmatpush.bf16.msra.mxu3 %v4230_v47  ;;  %v4529_v47 = vld [vmem:[%s5397_s12 + $0x160] sm:$0xf]  ;;  %v2238_v51 = vperm.slane %v6040_v41, 0 }
 0x705   : > { %v2130_v29 = vmul.f32 %v5967_v57, %v2129_v63 }
 0x706   : > { %4959 = vrsqrt.f32 %v5978_v8  ;;  %vm2144_vm7 = vweird.f32 %v5978_v8 }
 0x707   : > { %v2131_v20 = vmul.f32 0.5, %v2130_v29  ;;  %v4401_v29 = vld [vmem:[%s5397_s12 + $0x60] sm:$0xf] }
 0x708   : > { %2628 = vmatpush.bf16.msra.mxu0 %v4114_v23  ;;  %v4402_v30 = vor.u32 %v4817_v17, %v4401_v29  ;;  %v4466_v23 = vor.u32 %v4833_v22, %v4465_v21  ;;  %v4805_v29 = vld [vmem:[%s5397_s12 + $0x4] sm:$0xf0]  ;;  %v4411_v21 = vld [vmem:[%s5397_s12 + $0x78] sm:$0xf0]  ;;  %v4425_v22 = vld [vmem:[%s5397_s12 + $0x90] sm:$0xf] }
 0x709   : > { %v2132_v11 = vsub.f32 1.5, %v2131_v20  ;;  %v4394_v20 = vor.u32 %v4815_v25, %v4393_v14 }
 0x70b   : > { %v2133_v42 = vmul.f32 %v5967_v57, %v2132_v11  ;;  %v4457_v11 = vld [vmem:[%s5397_s12 + $0xd0] sm:$0xf] }
 0x70c   : > { %v4960_v39 = vpop.eup %4959  ;;  %2629 = vmatpush.bf16.msra.mxu0 %v4098_v40  ;;  %v4458_v27 = vor.u32 %v4831_v26, %v4457_v11  ;;  %v4829_v40 = vld [vmem:[%s5397_s12 + $0xc4] sm:$0xf0]  ;;  %v4823_v11 = vld [vmem:[%s5397_s12 + $0x94] sm:$0xf0]  ;;  %v4585_v26 = vld [vmem:[%s5397_s12 + $0x1d0] sm:$0xf] }
 0x70d   : > { %v2139_v43 = vmul.f32 %v4960_v39, %v5978_v8  ;;  %v2137_v49 = vsel %vm2136_vm5, %v5967_v57, %v2133_v42  ;;  %vm2145_vm6 = vweird.f32 %v4960_v39  ;;  %v4426_v34 = vor.u32 %v4823_v11, %v4425_v22 }
 0x70e   : > { %v2148_v53 = vmul.f32 %v2137_v49, %v5844_v0  ;;  %v2149_v6 = vmul.f32 %v2137_v49, %v5847_v2  ;;  %vm2146_vm8 = vmor %vm2144_vm7, %vm2145_vm6  ;;  %v4849_v49 = vld [vmem:[%s5397_s12 + $0x164] sm:$0xf0] }
 0x70f   : > { %v2140_v48 = vmul.f32 %v4960_v39, %v2139_v43  ;;  %v4369_v43 = vld [vmem:[%s5397_s12 + $0x20] sm:$0xf] }
 0x710   : > { %v2157_v62 = vmul.f32 %v2153_v55, %v2148_v53  ;;  %v2158_v2 = vmul.f32 %v2154_v56, %v2149_v6  ;;  %v4827_v53 = vld [vmem:[%s5397_s12 + $0xb4] sm:$0xf0]  ;;  %v4601_v6 = vld [vmem:[%s5397_s12 + $0x1f0] sm:$0xf] }
 0x711   : > { %v2141_v50 = vmul.f32 0.5, %v2140_v48  ;;  %v4370_v48 = vor.u32 %v4809_v44, %v4369_v43  ;;  %v4403_v43 = vld [vmem:[%s5397_s12 + $0x68] sm:$0xf0] }
 0x712   : > { %v2166_v4 = vadd.f32 %v2162_v59, %v2157_v62  ;;  %v2167_v1 = vadd.f32 %v2163_v60, %v2158_v2  ;;  %v4847_v62 = vld [vmem:[%s5397_s12 + $0x154] sm:$0xf0] }
 0x713   : > { %v2142_v52 = vsub.f32 1.5, %v2141_v50  ;;  %v4530_v50 = vor.u32 %v4849_v49, %v4529_v47  ;;  %v4821_v49 = vld [vmem:[%s5397_s12 + $0x84] sm:$0xf0] }
 0x715   : > { %v2143_v57 = vmul.f32 %v4960_v39, %v2142_v52  ;;  %v4441_v52 = vld [vmem:[%s5397_s12 + $0xb0] sm:$0xf] }
 0x716   : > { %v4442_v54 = vor.u32 %v4827_v53, %v4441_v52  ;;  %v4861_v53 = vld [vmem:[%s5397_s12 + $0x1c4] sm:$0xf0] }
 0x717   : > { %v2147_v58 = vsel %vm2146_vm8, %v4960_v39, %v2143_v57  ;;  %v4449_v39 = vld [vmem:[%s5397_s12 + $0xc0] sm:$0xf]  ;;  %v4361_v57 = vld [vmem:[%s5397_s12 + $0x10] sm:$0xf] }
 0x718   : > { %v2150_v61 = vmul.f32 %v2147_v58, %v5855_v12  ;;  %v2151_v0 = vmul.f32 %v2147_v58, %v5858_v13  ;;  %v4409_v12 = vld [vmem:[%s5397_s12 + $0x70] sm:$0xf]  ;;  %v4819_v13 = vld [vmem:[%s5397_s12 + $0x74] sm:$0xf0]  ;;  %v4450_v42 = vor.u32 %v4829_v40, %v4449_v39  ;;  %v2240_v39 = vperm.slane %v6040_v41, 2 }
 0x719   : > { %v4410_v16 = vor.u32 %v4819_v13, %v4409_v12  ;;  %v4807_v58 = vld [vmem:[%s5397_s12 + $0x14] sm:$0xf0]  ;;  %v2239_v12 = vperm.slane %v6040_v41, 1 }
 0x71a   : > { %v2159_v63 = vmul.f32 %v2153_v55, %v2150_v61  ;;  %v2160_v3 = vmul.f32 %v2154_v56, %v2151_v0  ;;  %v4867_v55 = vld [vmem:[%s5397_s12 + $0x1f4] sm:$0xf0]  ;;  %v4362_v0 = vor.u32 %v4807_v58, %v4361_v57  ;;  %v4497_v57 = vld [vmem:[%s5397_s12 + $0x120] sm:$0xf] }
 0x71b   : > { %v4602_v56 = vor.u32 %v4867_v55, %v4601_v6  ;;  %v4834_v6 = vld [vmem:[%s5397_s12 + $0xf4] sm:$0xf] }
 0x71c   : > { %v2168_v7 = vadd.f32 %v2162_v59, %v2159_v63  ;;  %v2169_v9 = vadd.f32 %v2163_v60, %v2160_v3  ;;  %v4521_v59 = vld [vmem:[%s5397_s12 + $0x150] sm:$0xf]  ;;  %v4433_v3 = vld [vmem:[%s5397_s12 + $0xa0] sm:$0xf] }
 0x71d   : > { %v4522_v63 = vor.u32 %v4847_v62, %v4521_v59 }
 0x71e   : > { %v2170_v8 = vpack.c.bf16 %v2168_v7, %v2166_v4  ;;  %v2171_v15 = vpack.c.bf16 %v2169_v9, %v2167_v1  ;;  %v4825_v4 = vld [vmem:[%s5397_s12 + $0xa4] sm:$0xf0]  ;;  %v4593_v7 = vld [vmem:[%s5397_s12 + $0x1e0] sm:$0xf] }
 0x71f   : > { %v4434_v1 = vor.u32 %v4825_v4, %v4433_v3  ;;  %v4865_v9 = vld [vmem:[%s5397_s12 + $0x1e4] sm:$0xf0]  ;;  %v4395_v3 = vld [vmem:[%s5397_s12 + $0x58] sm:$0xf0]  ;;  %v4569_v4 = vld [vmem:[%s5397_s12 + $0x1b0] sm:$0xf] }
 0x720   : > { %2574 = vmatmul.bf16.vlgmr.msrb.gmra.mxu0 %v2170_v8  ;;  %2588 = vmatmul.bf16.vlgmr.msrb.gmra.mxu1 %v2171_v15 }
 0x721   : > { %2602 = vmatmul.bf16.vlgmr.msrb.gmra.mxu2 %v2170_v8  ;;  %2616 = vmatmul.bf16.vlgmr.msrb.gmra.mxu3 %v2171_v15 }
 0x722   : > { %3240 = vmatpush.bf16.msrb.mxu0 %v4410_v16  ;;  %3254 = vmatpush.bf16.msrb.mxu1 %v4474_v19  ;;  %v4353_v16 = vld [vmem:[%s5397_s12] sm:$0xf] }
 0x723   : > { %3268 = vmatpush.bf16.msrb.mxu2 %v4538_v38  ;;  %3282 = vmatpush.bf16.msrb.mxu3 %v4602_v56  ;;  %v4354_v17 = vor.u32 %v4805_v29, %v4353_v16  ;;  %v4475_v56 = vld [vmem:[%s5397_s12 + $0xf8] sm:$0xf0]  ;;  %v4832_v16 = vld [vmem:[%s5397_s12 + $0xe4] sm:$0xf] }
 0x724   : > { %v4478_v59 = vor.u32 %v4834_v6, %v4475_v56 }
 0x726   : > { %3241 = vmatpush.bf16.msrb.mxu0 %v4402_v30  ;;  %3255 = vmatpush.bf16.msrb.mxu1 %v4466_v23  ;;  %v4513_v30 = vld [vmem:[%s5397_s12 + $0x140] sm:$0xf] }
 0x727   : > { %3269 = vmatpush.bf16.msrb.mxu2 %v4530_v50  ;;  %v4577_v50 = vld [vmem:[%s5397_s12 + $0x1c0] sm:$0xf] }
 0x728   : > { %v4578_v55 = vor.u32 %v4861_v53, %v4577_v50 }
 0x72a   : > { %3242 = vmatpush.bf16.msrb.mxu0 %v4394_v20  ;;  %3256 = vmatpush.bf16.msrb.mxu1 %v4458_v27  ;;  %v4514_v20 = vor.u32 %v4845_v18, %v4513_v30  ;;  %v4863_v27 = vld [vmem:[%s5397_s12 + $0x1d4] sm:$0xf0]  ;;  %v4467_v18 = vld [vmem:[%s5397_s12 + $0xe8] sm:$0xf0] }
 0x72b   : > { %3270 = vmatpush.bf16.msrb.mxu2 %v4522_v63  ;;  %v4586_v35 = vor.u32 %v4863_v27, %v4585_v26  ;;  %v4830_v27 = vld [vmem:[%s5397_s12 + $0xd4] sm:$0xf] }
 0x72e   : > { %3243 = vmatpush.bf16.msrb.mxu0 %v4386_v5  ;;  %3257 = vmatpush.bf16.msrb.mxu1 %v4450_v42  ;;  %v4414_v5 = vor.u32 %v4818_v24, %v4411_v21  ;;  %v4816_v42 = vld [vmem:[%s5397_s12 + $0x64] sm:$0xf]  ;;  %v4489_v24 = vld [vmem:[%s5397_s12 + $0x110] sm:$0xf]  ;;  %v4470_v21 = vor.u32 %v4832_v16, %v4467_v18 }
 0x72f   : > { %3271 = vmatpush.bf16.msrb.mxu2 %v4514_v20  ;;  %v4406_v47 = vor.u32 %v4816_v42, %v4403_v43  ;;  %v4837_v42 = vld [vmem:[%s5397_s12 + $0x104] sm:$0xf0]  ;;  %v4810_v43 = vld [vmem:[%s5397_s12 + $0x34] sm:$0xf]  ;;  %v4848_v16 = vld [vmem:[%s5397_s12 + $0x164] sm:$0xf] }
 0x730   : > { %2630 = vmatmul.bf16.vlgmr.msra.gmra.mxu0 %v2170_v8  ;;  %2644 = vmatmul.bf16.vlgmr.msra.gmra.mxu1 %v2171_v15 }
 0x731   : > { %2658 = vmatmul.bf16.vlgmr.msra.gmra.mxu2 %v2170_v8  ;;  %2672 = vmatmul.bf16.vlgmr.msra.gmra.mxu3 %v2171_v15  ;;  %v4594_v15 = vor.u32 %v4865_v9, %v4593_v7 }
 0x732   : > { %3244 = vmatpush.bf16.msrb.mxu0 %v4378_v36  ;;  %3258 = vmatpush.bf16.msrb.mxu1 %v4442_v54  ;;  %v4505_v36 = vld [vmem:[%s5397_s12 + $0x130] sm:$0xf] }
 0x733   : > { %3283 = vmatpush.bf16.msrb.mxu3 %v4594_v15  ;;  %v4506_v40 = vor.u32 %v4843_v37, %v4505_v36  ;;  %v4481_v37 = vld [vmem:[%s5397_s12 + $0x100] sm:$0xf] }
 0x735   : > { %3272 = vmatpush.bf16.msrb.mxu2 %v4506_v40 }
 0x736   : > { %3245 = vmatpush.bf16.msrb.mxu0 %v4370_v48  ;;  %3259 = vmatpush.bf16.msrb.mxu1 %v4434_v1  ;;  %v4417_v48 = vld [vmem:[%s5397_s12 + $0x80] sm:$0xf] }
 0x737   : > { %3284 = vmatpush.bf16.msrb.mxu3 %v4586_v35  ;;  %v4418_v52 = vor.u32 %v4821_v49, %v4417_v48 }
 0x73a   : > { %3246 = vmatpush.bf16.msrb.mxu0 %v4362_v0  ;;  %3260 = vmatpush.bf16.msrb.mxu1 %v4426_v34 }
 0x73b   : > { %3285 = vmatpush.bf16.msrb.mxu3 %v4578_v55 }
 0x73e   : > { %3247 = vmatpush.bf16.msrb.mxu0 %v4354_v17  ;;  %3261 = vmatpush.bf16.msrb.mxu1 %v4418_v52  ;;  %v4482_v52 = vor.u32 %v4837_v42, %v4481_v37 }
 0x742   : > { %3296 = vmatpush.bf16.msra.mxu0 %v4414_v5  ;;  %3310 = vmatpush.bf16.msra.mxu1 %v4478_v59  ;;  %v2241_v5 = vperm.slane %v6040_v41, 3 }
 0x746   : > { %3297 = vmatpush.bf16.msra.mxu0 %v4406_v47  ;;  %3311 = vmatpush.bf16.msra.mxu1 %v4470_v21  ;;  %v4379_v47 = vld [vmem:[%s5397_s12 + $0x38] sm:$0xf0] }
 0x747   : > { %v4382_v56 = vor.u32 %v4810_v43, %v4379_v47 }
 0x79d   : > { %v2575_v60 = vpop.f32.mrf.mxu0  ;;  %v2589_v61 = vpop.f32.mrf.mxu1 }
 0x79e   : > { %v2576_v2 = vadd.f32 %v2575_v60, %v2238_v51  ;;  %v4841_v60 = vld [vmem:[%s5397_s12 + $0x124] sm:$0xf0] }
 0x79f   : > { %v4498_v63 = vor.u32 %v4841_v60, %v4497_v57  ;;  %v4539_v60 = vld [vmem:[%s5397_s12 + $0x178] sm:$0xf0] }
 0x7a0   : > { %v6059_v8 = vadd.f32 %v2589_v61, %v2576_v2  ;;  %v4814_v61 = vld [vmem:[%s5397_s12 + $0x54] sm:$0xf] }
 0x7a1   : > { %v4398_v15 = vor.u32 %v4814_v61, %v4395_v3  ;;  %3273 = vmatpush.bf16.msrb.mxu2 %v4498_v63  ;;  %v4553_v61 = vld [vmem:[%s5397_s12 + $0x190] sm:$0xf]  ;;  %v4828_v63 = vld [vmem:[%s5397_s12 + $0xc4] sm:$0xf]  ;;  %v4451_v3 = vld [vmem:[%s5397_s12 + $0xc8] sm:$0xf0] }
 0x7a2   : > { %v4343_v13 = vmul.f32 -1.702, %v6059_v8 }
 0x7a3   : > { %3298 = vmatpush.bf16.msra.mxu0 %v4398_v15 }
 0x7a4   : > { %v2694_v19 = vmul.f32 1.442695, %v4343_v13  ;;  %v2603_v14 = vpop.f32.mrf.mxu2  ;;  %v2617_v25 = vpop.f32.mrf.mxu3  ;;  %v4859_v13 = vld [vmem:[%s5397_s12 + $0x1b4] sm:$0xf0] }
 0x7a5   : > { %v2604_v23 = vadd.f32 %v2603_v14, %v2239_v12  ;;  %v2577_v28 = vpop.f32.mrf.mxu0  ;;  %v2591_v10 = vpop.f32.mrf.mxu1  ;;  %v4570_v30 = vor.u32 %v4859_v13, %v4569_v4  ;;  %v4812_v14 = vld [vmem:[%s5397_s12 + $0x44] sm:$0xf] }
 0x7a6   : > { %4961 = vpow2.f32 %v2694_v19  ;;  %v2578_v31 = vadd.f32 %v2577_v28, %v2238_v51  ;;  %v4839_v19 = vld [vmem:[%s5397_s12 + $0x114] sm:$0xf0]  ;;  %v4561_v28 = vld [vmem:[%s5397_s12 + $0x1a0] sm:$0xf] }
 0x7a7   : > { %v6077_v38 = vadd.f32 %v2617_v25, %v2604_v23  ;;  %3286 = vmatpush.bf16.msrb.mxu3 %v4570_v30  ;;  %v4490_v22 = vor.u32 %v4839_v19, %v4489_v24  ;;  %v4387_v23 = vld [vmem:[%s5397_s12 + $0x48] sm:$0xf0]  ;;  %v4454_v19 = vor.u32 %v4828_v63, %v4451_v3  ;;  %v4603_v63 = vld [vmem:[%s5397_s12 + $0x1f8] sm:$0xf0] }
 0x7a8   : > { %v6082_v44 = vadd.f32 %v2591_v10, %v2578_v31  ;;  %v4857_v10 = vld [vmem:[%s5397_s12 + $0x1a4] sm:$0xf0]  ;;  %v4390_v11 = vor.u32 %v4812_v14, %v4387_v23  ;;  %v4459_v31 = vld [vmem:[%s5397_s12 + $0xd8] sm:$0xf0] }
 0x7a9   : > { %v4344_v51 = vmul.f32 -1.702, %v6077_v38  ;;  %v4562_v26 = vor.u32 %v4857_v10, %v4561_v28  ;;  %3274 = vmatpush.bf16.msrb.mxu2 %v4490_v22  ;;  %v4462_v36 = vor.u32 %v4830_v27, %v4459_v31 }
 0x7aa   : > { %v4347_v54 = vmul.f32 -1.702, %v6082_v44  ;;  %3299 = vmatpush.bf16.msra.mxu0 %v4390_v11 }
 0x7ab   : > { %v2696_v58 = vmul.f32 1.442695, %v4344_v51  ;;  %3287 = vmatpush.bf16.msrb.mxu3 %v4562_v26  ;;  %3312 = vmatpush.bf16.msra.mxu1 %v4462_v36 }
 0x7ac   : > { %v4962_v0 = vpop.eup %4961  ;;  %v2702_v62 = vmul.f32 1.442695, %v4347_v54  ;;  %v2605_v2 = vpop.f32.mrf.mxu2 }
 0x7ad   : > { %v6097_v7 = vadd.f32 1.0, %v4962_v0  ;;  %4963 = vpow2.f32 %v2696_v58  ;;  %v2606_v1 = vadd.f32 %v2605_v2, %v2239_v12  ;;  %v2631_v9 = vpop.f32.mrf.mxu0  ;;  %v2619_v29 = vpop.f32.mrf.mxu3  ;;  %3275 = vmatpush.bf16.msrb.mxu2 %v4482_v52  ;;  %v4850_v58 = vld [vmem:[%s5397_s12 + $0x174] sm:$0xf]  ;;  %v4855_v0 = vld [vmem:[%s5397_s12 + $0x194] sm:$0xf0] }
 0x7ae   : > { %4965 = vpow2.f32 %v2702_v62  ;;  %v2632_v17 = vadd.f32 %v2631_v9, %v2240_v39  ;;  %v2645_v12 = vpop.f32.mrf.mxu1  ;;  %3300 = vmatpush.bf16.msra.mxu0 %v4382_v56  ;;  %v4371_v9 = vld [vmem:[%s5397_s12 + $0x28] sm:$0xf0]  ;;  %v4542_v18 = vor.u32 %v4850_v58, %v4539_v60  ;;  %v4554_v24 = vor.u32 %v4855_v0, %v4553_v61  ;;  %v4853_v56 = vld [vmem:[%s5397_s12 + $0x184] sm:$0xf0]  ;;  %v4826_v61 = vld [vmem:[%s5397_s12 + $0xb4] sm:$0xf] }
 0x7af   : > { %4967 = vrcp.f32 %v6097_v7  ;;  %v6110_v25 = vadd.f32 %v2619_v29, %v2606_v1  ;;  %v4808_v1 = vld [vmem:[%s5397_s12 + $0x24] sm:$0xf]  ;;  %v4531_v29 = vld [vmem:[%s5397_s12 + $0x168] sm:$0xf0]  ;;  %vm2723_vm9 = vweird.f32 %v6097_v7  ;;  %v2727_v14 = vand.u32 2147483647, %v6097_v7  ;;  %3313 = vmatpush.bf16.msra.mxu1 %v4454_v19 }
 0x7b0   : > { %v6112_v20 = vadd.f32 %v2645_v12, %v2632_v17  ;;  %v4374_v22 = vor.u32 %v4808_v1, %v4371_v9  ;;  %3288 = vmatpush.bf16.msrb.mxu3 %v4554_v24  ;;  %v4534_v26 = vor.u32 %v4848_v16, %v4531_v29 }
 0x7b1   : > { %v4348_v34 = vmul.f32 -1.702, %v6110_v25  ;;  %3324 = vmatpush.bf16.msra.mxu2 %v4542_v18  ;;  %vm2728_vm13 = vcmp.eq.f32.partialorder %v2727_v14, 8.507059e+37 }
 0x7b2   : > { %v4345_v35 = vmul.f32 -1.702, %v6112_v20  ;;  %3301 = vmatpush.bf16.msra.mxu0 %v4374_v22 }
 0x7b3   : > { %v4964_v40 = vpop.eup %4963  ;;  %v2704_v50 = vmul.f32 1.442695, %v4348_v34 }
 0x7b4   : > { %v4966_v48 = vpop.eup %4965  ;;  %v6126_v49 = vadd.f32 1.0, %v4964_v40  ;;  %v2659_v51 = vpop.f32.mrf.mxu2  ;;  %v2698_v54 = vmul.f32 1.442695, %v4345_v35 }
 0x7b5   : > { %v6128_v53 = vpop.eup %4967  ;;  %v6130_v6 = vadd.f32 1.0, %v4966_v48  ;;  %v2660_v55 = vadd.f32 %v2659_v51, %v2241_v5  ;;  %v2633_v59 = vpop.f32.mrf.mxu0  ;;  %3325 = vmatpush.bf16.msra.mxu2 %v4534_v26 }
 0x7b6   : > { %v2719_v57 = vmul.f32 %v6128_v53, %v6097_v7  ;;  %4969 = vrcp.f32 %v6126_v49  ;;  %v2673_v2 = vpop.f32.mrf.mxu3  ;;  %v2634_v13 = vadd.f32 %v2633_v59, %v2240_v39  ;;  %v2647_v30 = vpop.f32.mrf.mxu1  ;;  %v2729_v39 = vand.u32 2147483648, %v6097_v7 }
 0x7b7   : > { %4971 = vrcp.f32 %v6130_v6  ;;  %v6144_v4 = vadd.f32 %v2673_v2, %v2660_v55  ;;  %vm2724_vm10 = vweird.f32 %v6128_v53  ;;  %v2744_v40 = vand.u32 2147483648, %v6126_v49  ;;  %v4866_v2 = vld [vmem:[%s5397_s12 + $0x1f4] sm:$0xf] }
 0x7b8   : > { %v2720_v62 = vsub.f32 1.0, %v2719_v57  ;;  %4973 = vpow2.f32 %v2704_v50  ;;  %v6158_v21 = vadd.f32 %v2647_v30, %v2634_v13  ;;  %vm6179_vm11 = vmor %vm2723_vm9, %vm2724_vm10  ;;  %v2742_v52 = vand.u32 2147483647, %v6126_v49 }
 0x7b9   : > { %4975 = vpow2.f32 %v2698_v54  ;;  %v4346_v17 = vmul.f32 -1.702, %v6144_v4  ;;  %v2787_v54 = vand.u32 2147483647, %v6130_v6  ;;  %v2789_v55 = vand.u32 2147483648, %v6130_v6 }
 0x7ba   : > { %v2721_v15 = vmul.f32 %v6128_v53, %v2720_v62  ;;  %v4349_v35 = vmul.f32 -1.702, %v6158_v21  ;;  %v2730_v57 = vor.u32 1.1754944e-38, %v2729_v39  ;;  %v6196_v59 = vor.u32 1.1754944e-38, %v2744_v40  ;;  %v4443_v62 = vld [vmem:[%s5397_s12 + $0xb8] sm:$0xf0] }
 0x7bb   : > { %v2700_v10 = vmul.f32 1.442695, %v4346_v17  ;;  %vm2783_vm14 = vweird.f32 %v6130_v6  ;;  %vm2788_vm0 = vcmp.eq.f32.partialorder %v2787_v54, 8.507059e+37  ;;  %v2790_v9 = vor.u32 1.1754944e-38, %v2789_v55  ;;  %v4435_v40 = vld [vmem:[%s5397_s12 + $0xa8] sm:$0xf0] }
 0x7bc   : > { %v6154_v12 = vpop.eup %4969  ;;  %v2661_v11 = vpop.f32.mrf.mxu2  ;;  %v2722_v31 = vadd.f32 %v6128_v53, %v2721_v15  ;;  %v2706_v48 = vmul.f32 1.442695, %v4349_v35  ;;  %vm6209_vm2 = vcmp.eq.f32.partialorder %v2742_v52, 8.507059e+37  ;;  %v4446_v24 = vor.u32 %v4826_v61, %v4443_v62  ;;  %v4864_v52 = vld [vmem:[%s5397_s12 + $0x1e4] sm:$0xf] }
 0x7bd   : > { %v6160_v23 = vpop.eup %4971  ;;  %v2734_v28 = vmul.f32 %v6154_v12, %v6126_v49  ;;  %4977 = vpow2.f32 %v2700_v10  ;;  %v2662_v50 = vadd.f32 %v2661_v11, %v2241_v5  ;;  %v4545_v5 = vld [vmem:[%s5397_s12 + $0x180] sm:$0xf]  ;;  %vm2739_vm1 = vweird.f32 %v6154_v12  ;;  %v4363_v10 = vld [vmem:[%s5397_s12 + $0x18] sm:$0xf0]  ;;  %v4846_v11 = vld [vmem:[%s5397_s12 + $0x154] sm:$0xf] }
 0x7be   : > { %v4974_v27 = vpop.eup %4973  ;;  %v2779_v34 = vmul.f32 %v6160_v23, %v6130_v6  ;;  %v2726_v41 = vsel %vm6179_vm11, %v6128_v53, %v2722_v31  ;;  %vm2784_vm12 = vweird.f32 %v6160_v23  ;;  %v2675_v60 = vpop.f32.mrf.mxu3  ;;  %v4546_v15 = vor.u32 %v4853_v56, %v4545_v5  ;;  %3314 = vmatpush.bf16.msra.mxu1 %v4446_v24  ;;  %v4595_v54 = vld [vmem:[%s5397_s12 + $0x1e8] sm:$0xf0]  ;;  %v4844_v5 = vld [vmem:[%s5397_s12 + $0x144] sm:$0xf]  ;;  %v4427_v62 = vld [vmem:[%s5397_s12 + $0x98] sm:$0xf0] }
 0x7bf   : > { %v4976_v36 = vpop.eup %4975  ;;  %v2735_v37 = vsub.f32 1.0, %v2734_v28  ;;  %v6171_v42 = vadd.f32 1.0, %v4974_v27  ;;  %v6201_v0 = vadd.f32 %v2675_v60, %v2662_v50  ;;  %v2731_v1 = vsel %vm2728_vm13, %v2730_v57, %v2726_v41  ;;  %vm2785_vm15 = vmor %vm2783_vm14, %vm2784_vm12  ;;  %v4806_v28 = vld [vmem:[%s5397_s12 + $0x14] sm:$0xf]  ;;  %v4515_v56 = vld [vmem:[%s5397_s12 + $0x148] sm:$0xf0] }
 0x7c0   : > { %v2780_v43 = vsub.f32 1.0, %v2779_v34  ;;  %v6173_v47 = vadd.f32 1.0, %v4976_v36  ;;  %3289 = vmatpush.bf16.msrb.mxu3 %v4546_v15  ;;  %v4606_v19 = vor.u32 %v4866_v2, %v4603_v63  ;;  %v2838_v22 = vmul.f32 %v2731_v1, %v6059_v8  ;;  %v4523_v8 = vld [vmem:[%s5397_s12 + $0x158] sm:$0xf0]  ;;  %v4862_v1 = vld [vmem:[%s5397_s12 + $0x1d4] sm:$0xf] }
 0x7c1   : > { %4979 = vrcp.f32 %v6171_v42  ;;  %v2736_v58 = vmul.f32 %v6154_v12, %v2735_v37  ;;  %v4350_v29 = vmul.f32 -1.702, %v6201_v0  ;;  %vm2738_vm3 = vweird.f32 %v6126_v49  ;;  %v4820_v24 = vld [vmem:[%s5397_s12 + $0x84] sm:$0xf]  ;;  %v4499_v34 = vld [vmem:[%s5397_s12 + $0x128] sm:$0xf0] }
 0x7c2   : > { %v2781_v7 = vmul.f32 %v6160_v23, %v2780_v43  ;;  %4981 = vrcp.f32 %v6173_v47  ;;  %v2802_v26 = vand.u32 2147483647, %v6171_v42  ;;  %vm6238_vm4 = vmor %vm2738_vm3, %vm2739_vm1  ;;  %v2804_v36 = vand.u32 2147483648, %v6171_v42 }
 0x7c3   : > { %4983 = vpow2.f32 %v2706_v48  ;;  %v4978_v3 = vpop.eup %4977  ;;  %v2737_v30 = vadd.f32 %v6154_v12, %v2736_v58  ;;  %v2708_v37 = vmul.f32 1.442695, %v4350_v29  ;;  %v4366_v51 = vor.u32 %v4806_v28, %v4363_v10  ;;  %v4507_v29 = vld [vmem:[%s5397_s12 + $0x138] sm:$0xf0]  ;;  %v4860_v28 = vld [vmem:[%s5397_s12 + $0x1c4] sm:$0xf] }
 0x7c4   : > { %v2782_v53 = vadd.f32 %v6160_v23, %v2781_v7  ;;  %v6214_v16 = vadd.f32 1.0, %v4978_v3  ;;  %3338 = vmatpush.bf16.msra.mxu3 %v4606_v19  ;;  %v4526_v41 = vor.u32 %v4846_v11, %v4523_v8  ;;  %v4804_v7 = vld [vmem:[%s5397_s12 + $0x4] sm:$0xf]  ;;  %vm2798_vm6 = vweird.f32 %v6171_v42  ;;  %v4419_v19 = vld [vmem:[%s5397_s12 + $0x88] sm:$0xf0] }
 0x7c5   : > { %v2741_v43 = vsel %vm6238_vm4, %v6154_v12, %v2737_v30  ;;  %3302 = vmatpush.bf16.msra.mxu0 %v4366_v51  ;;  %v4355_v12 = vld [vmem:[%s5397_s12 + $0x8] sm:$0xf0]  ;;  %v4598_v61 = vor.u32 %v4864_v52, %v4595_v54  ;;  %v2805_v63 = vor.u32 1.1754944e-38, %v2804_v36  ;;  %vm2803_vm8 = vcmp.eq.f32.partialorder %v2802_v26, 8.507059e+37  ;;  %v4838_v54 = vld [vmem:[%s5397_s12 + $0x114] sm:$0xf] }
 0x7c6   : > { %v2786_v6 = vsel %vm2785_vm15, %v6160_v23, %v2782_v53  ;;  %4985 = vrcp.f32 %v6214_v16  ;;  %3326 = vmatpush.bf16.msra.mxu2 %v4526_v41  ;;  %v4822_v53 = vld [vmem:[%s5397_s12 + $0x94] sm:$0xf]  ;;  %v2746_v2 = vsel %vm6209_vm2, %v6196_v59, %v2741_v43  ;;  %v4358_v59 = vor.u32 %v4804_v7, %v4355_v12  ;;  %v4579_v10 = vld [vmem:[%s5397_s12 + $0x1c8] sm:$0xf0]  ;;  %v4491_v12 = vld [vmem:[%s5397_s12 + $0x118] sm:$0xf0] }
 0x7c7   : > { %v6217_v17 = vpop.eup %4979  ;;  %v2791_v18 = vsel %vm2788_vm0, %v2790_v9, %v2786_v6  ;;  %4987 = vpow2.f32 %v2708_v37  ;;  %v4587_v9 = vld [vmem:[%s5397_s12 + $0x1d8] sm:$0xf0]  ;;  %v4518_v13 = vor.u32 %v4844_v5, %v4515_v56  ;;  %v4842_v6 = vld [vmem:[%s5397_s12 + $0x134] sm:$0xf]  ;;  %vm2753_vm10 = vweird.f32 %v6173_v47 }
 0x7c8   : > { %v6220_v14 = vpop.eup %4981  ;;  %v2842_v23 = vmul.f32 %v2791_v18, %v6082_v44  ;;  %v2794_v39 = vmul.f32 %v6217_v17, %v6171_v42  ;;  %v4824_v44 = vld [vmem:[%s5397_s12 + $0xa4] sm:$0xf]  ;;  %vm2799_vm5 = vweird.f32 %v6217_v17  ;;  %3339 = vmatpush.bf16.msra.mxu3 %v4598_v61  ;;  %v4430_v18 = vor.u32 %v4822_v53, %v4427_v62  ;;  %v4858_v37 = vld [vmem:[%s5397_s12 + $0x1b4] sm:$0xf]  ;;  %v4563_v53 = vld [vmem:[%s5397_s12 + $0x1a8] sm:$0xf0] }
 0x7c9   : > { %v2749_v27 = vmul.f32 %v6220_v14, %v6173_v47  ;;  %v4984_v31 = vpop.eup %4983  ;;  %v4438_v60 = vor.u32 %v4824_v44, %v4435_v40  ;;  %vm2800_vm7 = vmor %vm2798_vm6, %vm2799_vm5  ;;  %3303 = vmatpush.bf16.msra.mxu0 %v4358_v59  ;;  %v4510_v44 = vor.u32 %v4842_v6, %v4507_v29  ;;  %vm2754_vm9 = vweird.f32 %v6220_v14  ;;  %v4571_v40 = vld [vmem:[%s5397_s12 + $0x1b8] sm:$0xf0]  ;;  %v4856_v61 = vld [vmem:[%s5397_s12 + $0x1a4] sm:$0xf] }
 0x7ca   : > { %v6242_v35 = vpack.c.bf16 %v2842_v23, %v2838_v22  ;;  %v2795_v49 = vsub.f32 1.0, %v2794_v39  ;;  %v6249_v50 = vadd.f32 1.0, %v4984_v31  ;;  %v2839_v23 = vmul.f32 %v2746_v2, %v6077_v38  ;;  %3327 = vmatpush.bf16.msra.mxu2 %v4518_v13  ;;  %v4840_v31 = vld [vmem:[%s5397_s12 + $0x124] sm:$0xf]  ;;  %vm6305_vm11 = vmor %vm2753_vm10, %vm2754_vm9  ;;  %v4483_v59 = vld [vmem:[%s5397_s12 + $0x108] sm:$0xf0] }
 0x7cb   : > { %v2750_v48 = vsub.f32 1.0, %v2749_v27  ;;  %3315 = vmatpush.bf16.msra.mxu1 %v4438_v60  ;;  %v4590_v39 = vor.u32 %v4862_v1, %v4587_v9  ;;  %v2759_v36 = vand.u32 2147483648, %v6173_v47  ;;  %v2757_v43 = vand.u32 2147483647, %v6173_v47  ;;  %v4854_v29 = vld [vmem:[%s5397_s12 + $0x194] sm:$0xf] }
 0x7cc   : > { %v2796_v55 = vmul.f32 %v6217_v17, %v2795_v49  ;;  %3248 = vmatmul.bf16.vlgmr.msrb.gmra.mxu0 %v6242_v35  ;;  %4989 = vrcp.f32 %v6249_v50  ;;  %v6261_v57 = vpop.eup %4985  ;;  %v4582_v51 = vor.u32 %v4860_v28, %v4579_v10  ;;  %v4502_v52 = vor.u32 %v4840_v31, %v4499_v34 }
 0x7cd   : > { %v2751_v3 = vmul.f32 %v6220_v14, %v2750_v48  ;;  %v2764_v42 = vmul.f32 %v6261_v57, %v6214_v16  ;;  %v4988_v22 = vpop.eup %4987  ;;  %3340 = vmatpush.bf16.msra.mxu3 %v4590_v39  ;;  %v2817_v7 = vand.u32 2147483647, %v6249_v50  ;;  %v2819_v47 = vand.u32 2147483648, %v6249_v50 }
 0x7ce   : > { %v2797_v58 = vadd.f32 %v6217_v17, %v2796_v55  ;;  %v6287_v8 = vadd.f32 1.0, %v4988_v22  ;;  %3328 = vmatpush.bf16.msra.mxu2 %v4510_v44  ;;  %v2760_v60 = vor.u32 1.1754944e-38, %v2759_v36  ;;  %vm2758_vm13 = vcmp.eq.f32.partialorder %v2757_v43, 8.507059e+37 }
 0x7cf   : > { %v2752_v26 = vadd.f32 %v6220_v14, %v2751_v3  ;;  %v2765_v27 = vsub.f32 1.0, %v2764_v42  ;;  %3316 = vmatpush.bf16.msra.mxu1 %v4430_v18  ;;  %vm2813_vm14 = vweird.f32 %v6249_v50  ;;  %v4494_v2 = vor.u32 %v4838_v54, %v4491_v12 }
 0x7d0   : > { %v2801_v15 = vsel %vm2800_vm7, %v6217_v17, %v2797_v58  ;;  %4991 = vrcp.f32 %v6287_v8  ;;  %v4574_v58 = vor.u32 %v4858_v37, %v4571_v40  ;;  %vm2769_vm15 = vweird.f32 %v6261_v57  ;;  %v2914_v40 = vld [vmem:[%s765_s22] sm:$0x3] }
 0x7d1   : > { %v2806_v30 = vsel %vm2803_vm8, %v2805_v63, %v2801_v15  ;;  %v2766_v41 = vmul.f32 %v6261_v57, %v2765_v27  ;;  %v2756_v5 = vsel %vm6305_vm11, %v6220_v14, %v2752_v26  ;;  %3341 = vmatpush.bf16.msra.mxu3 %v4582_v51  ;;  %v2820_v42 = vor.u32 1.1754944e-38, %v2819_v47  ;;  %v4836_v15 = vld [vmem:[%s5397_s12 + $0x104] sm:$0xf]  ;;  %v4547_v27 = vld [vmem:[%s5397_s12 + $0x188] sm:$0xf0] }
 0x7d2   : > { %v2843_v17 = vmul.f32 %v2806_v30, %v6110_v25  ;;  %v4990_v11 = vpop.eup %4989  ;;  %v4422_v25 = vor.u32 %v4820_v24, %v4419_v19  ;;  %3329 = vmatpush.bf16.msra.mxu2 %v4502_v52  ;;  %v2761_v3 = vsel %vm2758_vm13, %v2760_v60, %v2756_v5  ;;  %vm2818_vm1 = vcmp.eq.f32.partialorder %v2817_v7, 8.507059e+37  ;;  %v4555_v30 = vld [vmem:[%s5397_s12 + $0x198] sm:$0xf0] }
 0x7d3   : > { %v2809_v38 = vmul.f32 %v4990_v11, %v6249_v50  ;;  %vm2814_vm12 = vweird.f32 %v4990_v11  ;;  %v2767_v14 = vadd.f32 %v6261_v57, %v2766_v41  ;;  %v4566_v50 = vor.u32 %v4856_v61, %v4563_v53 }
 0x7d4   : > { %v6291_v49 = vpack.c.bf16 %v2843_v17, %v2839_v23  ;;  %3317 = vmatpush.bf16.msra.mxu1 %v4422_v25  ;;  %vm2815_vm0 = vmor %vm2813_vm14, %vm2814_vm12  ;;  %vm2768_vm2 = vweird.f32 %v6214_v16  ;;  %v2774_v13 = vand.u32 2147483648, %v6214_v16  ;;  %v2840_v18 = vmul.f32 %v2761_v3, %v6112_v20 }
 0x7d5   : > { %v2810_v48 = vsub.f32 1.0, %v2809_v38  ;;  %3342 = vmatpush.bf16.msra.mxu3 %v4574_v58  ;;  %vm6333_vm3 = vmor %vm2768_vm2, %vm2769_vm15  ;;  %v2832_v20 = vand.u32 2147483647, %v6287_v8  ;;  %v2834_v17 = vand.u32 2147483648, %v6287_v8  ;;  %v4486_v39 = vor.u32 %v4836_v15, %v4483_v59 }
 0x7d6   : > { %3262 = vmatmul.bf16.vlgmr.msrb.gmra.mxu1 %v6291_v49  ;;  %v4992_v63 = vpop.eup %4991  ;;  %3330 = vmatpush.bf16.msra.mxu2 %v4494_v2  ;;  %v2771_v23 = vsel %vm6333_vm3, %v6261_v57, %v2767_v14  ;;  %v2775_v26 = vor.u32 1.1754944e-38, %v2774_v13  ;;  %vm2828_vm6 = vweird.f32 %v6287_v8  ;;  %v2917_v58 = vperm.slane %v2914_v40, 1 }
 0x7d7   : > { %v2811_v56 = vmul.f32 %v4990_v11, %v2810_v48  ;;  %v2824_v9 = vmul.f32 %v4992_v63, %v6287_v8  ;;  %vm2829_vm4 = vweird.f32 %v4992_v63  ;;  %v2835_v57 = vor.u32 1.1754944e-38, %v2834_v17 }
 0x7d8   : > { %vm2830_vm7 = vmor %vm2828_vm6, %vm2829_vm4  ;;  %vm2833_vm8 = vcmp.eq.f32.partialorder %v2832_v20, 8.507059e+37  ;;  %v2916_v48 = vperm.slane %v2914_v40, 0 }
 0x7d9   : > { %v2812_v62 = vadd.f32 %v4990_v11, %v2811_v56  ;;  %v2825_v22 = vsub.f32 1.0, %v2824_v9  ;;  %3343 = vmatpush.bf16.msra.mxu3 %v4566_v50 }
 0x7da   : > { %3331 = vmatpush.bf16.msra.mxu2 %v4486_v39 }
 0x7db   : > { %v2816_v1 = vsel %vm2815_vm0, %v4990_v11, %v2812_v62  ;;  %v2826_v10 = vmul.f32 %v4992_v63, %v2825_v22  ;;  %v4558_v11 = vor.u32 %v4854_v29, %v4555_v30 }
 0x7dc   : > { %3304 = vmatmul.bf16.vlgmr.msra.gmra.mxu0 %v6242_v35  ;;  %v2821_v6 = vsel %vm2818_vm1, %v2820_v42, %v2816_v1  ;;  %v2772_v35 = vand.u32 2147483647, %v6214_v16  ;;  %v4852_v16 = vld [vmem:[%s5397_s12 + $0x184] sm:$0xf] }
 0x7dd   : > { %v2844_v19 = vmul.f32 %v2821_v6, %v6158_v21  ;;  %v2827_v21 = vadd.f32 %v4992_v63, %v2826_v10  ;;  %3344 = vmatpush.bf16.msra.mxu3 %v4558_v11  ;;  %v4550_v34 = vor.u32 %v4852_v16, %v4547_v27 }
 0x7de   : > { %vm2773_vm5 = vcmp.eq.f32.partialorder %v2772_v35, 8.507059e+37 }
 0x7df   : > { %v2848_v28 = vpack.c.bf16 %v2844_v19, %v2840_v18  ;;  %v2776_v44 = vsel %vm2773_vm5, %v2775_v26, %v2771_v23  ;;  %v2831_v31 = vsel %vm2830_vm7, %v4992_v63, %v2827_v21 }
 0x7e0   : > { %v2836_v38 = vsel %vm2833_vm8, %v2835_v57, %v2831_v31  ;;  %v2841_v25 = vmul.f32 %v2776_v44, %v6144_v4 }
 0x7e1   : > { %3276 = vmatmul.bf16.vlgmr.msrb.gmra.mxu2 %v2848_v28  ;;  %v2845_v36 = vmul.f32 %v2836_v38, %v6201_v0  ;;  %3345 = vmatpush.bf16.msra.mxu3 %v4550_v34 }
 0x7e3   : > { %v2849_v37 = vpack.c.bf16 %v2845_v36, %v2841_v25 }
 0x7e5   : > { %3290 = vmatmul.bf16.vlgmr.msrb.gmra.mxu3 %v2849_v37 }
 0x7e6   : > { %3318 = vmatmul.bf16.vlgmr.msra.gmra.mxu1 %v6291_v49 }
 0x7f1   : > { %3332 = vmatmul.bf16.vlgmr.msra.gmra.mxu2 %v2848_v28 }
 0x7f5   : > { %3346 = vmatmul.bf16.vlgmr.msra.gmra.mxu3 %v2849_v37 }
 0x849   : > { %v3249_v8 = vpop.f32.mrf.mxu0 }
 0x84a   : > { %v3250_v52 = vadd.f32 %v3249_v8, %v2916_v48 }
 0x851   : > { %v3251_v4 = vpop.f32.mrf.mxu0 }
 0x852   : > { %v3252_v47 = vadd.f32 %v3251_v4, %v2916_v48 }
 0x853   : > { %v3263_v43 = vpop.f32.mrf.mxu1 }
 0x854   : > { %v3264_v54 = vadd.f32 %v3263_v43, %v3250_v52 }
 0x859   : > { %v3305_v56 = vpop.f32.mrf.mxu0 }
 0x85a   : > { %v3306_v63 = vadd.f32 %v3305_v56, %v2917_v58 }
 0x85b   : > { %v3265_v0 = vpop.f32.mrf.mxu1 }
 0x85c   : > { %v3266_v5 = vadd.f32 %v3265_v0, %v3252_v47 }
 0x861   : > { %v3307_v42 = vpop.f32.mrf.mxu0 }
 0x862   : > { %v3308_v15 = vadd.f32 %v3307_v42, %v2917_v58 }
 0x863   : > { %v3319_v61 = vpop.f32.mrf.mxu1 }
 0x864   : > { %v3277_v51 = vpop.f32.mrf.mxu2  ;;  %v3320_v14 = vadd.f32 %v3319_v61, %v3306_v63 }
 0x865   : > { %v3278_v55 = vadd.f32 %v3277_v51, %v3264_v54 }
 0x868   : > { %v3291_v49 = vpop.f32.mrf.mxu3 }
 0x869   : > { %v3292_v7 = vadd.f32 %v3291_v49, %v3278_v55 }
 0x86b   : > { %v3352_v12 = vadd.f32 %v3292_v7, %v5814_v32  ;;  %v3321_v50 = vpop.f32.mrf.mxu1 }
 0x86c   : > { %v3279_v41 = vpop.f32.mrf.mxu2  ;;  %v3322_v6 = vadd.f32 %v3321_v50, %v3308_v15 }
 0x86d   : > { %3356 = vst [vmem:[%s6443_s0] sm:$0xff] %v3352_v12  ;;  %v3280_v60 = vadd.f32 %v3279_v41, %v3266_v5 }
 0x870   : > { %v3293_v53 = vpop.f32.mrf.mxu3 }
 0x871   : > { %v3294_v62 = vadd.f32 %v3293_v53, %v3280_v60 }
 0x873   : > { %v3354_v3 = vadd.f32 %v3294_v62, %v5826_v45 }
 0x874   : > { %v3333_v2 = vpop.f32.mrf.mxu2 }
 0x875   : > { %3358 = vst [vmem:[%s6443_s0 + $0x10] sm:$0x3] %v3354_v3  ;;  %v3334_v32 = vadd.f32 %v3333_v2, %v3320_v14 }
 0x878   : > { %v3347_v1 = vpop.f32.mrf.mxu3 }
 0x879   : > { %v3348_v9 = vadd.f32 %v3347_v1, %v3334_v32 }
 0x87b   : > { %v3353_v59 = vadd.f32 %v3348_v9, %v5816_v33 }
 0x87c   : > { %v3335_v13 = vpop.f32.mrf.mxu2 }
 0x87d   : > { %3357 = vst [vmem:[%s6443_s0 + $0x8] sm:$0xff] %v3353_v59  ;;  %v3336_v45 = vadd.f32 %v3335_v13, %v3322_v6 }
 0x880   : > { %v3349_v29 = vpop.f32.mrf.mxu3 }
 0x881   : > { %v3350_v30 = vadd.f32 %v3349_v29, %v3336_v45 }
 0x883   : > { %v3355_v18 = vadd.f32 %v3350_v30, %v5828_v46 }
 0x885   : > { %3359 = vst [vmem:[%s6443_s0 + $0x18] sm:$0x3] %v3355_v18 }
 0x886 PF: > { %s6459_s24 = sld [smem:[#allocation11_spill]] }
 0x887   : > { %s6460_s21 = sld [smem:[#allocation9_spill]] }
 0x888   : > { %s6461_s22 = sld [smem:[#allocation10_spill]] }
 0x889   : > { %s6462_s23 = sld [smem:[#allocation12_spill]] }
 0x88c   : > { %p29_p10 = scmp.ge.s32.totalorder %s6459_s24, 4  }
 0x88e   :  { %31 = sbr.rel (!%p29_p10) target bundleno = 19 (0x13), region = 175 }
 0x893   :  { %3371 = vsyncpa [#allocation3], 1 }
 0x894   :  { %3373 = vsyncpa [#allocation3 + $0x1], 1 }
 0x895   :  { %3374 = vsyncpa [#allocation5], 1 }
 0x896   :  { %3376 = vsyncpa [#allocation5 + $0x1], 1 }

// kernel: clip_forward.6
= control target key start
LH: loop header
LB: loop body
LE: loop exit
PB: predicated region body
PF: predicated region fallthrough
CT: control target
= control target key end

     0   :  { %s6282_s0 = inlined_call_operand.vmem [shape: f32[16,256], index: 0, kind: input, shape index: {}]   ;;  %s6283_s1 = inlined_call_operand.vmem [shape: f32[16,16], index: 1, kind: input, shape index: {}]   ;;  %s6284_s2 = inlined_call_operand.vmem [shape: f32[2,1,256], index: 2, kind: input, shape index: {}]   ;;  %s6285_s3 = inlined_call_operand.vmem [shape: f32[2,1,256], index: 3, kind: input, shape index: {}]   ;;  %s6286_s4 = inlined_call_operand.hbm [shape: bf16[2,256,768], index: 4, kind: input, shape index: {}]   ;;  %s6287_s5 = inlined_call_operand.vmem [shape: f32[2,1,768], index: 5, kind: input, shape index: {}]   ;;  %s6288_s6 = inlined_call_operand.hbm [shape: bf16[2,256,256], index: 6, kind: input, shape index: {}]   ;;  %s6289_s7 = inlined_call_operand.vmem [shape: f32[2,1,256], index: 7, kind: input, shape index: {}]   ;;  %s6290_s8 = inlined_call_operand.vmem [shape: f32[2,1,256], index: 8, kind: input, shape index: {}]   ;;  %s6291_s9 = inlined_call_operand.vmem [shape: f32[2,1,256], index: 9, kind: input, shape index: {}]   ;;  %s6292_s10 = inlined_call_operand.hbm [shape: bf16[2,256,512], index: 10, kind: input, shape index: {}]   ;;  %s6293_s11 = inlined_call_operand.vmem [shape: f32[2,1,512], index: 11, kind: input, shape index: {}]   ;;  %s6294_s12 = inlined_call_operand.hbm [shape: bf16[2,512,256], index: 12, kind: input, shape index: {}]   ;;  %s6295_s13 = inlined_call_operand.vmem [shape: f32[2,1,256], index: 13, kind: input, shape index: {}]   ;;  %s6296_s14 = inlined_call_operand.vmem [shape: f32[16,256], index: 14, kind: output, shape index: {}]  }
   0x1   :  { %6307 = sst [smem:[#allocation16_spill]] %s6282_s0 }
   0x2   :  { %6308 = sst [smem:[#allocation17_spill]] %s6283_s1 }
   0x3   :  { %6309 = sst [smem:[#allocation18_spill]] %s6286_s4 }
   0x4   :  { %6310 = sst [smem:[#allocation19_spill]] %s6287_s5 }
   0x5   :  { %6311 = sst [smem:[#allocation20_spill]] %s6288_s6 }
   0x6   :  { %6312 = sst [smem:[#allocation21_spill]] %s6291_s9 }
   0x7   :  { %6313 = sst [smem:[#allocation22_spill]] %s6292_s10 }
   0x8   :  { %6314 = sst [smem:[#allocation23_spill]] %s6293_s11 }
   0x9   :  { %6315 = sst [smem:[#allocation24_spill]] %s6294_s12 }
   0xa   :  { %6316 = sst [smem:[#allocation25_spill]] %s6295_s13 }
   0xb   :  { %6317 = sst [smem:[#allocation26_spill]] %s6296_s14 }
   0xc   :  { %19 = vsyncpa [#allocation3], 0 }
   0xd   :  { %21 = vsyncpa [#allocation3 + $0x1], 0 }
   0xe   :  { %22 = vsyncpa [#allocation5], 0 }
   0xf   :  { %24 = vsyncpa [#allocation5 + $0x1], 0 }
  0x10   :  { %25 = vsyncpa [#allocation8], 0 }
  0x11   :  { %27 = vsyncpa [#allocation8 + $0x1], 0  ;;  %s5123_s29 = smov 0   ;;  %s5125_s30 = smov 0  }
  0x12   :  { %s5127_s15 = smov 0   ;;  %s5129_s16 = smov 0  }
  0x13 LB: > { %6318 = sst [smem:[#allocation12_spill]] %s5031_s30  ;;  %s5142_s17 = sadd.s32 4294967295, %s5039_s16   ;;  %s5039_s16 = sphi %s5129_s16, %s6354_s16   ;;  %s5035_s15 = sphi %s5127_s15, %s6357_s15   ;;  %s5031_s30 = sphi %s5125_s30, %s6356_s30   ;;  %s5027_s29 = sphi %s5123_s29, %s6355_s29  }
  0x14   : > { %6319 = sst [smem:[#allocation13_spill]] %s5035_s15  ;;  %s5145_s18 = sadd.s32 1, %s5039_s16  }
  0x15   : > { %6320 = sst [smem:[#allocation14_spill]] %s5145_s18  ;;  %s131_s19 = ssub.s32 %s5039_s16, %s5145_s18 }
  0x16   : > { %s134_s20 = sadd.s32 1, %s5035_s15  ;;  %p132_p0 = scmp.eq.s32.totalorder %s131_s19, 0 }
  0x17   : > { %p141_p1 = scmp.ne.s32.totalorder %s5035_s15, %s5031_s30  ;;  %p142_p2 = scmp.eq.s32.totalorder %s5039_s16, 0 }
  0x18   : > { %p147_p3 = scmp.ne.s32.totalorder %s5031_s30, %s5027_s29  ;;  %p148_p5 = scmp.eq.s32.totalorder %s5142_s17, 0 }
  0x19   : > { %s5155_s21 = scalar_select %p132_p0, %s5035_s15, %s134_s20  }
  0x1a   : > { %p143_p4 = por %p142_p2, %p141_p1  ;;  %p4775_p6 = scmp.lt.s32.totalorder %s5039_s16, 2 }
  0x1b   : > { %6321 = sst [smem:[#allocation15_spill]] %s5155_s21  ;;  %p5159_p7 = por %p148_p5, %p147_p3 }
  0x1c   : > { %s5164_s23 = sand.u32 1, %s5035_s15   ;;  %p5166_p8 = pnand %p4775_p6, %p143_p4 }
  0x1d   : > { %s475_s25 = sand.u32 1, %s5039_s16   ;;  %s3434_s26 = sshll.u32 %s5164_s23, 8 }
  0x1e   : > { %s4491_s27 = sshll.u32 %s5039_s16, 8  ;;  %s479_s28 = scalar_lea.vmem [#allocation4], %s3434_s26 }
  0x1f   : > { %s487_s29 = sshll.u32 %s479_s28, 4  ;;  %s6324_s6 = sld [smem:[#allocation20_spill]]  ;;  %s488_s29 = int_to_ptr.vmem [resolvable:$true] %s487_s29 }
  0x20   : > { %s5176_s15 = scalar_lea.sflag [#allocation5], %s475_s25  ;;  %p4881_p10 = pneg %p5166_p8 }
  0x25   : > { %s484_s21 = scalar_lea.hbm %s6324_s6, %s4491_s27  ;;  %s4884_s19 = scalar_lea.hbm %s6324_s6, 512 }
  0x26   : > { %s485_s18 = sshll.u32 %s484_s21, 4  ;;  %s486_s18 = int_to_ptr.hbm [resolvable:$true] %s485_s18 }
  0x27   : > { %s4877_s1 = sshra.s32 %s486_s18, 4  ;;  %s4878_s1 = int_to_ptr.hbm [resolvable:$true] %s4877_s1 }
  0x28   : > { %s4879_s14 = scalar_lea.hbm %s4878_s1, 256  ;;  %p4885_p13 = scmp.lt.s32.totalorder %s4878_s1, %s6324_s6 }
  0x29   : > { %p4880_p9 = scmp.ne.s32.totalorder %s4878_s1, %s4879_s14  ;;  %p4886_p0 = scmp.lt.s32.totalorder %s4884_s19, %s4879_s14 }
  0x2b   : > { %p4882_p11 = pnand %p4881_p10, %p4880_p9  ;;  %p4887_p1 = por %p4886_p0, %p4885_p13 }
  0x2d   : > { %p4883_p12 = pneg %p4882_p11 }
  0x2f   : > { %p4888_p2 = pnand %p4887_p1, %p4883_p12 }
  0x31   : > { %4891 = shalt.err (!%p4888_p2)
}
  0x32   : > { %s6304_s21 = smov 128   ;;  %s6305_s25 = smov 8  }
  0x33   : > { %4768 = dma.hbm_to_vmem [thread:$0]  (!%p5166_p8), %s486_s18, 4096, %s488_s29, %s5176_s15, %s6304_s21, %s6304_s21, %s6305_s25  }
  0x34   : > { %p3443_p3 = scmp.ge.s32.totalorder %s5039_s16, 1  ;;  %p574_p4 = scmp.lt.s32.totalorder %s5039_s16, 3 }
  0x35   : > { %s4750_s1 = smul.u32 768, %s5164_s23  ;;  %s6326_s4 = sld [smem:[#allocation18_spill]] }
  0x36   : > { %p5198_p5 = pnand %p3443_p3, %p574_p4  ;;  %s4751_s26 = smul.u32 768, %s5039_s16 }
  0x37   : > { %s450_s20 = scalar_lea.vmem [#allocation2], %s4750_s1  ;;  %s447_s11 = scalar_lea.sflag [#allocation3], %s5164_s23 }
  0x38   : > { %s458_s6 = sshll.u32 %s450_s20, 4  ;;  %s459_s6 = int_to_ptr.vmem [resolvable:$true] %s458_s6 }
  0x3b   : > { %s455_s27 = scalar_lea.hbm %s6326_s4, %s4751_s26  ;;  %s4914_s13 = scalar_lea.hbm %s6326_s4, 1536 }
  0x3c   : > { %s456_s0 = sshll.u32 %s455_s27, 4  ;;  %s457_s0 = int_to_ptr.hbm [resolvable:$true] %s456_s0 }
  0x3d   : > { %s4907_s18 = sshra.s32 %s457_s0, 4  ;;  %s4908_s18 = int_to_ptr.hbm [resolvable:$true] %s4907_s18 }
  0x3e   : > { %s4909_s29 = scalar_lea.hbm %s4908_s18, 768  ;;  %p4915_p12 = scmp.lt.s32.totalorder %s4908_s18, %s6326_s4 }
  0x3f   : > { %p4910_p6 = scmp.ne.s32.totalorder %s4908_s18, %s4909_s29  ;;  %p4916_p13 = scmp.lt.s32.totalorder %s4914_s13, %s4909_s29 }
  0x41   : > { %p4912_p9 = pnand %p4910_p6, %p4881_p10  ;;  %p4917_p0 = por %p4916_p13, %p4915_p12 }
  0x43   : > { %p4913_p11 = pneg %p4912_p9 }
  0x45   : > { %p4918_p1 = pnand %p4917_p0, %p4913_p11 }
  0x47   : > { %4921 = shalt.err (!%p4918_p1)
}
  0x48   : > { %s5043_s1 = smov 384   ;;  %s5044_s19 = smov 24  }
  0x49   : > { %4765 = dma.hbm_to_vmem [thread:$0]  (!%p5166_p8), %s457_s0, 12288, %s459_s6, %s447_s11, %s5043_s1, %s5043_s1, %s5044_s19  }
  0x4a   : > { %s3437_s27 = sshll.u32 %s5164_s23, 9  ;;  %s4492_s20 = sshll.u32 %s5039_s16, 9 }
  0x4b   : > { %s6327_s10 = sld [smem:[#allocation22_spill]]  ;;  %s522_s18 = scalar_lea.vmem [#allocation6], %s3437_s27 }
  0x4c   : > { %s530_s13 = sshll.u32 %s522_s18, 4  ;;  %s531_s13 = int_to_ptr.vmem [resolvable:$true] %s530_s13 }
  0x51   : > { %s527_s9 = scalar_lea.hbm %s6327_s10, %s4492_s20  ;;  %s4944_s11 = scalar_lea.hbm %s6327_s10, 1024 }
  0x52   : > { %s528_s28 = sshll.u32 %s527_s9, 4  ;;  %s529_s28 = int_to_ptr.hbm [resolvable:$true] %s528_s28 }
  0x53   : > { %s4937_s29 = sshra.s32 %s529_s28, 4  ;;  %s4938_s29 = int_to_ptr.hbm [resolvable:$true] %s4937_s29 }
  0x54   : > { %s4939_s26 = scalar_lea.hbm %s4938_s29, 512  ;;  %p4945_p6 = scmp.lt.s32.totalorder %s4938_s29, %s6327_s10 }
  0x55   : > { %p4940_p2 = scmp.ne.s32.totalorder %s4938_s29, %s4939_s26  ;;  %p4946_p9 = scmp.lt.s32.totalorder %s4944_s11, %s4939_s26 }
  0x57   : > { %p4942_p3 = pnand %p4940_p2, %p4881_p10  ;;  %p4947_p11 = por %p4946_p9, %p4945_p6 }
  0x59   : > { %p4943_p4 = pneg %p4942_p3 }
  0x5b   : > { %p4948_p12 = pnand %p4947_p11, %p4943_p4 }
  0x5d   : > { %4951 = shalt.err (!%p4948_p12)
}
  0x5e   : > { %s5045_s9 = smov 256   ;;  %s5046_s19 = smov 16  }
  0x5f   : > { %4771 = dma.hbm_to_vmem [thread:$0]  (!%p5166_p8), %s529_s28, 8192, %s531_s13, %s5176_s15, %s5045_s9, %s5045_s9, %s5046_s19  }
  0x60   : > { %s6328_s12 = sld [smem:[#allocation24_spill]]  ;;  %s551_s0 = scalar_lea.vmem [#allocation7], %s3437_s27 }
  0x61   : > { %s559_s6 = sshll.u32 %s551_s0, 4  ;;  %s548_s29 = scalar_lea.sflag [#allocation8], %s5164_s23  ;;  %s560_s6 = int_to_ptr.vmem [resolvable:$true] %s559_s6 }
  0x66   : > { %s556_s18 = scalar_lea.hbm %s6328_s12, %s4492_s20  ;;  %s4974_s28 = scalar_lea.hbm %s6328_s12, 1024 }
  0x67   : > { %s557_s16 = sshll.u32 %s556_s18, 4  ;;  %s558_s16 = int_to_ptr.hbm [resolvable:$true] %s557_s16 }
  0x68   : > { %s4967_s26 = sshra.s32 %s558_s16, 4  ;;  %s4968_s26 = int_to_ptr.hbm [resolvable:$true] %s4967_s26 }
  0x69   : > { %s4969_s11 = scalar_lea.hbm %s4968_s26, 512  ;;  %p4975_p2 = scmp.lt.s32.totalorder %s4968_s26, %s6328_s12 }
  0x6a   : > { %p4970_p13 = scmp.ne.s32.totalorder %s4968_s26, %s4969_s11  ;;  %p4976_p3 = scmp.lt.s32.totalorder %s4974_s28, %s4969_s11 }
  0x6c   : > { %p4972_p0 = pnand %p4970_p13, %p4881_p10  ;;  %p4977_p4 = por %p4976_p3, %p4975_p2 }
  0x6e   : > { %p4973_p1 = pneg %p4972_p0 }
  0x70   : > { %p4978_p6 = pnand %p4977_p4, %p4973_p1 }
  0x72   : > { %4981 = shalt.err (!%p4978_p6)
}
  0x73   : > { %s6329_s23 = smov 8   ;;  %s6330_s27 = smov 128  }
  0x74   : > { %4774 = dma.hbm_to_vmem [thread:$0]  (!%p5166_p8), %s558_s16, 8192, %s560_s6, %s548_s29, %s6330_s27, %s6330_s27, %s6329_s23  }
  0x75   : > { %578 = sbr.rel (%p5198_p5) target bundleno = 1916 (0x77c), region = 76  ;;  %s580_s9 = sand.u32 (!%p5198_p5), 1, %s5031_s30  }
  0x76   : > { %s4752_s19 = smul.u32 (!%p5198_p5), 768, %s580_s9  ;;  %s581_s21 = scalar_lea.sflag (!%p5198_p5), [#allocation3], %s580_s9 }
  0x78   : > { %s5256_s25 = scalar_lea.vmem (!%p5198_p5), [#allocation2], %s4752_s19 }
  0x7a   : > { %5014 = dma.done.wait (%p5159_p7), %s581_s21, 12288  }
  0x7b   : > { %5016 = vsyncadd (%p5159_p7), %s581_s21, 4294955008  ;;  %s590_s24 = sand.u32 1, %s5142_s17   ;;  %s3444_s18 = sshll.u32 %s580_s9, 8 }
  0x7c   : > { %s591_s0 = scalar_lea.sflag [#allocation5], %s590_s24  ;;  %s5263_s6 = scalar_lea.vmem [#allocation4], %s3444_s18 }
  0x7d   : > { %5018 = dma.done.wait (%p5159_p7), %s591_s0, 12288  }
  0x7e   : > { %5020 = vsyncadd (%p5159_p7), %s591_s0, 4294955008  ;;  %s3445_s14 = sshll.u32 %s580_s9, 9  ;;  %s611_s29 = scalar_lea.sflag [#allocation8], %s580_s9 }
  0x7f   : > { %s5269_s16 = scalar_lea.vmem [#allocation6], %s3445_s14  ;;  %s5271_s26 = scalar_lea.vmem [#allocation7], %s3445_s14 }
  0x80   : > { %5022 = dma.done.wait (%p5159_p7), %s611_s29, 8192  }
  0x81   : > { %5024 = vsyncadd (%p5159_p7), %s611_s29, 4294959104  ;;  %p702_p8 = scmp.lt.s32.totalorder %s5142_s17, 1  ;;  %s6331_s5 = sld [smem:[#allocation19_spill]] }
  0x82   : > { %s6332_s13 = sld [smem:[#allocation21_spill]]  ;;  %p3454_p7 = scmp.ne.s32.totalorder %s5142_s17, 0 }
  0x83   : > { %s703_s11 = scalar_select %p702_p8, %s5142_s17, 1 }
  0x84   : > { %s6333_s27 = sld [smem:[#allocation25_spill]] }
  0x85   : > { %s5279_s1 = sshll.u32 %s703_s11, 1  ;;  %s4753_s15 = smul.u32 6, %s703_s11 }
  0x86   : > { %s717_s0 = scalar_lea.vmem %s6289_s7, %s5279_s1  ;;  %s721_s4 = scalar_lea.vmem %s6290_s8, %s5279_s1 }
  0x87   : > { %s5292_s21 = scalar_lea.vmem %s6331_s5, %s4753_s15  ;;  %s3452_s12 = sshll.u32 %s703_s11, 2 }
  0x88   : > { %s725_s20 = scalar_lea.vmem %s6332_s13, %s5279_s1  ;;  %s6334_s19 = sld [smem:[#allocation23_spill]] }
  0x89   : > { %s6335_s14 = sld [smem:[#allocation16_spill]] (!%p3454_p7) }
  0x8a   : > { %s733_s30 = scalar_lea.vmem %s6333_s27, %s5279_s1  ;;  %738 = sbr.rel (%p3454_p7) target bundleno = 149 (0x95), region = 96 }
  0x8b   : > { %s6336_s23 = sld [smem:[#allocation26_spill]] (!%p3454_p7) }
  0x8e   : > { %s5313_s5 = scalar_lea.vmem %s6334_s19, %s3452_s12 }
  0x8f   : > { %v739_v0 = vld [vmem:[%s6335_s14] sm:$0xff]  ;;  %v740_v1 = vld [vmem:[%s6335_s14 + $0x8] sm:$0xff]  ;;  %v741_v2 = vld [vmem:[%s6335_s14 + $0x10] sm:$0xff] }
  0x90   : > { %v742_v3 = vld [vmem:[%s6335_s14 + $0x18] sm:$0xff] }
  0x91   : > { %743 = vst [vmem:[%s6336_s23] sm:$0xff] %v739_v0 }
  0x92   : > { %744 = vst [vmem:[%s6336_s23 + $0x8] sm:$0xff] %v740_v1 }
  0x93   : > { %745 = vst [vmem:[%s6336_s23 + $0x10] sm:$0xff] %v741_v2 }
  0x94   : > { %746 = vst [vmem:[%s6336_s23 + $0x18] sm:$0xff] %v742_v3 }
  0x95 PF: > { %s6337_s11 = sld [smem:[#allocation26_spill]]  ;;  %v5047_v10 = vmov 256.0   ;;  %v3625_v14 = vld [vmem:[%s5256_s25 + $0x150] sm:$0xf]  ;;  %v4539_v15 = vld [vmem:[%s5256_s25 + $0x164] sm:$0xf0]  ;;  %s6338_s15 = scalar_lea.vmem %s6284_s2, %s5279_s1 }
  0x96   : > { %4815 = vrcp.f32 %v5047_v10  ;;  %v3817_v16 = vld [vmem:[%s5256_s25 + $0x2d0] sm:$0xf]  ;;  %v3626_v17 = vor.u32 %v4539_v15, %v3625_v14  ;;  %v4587_v18 = vld [vmem:[%s5256_s25 + $0x2e4] sm:$0xf0]  ;;  %v4536_v19 = vld [vmem:[%s5256_s25 + $0x154] sm:$0xf]  ;;  %s6339_s18 = scalar_lea.vmem %s6285_s3, %s5279_s1 }
  0x97   : > { %v3627_v20 = vld [vmem:[%s5256_s25 + $0x168] sm:$0xf0]  ;;  %v3818_v21 = vor.u32 %v4587_v18, %v3817_v16  ;;  %v4584_v23 = vld [vmem:[%s5256_s25 + $0x2d4] sm:$0xf]  ;;  %v3601_v25 = vld [vmem:[%s5256_s25 + $0x120] sm:$0xf] }
  0x98   : > { %v3630_v22 = vor.u32 %v4536_v19, %v3627_v20  ;;  %v3819_v24 = vld [vmem:[%s5256_s25 + $0x2e8] sm:$0xf0]  ;;  %1422 = vmatpush.bf16.msra.mxu0 %v3626_v17  ;;  %v4533_v27 = vld [vmem:[%s5256_s25 + $0x134] sm:$0xf0]  ;;  %v3793_v28 = vld [vmem:[%s5256_s25 + $0x2a0] sm:$0xf] }
  0x99   : > { %v3822_v26 = vor.u32 %v4584_v23, %v3819_v24  ;;  %v4581_v29 = vld [vmem:[%s5256_s25 + $0x2b4] sm:$0xf0]  ;;  %1436 = vmatpush.bf16.msra.mxu1 %v3818_v21  ;;  %v3602_v30 = vor.u32 %v4533_v27, %v3601_v25  ;;  %v4530_v32 = vld [vmem:[%s5256_s25 + $0x124] sm:$0xf]  ;;  %v3603_v33 = vld [vmem:[%s5256_s25 + $0x138] sm:$0xf0] }
  0x9a   : > { %1450 = vmatpush.bf16.msra.mxu2 %v3630_v22  ;;  %v3794_v31 = vor.u32 %v4581_v29, %v3793_v28  ;;  %v4578_v34 = vld [vmem:[%s5256_s25 + $0x2a4] sm:$0xf]  ;;  %v3606_v36 = vor.u32 %v4530_v32, %v3603_v33  ;;  %v3795_v37 = vld [vmem:[%s5256_s25 + $0x2b8] sm:$0xf0]  ;;  %v3577_v38 = vld [vmem:[%s5256_s25 + $0xf0] sm:$0xf] }
  0x9b   : > { %v5343_v4 = vld [vmem:[%s6337_s11] sm:$0xff]  ;;  %v5348_v5 = vld [vmem:[%s6337_s11 + $0x8] sm:$0xff]  ;;  %v5355_v7 = vld [vmem:[%s6337_s11 + $0x10] sm:$0xff]  ;;  %1464 = vmatpush.bf16.msra.mxu3 %v3822_v26  ;;  %v3798_v40 = vor.u32 %v4578_v34, %v3795_v37  ;;  %s6340_s29 = sld [smem:[#allocation17_spill]]  ;;  %vm1638_vm7 = vcmask 130048  }
  0x9c   : > { %v755_v6 = vadd.f32 %v5348_v5, %v5343_v4  ;;  %v5360_v8 = vld [vmem:[%s6337_s11 + $0x18] sm:$0xff]  ;;  %v5364_v11 = vpop.eup %4815  ;;  %v4527_v39 = vld [vmem:[%s5256_s25 + $0x104] sm:$0xf0]  ;;  %v3769_v41 = vld [vmem:[%s5256_s25 + $0x270] sm:$0xf]  ;;  %1423 = vmatpush.bf16.msra.mxu0 %v3602_v30 }
  0x9d   : > { %v758_v9 = vadd.f32 %v5360_v8, %v5355_v7  ;;  %v762_v12 = vmul.f32 256.0, %v5364_v11  ;;  %v4575_v42 = vld [vmem:[%s5256_s25 + $0x284] sm:$0xf0]  ;;  %v4524_v43 = vld [vmem:[%s5256_s25 + $0xf4] sm:$0xf]  ;;  %v3578_v44 = vor.u32 %v4527_v39, %v3577_v38  ;;  %1437 = vmatpush.bf16.msra.mxu1 %v3794_v31  ;;  %vm766_vm0 = vweird.f32 %v5364_v11 }
  0x9e   : > { %756 = vadd.xlane.f32.xlu0 %v755_v6  ;;  %v3579_v45 = vld [vmem:[%s5256_s25 + $0x108] sm:$0xf0]  ;;  %v4572_v46 = vld [vmem:[%s5256_s25 + $0x274] sm:$0xf]  ;;  %1451 = vmatpush.bf16.msra.mxu2 %v3606_v36  ;;  %v3770_v48 = vor.u32 %v4575_v42, %v3769_v41  ;;  %v3553_v50 = vld [vmem:[%s5256_s25 + $0xc0] sm:$0xf] }
  0x9f   : > { %v763_v13 = vsub.f32 1.0, %v762_v12  ;;  %v3771_v47 = vld [vmem:[%s5256_s25 + $0x288] sm:$0xf0]  ;;  %v3582_v49 = vor.u32 %v4524_v43, %v3579_v45  ;;  %v4521_v51 = vld [vmem:[%s5256_s25 + $0xd4] sm:$0xf0]  ;;  %1465 = vmatpush.bf16.msra.mxu3 %v3798_v40 }
  0xa0   : > { %v3745_v52 = vld [vmem:[%s5256_s25 + $0x240] sm:$0xf]  ;;  %v3774_v54 = vor.u32 %v4572_v46, %v3771_v47  ;;  %v4569_v55 = vld [vmem:[%s5256_s25 + $0x254] sm:$0xf0]  ;;  %v4518_v56 = vld [vmem:[%s5256_s25 + $0xc4] sm:$0xf]  ;;  %1424 = vmatpush.bf16.msra.mxu0 %v3578_v44  ;;  %v3554_v60 = vor.u32 %v4521_v51, %v3553_v50 }
  0xa1   : > { %v764_v35 = vmul.f32 %v5364_v11, %v763_v13  ;;  %v3555_v57 = vld [vmem:[%s5256_s25 + $0xd8] sm:$0xf0]  ;;  %v4566_v58 = vld [vmem:[%s5256_s25 + $0x244] sm:$0xf]  ;;  %1438 = vmatpush.bf16.msra.mxu1 %v3770_v48  ;;  %v3746_v61 = vor.u32 %v4569_v55, %v3745_v52  ;;  %v3529_v63 = vld [vmem:[%s5256_s25 + $0x90] sm:$0xf]  ;;  %s6341_s10 = smov %s6340_s29 }
  0xa2   : > { %v3747_v59 = vld [vmem:[%s5256_s25 + $0x258] sm:$0xf0]  ;;  %1452 = vmatpush.bf16.msra.mxu2 %v3582_v49  ;;  %v3558_v62 = vor.u32 %v4518_v56, %v3555_v57  ;;  %v4515_v0 = vld [vmem:[%s5256_s25 + $0xa4] sm:$0xf0]  ;;  %v3721_v1 = vld [vmem:[%s5256_s25 + $0x210] sm:$0xf] }
  0xa3   : > { %v765_v53 = vadd.f32 %v5364_v11, %v764_v35  ;;  %1466 = vmatpush.bf16.msra.mxu3 %v3774_v54  ;;  %v3750_v3 = vor.u32 %v4566_v58, %v3747_v59  ;;  %v4563_v6 = vld [vmem:[%s5256_s25 + $0x224] sm:$0xf0]  ;;  %v3531_v10 = vld [vmem:[%s5256_s25 + $0xa8] sm:$0xf0]  ;;  %v4560_v12 = vld [vmem:[%s5256_s25 + $0x214] sm:$0xf]  ;;  %v3530_v15 = vor.u32 %v4515_v0, %v3529_v63 }
  0xa4   : > { %v3723_v13 = vld [vmem:[%s5256_s25 + $0x228] sm:$0xf0]  ;;  %1425 = vmatpush.bf16.msra.mxu0 %v3554_v60  ;;  %v3722_v17 = vor.u32 %v4563_v6, %v3721_v1  ;;  %v3505_v29 = vld [vmem:[%s5256_s25 + $0x60] sm:$0xf]  ;;  %v4509_v30 = vld [vmem:[%s5256_s25 + $0x74] sm:$0xf0] }
  0xa5   : > { %v5406_v2 = vsel %vm766_vm0, %v5364_v11, %v765_v53  ;;  %1439 = vmatpush.bf16.msra.mxu1 %v3746_v61  ;;  %v3726_v19 = vor.u32 %v4560_v12, %v3723_v13  ;;  %v3697_v31 = vld [vmem:[%s5256_s25 + $0x1e0] sm:$0xf]  ;;  %v4557_v32 = vld [vmem:[%s5256_s25 + $0x1f4] sm:$0xf0]  ;;  %v4506_v33 = vld [vmem:[%s5256_s25 + $0x64] sm:$0xf] }
  0xa6   : > { %759 = vadd.xlane.f32.xlu0 %v758_v9  ;;  %v4512_v9 = vld [vmem:[%s5256_s25 + $0x94] sm:$0xf]  ;;  %1453 = vmatpush.bf16.msra.mxu2 %v3558_v62  ;;  %v3698_v34 = vor.u32 %v4557_v32, %v3697_v31  ;;  %v4554_v36 = vld [vmem:[%s5256_s25 + $0x1e4] sm:$0xf]  ;;  %v3699_v37 = vld [vmem:[%s5256_s25 + $0x1f8] sm:$0xf0] }
  0xa7   : > { %v3534_v18 = vor.u32 %v4512_v9, %v3531_v10  ;;  %1467 = vmatpush.bf16.msra.mxu3 %v3750_v3  ;;  %v3702_v38 = vor.u32 %v4554_v36, %v3699_v37  ;;  %v3481_v39 = vld [vmem:[%s5256_s25 + $0x30] sm:$0xf]  ;;  %v4503_v40 = vld [vmem:[%s5256_s25 + $0x44] sm:$0xf0]  ;;  %v4500_v44 = vld [vmem:[%s5256_s25 + $0x34] sm:$0xf] }
  0xa8   : > { %1426 = vmatpush.bf16.msra.mxu0 %v3530_v15  ;;  %v3673_v41 = vld [vmem:[%s5256_s25 + $0x1b0] sm:$0xf]  ;;  %v3482_v42 = vor.u32 %v4503_v40, %v3481_v39  ;;  %v4551_v43 = vld [vmem:[%s5256_s25 + $0x1c4] sm:$0xf0]  ;;  %v3483_v45 = vld [vmem:[%s5256_s25 + $0x48] sm:$0xf0] }
  0xa9   : > { %1440 = vmatpush.bf16.msra.mxu1 %v3722_v17  ;;  %v3674_v46 = vor.u32 %v4551_v43, %v3673_v41  ;;  %v3486_v47 = vor.u32 %v4500_v44, %v3483_v45  ;;  %v4548_v48 = vld [vmem:[%s5256_s25 + $0x1b4] sm:$0xf]  ;;  %v3675_v49 = vld [vmem:[%s5256_s25 + $0x1c8] sm:$0xf0]  ;;  %v3457_v51 = vld [vmem:[%s5256_s25] sm:$0xf] }
  0xaa   : > { %1454 = vmatpush.bf16.msra.mxu2 %v3534_v18  ;;  %v3678_v50 = vor.u32 %v4548_v48, %v3675_v49  ;;  %v4497_v52 = vld [vmem:[%s5256_s25 + $0x14] sm:$0xf0]  ;;  %v3649_v53 = vld [vmem:[%s5256_s25 + $0x180] sm:$0xf]  ;;  %v4494_v56 = vld [vmem:[%s5256_s25 + $0x4] sm:$0xf] }
  0xab   : > { %1468 = vmatpush.bf16.msra.mxu3 %v3726_v19  ;;  %v3458_v54 = vor.u32 %v4497_v52, %v3457_v51  ;;  %v4545_v55 = vld [vmem:[%s5256_s25 + $0x194] sm:$0xf0]  ;;  %v3459_v57 = vld [vmem:[%s5256_s25 + $0x18] sm:$0xf0]  ;;  %v4542_v60 = vld [vmem:[%s5256_s25 + $0x184] sm:$0xf] }
  0xac   : > { %v3650_v58 = vor.u32 %v4545_v55, %v3649_v53  ;;  %v3462_v59 = vor.u32 %v4494_v56, %v3459_v57  ;;  %v3651_v61 = vld [vmem:[%s5256_s25 + $0x198] sm:$0xf0]  ;;  %v3633_v62 = vld [vmem:[%s5256_s25 + $0x158] sm:$0xf]  ;;  %v4540_v0 = vld [vmem:[%s5256_s25 + $0x16c] sm:$0xf0] }
  0xad   : > { %1441 = vmatpush.bf16.msra.mxu1 %v3698_v34  ;;  %v3654_v63 = vor.u32 %v4542_v60, %v3651_v61  ;;  %v3825_v1 = vld [vmem:[%s5256_s25 + $0x2d8] sm:$0xf]  ;;  %v4588_v3 = vld [vmem:[%s5256_s25 + $0x2ec] sm:$0xf0]  ;;  %v3634_v6 = vor.u32 %v4540_v0, %v3633_v62  ;;  %v4537_v10 = vld [vmem:[%s5256_s25 + $0x15c] sm:$0xf] }
  0xae   : > { %v3826_v9 = vor.u32 %v4588_v3, %v3825_v1  ;;  %v3635_v12 = vld [vmem:[%s5256_s25 + $0x170] sm:$0xf0]  ;;  %v4585_v13 = vld [vmem:[%s5256_s25 + $0x2dc] sm:$0xf]  ;;  %v4534_v17 = vld [vmem:[%s5256_s25 + $0x13c] sm:$0xf0] }
  0xaf   : > { %1469 = vmatpush.bf16.msra.mxu3 %v3702_v38  ;;  %v3827_v15 = vld [vmem:[%s5256_s25 + $0x2f0] sm:$0xf0]  ;;  %v4528_v31 = vld [vmem:[%s5256_s25 + $0x10c] sm:$0xf0]  ;;  %v4573_v37 = vld [vmem:[%s5256_s25 + $0x27c] sm:$0xf] }
  0xb0   : > { %v3830_v18 = vor.u32 %v4585_v13, %v3827_v15  ;;  %v3587_v34 = vld [vmem:[%s5256_s25 + $0x110] sm:$0xf0]  ;;  %v3561_v40 = vld [vmem:[%s5256_s25 + $0xc8] sm:$0xf]  ;;  %v4522_v41 = vld [vmem:[%s5256_s25 + $0xdc] sm:$0xf0] }
  0xb1   : > { %1442 = vmatpush.bf16.msra.mxu1 %v3674_v46  ;;  %v3779_v38 = vld [vmem:[%s5256_s25 + $0x290] sm:$0xf0]  ;;  %v3562_v43 = vor.u32 %v4522_v41, %v3561_v40  ;;  %v4570_v44 = vld [vmem:[%s5256_s25 + $0x25c] sm:$0xf0]  ;;  %v4519_v45 = vld [vmem:[%s5256_s25 + $0xcc] sm:$0xf] }
  0xb2   : > { %v3782_v39 = vor.u32 %v4573_v37, %v3779_v38  ;;  %v3563_v46 = vld [vmem:[%s5256_s25 + $0xe0] sm:$0xf0]  ;;  %v4567_v49 = vld [vmem:[%s5256_s25 + $0x24c] sm:$0xf]  ;;  %v3537_v52 = vld [vmem:[%s5256_s25 + $0x98] sm:$0xf] }
  0xb3   : > { %1470 = vmatpush.bf16.msra.mxu3 %v3678_v50  ;;  %v3566_v48 = vor.u32 %v4519_v45, %v3563_v46  ;;  %v3755_v50 = vld [vmem:[%s5256_s25 + $0x260] sm:$0xf0]  ;;  %v4516_v53 = vld [vmem:[%s5256_s25 + $0xac] sm:$0xf0]  ;;  %v4513_v57 = vld [vmem:[%s5256_s25 + $0x9c] sm:$0xf] }
  0xb4   : > { %v3758_v51 = vor.u32 %v4567_v49, %v3755_v50  ;;  %v3538_v55 = vor.u32 %v4516_v53, %v3537_v52  ;;  %v4564_v56 = vld [vmem:[%s5256_s25 + $0x22c] sm:$0xf0]  ;;  %v4561_v61 = vld [vmem:[%s5256_s25 + $0x21c] sm:$0xf]  ;;  %v3731_v62 = vld [vmem:[%s5256_s25 + $0x230] sm:$0xf0] }
  0xb5   : > { %1443 = vmatpush.bf16.msra.mxu1 %v3650_v58  ;;  %v3539_v58 = vld [vmem:[%s5256_s25 + $0xb0] sm:$0xf0]  ;;  %v3513_v0 = vld [vmem:[%s5256_s25 + $0x68] sm:$0xf]  ;;  %v4510_v1 = vld [vmem:[%s5256_s25 + $0x7c] sm:$0xf0] }
  0xb6   : > { %v3542_v60 = vor.u32 %v4513_v57, %v3539_v58  ;;  %v3705_v3 = vld [vmem:[%s5256_s25 + $0x1e8] sm:$0xf]  ;;  %v4555_v15 = vld [vmem:[%s5256_s25 + $0x1ec] sm:$0xf]  ;;  %v3467_v38 = vld [vmem:[%s5256_s25 + $0x20] sm:$0xf0] }
  0xb7   : > { %1471 = vmatpush.bf16.msra.mxu3 %v3654_v63  ;;  %v3734_v63 = vor.u32 %v4561_v61, %v3731_v62  ;;  %v4495_v37 = vld [vmem:[%s5256_s25 + $0xc] sm:$0xf] }
  0xb8   : > { %v3470_v40 = vor.u32 %v4495_v37, %v3467_v38  ;;  %v4543_v41 = vld [vmem:[%s5256_s25 + $0x18c] sm:$0xf] }
  0xb9   : > { %1492 = vmatpush.bf16.msrb.mxu1 %v3826_v9  ;;  %v4558_v9 = vld [vmem:[%s5256_s25 + $0x1fc] sm:$0xf0]  ;;  %v3811_v37 = vld [vmem:[%s5256_s25 + $0x2c8] sm:$0xf0] }
  0xba   : > { %v3706_v13 = vor.u32 %v4558_v9, %v3705_v3 }
  0xbb   : > { %1520 = vmatpush.bf16.msrb.mxu3 %v3830_v18 }
 0x111   : > { %v757_v14 = vpop.xlane.xlu0 %756 }
 0x112   : > { %v768_v16 = vmul.f32 %v5406_v2, %v757_v14  ;;  %v3638_v14 = vor.u32 %v4537_v10, %v3635_v12  ;;  %v4507_v10 = vld [vmem:[%s5256_s25 + $0x6c] sm:$0xf]  ;;  %v3515_v12 = vld [vmem:[%s5256_s25 + $0x80] sm:$0xf0] }
 0x114   : > { %v5415_v11 = vsub.f32 %v5343_v4, %v768_v16  ;;  %v5418_v20 = vsub.f32 %v5348_v5, %v768_v16  ;;  %v3609_v16 = vld [vmem:[%s5256_s25 + $0x128] sm:$0xf] }
 0x115   : > { %v3610_v19 = vor.u32 %v4534_v17, %v3609_v16  ;;  %v3707_v16 = vld [vmem:[%s5256_s25 + $0x200] sm:$0xf0] }
 0x116   : > { %v774_v21 = vmul.f32 %v5415_v11, %v5415_v11  ;;  %v775_v22 = vmul.f32 %v5418_v20, %v5418_v20  ;;  %v3710_v17 = vor.u32 %v4555_v15, %v3707_v16  ;;  %v4541_v16 = vld [vmem:[%s5256_s25 + $0x174] sm:$0xf0] }
 0x118   : > { %v778_v4 = vadd.f32 %v775_v22, %v774_v21  ;;  %v3801_v21 = vld [vmem:[%s5256_s25 + $0x2a8] sm:$0xf]  ;;  %v4582_v22 = vld [vmem:[%s5256_s25 + $0x2bc] sm:$0xf0] }
 0x119   : > { %v760_v23 = vpop.xlane.xlu0 %759 }
 0x11a   : > { %v769_v5 = vmul.f32 %v5406_v2, %v760_v23  ;;  %779 = vadd.xlane.f32.xlu1 %v778_v4  ;;  %v4531_v4 = vld [vmem:[%s5256_s25 + $0x12c] sm:$0xf]  ;;  %v3802_v23 = vor.u32 %v4582_v22, %v3801_v21  ;;  %v4504_v21 = vld [vmem:[%s5256_s25 + $0x4c] sm:$0xf0]  ;;  %v3681_v22 = vld [vmem:[%s5256_s25 + $0x1b8] sm:$0xf] }
 0x11c   : > { %v5426_v24 = vsub.f32 %v5355_v7, %v769_v5  ;;  %v5429_v25 = vsub.f32 %v5360_v8, %v769_v5  ;;  %v3506_v7 = vor.u32 %v4509_v30, %v3505_v29  ;;  %v3507_v8 = vld [vmem:[%s5256_s25 + $0x78] sm:$0xf0]  ;;  %v3611_v5 = vld [vmem:[%s5256_s25 + $0x140] sm:$0xf0]  ;;  %v3585_v30 = vld [vmem:[%s5256_s25 + $0xf8] sm:$0xf]  ;;  %1493 = vmatpush.bf16.msrb.mxu1 %v3802_v23 }
 0x11d   : > { %v3510_v35 = vor.u32 %v4506_v33, %v3507_v8  ;;  %v3586_v32 = vor.u32 %v4528_v31, %v3585_v30  ;;  %v4576_v33 = vld [vmem:[%s5256_s25 + $0x28c] sm:$0xf0]  ;;  %v4525_v8 = vld [vmem:[%s5256_s25 + $0xfc] sm:$0xf]  ;;  %v3683_v31 = vld [vmem:[%s5256_s25 + $0x1d0] sm:$0xf0] }
 0x11e   : > { %v776_v26 = vmul.f32 %v5426_v24, %v5426_v24  ;;  %v777_v27 = vmul.f32 %v5429_v25, %v5429_v25  ;;  %1427 = vmatpush.bf16.msra.mxu0 %v3506_v7  ;;  %v3777_v7 = vld [vmem:[%s5256_s25 + $0x278] sm:$0xf]  ;;  %v3590_v36 = vor.u32 %v4525_v8, %v3587_v34  ;;  %v4549_v30 = vld [vmem:[%s5256_s25 + $0x1bc] sm:$0xf]  ;;  %v4498_v8 = vld [vmem:[%s5256_s25 + $0x1c] sm:$0xf0] }
 0x11f   : > { %1455 = vmatpush.bf16.msra.mxu2 %v3510_v35  ;;  %v3778_v35 = vor.u32 %v4576_v33, %v3777_v7  ;;  %v3465_v33 = vld [vmem:[%s5256_s25 + $0x8] sm:$0xf] }
 0x120   : > { %v781_v28 = vadd.f32 %v777_v27, %v776_v26  ;;  %v4579_v26 = vld [vmem:[%s5256_s25 + $0x2ac] sm:$0xf]  ;;  %v3803_v27 = vld [vmem:[%s5256_s25 + $0x2c0] sm:$0xf0]  ;;  %v3657_v34 = vld [vmem:[%s5256_s25 + $0x188] sm:$0xf] }
 0x121   : > { %v3806_v29 = vor.u32 %v4579_v26, %v3803_v27  ;;  %1494 = vmatpush.bf16.msrb.mxu1 %v3778_v35  ;;  %v4501_v26 = vld [vmem:[%s5256_s25 + $0x3c] sm:$0xf]  ;;  %v3491_v27 = vld [vmem:[%s5256_s25 + $0x50] sm:$0xf0]  ;;  %v3466_v35 = vor.u32 %v4498_v8, %v3465_v33  ;;  %v3809_v33 = vld [vmem:[%s5256_s25 + $0x2b0] sm:$0xf] }
 0x122   : > { %782 = vadd.xlane.f32.xlu1 %v781_v28  ;;  %1428 = vmatpush.bf16.msra.mxu0 %v3482_v42  ;;  %v3614_v28 = vor.u32 %v4531_v4, %v3611_v5  ;;  %v3753_v42 = vld [vmem:[%s5256_s25 + $0x248] sm:$0xf]  ;;  %v4552_v5 = vld [vmem:[%s5256_s25 + $0x1cc] sm:$0xf0] }
 0x123   : > { %1456 = vmatpush.bf16.msra.mxu2 %v3486_v47  ;;  %1521 = vmatpush.bf16.msrb.mxu3 %v3806_v29  ;;  %v3754_v47 = vor.u32 %v4570_v44, %v3753_v42  ;;  %v3494_v29 = vor.u32 %v4501_v26, %v3491_v27  ;;  %v3659_v42 = vld [vmem:[%s5256_s25 + $0x1a0] sm:$0xf0]  ;;  %v4583_v8 = vld [vmem:[%s5256_s25 + $0x2c4] sm:$0xf0] }
 0x124   : > { %v3662_v44 = vor.u32 %v4543_v41, %v3659_v42  ;;  %v4529_v41 = vld [vmem:[%s5256_s25 + $0x114] sm:$0xf0] }
 0x125   : > { %1495 = vmatpush.bf16.msrb.mxu1 %v3754_v47 }
 0x126   : > { %1429 = vmatpush.bf16.msra.mxu0 %v3458_v54  ;;  %v3729_v54 = vld [vmem:[%s5256_s25 + $0x218] sm:$0xf] }
 0x127   : > { %1457 = vmatpush.bf16.msra.mxu2 %v3462_v59  ;;  %1522 = vmatpush.bf16.msrb.mxu3 %v3782_v39  ;;  %v3730_v59 = vor.u32 %v4564_v56, %v3729_v54  ;;  %v753_v56 = vld [vmem:[%s6338_s15] sm:$0x3] }
 0x128   : > { %v813_v61 = vperm.slane %v753_v56, 0  ;;  %v814_v62 = vperm.slane %v753_v56, 1  ;;  %v3761_v56 = vld [vmem:[%s5256_s25 + $0x250] sm:$0xf] }
 0x129   : > { %1496 = vmatpush.bf16.msrb.mxu1 %v3730_v59 }
 0x12a   : > { %1478 = vmatpush.bf16.msrb.mxu0 %v3634_v6  ;;  %v3514_v6 = vor.u32 %v4510_v1, %v3513_v0 }
 0x12b   : > { %1506 = vmatpush.bf16.msrb.mxu2 %v3638_v14  ;;  %1523 = vmatpush.bf16.msrb.mxu3 %v3758_v51  ;;  %v3518_v14 = vor.u32 %v4507_v10, %v3515_v12 }
 0x12d   : > { %1497 = vmatpush.bf16.msrb.mxu1 %v3706_v13 }
 0x12e   : > { %1479 = vmatpush.bf16.msrb.mxu0 %v3610_v19  ;;  %v3489_v19 = vld [vmem:[%s5256_s25 + $0x38] sm:$0xf] }
 0x12f   : > { %1507 = vmatpush.bf16.msrb.mxu2 %v3614_v28  ;;  %1524 = vmatpush.bf16.msrb.mxu3 %v3734_v63  ;;  %v3490_v23 = vor.u32 %v4504_v21, %v3489_v19  ;;  %v3682_v28 = vor.u32 %v4552_v5, %v3681_v22  ;;  %v4538_v19 = vld [vmem:[%s5256_s25 + $0x164] sm:$0xf]  ;;  %v3643_v5 = vld [vmem:[%s5256_s25 + $0x178] sm:$0xf0] }
 0x131   : > { %1498 = vmatpush.bf16.msrb.mxu1 %v3682_v28 }
 0x132   : > { %1480 = vmatpush.bf16.msrb.mxu0 %v3586_v32  ;;  %v3686_v32 = vor.u32 %v4549_v30, %v3683_v31  ;;  %v3617_v30 = vld [vmem:[%s5256_s25 + $0x130] sm:$0xf]  ;;  %v4535_v31 = vld [vmem:[%s5256_s25 + $0x144] sm:$0xf0] }
 0x133   : > { %1508 = vmatpush.bf16.msrb.mxu2 %v3590_v36  ;;  %1525 = vmatpush.bf16.msrb.mxu3 %v3710_v17  ;;  %v4546_v36 = vld [vmem:[%s5256_s25 + $0x19c] sm:$0xf0]  ;;  %v3618_v38 = vor.u32 %v4535_v31, %v3617_v30  ;;  %v4505_v30 = vld [vmem:[%s5256_s25 + $0x54] sm:$0xf0] }
 0x134   : > { %v3658_v39 = vor.u32 %v4546_v36, %v3657_v34  ;;  %v3833_v17 = vld [vmem:[%s5256_s25 + $0x2e0] sm:$0xf]  ;;  %v4532_v34 = vld [vmem:[%s5256_s25 + $0x134] sm:$0xf] }
 0x135   : > { %v4580_v36 = vld [vmem:[%s5256_s25 + $0x2b4] sm:$0xf] }
 0x136   : > { %1481 = vmatpush.bf16.msrb.mxu0 %v3562_v43  ;;  %1499 = vmatpush.bf16.msrb.mxu1 %v3658_v39  ;;  %v3810_v39 = vor.u32 %v4583_v8, %v3809_v33  ;;  %v4553_v33 = vld [vmem:[%s5256_s25 + $0x1d4] sm:$0xf0]  ;;  %v4502_v8 = vld [vmem:[%s5256_s25 + $0x44] sm:$0xf] }
 0x137   : > { %1509 = vmatpush.bf16.msrb.mxu2 %v3566_v48  ;;  %1526 = vmatpush.bf16.msrb.mxu3 %v3686_v32 }
 0x13a   : > { %1482 = vmatpush.bf16.msrb.mxu0 %v3538_v55 }
 0x13b   : > { %1510 = vmatpush.bf16.msrb.mxu2 %v3542_v60  ;;  %1527 = vmatpush.bf16.msrb.mxu3 %v3662_v44  ;;  %v754_v60 = vld [vmem:[%s6339_s18] sm:$0x3] }
 0x13c   : > { %v822_v3 = vperm.slane %v754_v60, 0  ;;  %v3785_v44 = vld [vmem:[%s5256_s25 + $0x280] sm:$0xf] }
 0x13e   : > { %1483 = vmatpush.bf16.msrb.mxu0 %v3514_v6  ;;  %v823_v6 = vperm.slane %v754_v60, 1  ;;  %v4568_v60 = vld [vmem:[%s5256_s25 + $0x254] sm:$0xf] }
 0x13f   : > { %1511 = vmatpush.bf16.msrb.mxu2 %v3518_v14 }
 0x142   : > { %1484 = vmatpush.bf16.msrb.mxu0 %v3490_v23 }
 0x143   : > { %1512 = vmatpush.bf16.msrb.mxu2 %v3494_v29 }
 0x146   : > { %1485 = vmatpush.bf16.msrb.mxu0 %v3466_v35  ;;  %v3619_v35 = vld [vmem:[%s5256_s25 + $0x148] sm:$0xf0] }
 0x147   : > { %1513 = vmatpush.bf16.msrb.mxu2 %v3470_v40  ;;  %v3593_v40 = vld [vmem:[%s5256_s25 + $0x100] sm:$0xf]  ;;  %v3622_v42 = vor.u32 %v4532_v34, %v3619_v35  ;;  %v3499_v34 = vld [vmem:[%s5256_s25 + $0x58] sm:$0xf0]  ;;  %v4550_v35 = vld [vmem:[%s5256_s25 + $0x1c4] sm:$0xf] }
 0x18d   : > { %v780_v18 = vpop.xlane.xlu1 %779 }
 0x18e   : > { %v784_v4 = vmul.f32 %v780_v18, %v5406_v2  ;;  %v4589_v18 = vld [vmem:[%s5256_s25 + $0x2f4] sm:$0xf0] }
 0x18f   : > { %v3834_v29 = vor.u32 %v4589_v18, %v3833_v17  ;;  %v4511_v17 = vld [vmem:[%s5256_s25 + $0x84] sm:$0xf0] }
 0x190   : > { %v786_v7 = vadd.f32 1e-05, %v784_v4 }
 0x192   : > { %4817 = vrsqrt.f32 %v786_v7  ;;  %vm794_vm2 = vweird.f32 %v786_v7 }
 0x195   : > { %v783_v43 = vpop.xlane.xlu1 %782 }
 0x196   : > { %v785_v45 = vmul.f32 %v783_v43, %v5406_v2  ;;  %v3814_v43 = vor.u32 %v4580_v36, %v3811_v37  ;;  %v3691_v36 = vld [vmem:[%s5256_s25 + $0x1d8] sm:$0xf0] }
 0x198   : > { %v4818_v46 = vpop.eup %4817  ;;  %v787_v47 = vadd.f32 1e-05, %v785_v45  ;;  %v4577_v45 = vld [vmem:[%s5256_s25 + $0x294] sm:$0xf0] }
 0x199   : > { %v789_v48 = vmul.f32 %v4818_v46, %v786_v7  ;;  %vm795_vm1 = vweird.f32 %v4818_v46  ;;  %v3646_v7 = vor.u32 %v4538_v19, %v3643_v5  ;;  %v4556_v5 = vld [vmem:[%s5256_s25 + $0x1f4] sm:$0xf] }
 0x19a   : > { %4819 = vrsqrt.f32 %v787_v47  ;;  %vm796_vm3 = vmor %vm794_vm2, %vm795_vm1  ;;  %vm804_vm5 = vweird.f32 %v787_v47 }
 0x19b   : > { %v790_v49 = vmul.f32 %v4818_v46, %v789_v48  ;;  %v4574_v48 = vld [vmem:[%s5256_s25 + $0x284] sm:$0xf] }
 0x19d   : > { %v791_v50 = vmul.f32 0.5, %v790_v49  ;;  %v3787_v49 = vld [vmem:[%s5256_s25 + $0x298] sm:$0xf0] }
 0x19f   : > { %v792_v51 = vsub.f32 1.5, %v791_v50  ;;  %v3594_v50 = vor.u32 %v4529_v41, %v3593_v40  ;;  %v4499_v40 = vld [vmem:[%s5256_s25 + $0x24] sm:$0xf0]  ;;  %v3502_v41 = vor.u32 %v4502_v8, %v3499_v34 }
 0x1a0   : > { %v4820_v52 = vpop.eup %4819 }
 0x1a1   : > { %v793_v53 = vmul.f32 %v4818_v46, %v792_v51  ;;  %v799_v54 = vmul.f32 %v4820_v52, %v787_v47  ;;  %vm805_vm4 = vweird.f32 %v4820_v52  ;;  %v3595_v47 = vld [vmem:[%s5256_s25 + $0x118] sm:$0xf0]  ;;  %v3786_v51 = vor.u32 %v4577_v45, %v3785_v44  ;;  %v4547_v44 = vld [vmem:[%s5256_s25 + $0x1a4] sm:$0xf0]  ;;  %v4496_v45 = vld [vmem:[%s5256_s25 + $0x14] sm:$0xf] }
 0x1a2   : > { %vm806_vm6 = vmor %vm804_vm5, %vm805_vm4 }
 0x1a3   : > { %v800_v55 = vmul.f32 %v4820_v52, %v799_v54  ;;  %v797_v57 = vsel %vm796_vm3, %v4818_v46, %v793_v53  ;;  %v4526_v46 = vld [vmem:[%s5256_s25 + $0x104] sm:$0xf]  ;;  %v4523_v53 = vld [vmem:[%s5256_s25 + $0xe4] sm:$0xf0] }
 0x1a4   : > { %v808_v63 = vmul.f32 %v797_v57, %v5415_v11  ;;  %v809_v0 = vmul.f32 %v797_v57, %v5418_v20  ;;  %v3641_v20 = vld [vmem:[%s5256_s25 + $0x160] sm:$0xf]  ;;  %v3598_v54 = vor.u32 %v4526_v46, %v3595_v47  ;;  %v4571_v57 = vld [vmem:[%s5256_s25 + $0x264] sm:$0xf0]  ;;  %v3475_v46 = vld [vmem:[%s5256_s25 + $0x28] sm:$0xf0] }
 0x1a5   : > { %v801_v58 = vmul.f32 0.5, %v800_v55  ;;  %v3642_v28 = vor.u32 %v4541_v16, %v3641_v20  ;;  %v3790_v55 = vor.u32 %v4574_v48, %v3787_v49  ;;  %v3521_v16 = vld [vmem:[%s5256_s25 + $0x70] sm:$0xf]  ;;  %v4544_v47 = vld [vmem:[%s5256_s25 + $0x194] sm:$0xf] }
 0x1a6   : > { %v817_v10 = vmul.f32 %v813_v61, %v808_v63  ;;  %v818_v12 = vmul.f32 %v814_v62, %v809_v0  ;;  %v3762_v63 = vor.u32 %v4571_v57, %v3761_v56  ;;  %v3545_v0 = vld [vmem:[%s5256_s25 + $0xa0] sm:$0xf]  ;;  %v3667_v48 = vld [vmem:[%s5256_s25 + $0x1a8] sm:$0xf0] }
 0x1a7   : > { %v802_v59 = vsub.f32 1.5, %v801_v58  ;;  %v4520_v58 = vld [vmem:[%s5256_s25 + $0xd4] sm:$0xf] }
 0x1a8   : > { %v826_v21 = vadd.f32 %v822_v3, %v817_v10  ;;  %v827_v22 = vadd.f32 %v823_v6, %v818_v12  ;;  %v4565_v10 = vld [vmem:[%s5256_s25 + $0x234] sm:$0xf0]  ;;  %v4514_v12 = vld [vmem:[%s5256_s25 + $0xa4] sm:$0xf] }
 0x1a9   : > { %v803_v1 = vmul.f32 %v4820_v52, %v802_v59  ;;  %v3571_v59 = vld [vmem:[%s5256_s25 + $0xe8] sm:$0xf0] }
 0x1ab   : > { %v807_v9 = vsel %vm806_vm6, %v4820_v52, %v803_v1  ;;  %v3569_v52 = vld [vmem:[%s5256_s25 + $0xd0] sm:$0xf]  ;;  %v4517_v1 = vld [vmem:[%s5256_s25 + $0xb4] sm:$0xf0] }
 0x1ac   : > { %v810_v13 = vmul.f32 %v807_v9, %v5426_v24  ;;  %v811_v11 = vmul.f32 %v807_v9, %v5429_v25  ;;  %v4586_v24 = vld [vmem:[%s5256_s25 + $0x2e4] sm:$0xf]  ;;  %v3835_v25 = vld [vmem:[%s5256_s25 + $0x2f8] sm:$0xf0]  ;;  %v3737_v9 = vld [vmem:[%s5256_s25 + $0x220] sm:$0xf] }
 0x1ad   : > { %v3838_v32 = vor.u32 %v4586_v24, %v3835_v25  ;;  %v3738_v20 = vor.u32 %v4565_v10, %v3737_v9  ;;  %v3715_v24 = vld [vmem:[%s5256_s25 + $0x208] sm:$0xf0]  ;;  %v3522_v25 = vor.u32 %v4511_v17, %v3521_v16 }
 0x1ae   : > { %v819_v14 = vmul.f32 %v813_v61, %v810_v13  ;;  %v820_v15 = vmul.f32 %v814_v62, %v811_v11  ;;  %v3763_v61 = vld [vmem:[%s5256_s25 + $0x268] sm:$0xf0]  ;;  %v3570_v62 = vor.u32 %v4523_v53, %v3569_v52  ;;  %v3547_v13 = vld [vmem:[%s5256_s25 + $0xb8] sm:$0xf0]  ;;  %v4562_v11 = vld [vmem:[%s5256_s25 + $0x224] sm:$0xf]  ;;  %v3670_v52 = vor.u32 %v4544_v47, %v3667_v48 }
 0x1af   : > { %v3550_v18 = vor.u32 %v4514_v12, %v3547_v13 }
 0x1b0   : > { %v828_v4 = vadd.f32 %v822_v3, %v819_v14  ;;  %v829_v23 = vadd.f32 %v823_v6, %v820_v15  ;;  %v3574_v3 = vor.u32 %v4520_v58, %v3571_v59  ;;  %v3766_v6 = vor.u32 %v4568_v60, %v3763_v61  ;;  %v3739_v14 = vld [vmem:[%s5256_s25 + $0x238] sm:$0xf0] }
 0x1b1   : > { %v3546_v15 = vor.u32 %v4517_v1, %v3545_v0  ;;  %v3742_v19 = vor.u32 %v4562_v11, %v3739_v14 }
 0x1b2   : > { %v5547_v26 = vpack.c.bf16 %v828_v4, %v826_v21  ;;  %v5549_v27 = vpack.c.bf16 %v829_v23, %v827_v22  ;;  %v3713_v21 = vld [vmem:[%s5256_s25 + $0x1f0] sm:$0xf]  ;;  %v4559_v22 = vld [vmem:[%s5256_s25 + $0x204] sm:$0xf0]  ;;  %v4508_v4 = vld [vmem:[%s5256_s25 + $0x74] sm:$0xf] }
 0x1b3   : > { %v3523_v23 = vld [vmem:[%s5256_s25 + $0x88] sm:$0xf0] }
 0x1b4   : > { %1430 = vmatmul.bf16.vlgmr.msra.gmra.mxu0 %v5547_v26  ;;  %1444 = vmatmul.bf16.vlgmr.msra.gmra.mxu1 %v5549_v27  ;;  %v3526_v31 = vor.u32 %v4508_v4, %v3523_v23 }
 0x1b5   : > { %1458 = vmatmul.bf16.vlgmr.msra.gmra.mxu2 %v5547_v26  ;;  %1472 = vmatmul.bf16.vlgmr.msra.gmra.mxu3 %v5549_v27 }
 0x1b6   : > { %1534 = vmatpush.bf16.msra.mxu0 %v3642_v28  ;;  %1548 = vmatpush.bf16.msra.mxu1 %v3834_v29  ;;  %v3714_v28 = vor.u32 %v4559_v22, %v3713_v21  ;;  %v3497_v29 = vld [vmem:[%s5256_s25 + $0x40] sm:$0xf] }
 0x1b7   : > { %1562 = vmatpush.bf16.msra.mxu2 %v3646_v7  ;;  %1576 = vmatpush.bf16.msra.mxu3 %v3838_v32  ;;  %v3718_v7 = vor.u32 %v4556_v5, %v3715_v24  ;;  %v3689_v32 = vld [vmem:[%s5256_s25 + $0x1c0] sm:$0xf]  ;;  %v3498_v37 = vor.u32 %v4505_v30, %v3497_v29 }
 0x1ba   : > { %1535 = vmatpush.bf16.msra.mxu0 %v3618_v38  ;;  %1549 = vmatpush.bf16.msra.mxu1 %v3810_v39  ;;  %v3690_v38 = vor.u32 %v4553_v33, %v3689_v32  ;;  %v3473_v39 = vld [vmem:[%s5256_s25 + $0x10] sm:$0xf] }
 0x1bb   : > { %1563 = vmatpush.bf16.msra.mxu2 %v3622_v42  ;;  %1577 = vmatpush.bf16.msra.mxu3 %v3814_v43  ;;  %v3694_v42 = vor.u32 %v4550_v35, %v3691_v36  ;;  %v3665_v43 = vld [vmem:[%s5256_s25 + $0x190] sm:$0xf]  ;;  %v3474_v49 = vor.u32 %v4499_v40, %v3473_v39 }
 0x1be   : > { %1536 = vmatpush.bf16.msra.mxu0 %v3594_v50  ;;  %1550 = vmatpush.bf16.msra.mxu1 %v3786_v51  ;;  %v3666_v50 = vor.u32 %v4547_v44, %v3665_v43  ;;  %v3478_v51 = vor.u32 %v4496_v45, %v3475_v46 }
 0x1bf   : > { %1564 = vmatpush.bf16.msra.mxu2 %v3598_v54  ;;  %1578 = vmatpush.bf16.msra.mxu3 %v3790_v55 }
 0x1c2   : > { %1537 = vmatpush.bf16.msra.mxu0 %v3570_v62  ;;  %1551 = vmatpush.bf16.msra.mxu1 %v3762_v63  ;;  %v928_v63 = vld [vmem:[%s5292_s21] sm:$0x3f] }
 0x1c3   : > { %1565 = vmatpush.bf16.msra.mxu2 %v3574_v3  ;;  %1579 = vmatpush.bf16.msra.mxu3 %v3766_v6  ;;  %v932_v0 = vperm.slane %v928_v63, 2  ;;  %v930_v12 = vperm.slane %v928_v63, 0  ;;  %v931_v22 = vperm.slane %v928_v63, 1  ;;  %v935_v39 = vperm.slane %v928_v63, 5 }
 0x1c4   : > { %1486 = vmatmul.bf16.vlgmr.msrb.gmra.mxu0 %v5547_v26  ;;  %1500 = vmatmul.bf16.vlgmr.msrb.gmra.mxu1 %v5549_v27 }
 0x1c5   : > { %1514 = vmatmul.bf16.vlgmr.msrb.gmra.mxu2 %v5547_v26  ;;  %1528 = vmatmul.bf16.vlgmr.msrb.gmra.mxu3 %v5549_v27 }
 0x1c6   : > { %1538 = vmatpush.bf16.msra.mxu0 %v3546_v15  ;;  %1552 = vmatpush.bf16.msra.mxu1 %v3738_v20 }
 0x1c7   : > { %1566 = vmatpush.bf16.msra.mxu2 %v3550_v18  ;;  %1580 = vmatpush.bf16.msra.mxu3 %v3742_v19 }
 0x1ca   : > { %1539 = vmatpush.bf16.msra.mxu0 %v3522_v25  ;;  %1553 = vmatpush.bf16.msra.mxu1 %v3714_v28 }
 0x1cb   : > { %1567 = vmatpush.bf16.msra.mxu2 %v3526_v31  ;;  %1581 = vmatpush.bf16.msra.mxu3 %v3718_v7  ;;  %v934_v31 = vperm.slane %v928_v63, 4 }
 0x1ce   : > { %1540 = vmatpush.bf16.msra.mxu0 %v3498_v37  ;;  %1554 = vmatpush.bf16.msra.mxu1 %v3690_v38 }
 0x1cf   : > { %1568 = vmatpush.bf16.msra.mxu2 %v3502_v41  ;;  %1582 = vmatpush.bf16.msra.mxu3 %v3694_v42 }
 0x1d2   : > { %1541 = vmatpush.bf16.msra.mxu0 %v3474_v49  ;;  %1555 = vmatpush.bf16.msra.mxu1 %v3666_v50 }
 0x1d3   : > { %1569 = vmatpush.bf16.msra.mxu2 %v3478_v51  ;;  %1583 = vmatpush.bf16.msra.mxu3 %v3670_v52  ;;  %v751_v51 = vld [vmem:[%s6340_s29] sm:$0xff] }
 0x1d5   : > { %1542 = vmatmul.bf16.vlgmr.msra.gmra.mxu0 %v5547_v26  ;;  %1556 = vmatmul.bf16.vlgmr.msra.gmra.mxu1 %v5549_v27 }
 0x1d6   : > { %1570 = vmatmul.bf16.vlgmr.msra.gmra.mxu2 %v5547_v26  ;;  %1584 = vmatmul.bf16.vlgmr.msra.gmra.mxu3 %v5549_v27  ;;  %v933_v27 = vperm.slane %v928_v63, 3 }
 0x231   : > { %v1431_v53 = vpop.f32.mrf.mxu0  ;;  %v1445_v54 = vpop.f32.mrf.mxu1 }
 0x232   : > { %v1432_v20 = vadd.f32 %v1431_v53, %v930_v12 }
 0x234   : > { %v1446_v5 = vadd.f32 %v1445_v54, %v1432_v20 }
 0x238   : > { %v1459_v55 = vpop.f32.mrf.mxu2  ;;  %v1473_v56 = vpop.f32.mrf.mxu3 }
 0x239   : > { %v1433_v57 = vpop.f32.mrf.mxu0  ;;  %v1447_v58 = vpop.f32.mrf.mxu1  ;;  %v1460_v7 = vadd.f32 %v1459_v55, %v931_v22  ;;  %v752_v55 = vld [vmem:[%s6341_s10 + $0x8] sm:$0xff] }
 0x23a   : > { %v1434_v14 = vadd.f32 %v1433_v57, %v930_v12 }
 0x23b   : > { %v1474_v35 = vadd.f32 %v1473_v56, %v1460_v7  ;;  %v4602_v7 = vld [vmem:[%s5263_s6 + $0x64] sm:$0xf] }
 0x23c   : > { %v1448_v19 = vadd.f32 %v1447_v58, %v1434_v14 }
 0x23e   : > { %v1622_v29 = vpack.c.bf16 %v1448_v19, %v1446_v5  ;;  %v4605_v5 = vld [vmem:[%s5263_s6 + $0x74] sm:$0xf0] }
 0x240   : > { %v1461_v59 = vpop.f32.mrf.mxu2  ;;  %v1475_v60 = vpop.f32.mrf.mxu3 }
 0x241   : > { %v1487_v61 = vpop.f32.mrf.mxu0  ;;  %v1501_v62 = vpop.f32.mrf.mxu1  ;;  %v1462_v28 = vadd.f32 %v1461_v59, %v931_v22 }
 0x242   : > { %v1488_v1 = vadd.f32 %v1487_v61, %v932_v0 }
 0x243   : > { %v1476_v32 = vadd.f32 %v1475_v60, %v1462_v28  ;;  %v3965_v28 = vld [vmem:[%s5263_s6 + $0x78] sm:$0xf0] }
 0x244   : > { %v1502_v13 = vadd.f32 %v1501_v62, %v1488_v1 }
 0x245   : > { %v1681_v38 = vpack.c.bf16 %v1476_v32, %v1474_v35  ;;  %v3957_v32 = vld [vmem:[%s5263_s6 + $0x68] sm:$0xf0]  ;;  %v3947_v35 = vld [vmem:[%s5263_s6 + $0x50] sm:$0xf] }
 0x248   : > { %v1515_v3 = vpop.f32.mrf.mxu2  ;;  %v1529_v6 = vpop.f32.mrf.mxu3 }
 0x249   : > { %v1489_v9 = vpop.f32.mrf.mxu0  ;;  %v1503_v10 = vpop.f32.mrf.mxu1  ;;  %v1516_v16 = vadd.f32 %v1515_v3, %v933_v27 }
 0x24a   : > { %v1490_v26 = vadd.f32 %v1489_v9, %v932_v0 }
 0x24b   : > { %v1530_v24 = vadd.f32 %v1529_v6, %v1516_v16 }
 0x24c   : > { %v1504_v11 = vadd.f32 %v1503_v10, %v1490_v26 }
 0x24e   : > { %v1623_v15 = vpack.c.bf16 %v1504_v11, %v1502_v13 }
 0x250   : > { %v1517_v17 = vpop.f32.mrf.mxu2  ;;  %v1531_v18 = vpop.f32.mrf.mxu3  ;;  %1631 = vmatpush.bf16.xpose.msrb.mxu0 %v1623_v15 }
 0x251   : > { %v1518_v21 = vadd.f32 %v1517_v17, %v933_v27 }
 0x252   : > { %v1543_v4 = vpop.f32.mrf.mxu0  ;;  %v1557_v23 = vpop.f32.mrf.mxu1 }
 0x253   : > { %v1532_v25 = vadd.f32 %v1531_v18, %v1518_v21  ;;  %v1544_v33 = vadd.f32 %v1543_v4, %v934_v31 }
 0x255   : > { %v1682_v30 = vpack.c.bf16 %v1532_v25, %v1530_v24  ;;  %v1558_v41 = vadd.f32 %v1557_v23, %v1544_v33  ;;  %v3963_v23 = vld [vmem:[%s5263_s6 + $0x70] sm:$0xf]  ;;  %v4604_v24 = vld [vmem:[%s5263_s6 + $0x74] sm:$0xf] }
 0x256   : > { %v3964_v25 = vor.u32 %v4605_v5, %v3963_v23  ;;  %v4593_v23 = vld [vmem:[%s5263_s6 + $0x14] sm:$0xf0]  ;;  %v4592_v5 = vld [vmem:[%s5263_s6 + $0x14] sm:$0xf] }
 0x257   : > { %1690 = vmatpush.bf16.xpose.msrb.mxu2 %v1682_v30  ;;  %1632 = vmatmul.bf16.vlgmr.msrb.gmra.mxu0 %v1622_v29  ;;  %v3955_v29 = vld [vmem:[%s5263_s6 + $0x60] sm:$0xf]  ;;  %v4603_v30 = vld [vmem:[%s5263_s6 + $0x64] sm:$0xf0] }
 0x259   : > { %v1571_v8 = vpop.f32.mrf.mxu2  ;;  %v1585_v34 = vpop.f32.mrf.mxu3 }
 0x25a   : > { %v1545_v36 = vpop.f32.mrf.mxu0  ;;  %v1559_v40 = vpop.f32.mrf.mxu1  ;;  %v1572_v44 = vadd.f32 %v1571_v8, %v935_v39  ;;  %v3956_v8 = vor.u32 %v4603_v30, %v3955_v29  ;;  %v3883_v29 = vld [vmem:[%s5263_s6 + $0xd0] sm:$0xf]  ;;  %v4617_v30 = vld [vmem:[%s5263_s6 + $0xd4] sm:$0xf0] }
 0x25b   : > { %v1546_v37 = vadd.f32 %v1545_v36, %v934_v31  ;;  %v3968_v31 = vor.u32 %v4604_v24, %v3965_v28  ;;  %v4601_v36 = vld [vmem:[%s5263_s6 + $0x54] sm:$0xf0]  ;;  %v3917_v24 = vld [vmem:[%s5263_s6 + $0x18] sm:$0xf0] }
 0x25c   : > { %v1586_v48 = vadd.f32 %v1585_v34, %v1572_v44  ;;  %v3960_v34 = vor.u32 %v4602_v7, %v3957_v32  ;;  %v3901_v44 = vld [vmem:[%s5263_s6 + $0xf8] sm:$0xf0]  ;;  %v3920_v28 = vor.u32 %v4592_v5, %v3917_v24  ;;  %v3884_v7 = vor.u32 %v4617_v30, %v3883_v29  ;;  %v4874_v5 = vld [vmem:[%s6337_s11 + $0x8] sm:$0xff] }
 0x25d   : > { %v1560_v42 = vadd.f32 %v1559_v40, %v1546_v37  ;;  %v4600_v37 = vld [vmem:[%s5263_s6 + $0x54] sm:$0xf]  ;;  %v3885_v32 = vld [vmem:[%s5263_s6 + $0xd8] sm:$0xf0] }
 0x25e   : > { %1691 = vmatmul.bf16.vlgmr.msrb.gmra.mxu2 %v1681_v38  ;;  %v3949_v38 = vld [vmem:[%s5263_s6 + $0x58] sm:$0xf0] }
 0x25f   : > { %v1662_v43 = vpack.c.bf16 %v1560_v42, %v1558_v41  ;;  %1927 = vmatpush.bf16.msra.mxu2 %v3964_v25  ;;  %v3948_v41 = vor.u32 %v4601_v36, %v3947_v35  ;;  %v4621_v42 = vld [vmem:[%s5263_s6 + $0xf4] sm:$0xf0]  ;;  %v4590_v35 = vld [vmem:[%s5263_s6 + $0x4] sm:$0xf] }
 0x261   : > { %v1573_v45 = vpop.f32.mrf.mxu2  ;;  %1673 = vmatpush.bf16.msrb.mxu1 %v1662_v43  ;;  %v1587_v47 = vpop.f32.mrf.mxu3  ;;  %v4620_v43 = vld [vmem:[%s5263_s6 + $0xf4] sm:$0xf] }
 0x262   : > { %v1574_v46 = vadd.f32 %v1573_v45, %v935_v39  ;;  %v3899_v39 = vld [vmem:[%s5263_s6 + $0xf0] sm:$0xf]  ;;  %v3952_v45 = vor.u32 %v4600_v37, %v3949_v38  ;;  %v3909_v37 = vld [vmem:[%s5263_s6 + $0x8] sm:$0xf0] }
 0x263   : > { %1928 = vmatpush.bf16.msra.mxu2 %v3956_v8  ;;  %v3907_v8 = vld [vmem:[%s5263_s6] sm:$0xf]  ;;  %v3912_v38 = vor.u32 %v4590_v35, %v3909_v37 }
 0x264   : > { %v1588_v49 = vadd.f32 %v1587_v47, %v1574_v46  ;;  %v3939_v46 = vld [vmem:[%s5263_s6 + $0x40] sm:$0xf]  ;;  %v4599_v47 = vld [vmem:[%s5263_s6 + $0x44] sm:$0xf0] }
 0x266   : > { %v1720_v50 = vpack.c.bf16 %v1588_v49, %v1586_v48  ;;  %v3900_v48 = vor.u32 %v4621_v42, %v3899_v39  ;;  %v3904_v49 = vor.u32 %v4620_v43, %v3901_v44  ;;  %v3875_v39 = vld [vmem:[%s5263_s6 + $0xc0] sm:$0xf]  ;;  %v3877_v43 = vld [vmem:[%s5263_s6 + $0xc8] sm:$0xf0] }
 0x267   : > { %1929 = vmatpush.bf16.msra.mxu2 %v3948_v41  ;;  %v4614_v41 = vld [vmem:[%s5263_s6 + $0xc4] sm:$0xf] }
 0x268   : > { %1731 = vmatpush.bf16.msrb.mxu3 %v1720_v50  ;;  %v4598_v50 = vld [vmem:[%s5263_s6 + $0x44] sm:$0xf]  ;;  %1819 = vmatpush.bf16.msra.mxu0 %v3900_v48  ;;  %v3880_v44 = vor.u32 %v4614_v41, %v3877_v43  ;;  %v4083_v41 = vld [vmem:[%s5269_s16 + $0xe0] sm:$0xf] }
 0x269   : > { %1833 = vmatpush.bf16.msra.mxu1 %v3904_v49  ;;  %v3869_v49 = vld [vmem:[%s5263_s6 + $0xb8] sm:$0xf0]  ;;  %v4211_v43 = vld [vmem:[%s5269_s16 + $0x1e0] sm:$0xf] }
 0x26c   : > { %1941 = vmatpush.bf16.msra.mxu3 %v3968_v31  ;;  %v4616_v31 = vld [vmem:[%s5263_s6 + $0xd4] sm:$0xf] }
 0x270   : > { %1942 = vmatpush.bf16.msra.mxu3 %v3960_v34  ;;  %v4591_v34 = vld [vmem:[%s5263_s6 + $0x4] sm:$0xf0] }
 0x271   : > { %v3908_v36 = vor.u32 %v4591_v34, %v3907_v8  ;;  %v4875_v34 = vld [vmem:[%s6337_s11 + $0x10] sm:$0xff] }
 0x274   : > { %1943 = vmatpush.bf16.msra.mxu3 %v3952_v45  ;;  %v3867_v45 = vld [vmem:[%s5263_s6 + $0xb0] sm:$0xf] }
 0x2d4   : > { %v1633_v52 = vpop.f32.mrf.mxu0 }
 0x2d5   : > { %v1634_v53 = vadd.f32 %v1633_v52, %v751_v51  ;;  %v3940_v52 = vor.u32 %v4599_v47, %v3939_v46  ;;  %v4613_v46 = vld [vmem:[%s5263_s6 + $0xb4] sm:$0xf0]  ;;  %v4612_v47 = vld [vmem:[%s5263_s6 + $0xb4] sm:$0xf] }
 0x2d6   : > { %v3868_v48 = vor.u32 %v4613_v46, %v3867_v45  ;;  %v4684_v45 = vld [vmem:[%s5269_s16 + $0x1ec] sm:$0xf0]  ;;  %v4650_v46 = vld [vmem:[%s5269_s16 + $0xe4] sm:$0xf] }
 0x2d7   : > { %v1639_v54 = vsel %vm1638_vm7, %v1634_v53, -inf  ;;  %1930 = vmatpush.bf16.msra.mxu2 %v3940_v52  ;;  %v4611_v52 = vld [vmem:[%s5263_s6 + $0xa4] sm:$0xf0] }
 0x2d8   : > { %1640 = vmax.xlane.f32.xlu2 %v1639_v54 }
 0x2dc   : > { %v1635_v56 = vpop.f32.mrf.mxu0 }
 0x2dd   : > { %v1636_v57 = vadd.f32 %v1635_v56, %v752_v55  ;;  %v4597_v56 = vld [vmem:[%s5263_s6 + $0x34] sm:$0xf0] }
 0x2df   : > { %v1642_v58 = vsel %vm1638_vm7, %v1636_v57, -inf }
 0x2e0   : > { %1643 = vmax.xlane.f32.xlu2 %v1642_v58  ;;  %v3933_v58 = vld [vmem:[%s5263_s6 + $0x38] sm:$0xf0] }
 0x2e1   : > { %v1692_v59 = vpop.f32.mrf.mxu2 }
 0x2e2   : > { %v1693_v60 = vadd.f32 %v1692_v59, %v751_v51  ;;  %v3941_v51 = vld [vmem:[%s5263_s6 + $0x48] sm:$0xf0] }
 0x2e3   : > { %v3944_v54 = vor.u32 %v4598_v50, %v3941_v51  ;;  %v3872_v50 = vor.u32 %v4612_v47, %v3869_v49  ;;  %v3859_v51 = vld [vmem:[%s5263_s6 + $0xa0] sm:$0xf]  ;;  %v4085_v47 = vld [vmem:[%s5269_s16 + $0xf0] sm:$0xf0] }
 0x2e4   : > { %v1697_v61 = vsel %vm1638_vm7, %v1693_v60, -inf  ;;  %v4088_v49 = vor.u32 %v4650_v46, %v4085_v47  ;;  %v4147_v46 = vld [vmem:[%s5269_s16 + $0x160] sm:$0xf] }
 0x2e5   : > { %1698 = vmax.xlane.f32.xlu0 %v1697_v61  ;;  %1944 = vmatpush.bf16.msra.mxu3 %v3944_v54  ;;  %v3860_v54 = vor.u32 %v4611_v52, %v3859_v51  ;;  %v4213_v51 = vld [vmem:[%s5269_s16 + $0x1f0] sm:$0xf0]  ;;  %v4067_v52 = vld [vmem:[%s5269_s16 + $0xc0] sm:$0xf] }
 0x2e9   : > { %v1694_v62 = vpop.f32.mrf.mxu2 }
 0x2ea   : > { %v1695_v63 = vadd.f32 %v1694_v62, %v752_v55  ;;  %v3931_v55 = vld [vmem:[%s5263_s6 + $0x30] sm:$0xf] }
 0x2eb   : > { %v3932_v62 = vor.u32 %v4597_v56, %v3931_v55  ;;  %v3861_v55 = vld [vmem:[%s5263_s6 + $0xa8] sm:$0xf0] }
 0x2ec   : > { %v1700_v0 = vsel %vm1638_vm7, %v1695_v63, -inf }
 0x2ed   : > { %1701 = vmax.xlane.f32.xlu1 %v1700_v0  ;;  %1931 = vmatpush.bf16.msra.mxu2 %v3932_v62 }
 0x34b   : > { %v1641_v1 = vpop.xlane.xlu2 %1640 }
 0x34c   : > { %v1645_v3 = vsub.f32 %v1634_v53, %v1641_v1 }
 0x34e   : > { %v1647_v6 = vmul.f32 1.442695, %v1645_v3 }
 0x350   : > { %4821 = vpow2.f32 %v1647_v6 }
 0x353   : > { %v1644_v9 = vpop.xlane.xlu2 %1643 }
 0x354   : > { %v1646_v10 = vsub.f32 %v1636_v57, %v1644_v9  ;;  %v4596_v57 = vld [vmem:[%s5263_s6 + $0x34] sm:$0xf] }
 0x355   : > { %v3936_v0 = vor.u32 %v4596_v57, %v3933_v58  ;;  %v3851_v57 = vld [vmem:[%s5263_s6 + $0x90] sm:$0xf]  ;;  %v4609_v58 = vld [vmem:[%s5263_s6 + $0x94] sm:$0xf0] }
 0x356   : > { %v5630_v26 = vpop.eup %4821  ;;  %v1649_v12 = vmul.f32 1.442695, %v1646_v10 }
 0x357   : > { %v1651_v27 = vsel %vm1638_vm7, %v5630_v26, 0.0  ;;  %1945 = vmatpush.bf16.msra.mxu3 %v3936_v0  ;;  %v4607_v0 = vld [vmem:[%s5263_s6 + $0x84] sm:$0xf0] }
 0x358   : > { %4823 = vpow2.f32 %v1649_v12  ;;  %v1699_v13 = vpop.xlane.xlu0 %1698  ;;  %1652 = vadd.xlane.f32.xlu2 %v1651_v27  ;;  %v3923_v27 = vld [vmem:[%s5263_s6 + $0x20] sm:$0xf] }
 0x359   : > { %v1703_v11 = vsub.f32 %v1693_v60, %v1699_v13  ;;  %v4595_v13 = vld [vmem:[%s5263_s6 + $0x24] sm:$0xf0] }
 0x35b   : > { %v1705_v14 = vmul.f32 1.442695, %v1703_v11  ;;  %v4594_v11 = vld [vmem:[%s5263_s6 + $0x24] sm:$0xf] }
 0x35d   : > { %4825 = vpow2.f32 %v1705_v14  ;;  %v3924_v14 = vor.u32 %v4595_v13, %v3923_v27 }
 0x35e   : > { %v4824_v15 = vpop.eup %4823 }
 0x35f   : > { %v1654_v20 = vsel %vm1638_vm7, %v4824_v15, 0.0  ;;  %1932 = vmatpush.bf16.msra.mxu2 %v3924_v14 }
 0x360   : > { %v1702_v16 = vpop.xlane.xlu1 %1701  ;;  %1655 = vadd.xlane.f32.xlu0 %v1654_v20  ;;  %v3891_v20 = vld [vmem:[%s5263_s6 + $0xe0] sm:$0xf] }
 0x361   : > { %v1704_v17 = vsub.f32 %v1695_v63, %v1702_v16  ;;  %v4619_v16 = vld [vmem:[%s5263_s6 + $0xe4] sm:$0xf0] }
 0x363   : > { %v5635_v18 = vpop.eup %4825  ;;  %v1707_v19 = vmul.f32 1.442695, %v1704_v17 }
 0x364   : > { %v1709_v21 = vsel %vm1638_vm7, %v5635_v18, 0.0 }
 0x365   : > { %4827 = vpow2.f32 %v1707_v19  ;;  %1710 = vadd.xlane.f32.xlu1 %v1709_v21  ;;  %v4618_v19 = vld [vmem:[%s5263_s6 + $0xe4] sm:$0xf]  ;;  %v3893_v21 = vld [vmem:[%s5263_s6 + $0xe8] sm:$0xf0] }
 0x36b   : > { %v5639_v22 = vpop.eup %4827 }
 0x36c   : > { %v1712_v4 = vsel %vm1638_vm7, %v5639_v22, 0.0 }
 0x36d   : > { %1713 = vadd.xlane.f32.xlu2 %v1712_v4  ;;  %v3896_v4 = vor.u32 %v4618_v19, %v3893_v21 }
 0x36f   : > { %1834 = vmatpush.bf16.msra.mxu1 %v3896_v4  ;;  %v4873_v4 = vld [vmem:[%s6337_s11] sm:$0xff] }
 0x3cb   : > { %v1653_v33 = vpop.xlane.xlu2 %1652 }
 0x3cc   : > { %4829 = vrcp.f32 %v1653_v33  ;;  %v3888_v33 = vor.u32 %v4616_v31, %v3885_v32 }
 0x3ce   : > { %1835 = vmatpush.bf16.msra.mxu1 %v3888_v33 }
 0x3d2   : > { %v4830_v53 = vpop.eup %4829  ;;  %1836 = vmatpush.bf16.msra.mxu1 %v3880_v44 }
 0x3d3   : > { %v1656_v40 = vpop.xlane.xlu0 %1655  ;;  %v1659_v60 = vmul.f32 %v4830_v53, %v5630_v26  ;;  %v4610_v53 = vld [vmem:[%s5263_s6 + $0xa4] sm:$0xf] }
 0x3d4   : > { %4831 = vrcp.f32 %v1656_v40  ;;  %v4615_v40 = vld [vmem:[%s5263_s6 + $0xc4] sm:$0xf0]  ;;  %v3864_v56 = vor.u32 %v4610_v53, %v3861_v55  ;;  %v4195_v55 = vld [vmem:[%s5269_s16 + $0x1c0] sm:$0xf] }
 0x3d5   : > { %v3876_v42 = vor.u32 %v4615_v40, %v3875_v39 }
 0x3d6   : > { %1837 = vmatpush.bf16.msra.mxu1 %v3872_v50  ;;  %v4682_v50 = vld [vmem:[%s5269_s16 + $0x1e4] sm:$0xf] }
 0x3d7   : > { %v4216_v53 = vor.u32 %v4682_v50, %v4213_v51  ;;  %v4021_v50 = vld [vmem:[%s5269_s16 + $0x70] sm:$0xf0] }
 0x3d8   : > { %v1711_v63 = vpop.xlane.xlu1 %1710 }
 0x3d9   : > { %4833 = vrcp.f32 %v1711_v63  ;;  %v3843_v63 = vld [vmem:[%s5263_s6 + $0x80] sm:$0xf] }
 0x3da   : > { %v4832_v59 = vpop.eup %4831  ;;  %1838 = vmatpush.bf16.msra.mxu1 %v3864_v56  ;;  %v4680_v56 = vld [vmem:[%s5269_s16 + $0x1cc] sm:$0xf0] }
 0x3db   : > { %v1660_v61 = vmul.f32 %v4832_v59, %v4824_v15  ;;  %v3925_v15 = vld [vmem:[%s5263_s6 + $0x28] sm:$0xf0]  ;;  %v4608_v59 = vld [vmem:[%s5263_s6 + $0x94] sm:$0xf] }
 0x3dc   : > { %v3928_v17 = vor.u32 %v4594_v11, %v3925_v15 }
 0x3dd   : > { %v1661_v1 = vpack.c.bf16 %v1660_v61, %v1659_v60  ;;  %v3852_v60 = vor.u32 %v4609_v58, %v3851_v57  ;;  %v3853_v61 = vld [vmem:[%s5263_s6 + $0x98] sm:$0xf0]  ;;  %v4196_v58 = vor.u32 %v4680_v56, %v4195_v55  ;;  %v4003_v56 = vld [vmem:[%s5269_s16 + $0x40] sm:$0xf] }
 0x3de   : > { %1946 = vmatpush.bf16.msra.mxu3 %v3928_v17  ;;  %v3856_v62 = vor.u32 %v4608_v59, %v3853_v61  ;;  %v4646_v59 = vld [vmem:[%s5269_s16 + $0xc4] sm:$0xf] }
 0x3df   : > { %3839 = vmatmul.msk.bf16.vlgmr.msrb.gmra.mxu1 %vm1638_vm7, %v1661_v1  ;;  %v4834_v6 = vpop.eup %4833  ;;  %v4606_v1 = vld [vmem:[%s5263_s6 + $0x84] sm:$0xf] }
 0x3e0   : > { %v1714_v3 = vpop.xlane.xlu2 %1713  ;;  %v1717_v10 = vmul.f32 %v4834_v6, %v5635_v18  ;;  %v3892_v18 = vor.u32 %v4619_v16, %v3891_v20  ;;  %1839 = vmatpush.bf16.msra.mxu1 %v3856_v62  ;;  %v3845_v6 = vld [vmem:[%s5263_s6 + $0x88] sm:$0xf0]  ;;  %v1959_v20 = vld [vmem:[%s717_s0] sm:$0x3]  ;;  %v4678_v61 = vld [vmem:[%s5269_s16 + $0x1c4] sm:$0xf] }
 0x3e1   : > { %4835 = vrcp.f32 %v1714_v3  ;;  %v3844_v3 = vor.u32 %v4607_v0, %v3843_v63  ;;  %v1961_v19 = vperm.slane %v1959_v20, 0  ;;  %v4197_v63 = vld [vmem:[%s5269_s16 + $0x1d0] sm:$0xf0] }
 0x3e2   : > { %1820 = vmatpush.bf16.msra.mxu0 %v3892_v18  ;;  %1947 = vmatpush.bf16.msra.mxu3 %v3920_v28  ;;  %v4200_v0 = vor.u32 %v4678_v61, %v4197_v63  ;;  %v4630_v61 = vld [vmem:[%s5269_s16 + $0x44] sm:$0xf] }
 0x3e6   : > { %1821 = vmatpush.bf16.msra.mxu0 %v3884_v7  ;;  %1948 = vmatpush.bf16.msra.mxu3 %v3912_v38 }
 0x3e7   : > { %v4836_v9 = vpop.eup %4835 }
 0x3e8   : > { %v1718_v26 = vmul.f32 %v4836_v9, %v5639_v22  ;;  %v3915_v22 = vld [vmem:[%s5263_s6 + $0x10] sm:$0xf]  ;;  %v3848_v9 = vor.u32 %v4606_v1, %v3845_v6 }
 0x3e9   : > { %v3916_v25 = vor.u32 %v4593_v23, %v3915_v22  ;;  %v1962_v22 = vperm.slane %v1959_v20, 1 }
 0x3ea   : > { %v1719_v12 = vpack.c.bf16 %v1718_v26, %v1717_v10  ;;  %1822 = vmatpush.bf16.msra.mxu0 %v3876_v42  ;;  %1840 = vmatpush.bf16.msra.mxu1 %v3848_v9  ;;  %v4652_v42 = vld [vmem:[%s5269_s16 + $0xec] sm:$0xf0] }
 0x3eb   : > { %1933 = vmatpush.bf16.msra.mxu2 %v3916_v25  ;;  %v4084_v44 = vor.u32 %v4652_v42, %v4083_v41  ;;  %v4670_v41 = vld [vmem:[%s5269_s16 + $0x184] sm:$0xf]  ;;  %v4165_v42 = vld [vmem:[%s5269_s16 + $0x190] sm:$0xf0] }
 0x3ec   : > { %3840 = vmatmul.msk.bf16.vlgmr.msrb.gmra.mxu3 %vm1638_vm7, %v1719_v12 }
 0x3ed   : > { %2477 = vmatpush.bf16.msrb.mxu3 %v4216_v53  ;;  %v4666_v53 = vld [vmem:[%s5269_s16 + $0x164] sm:$0xf] }
 0x3ee   : > { %1823 = vmatpush.bf16.msra.mxu0 %v3868_v48  ;;  %v4212_v48 = vor.u32 %v4684_v45, %v4211_v43  ;;  %v4168_v43 = vor.u32 %v4670_v41, %v4165_v42  ;;  %v4636_v45 = vld [vmem:[%s5269_s16 + $0x6c] sm:$0xf0] }
 0x3ef   : > { %1934 = vmatpush.bf16.msra.mxu2 %v3908_v36  ;;  %v4876_v36 = vld [vmem:[%s6337_s11 + $0x18] sm:$0xff] }
 0x3f0   : > { %2449 = vmatpush.bf16.msrb.mxu1 %v4212_v48  ;;  %v4668_v48 = vld [vmem:[%s5269_s16 + $0x16c] sm:$0xf0] }
 0x3f1   : > { %2478 = vmatpush.bf16.msrb.mxu3 %v4200_v0  ;;  %v4148_v51 = vor.u32 %v4668_v48, %v4147_v46  ;;  %v4075_v48 = vld [vmem:[%s5269_s16 + $0xc8] sm:$0xf] }
 0x3f2   : > { %1824 = vmatpush.bf16.msra.mxu0 %v3860_v54  ;;  %v4648_v54 = vld [vmem:[%s5269_s16 + $0xcc] sm:$0xf0] }
 0x3f3   : > { %2463 = vmatpush.bf16.msrb.mxu2 %v4088_v49  ;;  %v4068_v57 = vor.u32 %v4648_v54, %v4067_v52  ;;  %v4634_v49 = vld [vmem:[%s5269_s16 + $0x64] sm:$0xf]  ;;  %v4149_v54 = vld [vmem:[%s5269_s16 + $0x170] sm:$0xf0] }
 0x3f4   : > { %2450 = vmatpush.bf16.msrb.mxu1 %v4196_v58  ;;  %v4024_v52 = vor.u32 %v4634_v49, %v4021_v50  ;;  %v4152_v55 = vor.u32 %v4666_v53, %v4149_v54  ;;  %v4131_v58 = vld [vmem:[%s5269_s16 + $0x140] sm:$0xf]  ;;  %v4649_v49 = vld [vmem:[%s5269_s16 + $0xd4] sm:$0xf0]  ;;  %v4647_v54 = vld [vmem:[%s5269_s16 + $0xcc] sm:$0xf] }
 0x3f5   : > { %v4681_v53 = vld [vmem:[%s5269_s16 + $0x1d4] sm:$0xf0] }
 0x3f6   : > { %1825 = vmatpush.bf16.msra.mxu0 %v3852_v60  ;;  %v4069_v60 = vld [vmem:[%s5269_s16 + $0xd0] sm:$0xf0] }
 0x3f7   : > { %v4072_v62 = vor.u32 %v4646_v59, %v4069_v60  ;;  %v4664_v60 = vld [vmem:[%s5269_s16 + $0x14c] sm:$0xf0] }
 0x3f8   : > { %v4132_v63 = vor.u32 %v4664_v60, %v4131_v58  ;;  %v4205_v58 = vld [vmem:[%s5269_s16 + $0x1d8] sm:$0xf0] }
 0x3f9   : > { %2464 = vmatpush.bf16.msrb.mxu2 %v4072_v62  ;;  %v4005_v62 = vld [vmem:[%s5269_s16 + $0x50] sm:$0xf0] }
 0x3fa   : > { %1826 = vmatpush.bf16.msra.mxu0 %v3844_v3  ;;  %v4008_v0 = vor.u32 %v4630_v61, %v4005_v62  ;;  %v4059_v61 = vld [vmem:[%s5269_s16 + $0xa8] sm:$0xf]  ;;  %v4645_v62 = vld [vmem:[%s5269_s16 + $0xb4] sm:$0xf0] }
 0x3fe   : > { %2435 = vmatpush.bf16.msrb.mxu0 %v4084_v44  ;;  %v4019_v44 = vld [vmem:[%s5269_s16 + $0x60] sm:$0xf] }
 0x3ff   : > { %v4020_v47 = vor.u32 %v4636_v45, %v4019_v44  ;;  %v4093_v44 = vld [vmem:[%s5269_s16 + $0xf8] sm:$0xf0]  ;;  %v4683_v45 = vld [vmem:[%s5269_s16 + $0x1ec] sm:$0xf] }
 0x402   : > { %2436 = vmatpush.bf16.msrb.mxu0 %v4068_v57  ;;  %v4632_v57 = vld [vmem:[%s5269_s16 + $0x4c] sm:$0xf0] }
 0x403   : > { %v4004_v59 = vor.u32 %v4632_v57, %v4003_v56  ;;  %v4077_v56 = vld [vmem:[%s5269_s16 + $0xd8] sm:$0xf0]  ;;  %v4679_v57 = vld [vmem:[%s5269_s16 + $0x1cc] sm:$0xf] }
 0x404   : > { %v4208_v60 = vor.u32 %v4679_v57, %v4205_v58  ;;  %v4141_v57 = vld [vmem:[%s5269_s16 + $0x158] sm:$0xf0]  ;;  %v3995_v58 = vld [vmem:[%s5269_s16 + $0x28] sm:$0xf] }
 0x45c   : > { %v1675_v10 = vpop.f32.mrf.mxu1 }
 0x464   : > { %v1677_v26 = vpop.f32.mrf.mxu1 }
 0x465   : > { %v1680_v12 = vpack.c.bf16 %v1677_v26, %v1675_v10 }
 0x467   : > { %1935 = vmatmul.bf16.vlgmr.msra.gmra.mxu2 %v1680_v12  ;;  %1949 = vmatmul.bf16.vlgmr.msra.gmra.mxu3 %v1680_v12 }
 0x46f   : > { %v1733_v27 = vpop.f32.mrf.mxu3 }
 0x477   : > { %v1735_v13 = vpop.f32.mrf.mxu3 }
 0x478   : > { %v1738_v11 = vpack.c.bf16 %v1735_v13, %v1733_v27 }
 0x47a   : > { %1827 = vmatmul.bf16.vlgmr.msra.gmra.mxu0 %v1738_v11  ;;  %1841 = vmatmul.bf16.vlgmr.msra.gmra.mxu1 %v1738_v11 }
 0x4ea   : > { %v1936_v14 = vpop.f32.mrf.mxu2  ;;  %v1950_v15 = vpop.f32.mrf.mxu3 }
 0x4f2   : > { %v1938_v29 = vpop.f32.mrf.mxu2  ;;  %v1952_v30 = vpop.f32.mrf.mxu3 }
 0x4f7   : > { %v1828_v16 = vpop.f32.mrf.mxu0  ;;  %v1842_v17 = vpop.f32.mrf.mxu1 }
 0x4f8   : > { %v1937_v18 = vadd.f32 %v1936_v14, %v1828_v16  ;;  %v1951_v21 = vadd.f32 %v1950_v15, %v1842_v17  ;;  %v4051_v17 = vld [vmem:[%s5269_s16 + $0xa0] sm:$0xf] }
 0x4fa   : > { %v1955_v23 = vadd.f32 %v4873_v4, %v1937_v18  ;;  %v1956_v24 = vadd.f32 %v4874_v5, %v1951_v21  ;;  %v4644_v18 = vld [vmem:[%s5269_s16 + $0xac] sm:$0xf0]  ;;  %v4642_v4 = vld [vmem:[%s5269_s16 + $0xa4] sm:$0xf] }
 0x4fb   : > { %v4052_v21 = vor.u32 %v4644_v18, %v4051_v17 }
 0x4fc   : > { %v5723_v25 = vadd.f32 %v1961_v19, %v1955_v23  ;;  %v5725_v28 = vadd.f32 %v1962_v22, %v1956_v24  ;;  %v4053_v23 = vld [vmem:[%s5269_s16 + $0xb0] sm:$0xf0] }
 0x4fd   : > { %v4056_v24 = vor.u32 %v4642_v4, %v4053_v23  ;;  %2437 = vmatpush.bf16.msrb.mxu0 %v4052_v21  ;;  %v4117_v21 = vld [vmem:[%s5269_s16 + $0x130] sm:$0xf0]  ;;  %v3971_v4 = vld [vmem:[%s5269_s16] sm:$0xf]  ;;  %v4624_v23 = vld [vmem:[%s5269_s16 + $0xc] sm:$0xf0] }
 0x4fe   : > { %v1971_v31 = vadd.f32 %v5725_v28, %v5723_v25 }
 0x4ff   : > { %v1830_v7 = vpop.f32.mrf.mxu0  ;;  %v1844_v32 = vpop.f32.mrf.mxu1  ;;  %2465 = vmatpush.bf16.msrb.mxu2 %v4056_v24  ;;  %v3972_v24 = vor.u32 %v4624_v23, %v3971_v4  ;;  %v4045_v4 = vld [vmem:[%s5269_s16 + $0x98] sm:$0xf0]  ;;  %v4671_v23 = vld [vmem:[%s5269_s16 + $0x18c] sm:$0xf] }
 0x500   : > { %v1939_v33 = vadd.f32 %v1938_v29, %v1830_v7  ;;  %v1953_v8 = vadd.f32 %v1952_v30, %v1844_v32  ;;  %1972 = vadd.xlane.f32.xlu0 %v1971_v31  ;;  %v4674_v29 = vld [vmem:[%s5269_s16 + $0x1a4] sm:$0xf]  ;;  %v4181_v30 = vld [vmem:[%s5269_s16 + $0x1b0] sm:$0xf0]  ;;  %v4035_v7 = vld [vmem:[%s5269_s16 + $0x80] sm:$0xf] }
 0x501   : > { %v4184_v31 = vor.u32 %v4674_v29, %v4181_v30  ;;  %v4640_v32 = vld [vmem:[%s5269_s16 + $0x8c] sm:$0xf0]  ;;  %v4622_v30 = vld [vmem:[%s5269_s16 + $0x4] sm:$0xf] }
 0x502   : > { %v1957_v35 = vadd.f32 %v4875_v34, %v1939_v33  ;;  %v1958_v37 = vadd.f32 %v4876_v36, %v1953_v8  ;;  %v4163_v33 = vld [vmem:[%s5269_s16 + $0x180] sm:$0xf]  ;;  %v4036_v8 = vor.u32 %v4640_v32, %v4035_v7  ;;  %v4672_v34 = vld [vmem:[%s5269_s16 + $0x18c] sm:$0xf0]  ;;  %v4037_v36 = vld [vmem:[%s5269_s16 + $0x90] sm:$0xf0] }
 0x503   : > { %2479 = vmatpush.bf16.msrb.mxu3 %v4184_v31  ;;  %v4656_v29 = vld [vmem:[%s5269_s16 + $0x10c] sm:$0xf0]  ;;  %v3973_v31 = vld [vmem:[%s5269_s16 + $0x10] sm:$0xf0] }
 0x504   : > { %v5735_v38 = vadd.f32 %v1961_v19, %v1957_v35  ;;  %v5737_v39 = vadd.f32 %v1962_v22, %v1958_v37  ;;  %v4179_v19 = vld [vmem:[%s5269_s16 + $0x1a0] sm:$0xf]  ;;  %v4676_v22 = vld [vmem:[%s5269_s16 + $0x1ac] sm:$0xf0]  ;;  %v4638_v35 = vld [vmem:[%s5269_s16 + $0x84] sm:$0xf]  ;;  %v4164_v37 = vor.u32 %v4672_v34, %v4163_v33  ;;  %2438 = vmatpush.bf16.msrb.mxu0 %v4036_v8  ;;  %v3976_v32 = vor.u32 %v4622_v30, %v3973_v31 }
 0x505   : > { %v4180_v5 = vor.u32 %v4676_v22, %v4179_v19  ;;  %v4658_v19 = vld [vmem:[%s5269_s16 + $0x124] sm:$0xf]  ;;  %v4101_v8 = vld [vmem:[%s5269_s16 + $0x110] sm:$0xf0]  ;;  %v4091_v34 = vld [vmem:[%s5269_s16 + $0xe8] sm:$0xf] }
 0x506   : > { %v1974_v40 = vadd.f32 %v5737_v39, %v5735_v38  ;;  %v4120_v22 = vor.u32 %v4658_v19, %v4117_v21  ;;  %v4654_v33 = vld [vmem:[%s5269_s16 + $0x104] sm:$0xf]  ;;  %v4171_v19 = vld [vmem:[%s5269_s16 + $0x188] sm:$0xf]  ;;  %v4673_v21 = vld [vmem:[%s5269_s16 + $0x194] sm:$0xf0] }
 0x507   : > { %2451 = vmatpush.bf16.msrb.mxu1 %v4180_v5  ;;  %2480 = vmatpush.bf16.msrb.mxu3 %v4168_v43  ;;  %v4099_v5 = vld [vmem:[%s5269_s16 + $0x100] sm:$0xf]  ;;  %v4651_v43 = vld [vmem:[%s5269_s16 + $0xec] sm:$0xf]  ;;  %v4173_v30 = vld [vmem:[%s5269_s16 + $0x198] sm:$0xf0] }
 0x508   : > { %1975 = vadd.xlane.f32.xlu1 %v1974_v40  ;;  %v4040_v40 = vor.u32 %v4638_v35, %v4037_v36  ;;  %2439 = vmatpush.bf16.msrb.mxu0 %v4020_v47  ;;  %v4100_v7 = vor.u32 %v4656_v29, %v4099_v5  ;;  %v4104_v35 = vor.u32 %v4654_v33, %v4101_v8  ;;  %v4653_v36 = vld [vmem:[%s5269_s16 + $0xf4] sm:$0xf0]  ;;  %v4221_v47 = vld [vmem:[%s5269_s16 + $0x1f8] sm:$0xf0]  ;;  %v4155_v8 = vld [vmem:[%s5269_s16 + $0x168] sm:$0xf] }
 0x509   : > { %v4092_v41 = vor.u32 %v4653_v36, %v4091_v34  ;;  %v4096_v46 = vor.u32 %v4651_v43, %v4093_v44  ;;  %v4224_v50 = vor.u32 %v4683_v45, %v4221_v47  ;;  %v4172_v29 = vor.u32 %v4673_v21, %v4171_v19  ;;  %v4637_v33 = vld [vmem:[%s5269_s16 + $0x74] sm:$0xf0]  ;;  %v4635_v36 = vld [vmem:[%s5269_s16 + $0x6c] sm:$0xf]  ;;  %v4157_v44 = vld [vmem:[%s5269_s16 + $0x178] sm:$0xf0] }
 0x50a   : > { %2466 = vmatpush.bf16.msrb.mxu2 %v4040_v40  ;;  %v4685_v40 = vld [vmem:[%s5269_s16 + $0x1f4] sm:$0xf0]  ;;  %v4667_v43 = vld [vmem:[%s5269_s16 + $0x16c] sm:$0xf]  ;;  %v4011_v45 = vld [vmem:[%s5269_s16 + $0x48] sm:$0xf] }
 0x50b   : > { %2452 = vmatpush.bf16.msrb.mxu1 %v4164_v37  ;;  %2481 = vmatpush.bf16.msrb.mxu3 %v4152_v55  ;;  %v4219_v37 = vld [vmem:[%s5269_s16 + $0x1e8] sm:$0xf]  ;;  %v4160_v47 = vor.u32 %v4667_v43, %v4157_v44  ;;  %v4657_v19 = vld [vmem:[%s5269_s16 + $0x114] sm:$0xf0] }
 0x50c   : > { %2440 = vmatpush.bf16.msrb.mxu0 %v4004_v59  ;;  %v4220_v42 = vor.u32 %v4685_v40, %v4219_v37  ;;  %v4080_v59 = vor.u32 %v4647_v54, %v4077_v56  ;;  %v4029_v37 = vld [vmem:[%s5269_s16 + $0x78] sm:$0xf0] }
 0x50e   : > { %2467 = vmatpush.bf16.msrb.mxu2 %v4024_v52  ;;  %v4203_v52 = vld [vmem:[%s5269_s16 + $0x1c8] sm:$0xf] }
 0x50f   : > { %2453 = vmatpush.bf16.msrb.mxu1 %v4148_v51  ;;  %v4076_v51 = vor.u32 %v4649_v49, %v4075_v48  ;;  %v4204_v55 = vor.u32 %v4681_v53, %v4203_v52  ;;  %v4633_v48 = vld [vmem:[%s5269_s16 + $0x54] sm:$0xf0]  ;;  %v4139_v49 = vld [vmem:[%s5269_s16 + $0x148] sm:$0xf]  ;;  %v4013_v52 = vld [vmem:[%s5269_s16 + $0x58] sm:$0xf0] }
 0x510   : > { %v4663_v53 = vld [vmem:[%s5269_s16 + $0x14c] sm:$0xf] }
 0x512   : > { %2468 = vmatpush.bf16.msrb.mxu2 %v4008_v0  ;;  %v4060_v0 = vor.u32 %v4645_v62, %v4059_v61  ;;  %v4629_v61 = vld [vmem:[%s5269_s16 + $0x34] sm:$0xf0]  ;;  %v4123_v62 = vld [vmem:[%s5269_s16 + $0x128] sm:$0xf] }
 0x513   : > { %2454 = vmatpush.bf16.msrb.mxu1 %v4132_v63  ;;  %v4187_v63 = vld [vmem:[%s5269_s16 + $0x1a8] sm:$0xf] }
 0x573   : > { %v1973_v1 = vpop.xlane.xlu0 %1972 }
 0x574   : > { %v1977_v3 = vmul.f32 %v1973_v1, %v5406_v2  ;;  %v4662_v1 = vld [vmem:[%s5269_s16 + $0x144] sm:$0xf] }
 0x576   : > { %v5759_v6 = vsub.f32 %v5723_v25, %v1977_v3  ;;  %v5762_v9 = vsub.f32 %v5725_v28, %v1977_v3  ;;  %v4133_v3 = vld [vmem:[%s5269_s16 + $0x150] sm:$0xf0] }
 0x578   : > { %v1983_v10 = vmul.f32 %v5759_v6, %v5759_v6  ;;  %v1984_v26 = vmul.f32 %v5762_v9, %v5762_v9 }
 0x57a   : > { %v1987_v12 = vadd.f32 %v1984_v26, %v1983_v10  ;;  %v4136_v10 = vor.u32 %v4662_v1, %v4133_v3  ;;  %v3987_v26 = vld [vmem:[%s5269_s16 + $0x20] sm:$0xf]  ;;  %v4677_v1 = vld [vmem:[%s5269_s16 + $0x1b4] sm:$0xf0]  ;;  %v4643_v3 = vld [vmem:[%s5269_s16 + $0xac] sm:$0xf] }
 0x57b   : > { %v1976_v27 = vpop.xlane.xlu1 %1975 }
 0x57c   : > { %v1978_v13 = vmul.f32 %v1976_v27, %v5406_v2  ;;  %1988 = vadd.xlane.f32.xlu2 %v1987_v12  ;;  %v4628_v12 = vld [vmem:[%s5269_s16 + $0x2c] sm:$0xf0]  ;;  %v4115_v27 = vld [vmem:[%s5269_s16 + $0x120] sm:$0xf]  ;;  %2482 = vmatpush.bf16.msrb.mxu3 %v4136_v10  ;;  %v4061_v10 = vld [vmem:[%s5269_s16 + $0xb8] sm:$0xf0] }
 0x57e   : > { %v5770_v11 = vsub.f32 %v5735_v38, %v1978_v13  ;;  %v5773_v14 = vsub.f32 %v5737_v39, %v1978_v13  ;;  %v3988_v13 = vor.u32 %v4628_v12, %v3987_v26  ;;  %v4188_v12 = vor.u32 %v4677_v1, %v4187_v63  ;;  %v4661_v63 = vld [vmem:[%s5269_s16 + $0x134] sm:$0xf0]  ;;  %v4627_v1 = vld [vmem:[%s5269_s16 + $0x2c] sm:$0xf] }
 0x580   : > { %v1985_v15 = vmul.f32 %v5770_v11, %v5770_v11  ;;  %v1986_v20 = vmul.f32 %v5773_v14, %v5773_v14  ;;  %2441 = vmatpush.bf16.msrb.mxu0 %v3988_v13  ;;  %2483 = vmatpush.bf16.msrb.mxu3 %v4120_v22  ;;  %v4675_v13 = vld [vmem:[%s5269_s16 + $0x1ac] sm:$0xf] }
 0x581   : > { %v4639_v22 = vld [vmem:[%s5269_s16 + $0x8c] sm:$0xf] }
 0x582   : > { %v1990_v16 = vadd.f32 %v1986_v20, %v1985_v15  ;;  %v4660_v15 = vld [vmem:[%s5269_s16 + $0x12c] sm:$0xf0]  ;;  %v4626_v20 = vld [vmem:[%s5269_s16 + $0x24] sm:$0xf]  ;;  %v4048_v31 = vor.u32 %v4639_v22, %v4045_v4  ;;  %v4623_v22 = vld [vmem:[%s5269_s16 + $0xc] sm:$0xf] }
 0x583   : > { %v4116_v17 = vor.u32 %v4660_v15, %v4115_v27  ;;  %v4064_v27 = vor.u32 %v4643_v3, %v4061_v10  ;;  %v4189_v15 = vld [vmem:[%s5269_s16 + $0x1b8] sm:$0xf0] }
 0x584   : > { %1991 = vadd.xlane.f32.xlu0 %v1990_v16  ;;  %v3989_v16 = vld [vmem:[%s5269_s16 + $0x30] sm:$0xf0]  ;;  %2442 = vmatpush.bf16.msrb.mxu0 %v3972_v24  ;;  %v3997_v3 = vld [vmem:[%s5269_s16 + $0x38] sm:$0xf0] }
 0x585   : > { %v3992_v18 = vor.u32 %v4626_v20, %v3989_v16  ;;  %2455 = vmatpush.bf16.msrb.mxu1 %v4116_v17  ;;  %2484 = vmatpush.bf16.msrb.mxu3 %v4104_v35  ;;  %v4043_v20 = vld [vmem:[%s5269_s16 + $0x88] sm:$0xf]  ;;  %v4192_v17 = vor.u32 %v4675_v13, %v4189_v15  ;;  %v4669_v35 = vld [vmem:[%s5269_s16 + $0x174] sm:$0xf0]  ;;  %v4124_v13 = vor.u32 %v4661_v63, %v4123_v62  ;;  %v3981_v4 = vld [vmem:[%s5269_s16 + $0x18] sm:$0xf0] }
 0x586   : > { %v3979_v15 = vld [vmem:[%s5269_s16 + $0x8] sm:$0xf]  ;;  %v4355_v63 = vld [vmem:[%s5271_s26 + $0xf0] sm:$0xf] }
 0x587   : > { %2469 = vmatpush.bf16.msrb.mxu2 %v3992_v18  ;;  %v4641_v18 = vld [vmem:[%s5269_s16 + $0x94] sm:$0xf0] }
 0x588   : > { %2491 = vmatpush.bf16.msra.mxu0 %v4092_v41  ;;  %v4044_v24 = vor.u32 %v4641_v18, %v4043_v20  ;;  %v4156_v41 = vor.u32 %v4669_v35, %v4155_v8  ;;  %v4625_v20 = vld [vmem:[%s5269_s16 + $0x14] sm:$0xf0]  ;;  %v4107_v18 = vld [vmem:[%s5269_s16 + $0x108] sm:$0xf]  ;;  %v3984_v8 = vor.u32 %v4623_v22, %v3981_v4  ;;  %v4419_v4 = vld [vmem:[%s5271_s26 + $0x170] sm:$0xf] }
 0x589   : > { %2456 = vmatpush.bf16.msrb.mxu1 %v4100_v7  ;;  %2533 = vmatpush.bf16.msra.mxu3 %v4224_v50  ;;  %v4176_v7 = vor.u32 %v4671_v23, %v4173_v30  ;;  %v4665_v50 = vld [vmem:[%s5269_s16 + $0x154] sm:$0xf0] }
 0x58a   : > { %v4140_v56 = vor.u32 %v4665_v50, %v4139_v49  ;;  %v4693_v22 = vld [vmem:[%s5271_s26 + $0x34] sm:$0xf0] }
 0x58b   : > { %2470 = vmatpush.bf16.msrb.mxu2 %v3976_v32  ;;  %v4027_v32 = vld [vmem:[%s5269_s16 + $0x68] sm:$0xf] }
 0x58c   : > { %2492 = vmatpush.bf16.msra.mxu0 %v4076_v51  ;;  %v4028_v34 = vor.u32 %v4637_v33, %v4027_v32  ;;  %v4631_v51 = vld [vmem:[%s5269_s16 + $0x4c] sm:$0xf] }
 0x58d   : > { %2505 = vmatpush.bf16.msra.mxu1 %v4220_v42  ;;  %2534 = vmatpush.bf16.msra.mxu3 %v4208_v60  ;;  %v4032_v42 = vor.u32 %v4635_v36, %v4029_v37  ;;  %v4016_v60 = vor.u32 %v4631_v51, %v4013_v52 }
 0x58f   : > { %2519 = vmatpush.bf16.msra.mxu2 %v4096_v46 }
 0x590   : > { %2493 = vmatpush.bf16.msra.mxu0 %v4060_v0  ;;  %v4144_v0 = vor.u32 %v4663_v53, %v4141_v57 }
 0x591   : > { %2506 = vmatpush.bf16.msra.mxu1 %v4204_v55  ;;  %2535 = vmatpush.bf16.msra.mxu3 %v4192_v17  ;;  %v4000_v17 = vor.u32 %v4627_v1, %v3997_v3  ;;  %v4275_v3 = vld [vmem:[%s5271_s26 + $0x50] sm:$0xf] }
 0x593   : > { %2520 = vmatpush.bf16.msra.mxu2 %v4080_v59 }
 0x594   : > { %2494 = vmatpush.bf16.msra.mxu0 %v4044_v24  ;;  %v4655_v24 = vld [vmem:[%s5269_s16 + $0x10c] sm:$0xf] }
 0x595   : > { %2507 = vmatpush.bf16.msra.mxu1 %v4188_v12  ;;  %2536 = vmatpush.bf16.msra.mxu3 %v4176_v7  ;;  %v4125_v12 = vld [vmem:[%s5269_s16 + $0x138] sm:$0xf0]  ;;  %v4108_v7 = vor.u32 %v4657_v19, %v4107_v18  ;;  %v4713_v18 = vld [vmem:[%s5271_s26 + $0xd4] sm:$0xf0] }
 0x597   : > { %2521 = vmatpush.bf16.msra.mxu2 %v4064_v27  ;;  %v3996_v27 = vor.u32 %v4629_v61, %v3995_v58  ;;  %v4699_v61 = vld [vmem:[%s5271_s26 + $0x64] sm:$0xf0] }
 0x598   : > { %2495 = vmatpush.bf16.msra.mxu0 %v4028_v34 }
 0x599   : > { %2508 = vmatpush.bf16.msra.mxu1 %v4172_v29  ;;  %2537 = vmatpush.bf16.msra.mxu3 %v4160_v47  ;;  %v4109_v29 = vld [vmem:[%s5269_s16 + $0x118] sm:$0xf0] }
 0x59a   : > { %v4112_v34 = vor.u32 %v4655_v24, %v4109_v29  ;;  %v4733_v24 = vld [vmem:[%s5271_s26 + $0x174] sm:$0xf0] }
 0x59b   : > { %2522 = vmatpush.bf16.msra.mxu2 %v4048_v31  ;;  %v3980_v31 = vor.u32 %v4625_v20, %v3979_v15  ;;  %v4267_v15 = vld [vmem:[%s5271_s26 + $0x40] sm:$0xf]  ;;  %v4695_v20 = vld [vmem:[%s5271_s26 + $0x44] sm:$0xf0]  ;;  %v4420_v29 = vor.u32 %v4733_v24, %v4419_v4  ;;  %v4725_v24 = vld [vmem:[%s5271_s26 + $0x134] sm:$0xf0] }
 0x59d   : > { %2509 = vmatpush.bf16.msra.mxu1 %v4156_v41  ;;  %2538 = vmatpush.bf16.msra.mxu3 %v4144_v0  ;;  %v4717_v0 = vld [vmem:[%s5271_s26 + $0xf4] sm:$0xf0] }
 0x59e   : > { %v4356_v1 = vor.u32 %v4717_v0, %v4355_v63  ;;  %v4727_v63 = vld [vmem:[%s5271_s26 + $0x144] sm:$0xf0]  ;;  %v4700_v0 = vld [vmem:[%s5271_s26 + $0x74] sm:$0xf] }
 0x59f   : > { %2523 = vmatpush.bf16.msra.mxu2 %v4032_v42 }
 0x5a1   : > { %2510 = vmatpush.bf16.msra.mxu1 %v4140_v56 }
 0x5a3   : > { %2524 = vmatpush.bf16.msra.mxu2 %v4016_v60  ;;  %v4283_v60 = vld [vmem:[%s5271_s26 + $0x60] sm:$0xf] }
 0x5a4   : > { %v4284_v62 = vor.u32 %v4699_v61, %v4283_v60  ;;  %v4687_v60 = vld [vmem:[%s5271_s26 + $0x4] sm:$0xf0] }
 0x5a5   : > { %2511 = vmatpush.bf16.msra.mxu1 %v4124_v13 }
 0x5a7   : > { %2525 = vmatpush.bf16.msra.mxu2 %v4000_v17  ;;  %v4339_v17 = vld [vmem:[%s5271_s26 + $0xd0] sm:$0xf] }
 0x5a8   : > { %v4340_v19 = vor.u32 %v4713_v18, %v4339_v17  ;;  %v4705_v17 = vld [vmem:[%s5271_s26 + $0x94] sm:$0xf0]  ;;  %v4467_v18 = vld [vmem:[%s5271_s26 + $0x1d0] sm:$0xf] }
 0x5a9   : > { %2512 = vmatpush.bf16.msra.mxu1 %v4108_v7  ;;  %v5938_v7 = vld [vmem:[%s5313_s5] sm:$0xf] }
 0x5ab   : > { %2526 = vmatpush.bf16.msra.mxu2 %v3984_v8  ;;  %v4691_v8 = vld [vmem:[%s5271_s26 + $0x24] sm:$0xf0] }
 0x5ef   : > { %v1989_v26 = vpop.xlane.xlu2 %1988 }
 0x5f0   : > { %v1993_v16 = vmul.f32 %v1989_v26, %v5406_v2  ;;  %v4659_v26 = vld [vmem:[%s5269_s16 + $0x12c] sm:$0xf] }
 0x5f1   : > { %v4128_v21 = vor.u32 %v4659_v26, %v4125_v12  ;;  %v4347_v12 = vld [vmem:[%s5271_s26 + $0xe0] sm:$0xf] }
 0x5f2   : > { %v5859_v5 = vadd.f32 1e-05, %v1993_v16 }
 0x5f3   : > { %2539 = vmatpush.bf16.msra.mxu3 %v4128_v21  ;;  %v4259_v21 = vld [vmem:[%s5271_s26 + $0x30] sm:$0xf] }
 0x5f4   : > { %4837 = vrsqrt.f32 %v5859_v5  ;;  %vm2003_vm9 = vweird.f32 %v5859_v5 }
 0x5f7   : > { %v1992_v40 = vpop.xlane.xlu0 %1991  ;;  %2540 = vmatpush.bf16.msra.mxu3 %v4112_v34  ;;  %v4411_v34 = vld [vmem:[%s5271_s26 + $0x160] sm:$0xf] }
 0x5f8   : > { %v1994_v46 = vmul.f32 %v1992_v40, %v5406_v2  ;;  %v4012_v2 = vor.u32 %v4633_v48, %v4011_v45  ;;  %v1969_v40 = vld [vmem:[%s721_s4] sm:$0x3] }
 0x5f9   : > { %v2022_v44 = vperm.slane %v1969_v40, 0  ;;  %v2023_v45 = vperm.slane %v1969_v40, 1  ;;  %v2107_v40 = vperm.slane %v5938_v7, 0 }
 0x5fa   : > { %v4838_v54 = vpop.eup %4837  ;;  %v5879_v55 = vadd.f32 1e-05, %v1994_v46  ;;  %2496 = vmatpush.bf16.msra.mxu0 %v4012_v2 }
 0x5fb   : > { %v1998_v59 = vmul.f32 %v4838_v54, %v5859_v5  ;;  %vm2004_vm8 = vweird.f32 %v4838_v54  ;;  %v1970_v5 = vld [vmem:[%s725_s20] sm:$0x3] }
 0x5fc   : > { %4839 = vrsqrt.f32 %v5879_v55  ;;  %vm2005_vm10 = vmor %vm2003_vm9, %vm2004_vm8  ;;  %vm2013_vm12 = vweird.f32 %v5879_v55  ;;  %v2031_v48 = vperm.slane %v1970_v5, 0  ;;  %v2032_v49 = vperm.slane %v1970_v5, 1 }
 0x5fd   : > { %v1999_v10 = vmul.f32 %v4838_v54, %v1998_v59 }
 0x5fe   : > { %2497 = vmatpush.bf16.msra.mxu0 %v3996_v27  ;;  %v4715_v27 = vld [vmem:[%s5271_s26 + $0xe4] sm:$0xf0] }
 0x5ff   : > { %v2000_v16 = vmul.f32 0.5, %v1999_v10  ;;  %v4697_v10 = vld [vmem:[%s5271_s26 + $0x54] sm:$0xf0]  ;;  %v4348_v13 = vor.u32 %v4715_v27, %v4347_v12  ;;  %v4293_v12 = vld [vmem:[%s5271_s26 + $0x78] sm:$0xf0] }
 0x600   : > { %v4276_v26 = vor.u32 %v4697_v10, %v4275_v3  ;;  %v4307_v27 = vld [vmem:[%s5271_s26 + $0x90] sm:$0xf] }
 0x601   : > { %v2001_v23 = vsub.f32 1.5, %v2000_v16  ;;  %v4268_v16 = vor.u32 %v4695_v20, %v4267_v15 }
 0x602   : > { %v4840_v30 = vpop.eup %4839  ;;  %2498 = vmatpush.bf16.msra.mxu0 %v3980_v31  ;;  %v4711_v31 = vld [vmem:[%s5271_s26 + $0xc4] sm:$0xf0] }
 0x603   : > { %v2002_v32 = vmul.f32 %v4838_v54, %v2001_v23  ;;  %v2008_v33 = vmul.f32 %v4840_v30, %v5879_v55  ;;  %vm2014_vm11 = vweird.f32 %v4840_v30  ;;  %v4260_v23 = vor.u32 %v4693_v22, %v4259_v21 }
 0x604   : > { %vm2015_vm13 = vmor %vm2013_vm12, %vm2014_vm11  ;;  %v4308_v22 = vor.u32 %v4705_v17, %v4307_v27 }
 0x605   : > { %v2009_v35 = vmul.f32 %v4840_v30, %v2008_v33  ;;  %v2006_v36 = vsel %vm2005_vm10, %v4838_v54, %v2002_v32  ;;  %v4251_v33 = vld [vmem:[%s5271_s26 + $0x20] sm:$0xf] }
 0x606   : > { %v2017_v42 = vmul.f32 %v2006_v36, %v5759_v6  ;;  %v2018_v43 = vmul.f32 %v2006_v36, %v5762_v9  ;;  %v4731_v36 = vld [vmem:[%s5271_s26 + $0x164] sm:$0xf0] }
 0x607   : > { %v2010_v37 = vmul.f32 0.5, %v2009_v35  ;;  %v4252_v35 = vor.u32 %v4691_v8, %v4251_v33  ;;  %v4285_v33 = vld [vmem:[%s5271_s26 + $0x68] sm:$0xf0] }
 0x608   : > { %v2026_v51 = vmul.f32 %v2022_v44, %v2017_v42  ;;  %v2027_v9 = vmul.f32 %v2023_v45, %v2018_v43  ;;  %v4709_v42 = vld [vmem:[%s5271_s26 + $0xb4] sm:$0xf0]  ;;  %v4483_v43 = vld [vmem:[%s5271_s26 + $0x1f0] sm:$0xf] }
 0x609   : > { %v2011_v41 = vsub.f32 1.5, %v2010_v37  ;;  %v4412_v37 = vor.u32 %v4731_v36, %v4411_v34  ;;  %v4703_v36 = vld [vmem:[%s5271_s26 + $0x84] sm:$0xf0] }
 0x60a   : > { %v2035_v54 = vadd.f32 %v2031_v48, %v2026_v51  ;;  %v2036_v56 = vadd.f32 %v2032_v49, %v2027_v9  ;;  %v4729_v51 = vld [vmem:[%s5271_s26 + $0x154] sm:$0xf0] }
 0x60b   : > { %v2012_v46 = vmul.f32 %v4840_v30, %v2011_v41  ;;  %v4323_v41 = vld [vmem:[%s5271_s26 + $0xb0] sm:$0xf] }
 0x60c   : > { %v4324_v5 = vor.u32 %v4709_v42, %v4323_v41  ;;  %v4743_v42 = vld [vmem:[%s5271_s26 + $0x1c4] sm:$0xf0] }
 0x60d   : > { %v2016_v47 = vsel %vm2015_vm13, %v4840_v30, %v2012_v46  ;;  %v4331_v30 = vld [vmem:[%s5271_s26 + $0xc0] sm:$0xf]  ;;  %v4243_v46 = vld [vmem:[%s5271_s26 + $0x10] sm:$0xf] }
 0x60e   : > { %v2019_v50 = vmul.f32 %v2016_v47, %v5770_v11  ;;  %v2020_v6 = vmul.f32 %v2016_v47, %v5773_v14  ;;  %v4291_v11 = vld [vmem:[%s5271_s26 + $0x70] sm:$0xf]  ;;  %v4701_v14 = vld [vmem:[%s5271_s26 + $0x74] sm:$0xf0]  ;;  %v4332_v32 = vor.u32 %v4711_v31, %v4331_v30  ;;  %v2109_v30 = vperm.slane %v5938_v7, 2 }
 0x60f   : > { %v4292_v59 = vor.u32 %v4701_v14, %v4291_v11  ;;  %v4689_v47 = vld [vmem:[%s5271_s26 + $0x14] sm:$0xf0]  ;;  %v2108_v11 = vperm.slane %v5938_v7, 1 }
 0x610   : > { %v2028_v52 = vmul.f32 %v2022_v44, %v2019_v50  ;;  %v2029_v53 = vmul.f32 %v2023_v45, %v2020_v6  ;;  %v4749_v44 = vld [vmem:[%s5271_s26 + $0x1f4] sm:$0xf0]  ;;  %v4244_v6 = vor.u32 %v4689_v47, %v4243_v46  ;;  %v4379_v46 = vld [vmem:[%s5271_s26 + $0x120] sm:$0xf] }
 0x611   : > { %v4484_v45 = vor.u32 %v4749_v44, %v4483_v43  ;;  %v4716_v43 = vld [vmem:[%s5271_s26 + $0xf4] sm:$0xf] }
 0x612   : > { %v2037_v2 = vadd.f32 %v2031_v48, %v2028_v52  ;;  %v2038_v57 = vadd.f32 %v2032_v49, %v2029_v53  ;;  %v4403_v48 = vld [vmem:[%s5271_s26 + $0x150] sm:$0xf]  ;;  %v4315_v53 = vld [vmem:[%s5271_s26 + $0xa0] sm:$0xf] }
 0x613   : > { %v4404_v52 = vor.u32 %v4729_v51, %v4403_v48 }
 0x614   : > { %v2039_v55 = vpack.c.bf16 %v2037_v2, %v2035_v54  ;;  %v2040_v58 = vpack.c.bf16 %v2038_v57, %v2036_v56  ;;  %v4707_v54 = vld [vmem:[%s5271_s26 + $0xa4] sm:$0xf0]  ;;  %v4475_v2 = vld [vmem:[%s5271_s26 + $0x1e0] sm:$0xf] }
 0x615   : > { %v4316_v56 = vor.u32 %v4707_v54, %v4315_v53  ;;  %v4747_v57 = vld [vmem:[%s5271_s26 + $0x1e4] sm:$0xf0]  ;;  %v4277_v53 = vld [vmem:[%s5271_s26 + $0x58] sm:$0xf0]  ;;  %v4451_v54 = vld [vmem:[%s5271_s26 + $0x1b0] sm:$0xf] }
 0x616   : > { %2443 = vmatmul.bf16.vlgmr.msrb.gmra.mxu0 %v2039_v55  ;;  %2457 = vmatmul.bf16.vlgmr.msrb.gmra.mxu1 %v2040_v58 }
 0x617   : > { %2471 = vmatmul.bf16.vlgmr.msrb.gmra.mxu2 %v2039_v55  ;;  %2485 = vmatmul.bf16.vlgmr.msrb.gmra.mxu3 %v2040_v58 }
 0x618   : > { %3109 = vmatpush.bf16.msrb.mxu0 %v4292_v59  ;;  %3123 = vmatpush.bf16.msrb.mxu1 %v4356_v1  ;;  %v4235_v59 = vld [vmem:[%s5271_s26] sm:$0xf] }
 0x619   : > { %3137 = vmatpush.bf16.msrb.mxu2 %v4420_v29  ;;  %3151 = vmatpush.bf16.msrb.mxu3 %v4484_v45  ;;  %v4236_v61 = vor.u32 %v4687_v60, %v4235_v59  ;;  %v4357_v45 = vld [vmem:[%s5271_s26 + $0xf8] sm:$0xf0]  ;;  %v4714_v59 = vld [vmem:[%s5271_s26 + $0xe4] sm:$0xf] }
 0x61a   : > { %v4360_v48 = vor.u32 %v4716_v43, %v4357_v45 }
 0x61c   : > { %3110 = vmatpush.bf16.msrb.mxu0 %v4284_v62  ;;  %3124 = vmatpush.bf16.msrb.mxu1 %v4348_v13  ;;  %v4395_v62 = vld [vmem:[%s5271_s26 + $0x140] sm:$0xf] }
 0x61d   : > { %3138 = vmatpush.bf16.msrb.mxu2 %v4412_v37  ;;  %v4459_v37 = vld [vmem:[%s5271_s26 + $0x1c0] sm:$0xf] }
 0x61e   : > { %v4460_v44 = vor.u32 %v4743_v42, %v4459_v37 }
 0x620   : > { %3111 = vmatpush.bf16.msrb.mxu0 %v4276_v26  ;;  %3125 = vmatpush.bf16.msrb.mxu1 %v4340_v19  ;;  %v4396_v26 = vor.u32 %v4727_v63, %v4395_v62  ;;  %v4745_v19 = vld [vmem:[%s5271_s26 + $0x1d4] sm:$0xf0]  ;;  %v4349_v63 = vld [vmem:[%s5271_s26 + $0xe8] sm:$0xf0] }
 0x621   : > { %3139 = vmatpush.bf16.msrb.mxu2 %v4404_v52  ;;  %v4468_v4 = vor.u32 %v4745_v19, %v4467_v18  ;;  %v4712_v19 = vld [vmem:[%s5271_s26 + $0xd4] sm:$0xf] }
 0x624   : > { %3112 = vmatpush.bf16.msrb.mxu0 %v4268_v16  ;;  %3126 = vmatpush.bf16.msrb.mxu1 %v4332_v32  ;;  %v4296_v16 = vor.u32 %v4700_v0, %v4293_v12  ;;  %v4698_v32 = vld [vmem:[%s5271_s26 + $0x64] sm:$0xf]  ;;  %v4371_v0 = vld [vmem:[%s5271_s26 + $0x110] sm:$0xf]  ;;  %v4352_v12 = vor.u32 %v4714_v59, %v4349_v63 }
 0x625   : > { %3140 = vmatpush.bf16.msrb.mxu2 %v4396_v26  ;;  %v4288_v34 = vor.u32 %v4698_v32, %v4285_v33  ;;  %v4719_v32 = vld [vmem:[%s5271_s26 + $0x104] sm:$0xf0]  ;;  %v4692_v33 = vld [vmem:[%s5271_s26 + $0x34] sm:$0xf]  ;;  %v4730_v59 = vld [vmem:[%s5271_s26 + $0x164] sm:$0xf] }
 0x626   : > { %2499 = vmatmul.bf16.vlgmr.msra.gmra.mxu0 %v2039_v55  ;;  %2513 = vmatmul.bf16.vlgmr.msra.gmra.mxu1 %v2040_v58 }
 0x627   : > { %2527 = vmatmul.bf16.vlgmr.msra.gmra.mxu2 %v2039_v55  ;;  %2541 = vmatmul.bf16.vlgmr.msra.gmra.mxu3 %v2040_v58  ;;  %v4476_v58 = vor.u32 %v4747_v57, %v4475_v2 }
 0x628   : > { %3113 = vmatpush.bf16.msrb.mxu0 %v4260_v23  ;;  %3127 = vmatpush.bf16.msrb.mxu1 %v4324_v5  ;;  %v4387_v23 = vld [vmem:[%s5271_s26 + $0x130] sm:$0xf] }
 0x629   : > { %3152 = vmatpush.bf16.msrb.mxu3 %v4476_v58  ;;  %v4388_v31 = vor.u32 %v4725_v24, %v4387_v23  ;;  %v4363_v24 = vld [vmem:[%s5271_s26 + $0x100] sm:$0xf] }
 0x62b   : > { %3141 = vmatpush.bf16.msrb.mxu2 %v4388_v31 }
 0x62c   : > { %3114 = vmatpush.bf16.msrb.mxu0 %v4252_v35  ;;  %3128 = vmatpush.bf16.msrb.mxu1 %v4316_v56  ;;  %v4299_v35 = vld [vmem:[%s5271_s26 + $0x80] sm:$0xf] }
 0x62d   : > { %3153 = vmatpush.bf16.msrb.mxu3 %v4468_v4  ;;  %v4300_v41 = vor.u32 %v4703_v36, %v4299_v35 }
 0x630   : > { %3115 = vmatpush.bf16.msrb.mxu0 %v4244_v6  ;;  %3129 = vmatpush.bf16.msrb.mxu1 %v4308_v22 }
 0x631   : > { %3154 = vmatpush.bf16.msrb.mxu3 %v4460_v44 }
 0x634   : > { %3116 = vmatpush.bf16.msrb.mxu0 %v4236_v61  ;;  %3130 = vmatpush.bf16.msrb.mxu1 %v4300_v41  ;;  %v4364_v41 = vor.u32 %v4719_v32, %v4363_v24 }
 0x638   : > { %3165 = vmatpush.bf16.msra.mxu0 %v4296_v16  ;;  %3179 = vmatpush.bf16.msra.mxu1 %v4360_v48  ;;  %v2110_v16 = vperm.slane %v5938_v7, 3 }
 0x63c   : > { %3166 = vmatpush.bf16.msra.mxu0 %v4288_v34  ;;  %3180 = vmatpush.bf16.msra.mxu1 %v4352_v12  ;;  %v4261_v34 = vld [vmem:[%s5271_s26 + $0x38] sm:$0xf0] }
 0x63d   : > { %v4264_v45 = vor.u32 %v4692_v33, %v4261_v34 }
 0x693   : > { %v2444_v49 = vpop.f32.mrf.mxu0  ;;  %v2458_v50 = vpop.f32.mrf.mxu1 }
 0x694   : > { %v2445_v9 = vadd.f32 %v2444_v49, %v2107_v40  ;;  %v4723_v49 = vld [vmem:[%s5271_s26 + $0x124] sm:$0xf0] }
 0x695   : > { %v4380_v52 = vor.u32 %v4723_v49, %v4379_v46  ;;  %v4421_v49 = vld [vmem:[%s5271_s26 + $0x178] sm:$0xf0] }
 0x696   : > { %v5957_v55 = vadd.f32 %v2458_v50, %v2445_v9  ;;  %v4696_v50 = vld [vmem:[%s5271_s26 + $0x54] sm:$0xf] }
 0x697   : > { %v4280_v58 = vor.u32 %v4696_v50, %v4277_v53  ;;  %3142 = vmatpush.bf16.msrb.mxu2 %v4380_v52  ;;  %v4435_v50 = vld [vmem:[%s5271_s26 + $0x190] sm:$0xf]  ;;  %v4710_v52 = vld [vmem:[%s5271_s26 + $0xc4] sm:$0xf]  ;;  %v4333_v53 = vld [vmem:[%s5271_s26 + $0xc8] sm:$0xf0] }
 0x698   : > { %v4225_v14 = vmul.f32 -1.702, %v5957_v55 }
 0x699   : > { %3167 = vmatpush.bf16.msra.mxu0 %v4280_v58 }
 0x69a   : > { %v2563_v1 = vmul.f32 1.442695, %v4225_v14  ;;  %v2472_v3 = vpop.f32.mrf.mxu2  ;;  %v2486_v10 = vpop.f32.mrf.mxu3  ;;  %v4741_v14 = vld [vmem:[%s5271_s26 + $0x1b4] sm:$0xf0] }
 0x69b   : > { %v2473_v13 = vadd.f32 %v2472_v3, %v2108_v11  ;;  %v2446_v15 = vpop.f32.mrf.mxu0  ;;  %v2460_v20 = vpop.f32.mrf.mxu1  ;;  %v4452_v62 = vor.u32 %v4741_v14, %v4451_v54  ;;  %v4694_v3 = vld [vmem:[%s5271_s26 + $0x44] sm:$0xf] }
 0x69c   : > { %4841 = vpow2.f32 %v2563_v1  ;;  %v2447_v21 = vadd.f32 %v2446_v15, %v2107_v40  ;;  %v4721_v1 = vld [vmem:[%s5271_s26 + $0x114] sm:$0xf0]  ;;  %v4443_v15 = vld [vmem:[%s5271_s26 + $0x1a0] sm:$0xf] }
 0x69d   : > { %v5975_v29 = vadd.f32 %v2486_v10, %v2473_v13  ;;  %3155 = vmatpush.bf16.msrb.mxu3 %v4452_v62  ;;  %v4372_v27 = vor.u32 %v4721_v1, %v4371_v0  ;;  %v4269_v13 = vld [vmem:[%s5271_s26 + $0x48] sm:$0xf0]  ;;  %v4336_v1 = vor.u32 %v4710_v52, %v4333_v53  ;;  %v4485_v52 = vld [vmem:[%s5271_s26 + $0x1f8] sm:$0xf0] }
 0x69e   : > { %v5980_v8 = vadd.f32 %v2460_v20, %v2447_v21  ;;  %v4739_v20 = vld [vmem:[%s5271_s26 + $0x1a4] sm:$0xf0]  ;;  %v4272_v17 = vor.u32 %v4694_v3, %v4269_v13  ;;  %v4341_v21 = vld [vmem:[%s5271_s26 + $0xd8] sm:$0xf0] }
 0x69f   : > { %v4226_v40 = vmul.f32 -1.702, %v5975_v29  ;;  %v4444_v18 = vor.u32 %v4739_v20, %v4443_v15  ;;  %3143 = vmatpush.bf16.msrb.mxu2 %v4372_v27  ;;  %v4344_v23 = vor.u32 %v4712_v19, %v4341_v21 }
 0x6a0   : > { %v4229_v5 = vmul.f32 -1.702, %v5980_v8  ;;  %3168 = vmatpush.bf16.msra.mxu0 %v4272_v17 }
 0x6a1   : > { %v2565_v47 = vmul.f32 1.442695, %v4226_v40  ;;  %3156 = vmatpush.bf16.msrb.mxu3 %v4444_v18  ;;  %3181 = vmatpush.bf16.msra.mxu1 %v4344_v23 }
 0x6a2   : > { %v4842_v6 = vpop.eup %4841  ;;  %v2571_v51 = vmul.f32 1.442695, %v4229_v5  ;;  %v2474_v9 = vpop.f32.mrf.mxu2 }
 0x6a3   : > { %v5995_v2 = vadd.f32 1.0, %v4842_v6  ;;  %4843 = vpow2.f32 %v2565_v47  ;;  %v2475_v56 = vadd.f32 %v2474_v9, %v2108_v11  ;;  %v2500_v57 = vpop.f32.mrf.mxu0  ;;  %v2488_v60 = vpop.f32.mrf.mxu3  ;;  %3144 = vmatpush.bf16.msrb.mxu2 %v4364_v41  ;;  %v4732_v47 = vld [vmem:[%s5271_s26 + $0x174] sm:$0xf]  ;;  %v4737_v6 = vld [vmem:[%s5271_s26 + $0x194] sm:$0xf0] }
 0x6a4   : > { %4845 = vpow2.f32 %v2571_v51  ;;  %v2501_v61 = vadd.f32 %v2500_v57, %v2109_v30  ;;  %v2514_v11 = vpop.f32.mrf.mxu1  ;;  %3169 = vmatpush.bf16.msra.mxu0 %v4264_v45  ;;  %v4253_v57 = vld [vmem:[%s5271_s26 + $0x28] sm:$0xf0]  ;;  %v4424_v63 = vor.u32 %v4732_v47, %v4421_v49  ;;  %v4436_v0 = vor.u32 %v4737_v6, %v4435_v50  ;;  %v4735_v45 = vld [vmem:[%s5271_s26 + $0x184] sm:$0xf0]  ;;  %v4708_v50 = vld [vmem:[%s5271_s26 + $0xb4] sm:$0xf] }
 0x6a5   : > { %4847 = vrcp.f32 %v5995_v2  ;;  %v6008_v10 = vadd.f32 %v2488_v60, %v2475_v56  ;;  %v4690_v56 = vld [vmem:[%s5271_s26 + $0x24] sm:$0xf]  ;;  %v4413_v60 = vld [vmem:[%s5271_s26 + $0x168] sm:$0xf0]  ;;  %vm2592_vm14 = vweird.f32 %v5995_v2  ;;  %v2596_v3 = vand.u32 2147483647, %v5995_v2  ;;  %3182 = vmatpush.bf16.msra.mxu1 %v4336_v1 }
 0x6a6   : > { %v6010_v26 = vadd.f32 %v2514_v11, %v2501_v61  ;;  %v4256_v27 = vor.u32 %v4690_v56, %v4253_v57  ;;  %3157 = vmatpush.bf16.msrb.mxu3 %v4436_v0  ;;  %v4416_v18 = vor.u32 %v4730_v59, %v4413_v60 }
 0x6a7   : > { %v4230_v22 = vmul.f32 -1.702, %v6008_v10  ;;  %3193 = vmatpush.bf16.msra.mxu2 %v4424_v63  ;;  %vm2597_vm2 = vcmp.eq.f32.partialorder %v2596_v3, 8.507059e+37 }
 0x6a8   : > { %v4227_v4 = vmul.f32 -1.702, %v6010_v26  ;;  %3170 = vmatpush.bf16.msra.mxu0 %v4256_v27 }
 0x6a9   : > { %v4844_v31 = vpop.eup %4843  ;;  %v2573_v37 = vmul.f32 1.442695, %v4230_v22 }
 0x6aa   : > { %v4846_v35 = vpop.eup %4845  ;;  %v6024_v36 = vadd.f32 1.0, %v4844_v31  ;;  %v2528_v40 = vpop.f32.mrf.mxu2  ;;  %v2567_v5 = vmul.f32 1.442695, %v4227_v4 }
 0x6ab   : > { %v6026_v42 = vpop.eup %4847  ;;  %v6028_v43 = vadd.f32 1.0, %v4846_v35  ;;  %v2529_v44 = vadd.f32 %v2528_v40, %v2110_v16  ;;  %v2502_v48 = vpop.f32.mrf.mxu0  ;;  %3194 = vmatpush.bf16.msra.mxu2 %v4416_v18 }
 0x6ac   : > { %v2588_v46 = vmul.f32 %v6026_v42, %v5995_v2  ;;  %4849 = vrcp.f32 %v6024_v36  ;;  %v2542_v9 = vpop.f32.mrf.mxu3  ;;  %v2503_v14 = vadd.f32 %v2502_v48, %v2109_v30  ;;  %v2516_v62 = vpop.f32.mrf.mxu1  ;;  %v2598_v30 = vand.u32 2147483648, %v5995_v2 }
 0x6ad   : > { %4851 = vrcp.f32 %v6028_v43  ;;  %v6042_v54 = vadd.f32 %v2542_v9, %v2529_v44  ;;  %vm2593_vm15 = vweird.f32 %v6026_v42  ;;  %v2613_v31 = vand.u32 2147483648, %v6024_v36  ;;  %v4748_v9 = vld [vmem:[%s5271_s26 + $0x1f4] sm:$0xf] }
 0x6ae   : > { %v2589_v51 = vsub.f32 1.0, %v2588_v46  ;;  %4853 = vpow2.f32 %v2573_v37  ;;  %v6056_v12 = vadd.f32 %v2516_v62, %v2503_v14  ;;  %vm6077_vm0 = vmor %vm2592_vm14, %vm2593_vm15  ;;  %v2611_v41 = vand.u32 2147483647, %v6024_v36 }
 0x6af   : > { %4855 = vpow2.f32 %v2567_v5  ;;  %v4228_v61 = vmul.f32 -1.702, %v6042_v54  ;;  %v2656_v5 = vand.u32 2147483647, %v6028_v43  ;;  %v2658_v44 = vand.u32 2147483648, %v6028_v43 }
 0x6b0   : > { %v2590_v58 = vmul.f32 %v6026_v42, %v2589_v51  ;;  %v4231_v4 = vmul.f32 -1.702, %v6056_v12  ;;  %v2599_v46 = vor.u32 1.1754944e-38, %v2598_v30  ;;  %v6094_v48 = vor.u32 1.1754944e-38, %v2613_v31  ;;  %v4325_v51 = vld [vmem:[%s5271_s26 + $0xb8] sm:$0xf0] }
 0x6b1   : > { %v2569_v20 = vmul.f32 1.442695, %v4228_v61  ;;  %vm2652_vm3 = vweird.f32 %v6028_v43  ;;  %vm2657_vm5 = vcmp.eq.f32.partialorder %v2656_v5, 8.507059e+37  ;;  %v2659_v57 = vor.u32 1.1754944e-38, %v2658_v44  ;;  %v4317_v31 = vld [vmem:[%s5271_s26 + $0xa8] sm:$0xf0] }
 0x6b2   : > { %v6052_v11 = vpop.eup %4849  ;;  %v2530_v17 = vpop.f32.mrf.mxu2  ;;  %v2591_v21 = vadd.f32 %v6026_v42, %v2590_v58  ;;  %v2575_v35 = vmul.f32 1.442695, %v4231_v4  ;;  %vm6107_vm7 = vcmp.eq.f32.partialorder %v2611_v41, 8.507059e+37  ;;  %v4328_v0 = vor.u32 %v4708_v50, %v4325_v51  ;;  %v4746_v41 = vld [vmem:[%s5271_s26 + $0x1e4] sm:$0xf] }
 0x6b3   : > { %v6058_v13 = vpop.eup %4851  ;;  %v2603_v15 = vmul.f32 %v6052_v11, %v6024_v36  ;;  %4857 = vpow2.f32 %v2569_v20  ;;  %v2531_v37 = vadd.f32 %v2530_v17, %v2110_v16  ;;  %v4427_v16 = vld [vmem:[%s5271_s26 + $0x180] sm:$0xf]  ;;  %vm2608_vm6 = vweird.f32 %v6052_v11  ;;  %v4245_v20 = vld [vmem:[%s5271_s26 + $0x18] sm:$0xf0]  ;;  %v4728_v17 = vld [vmem:[%s5271_s26 + $0x154] sm:$0xf] }
 0x6b4   : > { %v4854_v19 = vpop.eup %4853  ;;  %v2648_v22 = vmul.f32 %v6058_v13, %v6028_v43  ;;  %v2595_v7 = vsel %vm6077_vm0, %v6026_v42, %v2591_v21  ;;  %vm2653_vm1 = vweird.f32 %v6058_v13  ;;  %v2544_v49 = vpop.f32.mrf.mxu3  ;;  %v4428_v58 = vor.u32 %v4735_v45, %v4427_v16  ;;  %3183 = vmatpush.bf16.msra.mxu1 %v4328_v0  ;;  %v4477_v5 = vld [vmem:[%s5271_s26 + $0x1e8] sm:$0xf0]  ;;  %v4726_v16 = vld [vmem:[%s5271_s26 + $0x144] sm:$0xf]  ;;  %v4309_v51 = vld [vmem:[%s5271_s26 + $0x98] sm:$0xf0] }
 0x6b5   : > { %v4856_v23 = vpop.eup %4855  ;;  %v2604_v24 = vsub.f32 1.0, %v2603_v15  ;;  %v6069_v32 = vadd.f32 1.0, %v4854_v19  ;;  %v6099_v6 = vadd.f32 %v2544_v49, %v2531_v37  ;;  %v2600_v56 = vsel %vm2597_vm2, %v2599_v46, %v2595_v7  ;;  %vm2654_vm4 = vmor %vm2652_vm3, %vm2653_vm1  ;;  %v4688_v15 = vld [vmem:[%s5271_s26 + $0x14] sm:$0xf]  ;;  %v4397_v45 = vld [vmem:[%s5271_s26 + $0x148] sm:$0xf0] }
 0x6b6   : > { %v2649_v33 = vsub.f32 1.0, %v2648_v22  ;;  %v6071_v34 = vadd.f32 1.0, %v4856_v23  ;;  %3158 = vmatpush.bf16.msrb.mxu3 %v4428_v58  ;;  %v4488_v1 = vor.u32 %v4748_v9, %v4485_v52  ;;  %v2707_v27 = vmul.f32 %v2600_v56, %v5957_v55  ;;  %v4405_v55 = vld [vmem:[%s5271_s26 + $0x158] sm:$0xf0]  ;;  %v4744_v56 = vld [vmem:[%s5271_s26 + $0x1d4] sm:$0xf] }
 0x6b7   : > { %4859 = vrcp.f32 %v6069_v32  ;;  %v2605_v47 = vmul.f32 %v6052_v11, %v2604_v24  ;;  %v4232_v60 = vmul.f32 -1.702, %v6099_v6  ;;  %vm2607_vm8 = vweird.f32 %v6024_v36  ;;  %v4702_v0 = vld [vmem:[%s5271_s26 + $0x84] sm:$0xf]  ;;  %v4381_v22 = vld [vmem:[%s5271_s26 + $0x128] sm:$0xf0] }
 0x6b8   : > { %v2650_v2 = vmul.f32 %v6058_v13, %v2649_v33  ;;  %4861 = vrcp.f32 %v6071_v34  ;;  %v2671_v18 = vand.u32 2147483647, %v6069_v32  ;;  %vm6136_vm9 = vmor %vm2607_vm8, %vm2608_vm6  ;;  %v2673_v23 = vand.u32 2147483648, %v6069_v32 }
 0x6b9   : > { %4863 = vpow2.f32 %v2575_v35  ;;  %v4858_v53 = vpop.eup %4857  ;;  %v2606_v62 = vadd.f32 %v6052_v11, %v2605_v47  ;;  %v2577_v24 = vmul.f32 1.442695, %v4232_v60  ;;  %v4248_v40 = vor.u32 %v4688_v15, %v4245_v20  ;;  %v4389_v60 = vld [vmem:[%s5271_s26 + $0x138] sm:$0xf0]  ;;  %v4742_v15 = vld [vmem:[%s5271_s26 + $0x1c4] sm:$0xf] }
 0x6ba   : > { %v2651_v42 = vadd.f32 %v6058_v13, %v2650_v2  ;;  %v6112_v59 = vadd.f32 1.0, %v4858_v53  ;;  %3207 = vmatpush.bf16.msra.mxu3 %v4488_v1  ;;  %v4408_v7 = vor.u32 %v4728_v17, %v4405_v55  ;;  %v4686_v2 = vld [vmem:[%s5271_s26 + $0x4] sm:$0xf]  ;;  %vm2667_vm11 = vweird.f32 %v6069_v32  ;;  %v4301_v1 = vld [vmem:[%s5271_s26 + $0x88] sm:$0xf0] }
 0x6bb   : > { %v2610_v33 = vsel %vm6136_vm9, %v6052_v11, %v2606_v62  ;;  %3171 = vmatpush.bf16.msra.mxu0 %v4248_v40  ;;  %v4237_v11 = vld [vmem:[%s5271_s26 + $0x8] sm:$0xf0]  ;;  %v4480_v50 = vor.u32 %v4746_v41, %v4477_v5  ;;  %v2674_v52 = vor.u32 1.1754944e-38, %v2673_v23  ;;  %vm2672_vm13 = vcmp.eq.f32.partialorder %v2671_v18, 8.507059e+37  ;;  %v4720_v5 = vld [vmem:[%s5271_s26 + $0x114] sm:$0xf] }
 0x6bc   : > { %v2655_v43 = vsel %vm2654_vm4, %v6058_v13, %v2651_v42  ;;  %4865 = vrcp.f32 %v6112_v59  ;;  %3195 = vmatpush.bf16.msra.mxu2 %v4408_v7  ;;  %v4704_v42 = vld [vmem:[%s5271_s26 + $0x94] sm:$0xf]  ;;  %v2615_v9 = vsel %vm6107_vm7, %v6094_v48, %v2610_v33  ;;  %v4240_v48 = vor.u32 %v4686_v2, %v4237_v11  ;;  %v4461_v20 = vld [vmem:[%s5271_s26 + $0x1c8] sm:$0xf0]  ;;  %v4373_v11 = vld [vmem:[%s5271_s26 + $0x118] sm:$0xf0] }
 0x6bd   : > { %v6115_v61 = vpop.eup %4859  ;;  %v2660_v63 = vsel %vm2657_vm5, %v2659_v57, %v2655_v43  ;;  %4867 = vpow2.f32 %v2577_v24  ;;  %v4469_v57 = vld [vmem:[%s5271_s26 + $0x1d8] sm:$0xf0]  ;;  %v4400_v14 = vor.u32 %v4726_v16, %v4397_v45  ;;  %v4724_v43 = vld [vmem:[%s5271_s26 + $0x134] sm:$0xf]  ;;  %vm2622_vm15 = vweird.f32 %v6071_v34 }
 0x6be   : > { %v6118_v3 = vpop.eup %4861  ;;  %v2711_v13 = vmul.f32 %v2660_v63, %v5980_v8  ;;  %v2663_v30 = vmul.f32 %v6115_v61, %v6069_v32  ;;  %v4706_v8 = vld [vmem:[%s5271_s26 + $0xa4] sm:$0xf]  ;;  %vm2668_vm10 = vweird.f32 %v6115_v61  ;;  %3208 = vmatpush.bf16.msra.mxu3 %v4480_v50  ;;  %v4312_v63 = vor.u32 %v4704_v42, %v4309_v51  ;;  %v4740_v24 = vld [vmem:[%s5271_s26 + $0x1b4] sm:$0xf]  ;;  %v4445_v42 = vld [vmem:[%s5271_s26 + $0x1a8] sm:$0xf0] }
 0x6bf   : > { %v2618_v19 = vmul.f32 %v6118_v3, %v6071_v34  ;;  %v4864_v21 = vpop.eup %4863  ;;  %v4320_v49 = vor.u32 %v4706_v8, %v4317_v31  ;;  %vm2669_vm12 = vmor %vm2667_vm11, %vm2668_vm10  ;;  %3172 = vmatpush.bf16.msra.mxu0 %v4240_v48  ;;  %v4392_v8 = vor.u32 %v4724_v43, %v4389_v60  ;;  %vm2623_vm14 = vweird.f32 %v6118_v3  ;;  %v4453_v31 = vld [vmem:[%s5271_s26 + $0x1b8] sm:$0xf0]  ;;  %v4738_v50 = vld [vmem:[%s5271_s26 + $0x1a4] sm:$0xf] }
 0x6c0   : > { %v6140_v4 = vpack.c.bf16 %v2711_v13, %v2707_v27  ;;  %v2664_v36 = vsub.f32 1.0, %v2663_v30  ;;  %v6147_v37 = vadd.f32 1.0, %v4864_v21  ;;  %v2708_v13 = vmul.f32 %v2615_v9, %v5975_v29  ;;  %3196 = vmatpush.bf16.msra.mxu2 %v4400_v14  ;;  %v4722_v21 = vld [vmem:[%s5271_s26 + $0x124] sm:$0xf]  ;;  %vm6203_vm0 = vmor %vm2622_vm15, %vm2623_vm14  ;;  %v4365_v48 = vld [vmem:[%s5271_s26 + $0x108] sm:$0xf0] }
 0x6c1   : > { %v2619_v35 = vsub.f32 1.0, %v2618_v19  ;;  %3184 = vmatpush.bf16.msra.mxu1 %v4320_v49  ;;  %v4472_v30 = vor.u32 %v4744_v56, %v4469_v57  ;;  %v2628_v23 = vand.u32 2147483648, %v6071_v34  ;;  %v2626_v33 = vand.u32 2147483647, %v6071_v34  ;;  %v4736_v60 = vld [vmem:[%s5271_s26 + $0x194] sm:$0xf] }
 0x6c2   : > { %v2665_v44 = vmul.f32 %v6115_v61, %v2664_v36  ;;  %3117 = vmatmul.bf16.vlgmr.msrb.gmra.mxu0 %v6140_v4  ;;  %4869 = vrcp.f32 %v6147_v37  ;;  %v6159_v46 = vpop.eup %4865  ;;  %v4464_v40 = vor.u32 %v4742_v15, %v4461_v20  ;;  %v4384_v41 = vor.u32 %v4722_v21, %v4381_v22 }
 0x6c3   : > { %v2620_v53 = vmul.f32 %v6118_v3, %v2619_v35  ;;  %v2633_v32 = vmul.f32 %v6159_v46, %v6112_v59  ;;  %v4868_v27 = vpop.eup %4867  ;;  %3209 = vmatpush.bf16.msra.mxu3 %v4472_v30  ;;  %v2686_v2 = vand.u32 2147483647, %v6147_v37  ;;  %v2688_v34 = vand.u32 2147483648, %v6147_v37 }
 0x6c4   : > { %v2666_v47 = vadd.f32 %v6115_v61, %v2665_v44  ;;  %v6185_v55 = vadd.f32 1.0, %v4868_v27  ;;  %3197 = vmatpush.bf16.msra.mxu2 %v4392_v8  ;;  %v2629_v49 = vor.u32 1.1754944e-38, %v2628_v23  ;;  %vm2627_vm2 = vcmp.eq.f32.partialorder %v2626_v33, 8.507059e+37 }
 0x6c5   : > { %v2621_v18 = vadd.f32 %v6118_v3, %v2620_v53  ;;  %v2634_v19 = vsub.f32 1.0, %v2633_v32  ;;  %3185 = vmatpush.bf16.msra.mxu1 %v4312_v63  ;;  %vm2682_vm3 = vweird.f32 %v6147_v37  ;;  %v4376_v9 = vor.u32 %v4720_v5, %v4373_v11 }
 0x6c6   : > { %v2670_v58 = vsel %vm2669_vm12, %v6115_v61, %v2666_v47  ;;  %4871 = vrcp.f32 %v6185_v55  ;;  %v4456_v47 = vor.u32 %v4740_v24, %v4453_v31  ;;  %vm2638_vm4 = vweird.f32 %v6159_v46  ;;  %v2783_v31 = vld [vmem:[%s733_s30] sm:$0x3] }
 0x6c7   : > { %v2675_v62 = vsel %vm2672_vm13, %v2674_v52, %v2670_v58  ;;  %v2635_v7 = vmul.f32 %v6159_v46, %v2634_v19  ;;  %v2625_v16 = vsel %vm6203_vm0, %v6118_v3, %v2621_v18  ;;  %3210 = vmatpush.bf16.msra.mxu3 %v4464_v40  ;;  %v2689_v32 = vor.u32 1.1754944e-38, %v2688_v34  ;;  %v4718_v58 = vld [vmem:[%s5271_s26 + $0x104] sm:$0xf]  ;;  %v4429_v19 = vld [vmem:[%s5271_s26 + $0x188] sm:$0xf0] }
 0x6c8   : > { %v2712_v61 = vmul.f32 %v2675_v62, %v6008_v10  ;;  %v4870_v17 = vpop.eup %4869  ;;  %v4304_v10 = vor.u32 %v4702_v0, %v4301_v1  ;;  %3198 = vmatpush.bf16.msra.mxu2 %v4384_v41  ;;  %v2630_v53 = vsel %vm2627_vm2, %v2629_v49, %v2625_v16  ;;  %vm2687_vm6 = vcmp.eq.f32.partialorder %v2686_v2, 8.507059e+37  ;;  %v4437_v62 = vld [vmem:[%s5271_s26 + $0x198] sm:$0xf0] }
 0x6c9   : > { %v2678_v29 = vmul.f32 %v4870_v17, %v6147_v37  ;;  %vm2683_vm1 = vweird.f32 %v4870_v17  ;;  %v2636_v3 = vadd.f32 %v6159_v46, %v2635_v7  ;;  %v4448_v37 = vor.u32 %v4738_v50, %v4445_v42 }
 0x6ca   : > { %v6189_v36 = vpack.c.bf16 %v2712_v61, %v2708_v13  ;;  %3186 = vmatpush.bf16.msra.mxu1 %v4304_v10  ;;  %vm2684_vm5 = vmor %vm2682_vm3, %vm2683_vm1  ;;  %vm2637_vm7 = vweird.f32 %v6112_v59  ;;  %v2643_v14 = vand.u32 2147483648, %v6112_v59  ;;  %v2709_v63 = vmul.f32 %v2630_v53, %v6010_v26 }
 0x6cb   : > { %v2679_v35 = vsub.f32 1.0, %v2678_v29  ;;  %3211 = vmatpush.bf16.msra.mxu3 %v4456_v47  ;;  %vm6231_vm8 = vmor %vm2637_vm7, %vm2638_vm4  ;;  %v2701_v26 = vand.u32 2147483647, %v6185_v55  ;;  %v2703_v61 = vand.u32 2147483648, %v6185_v55  ;;  %v4368_v30 = vor.u32 %v4718_v58, %v4365_v48 }
 0x6cc   : > { %3131 = vmatmul.bf16.vlgmr.msrb.gmra.mxu1 %v6189_v36  ;;  %v4872_v52 = vpop.eup %4871  ;;  %3199 = vmatpush.bf16.msra.mxu2 %v4376_v9  ;;  %v2640_v13 = vsel %vm6231_vm8, %v6159_v46, %v2636_v3  ;;  %v2644_v18 = vor.u32 1.1754944e-38, %v2643_v14  ;;  %vm2697_vm11 = vweird.f32 %v6185_v55  ;;  %v2786_v47 = vperm.slane %v2783_v31, 1 }
 0x6cd   : > { %v2680_v45 = vmul.f32 %v4870_v17, %v2679_v35  ;;  %v2693_v57 = vmul.f32 %v4872_v52, %v6185_v55  ;;  %vm2698_vm9 = vweird.f32 %v4872_v52  ;;  %v2704_v46 = vor.u32 1.1754944e-38, %v2703_v61 }
 0x6ce   : > { %vm2699_vm12 = vmor %vm2697_vm11, %vm2698_vm9  ;;  %vm2702_vm13 = vcmp.eq.f32.partialorder %v2701_v26, 8.507059e+37  ;;  %v2785_v35 = vperm.slane %v2783_v31, 0 }
 0x6cf   : > { %v2681_v51 = vadd.f32 %v4870_v17, %v2680_v45  ;;  %v2694_v27 = vsub.f32 1.0, %v2693_v57  ;;  %3212 = vmatpush.bf16.msra.mxu3 %v4448_v37 }
 0x6d0   : > { %3200 = vmatpush.bf16.msra.mxu2 %v4368_v30 }
 0x6d1   : > { %v2685_v56 = vsel %vm2684_vm5, %v4870_v17, %v2681_v51  ;;  %v2695_v20 = vmul.f32 %v4872_v52, %v2694_v27  ;;  %v4440_v17 = vor.u32 %v4736_v60, %v4437_v62 }
 0x6d2   : > { %3173 = vmatmul.bf16.vlgmr.msra.gmra.mxu0 %v6140_v4  ;;  %v2690_v43 = vsel %vm2687_vm6, %v2689_v32, %v2685_v56  ;;  %v2641_v4 = vand.u32 2147483647, %v6112_v59  ;;  %v4734_v59 = vld [vmem:[%s5271_s26 + $0x184] sm:$0xf] }
 0x6d3   : > { %v2713_v1 = vmul.f32 %v2690_v43, %v6056_v12  ;;  %v2696_v12 = vadd.f32 %v4872_v52, %v2695_v20  ;;  %3213 = vmatpush.bf16.msra.mxu3 %v4440_v17  ;;  %v4432_v22 = vor.u32 %v4734_v59, %v4429_v19 }
 0x6d4   : > { %vm2642_vm10 = vcmp.eq.f32.partialorder %v2641_v4, 8.507059e+37 }
 0x6d5   : > { %v2717_v15 = vpack.c.bf16 %v2713_v1, %v2709_v63  ;;  %v2645_v8 = vsel %vm2642_vm10, %v2644_v18, %v2640_v13  ;;  %v2700_v21 = vsel %vm2699_vm12, %v4872_v52, %v2696_v12 }
 0x6d6   : > { %v2705_v29 = vsel %vm2702_vm13, %v2704_v46, %v2700_v21  ;;  %v2710_v10 = vmul.f32 %v2645_v8, %v6042_v54 }
 0x6d7   : > { %3145 = vmatmul.bf16.vlgmr.msrb.gmra.mxu2 %v2717_v15  ;;  %v2714_v23 = vmul.f32 %v2705_v29, %v6099_v6  ;;  %3214 = vmatpush.bf16.msra.mxu3 %v4432_v22 }
 0x6d9   : > { %v2718_v24 = vpack.c.bf16 %v2714_v23, %v2710_v10 }
 0x6db   : > { %3159 = vmatmul.bf16.vlgmr.msrb.gmra.mxu3 %v2718_v24 }
 0x6dc   : > { %3187 = vmatmul.bf16.vlgmr.msra.gmra.mxu1 %v6189_v36 }
 0x6e7   : > { %3201 = vmatmul.bf16.vlgmr.msra.gmra.mxu2 %v2717_v15 }
 0x6eb   : > { %3215 = vmatmul.bf16.vlgmr.msra.gmra.mxu3 %v2718_v24 }
 0x73f   : > { %v3118_v55 = vpop.f32.mrf.mxu0 }
 0x740   : > { %v3119_v41 = vadd.f32 %v3118_v55, %v2785_v35 }
 0x747   : > { %v3120_v54 = vpop.f32.mrf.mxu0 }
 0x748   : > { %v3121_v34 = vadd.f32 %v3120_v54, %v2785_v35 }
 0x749   : > { %v3132_v33 = vpop.f32.mrf.mxu1 }
 0x74a   : > { %v3133_v5 = vadd.f32 %v3132_v33, %v3119_v41 }
 0x74f   : > { %v3174_v45 = vpop.f32.mrf.mxu0 }
 0x750   : > { %v3175_v52 = vadd.f32 %v3174_v45, %v2786_v47 }
 0x751   : > { %v3134_v6 = vpop.f32.mrf.mxu1 }
 0x752   : > { %v3135_v16 = vadd.f32 %v3134_v6, %v3121_v34 }
 0x757   : > { %v3176_v32 = vpop.f32.mrf.mxu0 }
 0x758   : > { %v3177_v58 = vadd.f32 %v3176_v32, %v2786_v47 }
 0x759   : > { %v3188_v50 = vpop.f32.mrf.mxu1 }
 0x75a   : > { %v3146_v40 = vpop.f32.mrf.mxu2  ;;  %v3189_v3 = vadd.f32 %v3188_v50, %v3175_v52 }
 0x75b   : > { %v3147_v44 = vadd.f32 %v3146_v40, %v3133_v5 }
 0x75e   : > { %v3160_v36 = vpop.f32.mrf.mxu3 }
 0x75f   : > { %v3161_v2 = vadd.f32 %v3160_v36, %v3147_v44 }
 0x761   : > { %v3221_v11 = vadd.f32 %v3161_v2, %v5723_v25  ;;  %v3190_v37 = vpop.f32.mrf.mxu1 }
 0x762   : > { %v3148_v7 = vpop.f32.mrf.mxu2  ;;  %v3191_v43 = vadd.f32 %v3190_v37, %v3177_v58 }
 0x763   : > { %3225 = vst [vmem:[%s6337_s11] sm:$0xff] %v3221_v11  ;;  %v3149_v49 = vadd.f32 %v3148_v7, %v3135_v16 }
 0x766   : > { %v3162_v42 = vpop.f32.mrf.mxu3 }
 0x767   : > { %v3163_v51 = vadd.f32 %v3162_v42, %v3149_v49 }
 0x769   : > { %v3223_v53 = vadd.f32 %v3163_v51, %v5735_v38 }
 0x76a   : > { %v3202_v9 = vpop.f32.mrf.mxu2 }
 0x76b   : > { %3227 = vst [vmem:[%s6337_s11 + $0x10] sm:$0xff] %v3223_v53  ;;  %v3203_v25 = vadd.f32 %v3202_v9, %v3189_v3 }
 0x76e   : > { %v3216_v56 = vpop.f32.mrf.mxu3 }
 0x76f   : > { %v3217_v57 = vadd.f32 %v3216_v56, %v3203_v25 }
 0x771   : > { %v3222_v48 = vadd.f32 %v3217_v57, %v5725_v28 }
 0x772   : > { %v3204_v14 = vpop.f32.mrf.mxu2 }
 0x773   : > { %3226 = vst [vmem:[%s6337_s11 + $0x8] sm:$0xff] %v3222_v48  ;;  %v3205_v38 = vadd.f32 %v3204_v14, %v3191_v43 }
 0x776   : > { %v3218_v60 = vpop.f32.mrf.mxu3 }
 0x777   : > { %v3219_v62 = vadd.f32 %v3218_v60, %v3205_v38 }
 0x779   : > { %v3224_v63 = vadd.f32 %v3219_v62, %v5737_v39 }
 0x77b   : > { %3228 = vst [vmem:[%s6337_s11 + $0x18] sm:$0xff] %v3224_v63 }
 0x77c PF: > { %s6354_s16 = sld [smem:[#allocation14_spill]] }
 0x77d   : > { %s6355_s29 = sld [smem:[#allocation12_spill]] }
 0x77e   : > { %s6356_s30 = sld [smem:[#allocation13_spill]] }
 0x77f   : > { %s6357_s15 = sld [smem:[#allocation15_spill]] }
 0x782   : > { %p30_p10 = scmp.ge.s32.totalorder %s6354_s16, 4  }
 0x784   :  { %32 = sbr.rel (!%p30_p10) target bundleno = 19 (0x13), region = 177 }
 0x789   :  { %3240 = vsyncpa [#allocation3], 1 }
 0x78a   :  { %3242 = vsyncpa [#allocation3 + $0x1], 1 }
 0x78b   :  { %3243 = vsyncpa [#allocation5], 1 }
 0x78c   :  { %3245 = vsyncpa [#allocation5 + $0x1], 1 }
 0x78d   :  { %3246 = vsyncpa [#allocation8], 1 }
 0x78e   :  { %3248 = vsyncpa [#allocation8 + $0x1], 1 }

</bundles_post_ra>
